<compile_context>
chip_gen: v5e
topology: v5e:2x2
jax: 0.10.0
libtpu: 0.0.40
codegen_flags: <defaults>
</compile_context>

<pallas_src>
import jax
import jax.numpy as jnp
from jax import lax
from jax.experimental import pallas as pl
from jax.experimental.pallas import tpu as pltpu

EMBED_DIM = 768
LATENT_DIM = 256
NHID = 256
NLAYERS = 10


# ----------------------------------------------------------------------------
# Single fused kernel: grid iterates over LSTM layers; layer 0 additionally
# runs the (collapsed) LEConv encoder and seeds the resident sequence block.
# ----------------------------------------------------------------------------
def retrend_kernel(adj_ref, emb_ref, wcat_ref, bcat_ref,
                   wih_ref, whh_ref, bias_ref, h0_ref, c0_ref,
                   y_ref, hT_ref, cT_ref, xw_s):
    l = pl.program_id(0)
    H = NHID
    Np = h0_ref.shape[1]          # padded node count (multiple of 8)
    TN = y_ref.shape[0]
    T = TN // Np                  # static

    # ---- layer 0: fused LEConv encoder for all T snapshots ----
    @pl.when(l == 0)
    def _():
        # abc = embed @ [W1 | W2 | W3] + [b1 | 0 | b3]  (one MXU pass, bf16 in / f32 acc)
        abc = (jnp.dot(emb_ref[...], wcat_ref[...],
                       preferred_element_type=jnp.float32) + bcat_ref[...])
        a = abc[:, 0:H]                        # x W1 + b1
        b2 = abc[:, H:2 * H]                   # x W2
        c = abc[:, 2 * H:3 * H]                # x W3 + b3
        A = adj_ref[...]                       # [T*Np, Np], A[t*Np+i, j] = w(j->i)
        deg = jnp.sum(A, axis=1, keepdims=True)            # incoming weight sum
        # one matmul for every snapshot (MXU row fill T*Np instead of Np)
        Ab = jnp.dot(A.astype(jnp.bfloat16), b2.astype(jnp.bfloat16),
                     preferred_element_type=jnp.float32)    # [T*Np, H]
        a_rep = jnp.concatenate([a] * T, axis=0)             # static T, 8-row aligned tiles
        c_rep = jnp.concatenate([c] * T, axis=0)
        # ReLU; nn.Dropout(0.2) is the identity in eval mode.
        y_ref[...] = jnp.maximum(deg * a_rep - Ab + c_rep, 0.0)

    # ---- per-layer LSTM (PyTorch gate order i, f, g, o) ----
    wih = wih_ref[0]      # [H, 4H] bf16
    whh = whh_ref[0]      # [H, 4H] bf16
    bias = bias_ref[0]    # [1, 4H] f32 (b_ih + b_hh folded)

    # Hoisted input-side projection: one [T*Np, H] @ [H, 4H] MXU pass per layer,
    # off the serial h->h chain. (f32 scratch; bf16/chunked storage is a v7x-only
    # follow-up for very long sequences.)
    xw_s[...] = (jnp.dot(y_ref[...].astype(jnp.bfloat16), wih,
                         preferred_element_type=jnp.float32) + bias)

    def step(t, carry):
        h, c = carry
        rows = pl.ds(pl.multiple_of(t * Np, 8), Np)   # Np padded -> always aligned
        gates = xw_s[rows, :] + jnp.dot(h.astype(jnp.bfloat16), whh,
                                        preferred_element_type=jnp.float32)
        i_g = jax.nn.sigmoid(gates[:, 0:H])
        f_g = jax.nn.sigmoid(gates[:, H:2 * H])
        g_g = jnp.tanh(gates[:, 2 * H:3 * H])
        o_g = jax.nn.sigmoid(gates[:, 3 * H:4 * H])
        c_new = f_g * c + i_g * g_g
        h_new = o_g * jnp.tanh(c_new)
        # inter-layer nn.LSTM dropout is the identity in eval mode
        y_ref[rows, :] = h_new
        return (h_new, c_new)

    # Full unroll only for short sequences; otherwise a divisor-chunk unroll so gate
    # EUP/VALU work still overlaps neighbouring MXU pushes without vreg spills.
    # TODO(synk): on v6e/v7x the serial h @ Whh chain could keep Whh MXU-stationary via
    # explicit pltpu.matmul_push_rhs / matmul_acc_lhs / matmul_pop.
    unroll = T if T <= 8 else max(d for d in (8, 4, 2, 1) if T % d == 0)
    h, c = lax.fori_loop(0, T, step, (h0_ref[0], c0_ref[0]), unroll=unroll)
    hT_ref[0] = h
    cT_ref[0] = c


def retrend_pallas(adj_flat, embed_bf16, w_cat, b_cat, wih, whh, bias, h0, c0):
    TN, Np = adj_flat.shape
    L = wih.shape[0]
    H = NHID
    return pl.pallas_call(
        retrend_kernel,
        out_shape=(
            jax.ShapeDtypeStruct((TN, H), jnp.float32),       # y (resident sequence slab)
            jax.ShapeDtypeStruct((L, Np, H), jnp.float32),    # hT
            jax.ShapeDtypeStruct((L, Np, H), jnp.float32),    # cT
        ),
        grid_spec=pltpu.PrefetchScalarGridSpec(
            num_scalar_prefetch=0,
            grid=(L,),
            in_specs=[
                pl.BlockSpec((TN, Np), lambda l: (0, 0)),                    # adjacency (fetched once)
                pl.BlockSpec((Np, EMBED_DIM), lambda l: (0, 0)),             # embedding slab (bf16)
                pl.BlockSpec((EMBED_DIM, 3 * LATENT_DIM), lambda l: (0, 0)), # [W1|W2|W3] (bf16)
                pl.BlockSpec((1, 3 * LATENT_DIM), lambda l: (0, 0)),         # [b1|0|b3]
                pl.BlockSpec((1, H, 4 * H), lambda l: (l, 0, 0)),            # W_ih (bf16)
                pl.BlockSpec((1, H, 4 * H), lambda l: (l, 0, 0)),            # W_hh (bf16)
                pl.BlockSpec((1, 1, 4 * H), lambda l: (l, 0, 0)),            # fused bias
                pl.BlockSpec((1, Np, H), lambda l: (l, 0, 0)),               # h0
                pl.BlockSpec((1, Np, H), lambda l: (l, 0, 0)),               # c0
            ],
            out_specs=(
                pl.BlockSpec((TN, H), lambda l: (0, 0)),                     # y (constant index -> resident)
                pl.BlockSpec((1, Np, H), lambda l: (l, 0, 0)),               # hT
                pl.BlockSpec((1, Np, H), lambda l: (l, 0, 0)),               # cT
            ),
            scratch_shapes=[pltpu.VMEM((TN, 4 * H), jnp.float32)],           # per-layer x @ W_ih
        ),
        compiler_params=pltpu.CompilerParams(
            dimension_semantics=("arbitrary",),        # layer recurrence is sequential
            vmem_limit_bytes=48 * 1024 * 1024),
    )(adj_flat, embed_bf16, w_cat, b_cat, wih, whh, bias, h0, c0)


# ----------------------------------------------------------------------------
# ReTrend forward (glue in plain JAX)
# ----------------------------------------------------------------------------
def retrend_forward(params, E_indices, E_weights, hidden):
    embed = params["node_embed"]            # embedding of arange(N) == the full table
    N = embed.shape[0]
    Np = ((N + 7) // 8) * 8                 # sublane-align the node/batch dimension
    T = E_indices.shape[0]

    def build_adj(e_idx, e_w):              # dense weighted adjacency, A[dst, src] += w
        src, dst = e_idx[0], e_idx[1]
        return jnp.zeros((Np, Np), jnp.float32).at[dst, src].add(e_w)

    # TODO(synk): for large graphs replace the dense O(T*N^2) adjacency with a
    #             CSR / scalar-prefetch gather encoder.
    adj_flat = jax.vmap(build_adj)(E_indices, E_weights).reshape(T * Np, Np)

    embed_bf16 = embed.astype(jnp.bfloat16)
    h0, c0 = hidden
    if Np != N:
        embed_bf16 = jnp.pad(embed_bf16, ((0, Np - N), (0, 0)))
        h0 = jnp.pad(h0, ((0, 0), (0, Np - N), (0, 0)))
        c0 = jnp.pad(c0, ((0, 0), (0, Np - N), (0, 0)))

    y2, hT, cT = retrend_pallas(adj_flat, embed_bf16, params["w_cat"], params["b_cat"],
                                params["wih"], params["whh"], params["bias"], h0, c0)

    y = y2.reshape(T, Np, NHID)[:, :N, :]
    hT = hT[:, :N, :]
    cT = cT[:, :N, :]
    # TODO(synk): NodePredictorHead definition was not provided; returning y as the prediction.
    return y, (hT, cT)


def init_params(key, num_nodes):
    ks = jax.random.split(key, 9)

    def u(k, shape, fan_in):
        bound = 1.0 / jnp.sqrt(jnp.float32(fan_in))
        return jax.random.uniform(k, shape, jnp.float32, -bound, bound)

    # LEConv(768 -> 256): lin1 (bias), lin2 (no bias), lin3 (bias).
    # Weights are pre-fused once here (not per forward) into one [768, 768] slab.
    w1 = u(ks[1], (EMBED_DIM, LATENT_DIM), EMBED_DIM)
    b1 = u(ks[2], (1, LATENT_DIM), EMBED_DIM)
    w2 = u(ks[3], (EMBED_DIM, LATENT_DIM), EMBED_DIM)
    w3 = u(ks[4], (EMBED_DIM, LATENT_DIM), EMBED_DIM)
    b3 = u(ks[5], (1, LATENT_DIM), EMBED_DIM)

    return {
        "node_embed": jax.random.normal(ks[0], (num_nodes, EMBED_DIM), jnp.float32),
        "w_cat": jnp.concatenate([w1, w2, w3], axis=1).astype(jnp.bfloat16),   # [768, 768]
        "b_cat": jnp.concatenate([b1, jnp.zeros_like(b1), b3], axis=1),        # [1, 768]
        # LSTM(256, 256, 10 layers): per layer W_ih [H,4H], W_hh [H,4H] (bf16-streamed),
        # fused bias [1,4H] (= b_ih + b_hh when importing a PyTorch checkpoint).
        "wih": u(ks[6], (NLAYERS, NHID, 4 * NHID), NHID).astype(jnp.bfloat16),
        "whh": u(ks[7], (NLAYERS, NHID, 4 * NHID), NHID).astype(jnp.bfloat16),
        "bias": u(ks[8], (NLAYERS, 1, 4 * NHID), NHID),
    }


if __name__ == "__main__":
    key = jax.random.PRNGKey(0)
    num_nodes = 8
    T = 4          # number of graph snapshots (len(E_indices))
    E = 16         # edges per snapshot

    k_params, k_idx, k_w = jax.random.split(key, 3)
    params = init_params(k_params, num_nodes)

    E_indices = jax.random.randint(k_idx, (T, 2, E), 0, num_nodes)       # [T, 2, E] (src, dst)
    E_weights = jax.random.uniform(k_w, (T, E), jnp.float32)             # [T, E]
    hidden = (jnp.zeros((NLAYERS, num_nodes, NHID), jnp.float32),
              jnp.zeros((NLAYERS, num_nodes, NHID), jnp.float32))

    fwd = jax.jit(retrend_forward)
    y, (hT, cT) = fwd(params, E_indices, E_weights, hidden)
    jax.block_until_ready((y, hT, cT))

    assert y.shape == (T, num_nodes, NHID)
    assert hT.shape == (NLAYERS, num_nodes, NHID)
    assert cT.shape == (NLAYERS, num_nodes, NHID)
    print("KERNEL_OK")
</pallas_src>

<mosaic_0001>
module attributes {stable_mosaic.version = 11 : i64} {
  func.func @retrend_kernel(%arg0: i32, %arg1: memref<32x8xf32, #tpu.memory_space<vmem>>, %arg2: memref<8x768xbf16, #tpu.memory_space<vmem>>, %arg3: memref<768x768xbf16, #tpu.memory_space<vmem>>, %arg4: memref<1x768xf32, #tpu.memory_space<vmem>>, %arg5: memref<1x256x1024xbf16, #tpu.memory_space<vmem>>, %arg6: memref<1x256x1024xbf16, #tpu.memory_space<vmem>>, %arg7: memref<1x1x1024xf32, #tpu.memory_space<vmem>>, %arg8: memref<1x8x256xf32, #tpu.memory_space<vmem>>, %arg9: memref<1x8x256xf32, #tpu.memory_space<vmem>>, %arg10: memref<32x256xf32, #tpu.memory_space<vmem>>, %arg11: memref<1x8x256xf32, #tpu.memory_space<vmem>>, %arg12: memref<1x8x256xf32, #tpu.memory_space<vmem>>, %arg13: memref<32x1024xf32, #tpu.memory_space<vmem>>) attributes {dimension_semantics = [#tpu.dimension_semantics<arbitrary>], iteration_bounds = array<i64: 10>, scalar_prefetch = 0 : i64, scratch_operands = 1 : i64, tpu.core_type = #tpu.core_type<tc>, window_params = [{pipeline_mode = #tpu.pipeline_mode<synchronous>, transform_indices = @transform_0, window_bounds = array<i64: 32, 8>}, {pipeline_mode = #tpu.pipeline_mode<synchronous>, transform_indices = @transform_1, window_bounds = array<i64: 8, 768>}, {pipeline_mode = #tpu.pipeline_mode<synchronous>, transform_indices = @transform_2, window_bounds = array<i64: 768, 768>}, {pipeline_mode = #tpu.pipeline_mode<synchronous>, transform_indices = @transform_3, window_bounds = array<i64: 1, 768>}, {transform_indices = @transform_4, window_bounds = array<i64: 1, 256, 1024>}, {transform_indices = @transform_5, window_bounds = array<i64: 1, 256, 1024>}, {transform_indices = @transform_6, window_bounds = array<i64: 1, 1, 1024>}, {transform_indices = @transform_7, window_bounds = array<i64: 1, 8, 256>}, {transform_indices = @transform_8, window_bounds = array<i64: 1, 8, 256>}, {pipeline_mode = #tpu.pipeline_mode<synchronous>, transform_indices = @transform_9, window_bounds = array<i64: 32, 256>}, {transform_indices = @transform_10, window_bounds = array<i64: 1, 8, 256>}, {transform_indices = @transform_11, window_bounds = array<i64: 1, 8, 256>}]} {
    %c0_i32 = arith.constant 0 : i32
    %0 = arith.cmpi eq, %arg0, %c0_i32 : i32
    %1 = arith.extui %0 : i1 to i32
    %c0_i32_0 = arith.constant 0 : i32
    %2 = arith.cmpi ne, %1, %c0_i32_0 : i32
    scf.if %2 {
      %c0_53 = arith.constant 0 : index
      %c0_54 = arith.constant 0 : index
      %161 = vector.load %arg2[%c0_53, %c0_54] : memref<8x768xbf16, #tpu.memory_space<vmem>>, vector<8x768xbf16>
      %c0_55 = arith.constant 0 : index
      %c0_56 = arith.constant 0 : index
      %162 = vector.load %arg3[%c0_55, %c0_56] : memref<768x768xbf16, #tpu.memory_space<vmem>>, vector<768x768xbf16>
      %cst_57 = arith.constant dense<0.000000e+00> : vector<8x768xf32>
      %163 = tpu.matmul %161, %162, %cst_57 {dimension_numbers = #tpu.dot_dimension_numbers<[1], [0], [0], [1], [0, 0, 1, 1], [], []>} : vector<8x768xbf16>, vector<768x768xbf16>, vector<8x768xf32> -> vector<8x768xf32>
      %c0_58 = arith.constant 0 : index
      %c0_59 = arith.constant 0 : index
      %164 = vector.load %arg4[%c0_58, %c0_59] : memref<1x768xf32, #tpu.memory_space<vmem>>, vector<1x768xf32>
      %165 = vector.broadcast %164 : vector<1x768xf32> to vector<8x768xf32>
      %166 = arith.addf %163, %165 : vector<8x768xf32>
      %167 = vector.extract_strided_slice %166 {offsets = [0, 0], sizes = [8, 256], strides = [1, 1]} : vector<8x768xf32> to vector<8x256xf32>
      %168 = vector.extract_strided_slice %166 {offsets = [0, 256], sizes = [8, 256], strides = [1, 1]} : vector<8x768xf32> to vector<8x256xf32>
      %169 = vector.extract_strided_slice %166 {offsets = [0, 512], sizes = [8, 256], strides = [1, 1]} : vector<8x768xf32> to vector<8x256xf32>
      %c0_60 = arith.constant 0 : index
      %c0_61 = arith.constant 0 : index
      %170 = vector.load %arg1[%c0_60, %c0_61] : memref<32x8xf32, #tpu.memory_space<vmem>>, vector<32x8xf32>
      %cst_62 = arith.constant dense<0.000000e+00> : vector<32xf32>
      %171 = vector.multi_reduction <add>, %170, %cst_62 [1] : vector<32x8xf32> to vector<32xf32>
      %172 = vector.shape_cast %171 : vector<32xf32> to vector<32x1xf32>
      %173 = arith.truncf %170 : vector<32x8xf32> to vector<32x8xbf16>
      %174 = arith.truncf %168 : vector<8x256xf32> to vector<8x256xbf16>
      %cst_63 = arith.constant dense<0.000000e+00> : vector<32x256xf32>
      %175 = tpu.matmul %173, %174, %cst_63 {dimension_numbers = #tpu.dot_dimension_numbers<[1], [0], [0], [1], [0, 0, 1, 1], [], []>} : vector<32x8xbf16>, vector<8x256xbf16>, vector<32x256xf32> -> vector<32x256xf32>
      %176 = tpu.concatenate %167, %167, %167, %167 in 0 : vector<8x256xf32>, vector<8x256xf32>, vector<8x256xf32>, vector<8x256xf32> -> vector<32x256xf32>
      %177 = tpu.concatenate %169, %169, %169, %169 in 0 : vector<8x256xf32>, vector<8x256xf32>, vector<8x256xf32>, vector<8x256xf32> -> vector<32x256xf32>
      %178 = vector.broadcast %172 : vector<32x1xf32> to vector<32x256xf32>
      %179 = arith.mulf %178, %176 : vector<32x256xf32>
      %180 = arith.subf %179, %175 : vector<32x256xf32>
      %181 = arith.addf %180, %177 : vector<32x256xf32>
      %cst_64 = arith.constant 0.000000e+00 : f32
      %182 = vector.broadcast %cst_64 : f32 to vector<32x256xf32>
      %183 = arith.maximumf %181, %182 : vector<32x256xf32>
      %c0_65 = arith.constant 0 : index
      %c0_66 = arith.constant 0 : index
      %184 = vector.load %arg10[%c0_65, %c0_66] : memref<32x256xf32, #tpu.memory_space<vmem>>, vector<32x256xf32>
      tpu.vector_store %arg10[%c0_65, %c0_66], %183 {strides = array<i32>} : memref<32x256xf32, #tpu.memory_space<vmem>>, vector<32x256xf32>,
    } else {
    }
    %c0 = arith.constant 0 : index
    %c0_1 = arith.constant 0 : index
    %c0_2 = arith.constant 0 : index
    %3 = vector.load %arg5[%c0, %c0_1, %c0_2] : memref<1x256x1024xbf16, #tpu.memory_space<vmem>>, vector<1x256x1024xbf16>
    %4 = vector.shape_cast %3 : vector<1x256x1024xbf16> to vector<256x1024xbf16>
    %c0_3 = arith.constant 0 : index
    %c0_4 = arith.constant 0 : index
    %c0_5 = arith.constant 0 : index
    %5 = vector.load %arg6[%c0_3, %c0_4, %c0_5] : memref<1x256x1024xbf16, #tpu.memory_space<vmem>>, vector<1x256x1024xbf16>
    %6 = vector.shape_cast %5 : vector<1x256x1024xbf16> to vector<256x1024xbf16>
    %c0_6 = arith.constant 0 : index
    %c0_7 = arith.constant 0 : index
    %c0_8 = arith.constant 0 : index
    %7 = vector.load %arg7[%c0_6, %c0_7, %c0_8] : memref<1x1x1024xf32, #tpu.memory_space<vmem>>, vector<1x1x1024xf32>
    %8 = vector.shape_cast %7 : vector<1x1x1024xf32> to vector<1x1024xf32>
    %c0_9 = arith.constant 0 : index
    %c0_10 = arith.constant 0 : index
    %9 = vector.load %arg10[%c0_9, %c0_10] : memref<32x256xf32, #tpu.memory_space<vmem>>, vector<32x256xf32>
    %10 = arith.truncf %9 : vector<32x256xf32> to vector<32x256xbf16>
    %cst = arith.constant dense<0.000000e+00> : vector<32x1024xf32>
    %11 = tpu.matmul %10, %4, %cst {dimension_numbers = #tpu.dot_dimension_numbers<[1], [0], [0], [1], [0, 0, 1, 1], [], []>} : vector<32x256xbf16>, vector<256x1024xbf16>, vector<32x1024xf32> -> vector<32x1024xf32>
    %12 = vector.broadcast %8 : vector<1x1024xf32> to vector<32x1024xf32>
    %13 = arith.addf %11, %12 : vector<32x1024xf32>
    %c0_11 = arith.constant 0 : index
    %c0_12 = arith.constant 0 : index
    %14 = vector.load %arg13[%c0_11, %c0_12] : memref<32x1024xf32, #tpu.memory_space<vmem>>, vector<32x1024xf32>
    tpu.vector_store %arg13[%c0_11, %c0_12], %13 {strides = array<i32>} : memref<32x1024xf32, #tpu.memory_space<vmem>>, vector<32x1024xf32>,
    %c0_13 = arith.constant 0 : index
    %c0_14 = arith.constant 0 : index
    %c0_15 = arith.constant 0 : index
    %15 = vector.load %arg8[%c0_13, %c0_14, %c0_15] : memref<1x8x256xf32, #tpu.memory_space<vmem>>, vector<1x8x256xf32>
    %16 = vector.shape_cast %15 : vector<1x8x256xf32> to vector<8x256xf32>
    %c0_16 = arith.constant 0 : index
    %c0_17 = arith.constant 0 : index
    %c0_18 = arith.constant 0 : index
    %17 = vector.load %arg9[%c0_16, %c0_17, %c0_18] : memref<1x8x256xf32, #tpu.memory_space<vmem>>, vector<1x8x256xf32>
    %18 = vector.shape_cast %17 : vector<1x8x256xf32> to vector<8x256xf32>
    %c0_i32_19 = arith.constant 0 : i32
    %c8_i32 = arith.constant 8 : i32
    %19 = arith.muli %c0_i32_19, %c8_i32 : i32
    %20 = tpu.assume_multiple %19, 8 : i32
    %21 = arith.index_cast %20 : i32 to index
    %c0_20 = arith.constant 0 : index
    %22 = vector.load %arg13[%21, %c0_20] : memref<32x1024xf32, #tpu.memory_space<vmem>>, vector<8x1024xf32>
    %23 = arith.truncf %16 : vector<8x256xf32> to vector<8x256xbf16>
    %cst_21 = arith.constant dense<0.000000e+00> : vector<8x1024xf32>
    %24 = tpu.matmul %23, %6, %cst_21 {dimension_numbers = #tpu.dot_dimension_numbers<[1], [0], [0], [1], [0, 0, 1, 1], [], []>} : vector<8x256xbf16>, vector<256x1024xbf16>, vector<8x1024xf32> -> vector<8x1024xf32>
    %25 = arith.addf %22, %24 : vector<8x1024xf32>
    %26 = vector.extract_strided_slice %25 {offsets = [0, 0], sizes = [8, 256], strides = [1, 1]} : vector<8x1024xf32> to vector<8x256xf32>
    %27 = arith.negf %26 : vector<8x256xf32>
    %28 = math.exp %27 : vector<8x256xf32>
    %cst_22 = arith.constant 1.000000e+00 : f32
    %29 = vector.broadcast %cst_22 : f32 to vector<8x256xf32>
    %30 = arith.addf %29, %28 : vector<8x256xf32>
    %31 = arith.divf %29, %30 : vector<8x256xf32>
    %32 = vector.extract_strided_slice %25 {offsets = [0, 256], sizes = [8, 256], strides = [1, 1]} : vector<8x1024xf32> to vector<8x256xf32>
    %33 = arith.negf %32 : vector<8x256xf32>
    %34 = math.exp %33 : vector<8x256xf32>
    %cst_23 = arith.constant 1.000000e+00 : f32
    %35 = vector.broadcast %cst_23 : f32 to vector<8x256xf32>
    %36 = arith.addf %35, %34 : vector<8x256xf32>
    %37 = arith.divf %35, %36 : vector<8x256xf32>
    %38 = vector.extract_strided_slice %25 {offsets = [0, 512], sizes = [8, 256], strides = [1, 1]} : vector<8x1024xf32> to vector<8x256xf32>
    %39 = math.tanh %38 : vector<8x256xf32>
    %40 = vector.extract_strided_slice %25 {offsets = [0, 768], sizes = [8, 256], strides = [1, 1]} : vector<8x1024xf32> to vector<8x256xf32>
    %41 = arith.negf %40 : vector<8x256xf32>
    %42 = math.exp %41 : vector<8x256xf32>
    %cst_24 = arith.constant 1.000000e+00 : f32
    %43 = vector.broadcast %cst_24 : f32 to vector<8x256xf32>
    %44 = arith.addf %43, %42 : vector<8x256xf32>
    %45 = arith.divf %43, %44 : vector<8x256xf32>
    %46 = arith.mulf %37, %18 : vector<8x256xf32>
    %47 = arith.mulf %31, %39 : vector<8x256xf32>
    %48 = arith.addf %46, %47 : vector<8x256xf32>
    %49 = math.tanh %48 : vector<8x256xf32>
    %50 = arith.mulf %45, %49 : vector<8x256xf32>
    %51 = arith.index_cast %20 : i32 to index
    %c0_25 = arith.constant 0 : index
    %52 = vector.load %arg10[%51, %c0_25] : memref<32x256xf32, #tpu.memory_space<vmem>>, vector<8x256xf32>
    tpu.vector_store %arg10[%51, %c0_25], %50 {strides = array<i32>} : memref<32x256xf32, #tpu.memory_space<vmem>>, vector<8x256xf32>,
    %c1_i32 = arith.constant 1 : i32
    %c8_i32_26 = arith.constant 8 : i32
    %53 = arith.muli %c1_i32, %c8_i32_26 : i32
    %54 = tpu.assume_multiple %53, 8 : i32
    %55 = arith.index_cast %54 : i32 to index
    %c0_27 = arith.constant 0 : index
    %56 = vector.load %arg13[%55, %c0_27] : memref<32x1024xf32, #tpu.memory_space<vmem>>, vector<8x1024xf32>
    %57 = arith.truncf %50 : vector<8x256xf32> to vector<8x256xbf16>
    %cst_28 = arith.constant dense<0.000000e+00> : vector<8x1024xf32>
    %58 = tpu.matmul %57, %6, %cst_28 {dimension_numbers = #tpu.dot_dimension_numbers<[1], [0], [0], [1], [0, 0, 1, 1], [], []>} : vector<8x256xbf16>, vector<256x1024xbf16>, vector<8x1024xf32> -> vector<8x1024xf32>
    %59 = arith.addf %56, %58 : vector<8x1024xf32>
    %60 = vector.extract_strided_slice %59 {offsets = [0, 0], sizes = [8, 256], strides = [1, 1]} : vector<8x1024xf32> to vector<8x256xf32>
    %61 = arith.negf %60 : vector<8x256xf32>
    %62 = math.exp %61 : vector<8x256xf32>
    %cst_29 = arith.constant 1.000000e+00 : f32
    %63 = vector.broadcast %cst_29 : f32 to vector<8x256xf32>
    %64 = arith.addf %63, %62 : vector<8x256xf32>
    %65 = arith.divf %63, %64 : vector<8x256xf32>
    %66 = vector.extract_strided_slice %59 {offsets = [0, 256], sizes = [8, 256], strides = [1, 1]} : vector<8x1024xf32> to vector<8x256xf32>
    %67 = arith.negf %66 : vector<8x256xf32>
    %68 = math.exp %67 : vector<8x256xf32>
    %cst_30 = arith.constant 1.000000e+00 : f32
    %69 = vector.broadcast %cst_30 : f32 to vector<8x256xf32>
    %70 = arith.addf %69, %68 : vector<8x256xf32>
    %71 = arith.divf %69, %70 : vector<8x256xf32>
    %72 = vector.extract_strided_slice %59 {offsets = [0, 512], sizes = [8, 256], strides = [1, 1]} : vector<8x1024xf32> to vector<8x256xf32>
    %73 = math.tanh %72 : vector<8x256xf32>
    %74 = vector.extract_strided_slice %59 {offsets = [0, 768], sizes = [8, 256], strides = [1, 1]} : vector<8x1024xf32> to vector<8x256xf32>
    %75 = arith.negf %74 : vector<8x256xf32>
    %76 = math.exp %75 : vector<8x256xf32>
    %cst_31 = arith.constant 1.000000e+00 : f32
    %77 = vector.broadcast %cst_31 : f32 to vector<8x256xf32>
    %78 = arith.addf %77, %76 : vector<8x256xf32>
    %79 = arith.divf %77, %78 : vector<8x256xf32>
    %80 = arith.mulf %71, %48 : vector<8x256xf32>
    %81 = arith.mulf %65, %73 : vector<8x256xf32>
    %82 = arith.addf %80, %81 : vector<8x256xf32>
    %83 = math.tanh %82 : vector<8x256xf32>
    %84 = arith.mulf %79, %83 : vector<8x256xf32>
    %85 = arith.index_cast %54 : i32 to index
    %c0_32 = arith.constant 0 : index
    %86 = vector.load %arg10[%85, %c0_32] : memref<32x256xf32, #tpu.memory_space<vmem>>, vector<8x256xf32>
    tpu.vector_store %arg10[%85, %c0_32], %84 {strides = array<i32>} : memref<32x256xf32, #tpu.memory_space<vmem>>, vector<8x256xf32>,
    %c2_i32 = arith.constant 2 : i32
    %c8_i32_33 = arith.constant 8 : i32
    %87 = arith.muli %c2_i32, %c8_i32_33 : i32
    %88 = tpu.assume_multiple %87, 8 : i32
    %89 = arith.index_cast %88 : i32 to index
    %c0_34 = arith.constant 0 : index
    %90 = vector.load %arg13[%89, %c0_34] : memref<32x1024xf32, #tpu.memory_space<vmem>>, vector<8x1024xf32>
    %91 = arith.truncf %84 : vector<8x256xf32> to vector<8x256xbf16>
    %cst_35 = arith.constant dense<0.000000e+00> : vector<8x1024xf32>
    %92 = tpu.matmul %91, %6, %cst_35 {dimension_numbers = #tpu.dot_dimension_numbers<[1], [0], [0], [1], [0, 0, 1, 1], [], []>} : vector<8x256xbf16>, vector<256x1024xbf16>, vector<8x1024xf32> -> vector<8x1024xf32>
    %93 = arith.addf %90, %92 : vector<8x1024xf32>
    %94 = vector.extract_strided_slice %93 {offsets = [0, 0], sizes = [8, 256], strides = [1, 1]} : vector<8x1024xf32> to vector<8x256xf32>
    %95 = arith.negf %94 : vector<8x256xf32>
    %96 = math.exp %95 : vector<8x256xf32>
    %cst_36 = arith.constant 1.000000e+00 : f32
    %97 = vector.broadcast %cst_36 : f32 to vector<8x256xf32>
    %98 = arith.addf %97, %96 : vector<8x256xf32>
    %99 = arith.divf %97, %98 : vector<8x256xf32>
    %100 = vector.extract_strided_slice %93 {offsets = [0, 256], sizes = [8, 256], strides = [1, 1]} : vector<8x1024xf32> to vector<8x256xf32>
    %101 = arith.negf %100 : vector<8x256xf32>
    %102 = math.exp %101 : vector<8x256xf32>
    %cst_37 = arith.constant 1.000000e+00 : f32
    %103 = vector.broadcast %cst_37 : f32 to vector<8x256xf32>
    %104 = arith.addf %103, %102 : vector<8x256xf32>
    %105 = arith.divf %103, %104 : vector<8x256xf32>
    %106 = vector.extract_strided_slice %93 {offsets = [0, 512], sizes = [8, 256], strides = [1, 1]} : vector<8x1024xf32> to vector<8x256xf32>
    %107 = math.tanh %106 : vector<8x256xf32>
    %108 = vector.extract_strided_slice %93 {offsets = [0, 768], sizes = [8, 256], strides = [1, 1]} : vector<8x1024xf32> to vector<8x256xf32>
    %109 = arith.negf %108 : vector<8x256xf32>
    %110 = math.exp %109 : vector<8x256xf32>
    %cst_38 = arith.constant 1.000000e+00 : f32
    %111 = vector.broadcast %cst_38 : f32 to vector<8x256xf32>
    %112 = arith.addf %111, %110 : vector<8x256xf32>
    %113 = arith.divf %111, %112 : vector<8x256xf32>
    %114 = arith.mulf %105, %82 : vector<8x256xf32>
    %115 = arith.mulf %99, %107 : vector<8x256xf32>
    %116 = arith.addf %114, %115 : vector<8x256xf32>
    %117 = math.tanh %116 : vector<8x256xf32>
    %118 = arith.mulf %113, %117 : vector<8x256xf32>
    %119 = arith.index_cast %88 : i32 to index
    %c0_39 = arith.constant 0 : index
    %120 = vector.load %arg10[%119, %c0_39] : memref<32x256xf32, #tpu.memory_space<vmem>>, vector<8x256xf32>
    tpu.vector_store %arg10[%119, %c0_39], %118 {strides = array<i32>} : memref<32x256xf32, #tpu.memory_space<vmem>>, vector<8x256xf32>,
    %c3_i32 = arith.constant 3 : i32
    %c8_i32_40 = arith.constant 8 : i32
    %121 = arith.muli %c3_i32, %c8_i32_40 : i32
    %122 = tpu.assume_multiple %121, 8 : i32
    %123 = arith.index_cast %122 : i32 to index
    %c0_41 = arith.constant 0 : index
    %124 = vector.load %arg13[%123, %c0_41] : memref<32x1024xf32, #tpu.memory_space<vmem>>, vector<8x1024xf32>
    %125 = arith.truncf %118 : vector<8x256xf32> to vector<8x256xbf16>
    %cst_42 = arith.constant dense<0.000000e+00> : vector<8x1024xf32>
    %126 = tpu.matmul %125, %6, %cst_42 {dimension_numbers = #tpu.dot_dimension_numbers<[1], [0], [0], [1], [0, 0, 1, 1], [], []>} : vector<8x256xbf16>, vector<256x1024xbf16>, vector<8x1024xf32> -> vector<8x1024xf32>
    %127 = arith.addf %124, %126 : vector<8x1024xf32>
    %128 = vector.extract_strided_slice %127 {offsets = [0, 0], sizes = [8, 256], strides = [1, 1]} : vector<8x1024xf32> to vector<8x256xf32>
    %129 = arith.negf %128 : vector<8x256xf32>
    %130 = math.exp %129 : vector<8x256xf32>
    %cst_43 = arith.constant 1.000000e+00 : f32
    %131 = vector.broadcast %cst_43 : f32 to vector<8x256xf32>
    %132 = arith.addf %131, %130 : vector<8x256xf32>
    %133 = arith.divf %131, %132 : vector<8x256xf32>
    %134 = vector.extract_strided_slice %127 {offsets = [0, 256], sizes = [8, 256], strides = [1, 1]} : vector<8x1024xf32> to vector<8x256xf32>
    %135 = arith.negf %134 : vector<8x256xf32>
    %136 = math.exp %135 : vector<8x256xf32>
    %cst_44 = arith.constant 1.000000e+00 : f32
    %137 = vector.broadcast %cst_44 : f32 to vector<8x256xf32>
    %138 = arith.addf %137, %136 : vector<8x256xf32>
    %139 = arith.divf %137, %138 : vector<8x256xf32>
    %140 = vector.extract_strided_slice %127 {offsets = [0, 512], sizes = [8, 256], strides = [1, 1]} : vector<8x1024xf32> to vector<8x256xf32>
    %141 = math.tanh %140 : vector<8x256xf32>
    %142 = vector.extract_strided_slice %127 {offsets = [0, 768], sizes = [8, 256], strides = [1, 1]} : vector<8x1024xf32> to vector<8x256xf32>
    %143 = arith.negf %142 : vector<8x256xf32>
    %144 = math.exp %143 : vector<8x256xf32>
    %cst_45 = arith.constant 1.000000e+00 : f32
    %145 = vector.broadcast %cst_45 : f32 to vector<8x256xf32>
    %146 = arith.addf %145, %144 : vector<8x256xf32>
    %147 = arith.divf %145, %146 : vector<8x256xf32>
    %148 = arith.mulf %139, %116 : vector<8x256xf32>
    %149 = arith.mulf %133, %141 : vector<8x256xf32>
    %150 = arith.addf %148, %149 : vector<8x256xf32>
    %151 = math.tanh %150 : vector<8x256xf32>
    %152 = arith.mulf %147, %151 : vector<8x256xf32>
    %153 = arith.index_cast %122 : i32 to index
    %c0_46 = arith.constant 0 : index
    %154 = vector.load %arg10[%153, %c0_46] : memref<32x256xf32, #tpu.memory_space<vmem>>, vector<8x256xf32>
    tpu.vector_store %arg10[%153, %c0_46], %152 {strides = array<i32>} : memref<32x256xf32, #tpu.memory_space<vmem>>, vector<8x256xf32>,
    %c4_i32 = arith.constant 4 : i32
    %c0_47 = arith.constant 0 : index
    %c0_48 = arith.constant 0 : index
    %c0_49 = arith.constant 0 : index
    %155 = vector.load %arg11[%c0_47, %c0_48, %c0_49] : memref<1x8x256xf32, #tpu.memory_space<vmem>>, vector<1x8x256xf32>
    %156 = vector.shape_cast %155 : vector<1x8x256xf32> to vector<8x256xf32>
    %157 = vector.shape_cast %152 : vector<8x256xf32> to vector<1x8x256xf32>
    tpu.vector_store %arg11[%c0_47, %c0_48, %c0_49], %157 {strides = array<i32>} : memref<1x8x256xf32, #tpu.memory_space<vmem>>, vector<1x8x256xf32>,
    %c0_50 = arith.constant 0 : index
    %c0_51 = arith.constant 0 : index
    %c0_52 = arith.constant 0 : index
    %158 = vector.load %arg12[%c0_50, %c0_51, %c0_52] : memref<1x8x256xf32, #tpu.memory_space<vmem>>, vector<1x8x256xf32>
    %159 = vector.shape_cast %158 : vector<1x8x256xf32> to vector<8x256xf32>
    %160 = vector.shape_cast %150 : vector<8x256xf32> to vector<1x8x256xf32>
    tpu.vector_store %arg12[%c0_50, %c0_51, %c0_52], %160 {strides = array<i32>} : memref<1x8x256xf32, #tpu.memory_space<vmem>>, vector<1x8x256xf32>,
    return
  }
  func.func @transform_0(%arg0: i32) -> (i32, i32) {
    %c0_i32 = arith.constant 0 : i32
    %c0_i32_0 = arith.constant 0 : i32
    %c0_i32_1 = arith.constant 0 : i32
    return %c0_i32, %c0_i32_0 : i32, i32
  }
  func.func @transform_1(%arg0: i32) -> (i32, i32) {
    %c0_i32 = arith.constant 0 : i32
    %c0_i32_0 = arith.constant 0 : i32
    %c0_i32_1 = arith.constant 0 : i32
    return %c0_i32, %c0_i32_0 : i32, i32
  }
  func.func @transform_2(%arg0: i32) -> (i32, i32) {
    %c0_i32 = arith.constant 0 : i32
    %c0_i32_0 = arith.constant 0 : i32
    %c0_i32_1 = arith.constant 0 : i32
    return %c0_i32, %c0_i32_0 : i32, i32
  }
  func.func @transform_3(%arg0: i32) -> (i32, i32) {
    %c0_i32 = arith.constant 0 : i32
    %c0_i32_0 = arith.constant 0 : i32
    %c0_i32_1 = arith.constant 0 : i32
    return %c0_i32, %c0_i32_0 : i32, i32
  }
  func.func @transform_4(%arg0: i32) -> (i32, i32, i32) {
    %c0_i32 = arith.constant 0 : i32
    %c0_i32_0 = arith.constant 0 : i32
    %c0_i32_1 = arith.constant 0 : i32
    return %arg0, %c0_i32, %c0_i32_0 : i32, i32, i32
  }
  func.func @transform_5(%arg0: i32) -> (i32, i32, i32) {
    %c0_i32 = arith.constant 0 : i32
    %c0_i32_0 = arith.constant 0 : i32
    %c0_i32_1 = arith.constant 0 : i32
    return %arg0, %c0_i32, %c0_i32_0 : i32, i32, i32
  }
  func.func @transform_6(%arg0: i32) -> (i32, i32, i32) {
    %c0_i32 = arith.constant 0 : i32
    %c0_i32_0 = arith.constant 0 : i32
    %c0_i32_1 = arith.constant 0 : i32
    return %arg0, %c0_i32, %c0_i32_0 : i32, i32, i32
  }
  func.func @transform_7(%arg0: i32) -> (i32, i32, i32) {
    %c0_i32 = arith.constant 0 : i32
    %c0_i32_0 = arith.constant 0 : i32
    %c0_i32_1 = arith.constant 0 : i32
    return %arg0, %c0_i32, %c0_i32_0 : i32, i32, i32
  }
  func.func @transform_8(%arg0: i32) -> (i32, i32, i32) {
    %c0_i32 = arith.constant 0 : i32
    %c0_i32_0 = arith.constant 0 : i32
    %c0_i32_1 = arith.constant 0 : i32
    return %arg0, %c0_i32, %c0_i32_0 : i32, i32, i32
  }
  func.func @transform_9(%arg0: i32) -> (i32, i32) {
    %c0_i32 = arith.constant 0 : i32
    %c0_i32_0 = arith.constant 0 : i32
    %c0_i32_1 = arith.constant 0 : i32
    return %c0_i32, %c0_i32_0 : i32, i32
  }
  func.func @transform_10(%arg0: i32) -> (i32, i32, i32) {
    %c0_i32 = arith.constant 0 : i32
    %c0_i32_0 = arith.constant 0 : i32
    %c0_i32_1 = arith.constant 0 : i32
    return %arg0, %c0_i32, %c0_i32_0 : i32, i32, i32
  }
  func.func @transform_11(%arg0: i32) -> (i32, i32, i32) {
    %c0_i32 = arith.constant 0 : i32
    %c0_i32_0 = arith.constant 0 : i32
    %c0_i32_1 = arith.constant 0 : i32
    return %arg0, %c0_i32, %c0_i32_0 : i32, i32, i32
  }
}

</mosaic_0001>

<bundles_post_ra>
// kernel: retrend_forward.1
= control target key start
LH: loop header
LB: loop body
LE: loop exit
PB: predicated region body
PF: predicated region fallthrough
CT: control target
= control target key end

     0   :  { %s12254_s0 = inlined_call_operand.vmem [shape: f32[32,8], index: 0, kind: input, shape index: {}]   ;;  %s12255_s1 = inlined_call_operand.vmem [shape: bf16[8,768], index: 1, kind: input, shape index: {}]   ;;  %s12256_s2 = inlined_call_operand.hbm [shape: bf16[768,768], index: 2, kind: input, shape index: {}]   ;;  %s12257_s3 = inlined_call_operand.hbm [shape: f32[1,768], index: 3, kind: input, shape index: {}]   ;;  %s12258_s4 = inlined_call_operand.hbm [shape: bf16[10,256,1024], index: 4, kind: input, shape index: {}]   ;;  %s12259_s5 = inlined_call_operand.hbm [shape: bf16[10,256,1024], index: 5, kind: input, shape index: {}]   ;;  %s12260_s6 = inlined_call_operand.hbm [shape: f32[10,1,1024], index: 6, kind: input, shape index: {}]   ;;  %s12261_s7 = inlined_call_operand.hbm [shape: f32[10,8,256], index: 7, kind: input, shape index: {}]   ;;  %s12262_s8 = inlined_call_operand.hbm [shape: f32[10,8,256], index: 8, kind: input, shape index: {}]   ;;  %s12263_s9 = inlined_call_operand.hbm [shape: f32[32,256], index: 9, kind: output, shape index: {0}]   ;;  %s12264_s10 = inlined_call_operand.hbm [shape: f32[10,8,256], index: 10, kind: output, shape index: {1}]   ;;  %s12265_s11 = inlined_call_operand.hbm [shape: f32[10,8,256], index: 11, kind: output, shape index: {2}]  }
   0x1   :  { %12531 = sst [smem:[#allocation205_spill]] %s12254_s0 }
   0x2   :  { %12532 = sst [smem:[#allocation206_spill]] %s12255_s1 }
   0x3   :  { %12533 = sst [smem:[#allocation207_spill]] %s12256_s2 }
   0x4   :  { %12534 = sst [smem:[#allocation208_spill]] %s12258_s4 }
   0x5   :  { %12535 = sst [smem:[#allocation209_spill]] %s12263_s9 }
   0x6   :  { %12536 = sst [smem:[#allocation210_spill]] %s12264_s10 }
   0x7   :  { %12537 = sst [smem:[#allocation211_spill]] %s12265_s11 }
   0x8   :  { %17 = vsyncpa [#allocation4], 0 }
   0x9   :  { %18 = vsyncpa [#allocation7], 0 }
   0xa   :  { %19 = vsyncpa [#allocation5], 0 }
   0xb   :  { %20 = vsyncpa [#allocation15], 0 }
   0xc   :  { %22 = vsyncpa [#allocation15 + $0x1], 0  ;;  %s10007_s17 = smov 0   ;;  %s10009_s18 = smov 0  }
   0xd   :  { %s10011_s19 = smov 0   ;;  %s10013_s20 = smov 0  }
   0xe LB: > { %12538 = sst [smem:[#allocation22_spill]] %s9932_s19  ;;  %s10026_s21 = sadd.s32 4294967295, %s9936_s20   ;;  %s9936_s20 = sphi %s10013_s20, %s13075_s20   ;;  %s9932_s19 = sphi %s10011_s19, %s13077_s19   ;;  %s9928_s18 = sphi %s10009_s18, %s13079_s18   ;;  %s9924_s17 = sphi %s10007_s17, %s13078_s17  }
   0xf   : > { %s12266_s22 = sadd.s32 4294967294, %s9936_s20   ;;  %p132_p0 = scmp.ne.s32.totalorder %s9928_s18, %s9924_s17 }
  0x10   : > { %p12275_p1 = scmp.eq.s32.totalorder %s10026_s21, 0  ;;  %p12273_p2 = scmp.eq.s32.totalorder %s10026_s21, 9 }
  0x11   : > { %p287_p3 = scmp.eq.s32.totalorder %s12266_s22, 9  ;;  %p6563_p5 = scmp.ge.s32.totalorder %s9936_s20, 1 }
  0x12   : > { %p10036_p4 = por %p12275_p1, %p132_p0  ;;  %p320_p7 = scmp.lt.s32.totalorder %s9936_s20, 11 }
  0x13   : > { %p10041_p6 = por %p287_p3, %p132_p0  ;;  %s12542_s2 = sld [smem:[#allocation207_spill]] }
  0x14   : > { %p10050_p9 = pnand %p6563_p5, %p320_p7  ;;  %s9938_s29 = smov [#allocation3]  }
  0x15   : > { %s12540_s24 = scalar_select %p10041_p6, 1, 0 }
  0x16   : > { %p9384_p10 = pneg %p10050_p9  ;;  %s339_s30 = sshll.u32 %s9938_s29, 4  ;;  %s340_s30 = int_to_ptr.vmem [resolvable:$true] %s339_s30 }
  0x17   : > { %12541 = sst [smem:[#allocation23_spill]] %s12540_s24  ;;  %s10063_s13 = sadd.s32 1, %s9936_s20  }
  0x18   : > { %p10058_p11 = pnand %p9384_p10, %p12275_p1  ;;  %12545 = sst [smem:[#allocation24_spill]] %s10063_s13 }
  0x19   : > { %s337_s27 = sshll.u32 %s12542_s2, 4  ;;  %s9939_s14 = smov 384   ;;  %s338_s27 = int_to_ptr.hbm [resolvable:$true] %s337_s27 }
  0x1a   : > { %s9940_s15 = smov 24   ;;  %s116_s16 = ssub.s32 %s9936_s20, %s10063_s13 }
  0x1b   : > { %9387 = dma.hbm_to_vmem [thread:$0]  (!%p10058_p11), %s338_s27, 36864, %s340_s30, [#allocation4], %s9939_s14, %s9939_s14, %s9940_s15  }
  0x1c   : > { %s119_s17 = sadd.s32 1, %s9932_s19  ;;  %p117_p12 = scmp.eq.s32.totalorder %s116_s16, 0 }
  0x1d   : > { %p126_p13 = scmp.ne.s32.totalorder %s9932_s19, %s9928_s18  ;;  %p127_p0 = scmp.eq.s32.totalorder %s9936_s20, 0 }
  0x1e   : > { %p9416_p3 = scmp.lt.s32.totalorder %s9936_s20, 10  ;;  %s365_s29 = sand.u32 1, %s9936_s20  }
  0x1f   : > { %s10075_s25 = scalar_select %p117_p12, %s9932_s19, %s119_s17  }
  0x20   : > { %p128_p5 = por %p127_p0, %p126_p13  ;;  %p10079_p7 = por %p12273_p2, %p126_p13 }
  0x21   : > { %12546 = sst [smem:[#allocation25_spill]] %s10075_s25  ;;  %s10085_s22 = sand.u32 1, %s9932_s19  }
  0x22   : > { %s12547_s26 = scalar_select %p10079_p7, 1, 0 }
  0x23   : > { %s12274_s27 = sshll.u32 %s10085_s22, 10  ;;  %s12276_s30 = sshll.u32 %s9936_s20, 10 }
  0x24   : > { %12548 = sst [smem:[#allocation26_spill]] %s12547_s26  ;;  %s369_s17 = scalar_lea.vmem [#allocation8], %s12274_s27 }
  0x25   : > { %s12549_s4 = sld [smem:[#allocation208_spill]]  ;;  %s377_s2 = sshll.u32 %s369_s17, 4  ;;  %s378_s2 = int_to_ptr.vmem [resolvable:$true] %s377_s2 }
  0x26   : > { %p10098_p10 = pnand %p9416_p3, %p128_p5  ;;  %s10102_s19 = scalar_lea.sflag [#allocation4], %s365_s29 }
  0x28   : > { %p10106_p13 = pneg %p10098_p10 }
  0x2b   : > { %s374_s16 = scalar_lea.hbm %s12549_s4, %s12276_s30  ;;  %s9629_s17 = scalar_lea.hbm %s12549_s4, 10240 }
  0x2c   : > { %s375_s25 = sshll.u32 %s374_s16, 4  ;;  %s376_s25 = int_to_ptr.hbm [resolvable:$true] %s375_s25 }
  0x2d   : > { %s9622_s24 = sshra.s32 %s376_s25, 4  ;;  %s9623_s24 = int_to_ptr.hbm [resolvable:$true] %s9622_s24 }
  0x2e   : > { %s9624_s26 = scalar_lea.hbm %s9623_s24, 1024  ;;  %p9630_p3 = scmp.lt.s32.totalorder %s9623_s24, %s12549_s4 }
  0x2f   : > { %p9625_p12 = scmp.ne.s32.totalorder %s9623_s24, %s9624_s26  ;;  %p9631_p5 = scmp.lt.s32.totalorder %s9629_s17, %s9624_s26 }
  0x31   : > { %p9627_p0 = pnand %p10106_p13, %p9625_p12  ;;  %p9632_p8 = por %p9631_p5, %p9630_p3 }
  0x33   : > { %p9628_p2 = pneg %p9627_p0 }
  0x35   : > { %p9633_p1 = pnand %p9632_p8, %p9628_p2 }
  0x37   : > { %9636 = shalt.err (!%p9633_p1)
}
  0x38   : > { %s9941_s30 = smov 512   ;;  %s9942_s9 = smov 32  }
  0x39   : > { %9394 = dma.hbm_to_vmem [thread:$0]  (!%p10098_p10), %s376_s25, 16384, %s378_s2, %s10102_s19, %s9941_s30, %s9941_s30, %s9942_s9  }
  0x3a   : > { %s12552_s15 = sshll.u32 %s9936_s20, 10  ;;  %s12553_s24 = sshll.u32 %s10085_s22, 10 }
  0x3b   : > { %s396_s27 = scalar_lea.hbm %s12259_s5, %s12552_s15  ;;  %s391_s26 = scalar_lea.vmem [#allocation9], %s12553_s24 }
  0x3c   : > { %s399_s17 = sshll.u32 %s391_s26, 4  ;;  %s397_s29 = sshll.u32 %s396_s27, 4  ;;  %s400_s17 = int_to_ptr.vmem [resolvable:$true] %s399_s17  ;;  %s398_s29 = int_to_ptr.hbm [resolvable:$true] %s397_s29 }
  0x3d   : > { %s6573_s4 = sshll.u32 %s10085_s22, 3  ;;  %s9652_s10 = sshra.s32 %s398_s29, 4  ;;  %s9653_s10 = int_to_ptr.hbm [resolvable:$true] %s9652_s10 }
  0x3e   : > { %s9654_s0 = scalar_lea.hbm %s9653_s10, 1024  ;;  %s9659_s1 = scalar_lea.hbm %s12259_s5, 10240 }
  0x3f   : > { %p9655_p1 = scmp.ne.s32.totalorder %s9653_s10, %s9654_s0  ;;  %p9660_p12 = scmp.lt.s32.totalorder %s9653_s10, %s12259_s5 }
  0x40   : > { %p9661_p0 = scmp.lt.s32.totalorder %s9659_s1, %s9654_s0 }
  0x41   : > { %p9657_p2 = pnand %p9655_p1, %p10106_p13 }
  0x42   : > { %p9662_p3 = por %p9661_p0, %p9660_p12 }
  0x43   : > { %p9658_p8 = pneg %p9657_p2 }
  0x45   : > { %p9663_p5 = pnand %p9662_p3, %p9658_p8 }
  0x47   : > { %9666 = shalt.err (!%p9663_p5)
}
  0x48   : > { %9397 = dma.hbm_to_vmem [thread:$0]  (!%p10098_p10), %s398_s29, 16384, %s400_s17, %s10102_s19, %s9941_s30, %s9941_s30, %s9942_s9  }
  0x49   : > { %s6574_s16 = sshll.u32 %s9936_s20, 3  ;;  %s413_s2 = scalar_lea.vmem [#allocation10], %s6573_s4 }
  0x4a   : > { %s417_s26 = scalar_lea.hbm %s12260_s6, %s6574_s16  ;;  %s421_s25 = sshll.u32 %s413_s2, 4  ;;  %s422_s25 = int_to_ptr.vmem [resolvable:$true] %s421_s25 }
  0x4b   : > { %s419_s11 = sshll.u32 %s417_s26, 4  ;;  %s6575_s0 = sshll.u32 %s10085_s22, 4  ;;  %s420_s11 = int_to_ptr.hbm [resolvable:$true] %s419_s11 }
  0x4c   : > { %s9682_s1 = sshra.s32 %s420_s11, 4  ;;  %s9689_s30 = scalar_lea.hbm %s12260_s6, 80  ;;  %s9683_s1 = int_to_ptr.hbm [resolvable:$true] %s9682_s1 }
  0x4d   : > { %s9684_s10 = scalar_lea.hbm %s9683_s1, 8  ;;  %p9690_p12 = scmp.lt.s32.totalorder %s9683_s1, %s12260_s6 }
  0x4e   : > { %p9685_p1 = scmp.ne.s32.totalorder %s9683_s1, %s9684_s10  ;;  %p9691_p0 = scmp.lt.s32.totalorder %s9689_s30, %s9684_s10 }
  0x50   : > { %p9687_p2 = pnand %p9685_p1, %p10106_p13  ;;  %p9692_p3 = por %p9691_p0, %p9690_p12 }
  0x52   : > { %p9688_p8 = pneg %p9687_p2 }
  0x54   : > { %p9693_p5 = pnand %p9692_p3, %p9688_p8 }
  0x56   : > { %9696 = shalt.err (!%p9693_p5)
}
  0x57   : > { %9400 = dma.hbm_to_vmem [thread:$0]  (!%p10098_p10), %s420_s11, 128, %s422_s25, %s10102_s19  }
  0x58   : > { %s8808_s4 = sshll.u32 %s9936_s20, 4  ;;  %s432_s26 = scalar_lea.vmem [#allocation11], %s6575_s0 }
  0x59   : > { %s437_s24 = scalar_lea.hbm %s12261_s7, %s8808_s4  ;;  %s441_s2 = sshll.u32 %s432_s26, 4  ;;  %s442_s2 = int_to_ptr.vmem [resolvable:$true] %s441_s2 }
  0x5a   : > { %s439_s1 = sshll.u32 %s437_s24, 4  ;;  %s352_s9 = sshll.u32 %s12257_s3, 4  ;;  %s440_s1 = int_to_ptr.hbm [resolvable:$true] %s439_s1  ;;  %s353_s9 = int_to_ptr.hbm [resolvable:$true] %s352_s9 }
  0x5b   : > { %s9712_s30 = sshra.s32 %s440_s1, 4  ;;  %s9719_s29 = scalar_lea.hbm %s12261_s7, 160  ;;  %s9713_s30 = int_to_ptr.hbm [resolvable:$true] %s9712_s30 }
  0x5c   : > { %s9714_s17 = scalar_lea.hbm %s9713_s30, 16  ;;  %p9720_p12 = scmp.lt.s32.totalorder %s9713_s30, %s12261_s7 }
  0x5d   : > { %p9715_p1 = scmp.ne.s32.totalorder %s9713_s30, %s9714_s17  ;;  %p9721_p0 = scmp.lt.s32.totalorder %s9719_s29, %s9714_s17 }
  0x5f   : > { %p9717_p2 = pnand %p9715_p1, %p10106_p13  ;;  %p9722_p3 = por %p9721_p0, %p9720_p12 }
  0x61   : > { %p9718_p8 = pneg %p9717_p2 }
  0x63   : > { %p9723_p5 = pnand %p9722_p3, %p9718_p8 }
  0x65   : > { %9726 = shalt.err (!%p9723_p5)
}
  0x66   : > { %9403 = dma.hbm_to_vmem [thread:$0]  (!%p10098_p10), %s440_s1, 256, %s442_s2, %s10102_s19  }
  0x67   : > { %s9943_s24 = smov [#allocation6]   ;;  %s457_s25 = scalar_lea.hbm %s12262_s8, %s8808_s4 }
  0x68   : > { %s354_s26 = sshll.u32 %s9943_s24, 4  ;;  %s459_s30 = sshll.u32 %s457_s25, 4  ;;  %s355_s26 = int_to_ptr.vmem [resolvable:$true] %s354_s26  ;;  %s460_s30 = int_to_ptr.hbm [resolvable:$true] %s459_s30 }
  0x69   : > { %9390 = dma.hbm_to_vmem [thread:$0]  (!%p10058_p11), %s353_s9, 96, %s355_s26, [#allocation7]  }
  0x6a   : > { %s452_s17 = scalar_lea.vmem [#allocation12], %s6575_s0  ;;  %s9772_s29 = sshra.s32 %s460_s30, 4  ;;  %s9773_s29 = int_to_ptr.hbm [resolvable:$true] %s9772_s29 }
  0x6b   : > { %s461_s11 = sshll.u32 %s452_s17, 4  ;;  %s9774_s2 = scalar_lea.hbm %s9773_s29, 16  ;;  %s462_s11 = int_to_ptr.vmem [resolvable:$true] %s461_s11 }
  0x6c   : > { %p9775_p1 = scmp.ne.s32.totalorder %s9773_s29, %s9774_s2  ;;  %s9779_s27 = scalar_lea.hbm %s12262_s8, 160 }
  0x6d   : > { %p9780_p11 = scmp.lt.s32.totalorder %s9773_s29, %s12262_s8  ;;  %p9781_p12 = scmp.lt.s32.totalorder %s9779_s27, %s9774_s2 }
  0x6e   : > { %p9777_p2 = pnand %p9775_p1, %p10106_p13 }
  0x6f   : > { %p9782_p0 = por %p9781_p12, %p9780_p11 }
  0x70   : > { %p9778_p8 = pneg %p9777_p2 }
  0x72   : > { %p9783_p3 = pnand %p9782_p0, %p9778_p8 }
  0x74   : > { %9786 = shalt.err (!%p9783_p3)
}
  0x75   : > { %9406 = dma.hbm_to_vmem [thread:$0]  (!%p10098_p10), %s460_s30, 256, %s462_s11, %s10102_s19  }
  0x76   : > { %470 = sbr.rel (%p10050_p9) target bundleno = 1796 (0x704), region = 56 }
  0x7b   : > { %p12554_p13 = scmp.eq.s32.totalorder %s10026_s21, 0 }
  0x7d   : > { %9903 = dma.done.wait (%p12554_p13), [#allocation4], 36864   ;;  %p12555_p5 = pmov %p12554_p13 }
  0x7f   : > { %9905 = vsyncadd (%p12555_p5), [#allocation4], 4294930432  ;;  %p12556_p1 = pmov %p12555_p5 }
  0x81   : > { %9907 = dma.done.wait (%p12556_p1), [#allocation7], 96   ;;  %p12557_p2 = pmov %p12556_p1 }
  0x82   : > { %s482_s19 = sand.u32 1, %s10026_s21   ;;  %s484_s22 = sand.u32 1, %s9928_s18  }
  0x83   : > { %9909 = vsyncadd (%p12557_p2), [#allocation7], 4294967200  ;;  %s6584_s28 = sshll.u32 %s484_s22, 10  ;;  %s483_s13 = scalar_lea.sflag [#allocation4], %s482_s19 }
  0x84   : > { %s10208_s14 = scalar_lea.vmem [#allocation8], %s6584_s28 }
  0x85   : > { %9911 = dma.done.wait (%p10036_p4), %s483_s13, 33408  }
  0x86   : > { %9913 = vsyncadd (%p10036_p4), %s483_s13, 4294933888  ;;  %s6586_s0 = sshll.u32 %s484_s22, 3  ;;  %s10214_s9 = sshll.u32 %s484_s22, 4 }
  0x87   : > { %s10216_s24 = scalar_lea.vmem [#allocation9], %s6584_s28  ;;  %s10218_s26 = scalar_lea.vmem [#allocation10], %s6586_s0 }
  0x88   : > { %s516_s10 = scalar_lea.vmem [#allocation11], %s10214_s9  ;;  %s526_s15 = scalar_lea.vmem [#allocation12], %s10214_s9 }
  0x89   : > { %s10223_s25 = scalar_lea.vmem [#allocation14], %s10214_s9  ;;  %s10226_s30 = scalar_lea.vmem [#allocation16], %s10214_s9 }
  0x8a   : > { %p12558_p9 = scmp.ne.s32.totalorder %s10026_s21, 0 }
  0x8b   : > { %s12559_s11 = sld [smem:[#allocation206_spill]] (!%p12558_p9) }
  0x8c   : > { %595 = sbr.rel (%p12558_p9) target bundleno = 630 (0x276), region = 88  ;;  %s12560_s12 = sld [smem:[#allocation205_spill]] (!%p12558_p9) }
  0x91   : > { %v6762_v0 = vld [vmem:[#allocation3 + $0x150] sm:$0xf]  ;;  %v8855_v1 = vld [vmem:[#allocation3 + $0x164] sm:$0xf0]  ;;  %v6738_v11 = vld [vmem:[#allocation3 + $0x120] sm:$0xf] }
  0x92   : > { %v6954_v2 = vld [vmem:[#allocation3 + $0x2d0] sm:$0xf]  ;;  %v6763_v3 = vor.u32 %v8855_v1, %v6762_v0  ;;  %v8903_v4 = vld [vmem:[#allocation3 + $0x2e4] sm:$0xf0]  ;;  %v8849_v13 = vld [vmem:[#allocation3 + $0x134] sm:$0xf0] }
  0x93   : > { %v7146_v5 = vld [vmem:[#allocation3 + $0x450] sm:$0xf]  ;;  %v8951_v6 = vld [vmem:[#allocation3 + $0x464] sm:$0xf0]  ;;  %v6955_v7 = vor.u32 %v8903_v4, %v6954_v2  ;;  %v6930_v14 = vld [vmem:[#allocation3 + $0x2a0] sm:$0xf]  ;;  %v6739_v16 = vor.u32 %v8849_v13, %v6738_v11 }
  0x94   : > { %v7147_v8 = vor.u32 %v8951_v6, %v7146_v5  ;;  %v7338_v9 = vld [vmem:[#allocation3 + $0x5d0] sm:$0xf]  ;;  %v8999_v10 = vld [vmem:[#allocation3 + $0x5e4] sm:$0xf0]  ;;  %2362 = vmatpush.bf16.msra.mxu0 %v6763_v3  ;;  %v8897_v15 = vld [vmem:[#allocation3 + $0x2b4] sm:$0xf0] }
  0x95   : > { %v7339_v12 = vor.u32 %v8999_v10, %v7338_v9  ;;  %2375 = vmatpush.bf16.msra.mxu1 %v6955_v7  ;;  %v6931_v17 = vor.u32 %v8897_v15, %v6930_v14  ;;  %v7122_v18 = vld [vmem:[#allocation3 + $0x420] sm:$0xf]  ;;  %v8945_v19 = vld [vmem:[#allocation3 + $0x434] sm:$0xf0]  ;;  %v6714_v23 = vld [vmem:[#allocation3 + $0xf0] sm:$0xf] }
  0x96   : > { %2388 = vmatpush.bf16.msra.mxu2 %v7147_v8  ;;  %v7314_v20 = vld [vmem:[#allocation3 + $0x5a0] sm:$0xf]  ;;  %v7123_v21 = vor.u32 %v8945_v19, %v7122_v18  ;;  %v8993_v22 = vld [vmem:[#allocation3 + $0x5b4] sm:$0xf0]  ;;  %v8843_v24 = vld [vmem:[#allocation3 + $0x104] sm:$0xf0] }
  0x97   : > { %2401 = vmatpush.bf16.msra.mxu3 %v7339_v12  ;;  %v7315_v25 = vor.u32 %v8993_v22, %v7314_v20  ;;  %v6906_v26 = vld [vmem:[#allocation3 + $0x270] sm:$0xf]  ;;  %v8891_v27 = vld [vmem:[#allocation3 + $0x284] sm:$0xf0]  ;;  %v6715_v29 = vor.u32 %v8843_v24, %v6714_v23  ;;  %v6690_v35 = vld [vmem:[#allocation3 + $0xc0] sm:$0xf] }
  0x98   : > { %v7098_v28 = vld [vmem:[#allocation3 + $0x3f0] sm:$0xf]  ;;  %2363 = vmatpush.bf16.msra.mxu0 %v6739_v16  ;;  %v8939_v30 = vld [vmem:[#allocation3 + $0x404] sm:$0xf0]  ;;  %v6907_v33 = vor.u32 %v8891_v27, %v6906_v26  ;;  %v8837_v36 = vld [vmem:[#allocation3 + $0xd4] sm:$0xf0] }
  0x99   : > { %v7290_v31 = vld [vmem:[#allocation3 + $0x570] sm:$0xf]  ;;  %v8987_v32 = vld [vmem:[#allocation3 + $0x584] sm:$0xf0]  ;;  %2376 = vmatpush.bf16.msra.mxu1 %v6931_v17  ;;  %v7099_v34 = vor.u32 %v8939_v30, %v7098_v28  ;;  %v6882_v37 = vld [vmem:[#allocation3 + $0x240] sm:$0xf]  ;;  %v6691_v44 = vor.u32 %v8837_v36, %v6690_v35 }
  0x9a   : > { %2389 = vmatpush.bf16.msra.mxu2 %v7123_v21  ;;  %v7291_v38 = vor.u32 %v8987_v32, %v7290_v31  ;;  %v8885_v39 = vld [vmem:[#allocation3 + $0x254] sm:$0xf0]  ;;  %v7074_v40 = vld [vmem:[#allocation3 + $0x3c0] sm:$0xf]  ;;  %v6666_v47 = vld [vmem:[#allocation3 + $0x90] sm:$0xf] }
  0x9b   : > { %2402 = vmatpush.bf16.msra.mxu3 %v7315_v25  ;;  %v8933_v41 = vld [vmem:[#allocation3 + $0x3d4] sm:$0xf0]  ;;  %v7266_v42 = vld [vmem:[#allocation3 + $0x540] sm:$0xf]  ;;  %v6883_v45 = vor.u32 %v8885_v39, %v6882_v37  ;;  %v8831_v48 = vld [vmem:[#allocation3 + $0xa4] sm:$0xf0] }
  0x9c   : > { %v8981_v43 = vld [vmem:[#allocation3 + $0x554] sm:$0xf0]  ;;  %2364 = vmatpush.bf16.msra.mxu0 %v6715_v29  ;;  %v7075_v46 = vor.u32 %v8933_v41, %v7074_v40  ;;  %v6858_v49 = vld [vmem:[#allocation3 + $0x210] sm:$0xf]  ;;  %v8879_v51 = vld [vmem:[#allocation3 + $0x224] sm:$0xf0]  ;;  %v6667_v56 = vor.u32 %v8831_v48, %v6666_v47 }
  0x9d   : > { %2377 = vmatpush.bf16.msra.mxu1 %v6907_v33  ;;  %v7267_v50 = vor.u32 %v8981_v43, %v7266_v42  ;;  %v7050_v52 = vld [vmem:[#allocation3 + $0x390] sm:$0xf]  ;;  %v8927_v53 = vld [vmem:[#allocation3 + $0x3a4] sm:$0xf0]  ;;  %v6859_v57 = vor.u32 %v8879_v51, %v6858_v49  ;;  %v6642_v59 = vld [vmem:[#allocation3 + $0x60] sm:$0xf] }
  0x9e   : > { %2390 = vmatpush.bf16.msra.mxu2 %v7099_v34  ;;  %v7242_v54 = vld [vmem:[#allocation3 + $0x510] sm:$0xf]  ;;  %v8975_v55 = vld [vmem:[#allocation3 + $0x524] sm:$0xf0]  ;;  %v7051_v58 = vor.u32 %v8927_v53, %v7050_v52  ;;  %v8825_v60 = vld [vmem:[#allocation3 + $0x74] sm:$0xf0] }
  0x9f   : > { %2403 = vmatpush.bf16.msra.mxu3 %v7291_v38  ;;  %v6834_v61 = vld [vmem:[#allocation3 + $0x1e0] sm:$0xf]  ;;  %v7243_v62 = vor.u32 %v8975_v55, %v7242_v54  ;;  %v8873_v63 = vld [vmem:[#allocation3 + $0x1f4] sm:$0xf0]  ;;  %v6643_v4 = vor.u32 %v8825_v60, %v6642_v59  ;;  %v6618_v7 = vld [vmem:[#allocation3 + $0x30] sm:$0xf] }
  0xa0   : > { %2365 = vmatpush.bf16.msra.mxu0 %v6691_v44  ;;  %v7026_v0 = vld [vmem:[#allocation3 + $0x360] sm:$0xf]  ;;  %v8921_v1 = vld [vmem:[#allocation3 + $0x374] sm:$0xf0]  ;;  %v6835_v5 = vor.u32 %v8873_v63, %v6834_v61  ;;  %v8819_v8 = vld [vmem:[#allocation3 + $0x44] sm:$0xf0] }
  0xa1   : > { %2378 = vmatpush.bf16.msra.mxu1 %v6883_v45  ;;  %v7218_v2 = vld [vmem:[#allocation3 + $0x4e0] sm:$0xf]  ;;  %v8969_v3 = vld [vmem:[#allocation3 + $0x4f4] sm:$0xf0]  ;;  %v7027_v6 = vor.u32 %v8921_v1, %v7026_v0  ;;  %v6810_v9 = vld [vmem:[#allocation3 + $0x1b0] sm:$0xf]  ;;  %v6619_v16 = vor.u32 %v8819_v8, %v6618_v7 }
  0xa2   : > { %2391 = vmatpush.bf16.msra.mxu2 %v7075_v46  ;;  %v7219_v10 = vor.u32 %v8969_v3, %v7218_v2  ;;  %v8867_v11 = vld [vmem:[#allocation3 + $0x1c4] sm:$0xf0]  ;;  %v7002_v12 = vld [vmem:[#allocation3 + $0x330] sm:$0xf]  ;;  %v6594_v17 = vld [vmem:[#allocation3] sm:$0xf] }
  0xa3   : > { %2404 = vmatpush.bf16.msra.mxu3 %v7267_v50  ;;  %v8915_v13 = vld [vmem:[#allocation3 + $0x344] sm:$0xf0]  ;;  %v7194_v14 = vld [vmem:[#allocation3 + $0x4b0] sm:$0xf]  ;;  %v8813_v18 = vld [vmem:[#allocation3 + $0x14] sm:$0xf0]  ;;  %v6811_v19 = vor.u32 %v8867_v11, %v6810_v9 }
  0xa4   : > { %2366 = vmatpush.bf16.msra.mxu0 %v6667_v56  ;;  %v8963_v15 = vld [vmem:[#allocation3 + $0x4c4] sm:$0xf0]  ;;  %v7003_v20 = vor.u32 %v8915_v13, %v7002_v12  ;;  %v6786_v21 = vld [vmem:[#allocation3 + $0x180] sm:$0xf]  ;;  %v8861_v22 = vld [vmem:[#allocation3 + $0x194] sm:$0xf0]  ;;  %v6595_v31 = vor.u32 %v8813_v18, %v6594_v17 }
  0xa5   : > { %2379 = vmatpush.bf16.msra.mxu1 %v6859_v57  ;;  %v6978_v23 = vld [vmem:[#allocation3 + $0x300] sm:$0xf]  ;;  %v7195_v24 = vor.u32 %v8963_v15, %v7194_v14  ;;  %v8909_v25 = vld [vmem:[#allocation3 + $0x314] sm:$0xf0]  ;;  %v7530_v28 = vld [vmem:[#allocation3 + $0x750] sm:$0xf]  ;;  %v6787_v35 = vor.u32 %v8861_v22, %v6786_v21 }
  0xa6   : > { %2392 = vmatpush.bf16.msra.mxu2 %v7051_v58  ;;  %v7170_v26 = vld [vmem:[#allocation3 + $0x480] sm:$0xf]  ;;  %v8957_v27 = vld [vmem:[#allocation3 + $0x494] sm:$0xf0]  ;;  %v9047_v29 = vld [vmem:[#allocation3 + $0x764] sm:$0xf0]  ;;  %v6979_v36 = vor.u32 %v8909_v25, %v6978_v23 }
  0xa7   : > { %2405 = vmatpush.bf16.msra.mxu3 %v7243_v62  ;;  %v7722_v30 = vld [vmem:[#allocation3 + $0x8d0] sm:$0xf]  ;;  %v9095_v32 = vld [vmem:[#allocation3 + $0x8e4] sm:$0xf0]  ;;  %v8852_v33 = vld [vmem:[#allocation3 + $0x154] sm:$0xf]  ;;  %v7171_v39 = vor.u32 %v8957_v27, %v7170_v26  ;;  %v7531_v40 = vor.u32 %v9047_v29, %v7530_v28 }
  0xa8   : > { %2367 = vmatpush.bf16.msra.mxu0 %v6643_v4  ;;  %v6764_v34 = vld [vmem:[#allocation3 + $0x168] sm:$0xf0]  ;;  %v8900_v37 = vld [vmem:[#allocation3 + $0x2d4] sm:$0xf]  ;;  %v7723_v41 = vor.u32 %v9095_v32, %v7722_v30  ;;  %v7506_v43 = vld [vmem:[#allocation3 + $0x720] sm:$0xf] }
  0xa9   : > { %2380 = vmatpush.bf16.msra.mxu1 %v6835_v5  ;;  %v6956_v38 = vld [vmem:[#allocation3 + $0x2e8] sm:$0xf0]  ;;  %v6767_v42 = vor.u32 %v8852_v33, %v6764_v34  ;;  %v9041_v44 = vld [vmem:[#allocation3 + $0x734] sm:$0xf0]  ;;  %v7698_v45 = vld [vmem:[#allocation3 + $0x8a0] sm:$0xf] }
  0xaa   : > { %2393 = vmatpush.bf16.msra.mxu2 %v7027_v6  ;;  %v6959_v46 = vor.u32 %v8900_v37, %v6956_v38  ;;  %v9089_v47 = vld [vmem:[#allocation3 + $0x8b4] sm:$0xf0]  ;;  %v8846_v48 = vld [vmem:[#allocation3 + $0x124] sm:$0xf]  ;;  %v6740_v49 = vld [vmem:[#allocation3 + $0x138] sm:$0xf0]  ;;  %v7507_v52 = vor.u32 %v9041_v44, %v7506_v43 }
  0xab   : > { %2406 = vmatpush.bf16.msra.mxu3 %v7219_v10  ;;  %v8894_v50 = vld [vmem:[#allocation3 + $0x2a4] sm:$0xf]  ;;  %v6932_v51 = vld [vmem:[#allocation3 + $0x2b8] sm:$0xf0]  ;;  %v7482_v53 = vld [vmem:[#allocation3 + $0x6f0] sm:$0xf]  ;;  %v7699_v54 = vor.u32 %v9089_v47, %v7698_v45  ;;  %v6743_v55 = vor.u32 %v8846_v48, %v6740_v49 }
  0xac   : > { %2368 = vmatpush.bf16.msra.mxu0 %v6619_v16  ;;  %v9035_v56 = vld [vmem:[#allocation3 + $0x704] sm:$0xf0]  ;;  %v7674_v57 = vld [vmem:[#allocation3 + $0x870] sm:$0xf]  ;;  %v6935_v59 = vor.u32 %v8894_v50, %v6932_v51  ;;  %v8840_v60 = vld [vmem:[#allocation3 + $0xf4] sm:$0xf] }
  0xad   : > { %2381 = vmatpush.bf16.msra.mxu1 %v6811_v19  ;;  %v9083_v58 = vld [vmem:[#allocation3 + $0x884] sm:$0xf0]  ;;  %v6716_v61 = vld [vmem:[#allocation3 + $0x108] sm:$0xf0]  ;;  %v8888_v62 = vld [vmem:[#allocation3 + $0x274] sm:$0xf]  ;;  %v7483_v0 = vor.u32 %v9035_v56, %v7482_v53 }
  0xae   : > { %2394 = vmatpush.bf16.msra.mxu2 %v7003_v20  ;;  %v6908_v63 = vld [vmem:[#allocation3 + $0x288] sm:$0xf0]  ;;  %v7675_v1 = vor.u32 %v9083_v58, %v7674_v57  ;;  %v596_v3 = vld [vmem:[%s12559_s11] sm:$0xff]  ;;  %v6719_v4 = vor.u32 %v8840_v60, %v6716_v61  ;;  %v9029_v6 = vld [vmem:[#allocation3 + $0x6d4] sm:$0xf0]  ;;  %vm2834_vm0 = vcmask 64512  }
  0xaf   : > { %2407 = vmatpush.bf16.msra.mxu3 %v7195_v24  ;;  %v597_v2 = vld [vmem:[%s12559_s11 + $0x8] sm:$0xff]  ;;  %v7458_v5 = vld [vmem:[#allocation3 + $0x6c0] sm:$0xf]  ;;  %v904_v9 = vunpack.c.l.b16 %v596_v3  ;;  %v6911_v11 = vor.u32 %v8888_v62, %v6908_v63  ;;  %v9077_v12 = vld [vmem:[#allocation3 + $0x854] sm:$0xf0]  ;;  %v905_v15 = vunpack.c.h.b16 %v596_v3  ;;  %vm2857_vm1 = vcmask 1043456  }
  0xb0   : > { %2369 = vmatpush.bf16.msra.mxu0 %v6595_v31  ;;  %v7650_v7 = vld [vmem:[#allocation3 + $0x840] sm:$0xf]  ;;  %v906_v8 = vunpack.c.l.b16 %v597_v2  ;;  %v907_v10 = vunpack.c.h.b16 %v597_v2  ;;  %v8834_v13 = vld [vmem:[#allocation3 + $0xc4] sm:$0xf]  ;;  %v6692_v14 = vld [vmem:[#allocation3 + $0xd8] sm:$0xf0]  ;;  %v7459_v21 = vor.u32 %v9029_v6, %v7458_v5 }
  0xb1   : > { %2382 = vmatpush.bf16.msra.mxu1 %v6787_v35  ;;  %v8882_v16 = vld [vmem:[#allocation3 + $0x244] sm:$0xf]  ;;  %v6884_v17 = vld [vmem:[#allocation3 + $0x258] sm:$0xf0]  ;;  %v10238_v19 = vpack.c.b16 %v904_v9, %v904_v9  ;;  %v10242_v22 = vpack.c.b16 %v905_v15, %v905_v15  ;;  %v7651_v23 = vor.u32 %v9077_v12, %v7650_v7  ;;  %v6695_v24 = vor.u32 %v8834_v13, %v6692_v14  ;;  %v7434_v25 = vld [vmem:[#allocation3 + $0x690] sm:$0xf] }
  0xb2   : > { %2395 = vmatpush.bf16.msra.mxu2 %v6979_v36  ;;  %v10236_v18 = vpack.c.b16 %v906_v8, %v906_v8  ;;  %v10240_v20 = vpack.c.b16 %v907_v10, %v907_v10  ;;  %v9023_v26 = vld [vmem:[#allocation3 + $0x6a4] sm:$0xf0]  ;;  %v7626_v27 = vld [vmem:[#allocation3 + $0x810] sm:$0xf]  ;;  %v6887_v28 = vor.u32 %v8882_v16, %v6884_v17  ;;  %v8828_v30 = vld [vmem:[#allocation3 + $0x94] sm:$0xf] }
  0xb3   : > { %2408 = vmatpush.bf16.msra.mxu3 %v7171_v39  ;;  %v9071_v29 = vld [vmem:[#allocation3 + $0x824] sm:$0xf0]  ;;  %v6668_v31 = vld [vmem:[#allocation3 + $0xa8] sm:$0xf0]  ;;  %v8876_v32 = vld [vmem:[#allocation3 + $0x214] sm:$0xf]  ;;  %2370 = vmatmul.bf16.vlgmr.msra.gmra.mxu0 %v10238_v19  ;;  %v7435_v34 = vor.u32 %v9023_v26, %v7434_v25 }
  0xb4   : > { %2414 = vmatpush.bf16.msrb.mxu0 %v7531_v40  ;;  %v6860_v33 = vld [vmem:[#allocation3 + $0x228] sm:$0xf0]  ;;  %2383 = vmatmul.bf16.vlgmr.msra.gmra.mxu1 %v10242_v22  ;;  %v7627_v35 = vor.u32 %v9071_v29, %v7626_v27  ;;  %v6671_v36 = vor.u32 %v8828_v30, %v6668_v31  ;;  %v7410_v37 = vld [vmem:[#allocation3 + $0x660] sm:$0xf]  ;;  %v9017_v38 = vld [vmem:[#allocation3 + $0x674] sm:$0xf0] }
  0xb5   : > { %2427 = vmatpush.bf16.msrb.mxu1 %v7723_v41  ;;  %2396 = vmatmul.bf16.vlgmr.msra.gmra.mxu2 %v10236_v18  ;;  %v7602_v39 = vld [vmem:[#allocation3 + $0x7e0] sm:$0xf]  ;;  %v6863_v40 = vor.u32 %v8876_v32, %v6860_v33  ;;  %v9065_v41 = vld [vmem:[#allocation3 + $0x7f4] sm:$0xf0]  ;;  %v6644_v43 = vld [vmem:[#allocation3 + $0x78] sm:$0xf0] }
  0xb6   : > { %2440 = vmatpush.bf16.msrb.mxu2 %v6767_v42  ;;  %2409 = vmatmul.bf16.vlgmr.msra.gmra.mxu3 %v10240_v20  ;;  %v8822_v42 = vld [vmem:[#allocation3 + $0x64] sm:$0xf]  ;;  %v6836_v45 = vld [vmem:[#allocation3 + $0x1f8] sm:$0xf0]  ;;  %v7386_v47 = vld [vmem:[#allocation3 + $0x630] sm:$0xf]  ;;  %v7603_v49 = vor.u32 %v9065_v41, %v7602_v39 }
  0xb7   : > { %2453 = vmatpush.bf16.msrb.mxu3 %v6959_v46  ;;  %v8870_v44 = vld [vmem:[#allocation3 + $0x1e4] sm:$0xf]  ;;  %v7411_v46 = vor.u32 %v9017_v38, %v7410_v37  ;;  %v9011_v48 = vld [vmem:[#allocation3 + $0x644] sm:$0xf0]  ;;  %v6647_v50 = vor.u32 %v8822_v42, %v6644_v43  ;;  %v7578_v51 = vld [vmem:[#allocation3 + $0x7b0] sm:$0xf] }
  0xb8   : > { %2415 = vmatpush.bf16.msrb.mxu0 %v7507_v52  ;;  %v9059_v52 = vld [vmem:[#allocation3 + $0x7c4] sm:$0xf0]  ;;  %v8816_v53 = vld [vmem:[#allocation3 + $0x34] sm:$0xf]  ;;  %v6812_v57 = vld [vmem:[#allocation3 + $0x1c8] sm:$0xf0]  ;;  %v7387_v60 = vor.u32 %v9011_v48, %v7386_v47 }
  0xb9   : > { %2428 = vmatpush.bf16.msrb.mxu1 %v7699_v54  ;;  %v6839_v54 = vor.u32 %v8870_v44, %v6836_v45  ;;  %v8864_v56 = vld [vmem:[#allocation3 + $0x1b4] sm:$0xf]  ;;  %v7362_v58 = vld [vmem:[#allocation3 + $0x600] sm:$0xf]  ;;  %v9053_v62 = vld [vmem:[#allocation3 + $0x794] sm:$0xf0] }
  0xba   : > { %2441 = vmatpush.bf16.msrb.mxu2 %v6743_v55  ;;  %v6620_v55 = vld [vmem:[#allocation3 + $0x48] sm:$0xf0]  ;;  %v7554_v61 = vld [vmem:[#allocation3 + $0x780] sm:$0xf]  ;;  %v8810_v63 = vld [vmem:[#allocation3 + $0x4] sm:$0xf]  ;;  %v6815_v6 = vor.u32 %v8864_v56, %v6812_v57 }
  0xbb   : > { %2454 = vmatpush.bf16.msrb.mxu3 %v6935_v59  ;;  %v9005_v59 = vld [vmem:[#allocation3 + $0x614] sm:$0xf0]  ;;  %v6623_v2 = vor.u32 %v8816_v53, %v6620_v55  ;;  %v598_v3 = vld [vmem:[%s12559_s11 + $0x10] sm:$0xff]  ;;  %v2830_v5 = vld [vmem:[%s12560_s12] sm:$0xff] }
  0xbc   : > { %2416 = vmatpush.bf16.msrb.mxu0 %v7483_v0  ;;  %v6596_v0 = vld [vmem:[#allocation3 + $0x18] sm:$0xf0]  ;;  %v8858_v7 = vld [vmem:[#allocation3 + $0x184] sm:$0xf]  ;;  %v2835_v10 = vsel %vm2834_vm0, %v2830_v5, 0.0  ;;  %v7363_v14 = vor.u32 %v9005_v59, %v7362_v58  ;;  %v909_v27 = vunpack.c.h.b16 %v598_v3  ;;  %v2831_v42 = vld [vmem:[%s12560_s12 + $0x8] sm:$0xff] }
  0xbd   : > { %2429 = vmatpush.bf16.msrb.mxu1 %v7675_v1  ;;  %v7579_v1 = vor.u32 %v9059_v52, %v7578_v51  ;;  %v6788_v8 = vld [vmem:[#allocation3 + $0x198] sm:$0xf0]  ;;  %v7148_v12 = vld [vmem:[#allocation3 + $0x468] sm:$0xf0]  ;;  %v8996_v13 = vld [vmem:[#allocation3 + $0x5d4] sm:$0xf]  ;;  %2836 = vadd.xlane.f32.xlu0 %v2835_v10 }
  0xbe   : > { %2442 = vmatpush.bf16.msrb.mxu2 %v6719_v4  ;;  %v2832_v4 = vld [vmem:[%s12560_s12 + $0x10] sm:$0xff]  ;;  %v7340_v15 = vld [vmem:[#allocation3 + $0x5e8] sm:$0xf0]  ;;  %v8942_v30 = vld [vmem:[#allocation3 + $0x424] sm:$0xf]  ;;  %v10269_v45 = vpack.c.b16 %v909_v27, %v909_v27 }
  0xbf   : > { %2455 = vmatpush.bf16.msrb.mxu3 %v6911_v11  ;;  %v2841_v9 = vsel %vm2834_vm0, %v2832_v4, 0.0  ;;  %v8948_v11 = vld [vmem:[#allocation3 + $0x454] sm:$0xf]  ;;  %v7532_v17 = vld [vmem:[#allocation3 + $0x768] sm:$0xf0]  ;;  %v7343_v32 = vor.u32 %v8996_v13, %v7340_v15 }
  0xc0   : > { %2417 = vmatpush.bf16.msrb.mxu0 %v7459_v21  ;;  %2842 = vadd.xlane.f32.xlu1 %v2841_v9  ;;  %v9044_v16 = vld [vmem:[#allocation3 + $0x754] sm:$0xf]  ;;  %v908_v21 = vunpack.c.l.b16 %v598_v3  ;;  %v7724_v26 = vld [vmem:[#allocation3 + $0x8e8] sm:$0xf0]  ;;  %v7151_v29 = vor.u32 %v8948_v11, %v7148_v12  ;;  %v7124_v31 = vld [vmem:[#allocation3 + $0x438] sm:$0xf0] }
  0xc1   : > { %2430 = vmatpush.bf16.msrb.mxu1 %v7651_v23  ;;  %v7555_v23 = vor.u32 %v9053_v62, %v7554_v61  ;;  %v9092_v25 = vld [vmem:[#allocation3 + $0x8d4] sm:$0xf]  ;;  %v7535_v33 = vor.u32 %v9044_v16, %v7532_v17  ;;  %v9038_v38 = vld [vmem:[#allocation3 + $0x724] sm:$0xf]  ;;  %v7508_v39 = vld [vmem:[#allocation3 + $0x738] sm:$0xf0]  ;;  %v7127_v47 = vor.u32 %v8942_v30, %v7124_v31 }
  0xc2   : > { %2443 = vmatpush.bf16.msrb.mxu2 %v6695_v24  ;;  %v6599_v24 = vor.u32 %v8810_v63, %v6596_v0  ;;  %v7727_v37 = vor.u32 %v9092_v25, %v7724_v26  ;;  %v9086_v43 = vld [vmem:[#allocation3 + $0x8a4] sm:$0xf]  ;;  %v7700_v44 = vld [vmem:[#allocation3 + $0x8b8] sm:$0xf0]  ;;  %v7100_v51 = vld [vmem:[#allocation3 + $0x408] sm:$0xf0] }
  0xc3   : > { %2456 = vmatpush.bf16.msrb.mxu3 %v6887_v28  ;;  %v6791_v28 = vor.u32 %v8858_v7, %v6788_v8  ;;  %v8984_v52 = vld [vmem:[#allocation3 + $0x574] sm:$0xf]  ;;  %v7703_v53 = vor.u32 %v9086_v43, %v7700_v44  ;;  %v7484_v56 = vld [vmem:[#allocation3 + $0x708] sm:$0xf0]  ;;  %v2838_v61 = vsel %vm2834_vm0, %v2831_v42, 0.0 }
  0xc4   : > { %2418 = vmatpush.bf16.msrb.mxu0 %v7435_v34  ;;  %v8990_v34 = vld [vmem:[#allocation3 + $0x5a4] sm:$0xf]  ;;  %v9032_v55 = vld [vmem:[#allocation3 + $0x6f4] sm:$0xf]  ;;  %v7676_v58 = vld [vmem:[#allocation3 + $0x888] sm:$0xf0] }
  0xc5   : > { %2431 = vmatpush.bf16.msrb.mxu1 %v7627_v35  ;;  %v7316_v35 = vld [vmem:[#allocation3 + $0x5b8] sm:$0xf0]  ;;  %v9080_v57 = vld [vmem:[#allocation3 + $0x874] sm:$0xf]  ;;  %v7487_v63 = vor.u32 %v9032_v55, %v7484_v56  ;;  %v8930_v0 = vld [vmem:[#allocation3 + $0x3c4] sm:$0xf]  ;;  %2839 = vadd.xlane.f32.xlu0 %v2838_v61 }
  0xc6   : > { %2444 = vmatpush.bf16.msrb.mxu2 %v6671_v36  ;;  %v2833_v36 = vld [vmem:[%s12560_s12 + $0x18] sm:$0xff]  ;;  %v7319_v48 = vor.u32 %v8990_v34, %v7316_v35  ;;  %v7679_v3 = vor.u32 %v9080_v57, %v7676_v58  ;;  %v9074_v7 = vld [vmem:[#allocation3 + $0x844] sm:$0xf]  ;;  %v8924_v12 = vld [vmem:[#allocation3 + $0x394] sm:$0xf] }
  0xc7   : > { %2457 = vmatpush.bf16.msrb.mxu3 %v6863_v40  ;;  %v10262_v40 = vpack.c.b16 %v908_v21, %v908_v21  ;;  %v10264_v41 = vpack.c.bf16 %v2833_v36, %v2832_v4  ;;  %v2844_v59 = vsel %vm2834_vm0, %v2833_v36, 0.0  ;;  %v7268_v4 = vld [vmem:[#allocation3 + $0x558] sm:$0xf0]  ;;  %v7052_v13 = vld [vmem:[#allocation3 + $0x3a8] sm:$0xf0] }
  0xc8   : > { %2419 = vmatpush.bf16.msrb.mxu0 %v7411_v46  ;;  %v10271_v46 = vpack.c.bf16 %v2831_v42, %v2830_v5  ;;  %v9026_v5 = vld [vmem:[#allocation3 + $0x6c4] sm:$0xf]  ;;  %2845 = vadd.xlane.f32.xlu1 %v2844_v59  ;;  %v7652_v8 = vld [vmem:[#allocation3 + $0x858] sm:$0xf0]  ;;  %v7244_v16 = vld [vmem:[#allocation3 + $0x528] sm:$0xf0]  ;;  %v7055_v25 = vor.u32 %v8924_v12, %v7052_v13 }
  0xc9   : > { %2432 = vmatpush.bf16.msrb.mxu1 %v7603_v49  ;;  %v7511_v49 = vor.u32 %v9038_v38, %v7508_v39  ;;  %v7655_v15 = vor.u32 %v9074_v7, %v7652_v8  ;;  %v9020_v17 = vld [vmem:[#allocation3 + $0x694] sm:$0xf]  ;;  %v7436_v21 = vld [vmem:[#allocation3 + $0x6a8] sm:$0xf0]  ;;  %v8966_v30 = vld [vmem:[#allocation3 + $0x4e4] sm:$0xf] }
  0xca   : > { %2445 = vmatpush.bf16.msrb.mxu2 %v6647_v50  ;;  %v8936_v50 = vld [vmem:[#allocation3 + $0x3f4] sm:$0xf]  ;;  %v7439_v27 = vor.u32 %v9020_v17, %v7436_v21  ;;  %v7412_v34 = vld [vmem:[#allocation3 + $0x678] sm:$0xf0]  ;;  %v9062_v35 = vld [vmem:[#allocation3 + $0x7e4] sm:$0xf] }
  0xcb   : > { %2458 = vmatpush.bf16.msrb.mxu3 %v6839_v54  ;;  %v7292_v54 = vld [vmem:[#allocation3 + $0x588] sm:$0xf0]  ;;  %v7604_v36 = vld [vmem:[#allocation3 + $0x7f8] sm:$0xf0]  ;;  %v8912_v42 = vld [vmem:[#allocation3 + $0x334] sm:$0xf] }
  0xcc   : > { %2420 = vmatpush.bf16.msrb.mxu0 %v7387_v60  ;;  %v7103_v60 = vor.u32 %v8936_v50, %v7100_v51  ;;  %v7295_v62 = vor.u32 %v8984_v52, %v7292_v54  ;;  %v7004_v43 = vld [vmem:[#allocation3 + $0x348] sm:$0xf0]  ;;  %v8960_v44 = vld [vmem:[#allocation3 + $0x4b4] sm:$0xf]  ;;  %v8906_v54 = vld [vmem:[#allocation3 + $0x304] sm:$0xf] }
  0xcd   : > { %2433 = vmatpush.bf16.msrb.mxu1 %v7579_v1  ;;  %v7076_v1 = vld [vmem:[#allocation3 + $0x3d8] sm:$0xf0]  ;;  %v7388_v50 = vld [vmem:[#allocation3 + $0x648] sm:$0xf0]  ;;  %v9056_v51 = vld [vmem:[#allocation3 + $0x7b4] sm:$0xf] }
  0xce   : > { %2446 = vmatpush.bf16.msrb.mxu2 %v6623_v2  ;;  %v8978_v2 = vld [vmem:[#allocation3 + $0x544] sm:$0xf]  ;;  %v7079_v9 = vor.u32 %v8930_v0, %v7076_v1  ;;  %v7580_v52 = vld [vmem:[#allocation3 + $0x7c8] sm:$0xf0]  ;;  %v6980_v55 = vld [vmem:[#allocation3 + $0x318] sm:$0xf0] }
  0xcf   : > { %2459 = vmatpush.bf16.msrb.mxu3 %v6815_v6  ;;  %v7460_v6 = vld [vmem:[#allocation3 + $0x6d8] sm:$0xf0]  ;;  %v7271_v10 = vor.u32 %v8978_v2, %v7268_v4  ;;  %v8954_v58 = vld [vmem:[#allocation3 + $0x484] sm:$0xf]  ;;  %v7583_v61 = vor.u32 %v9056_v51, %v7580_v52  ;;  %v6770_v1 = vld [vmem:[#allocation3 + $0x158] sm:$0xf]  ;;  %v6983_v4 = vor.u32 %v8906_v54, %v6980_v55 }
  0xd0   : > { %2421 = vmatpush.bf16.msrb.mxu0 %v7363_v14  ;;  %v7463_v11 = vor.u32 %v9026_v5, %v7460_v6  ;;  %v8972_v14 = vld [vmem:[#allocation3 + $0x514] sm:$0xf]  ;;  %v7172_v59 = vld [vmem:[#allocation3 + $0x498] sm:$0xf0]  ;;  %v8856_v2 = vld [vmem:[#allocation3 + $0x16c] sm:$0xf0] }
  0xd1   : > { %2434 = vmatpush.bf16.msrb.mxu1 %v7555_v23  ;;  %v9068_v23 = vld [vmem:[#allocation3 + $0x814] sm:$0xf]  ;;  %v7247_v26 = vor.u32 %v8972_v14, %v7244_v16  ;;  %v7556_v0 = vld [vmem:[#allocation3 + $0x798] sm:$0xf0]  ;;  %v8904_v5 = vld [vmem:[#allocation3 + $0x2ec] sm:$0xf0]  ;;  %v7175_v8 = vor.u32 %v8954_v58, %v7172_v59  ;;  %v6771_v13 = vor.u32 %v8856_v2, %v6770_v1 }
  0xd2   : > { %2447 = vmatpush.bf16.msrb.mxu2 %v6599_v24  ;;  %v7628_v24 = vld [vmem:[#allocation3 + $0x828] sm:$0xf0]  ;;  %v7154_v6 = vld [vmem:[#allocation3 + $0x458] sm:$0xf]  ;;  %v8952_v7 = vld [vmem:[#allocation3 + $0x46c] sm:$0xf0] }
  0xd3   : > { %2460 = vmatpush.bf16.msrb.mxu3 %v6791_v28  ;;  %2422 = vmatmul.bf16.vlgmr.msrb.gmra.mxu0 %v10262_v40  ;;  %v8918_v28 = vld [vmem:[#allocation3 + $0x364] sm:$0xf]  ;;  %v7631_v31 = vor.u32 %v9068_v23, %v7628_v24  ;;  %v6746_v16 = vld [vmem:[#allocation3 + $0x128] sm:$0xf]  ;;  %v8850_v17 = vld [vmem:[#allocation3 + $0x13c] sm:$0xf0] }
  0xd4   : > { %2466 = vmatpush.bf16.msra.mxu0 %v7151_v29  ;;  %2435 = vmatmul.bf16.vlgmr.msrb.gmra.mxu1 %v10269_v45  ;;  %v7028_v29 = vld [vmem:[#allocation3 + $0x378] sm:$0xf0]  ;;  %v6938_v21 = vld [vmem:[#allocation3 + $0x2a8] sm:$0xf]  ;;  %v8898_v24 = vld [vmem:[#allocation3 + $0x2bc] sm:$0xf0] }
  0xd5   : > { %2479 = vmatpush.bf16.msra.mxu1 %v7343_v32  ;;  %2448 = vmatmul.bf16.vlgmr.msrb.gmra.mxu2 %v10238_v19  ;;  %v7220_v32 = vld [vmem:[#allocation3 + $0x4f8] sm:$0xf0]  ;;  %v8886_v52 = vld [vmem:[#allocation3 + $0x25c] sm:$0xf0]  ;;  %v7274_v55 = vld [vmem:[#allocation3 + $0x548] sm:$0xf] }
  0xd6   : > { %2492 = vmatpush.bf16.msra.mxu2 %v7535_v33  ;;  %2461 = vmatmul.bf16.vlgmr.msrb.gmra.mxu3 %v10242_v22  ;;  %v9014_v33 = vld [vmem:[#allocation3 + $0x664] sm:$0xf]  ;;  %v7223_v38 = vor.u32 %v8966_v30, %v7220_v32  ;;  %v6939_v30 = vor.u32 %v8898_v24, %v6938_v21  ;;  %v6722_v32 = vld [vmem:[#allocation3 + $0xf8] sm:$0xf]  ;;  %v8934_v54 = vld [vmem:[#allocation3 + $0x3dc] sm:$0xf0] }
  0xd7   : > { %2505 = vmatpush.bf16.msra.mxu3 %v7727_v37  ;;  %v7031_v37 = vor.u32 %v8918_v28, %v7028_v29  ;;  %v7415_v39 = vor.u32 %v9014_v33, %v7412_v34  ;;  %v8994_v28 = vld [vmem:[#allocation3 + $0x5bc] sm:$0xf0]  ;;  %v6747_v29 = vor.u32 %v8850_v17, %v6746_v16  ;;  %v8844_v33 = vld [vmem:[#allocation3 + $0x10c] sm:$0xf0]  ;;  %v6914_v34 = vld [vmem:[#allocation3 + $0x278] sm:$0xf] }
  0xd8   : > { %2467 = vmatpush.bf16.msra.mxu0 %v7127_v47  ;;  %v7607_v47 = vor.u32 %v9062_v35, %v7604_v36  ;;  %v8892_v36 = vld [vmem:[#allocation3 + $0x28c] sm:$0xf0]  ;;  %v7058_v1 = vld [vmem:[#allocation3 + $0x398] sm:$0xf]  ;;  %v8970_v16 = vld [vmem:[#allocation3 + $0x4fc] sm:$0xf0] }
  0xd9   : > { %2480 = vmatpush.bf16.msra.mxu1 %v7319_v48  ;;  %v7196_v48 = vld [vmem:[#allocation3 + $0x4c8] sm:$0xf0]  ;;  %v8928_v2 = vld [vmem:[#allocation3 + $0x3ac] sm:$0xf0]  ;;  %v6626_v24 = vld [vmem:[#allocation3 + $0x38] sm:$0xf] }
  0xda   : > { %2493 = vmatpush.bf16.msra.mxu2 %v7511_v49  ;;  %v9008_v49 = vld [vmem:[#allocation3 + $0x634] sm:$0xf]  ;;  %v7199_v56 = vor.u32 %v8960_v44, %v7196_v48  ;;  %v6915_v44 = vor.u32 %v8892_v36, %v6914_v34  ;;  %v6698_v48 = vld [vmem:[#allocation3 + $0xc8] sm:$0xf] }
  0xdb   : > { %2506 = vmatpush.bf16.msra.mxu3 %v7703_v53  ;;  %v7007_v53 = vor.u32 %v8912_v42, %v7004_v43  ;;  %v7391_v57 = vor.u32 %v9008_v49, %v7388_v50  ;;  %v8988_v42 = vld [vmem:[#allocation3 + $0x58c] sm:$0xf0]  ;;  %v6723_v43 = vor.u32 %v8844_v33, %v6722_v32  ;;  %v8838_v49 = vld [vmem:[#allocation3 + $0xdc] sm:$0xf0]  ;;  %v6890_v50 = vld [vmem:[#allocation3 + $0x248] sm:$0xf] }
  0xdc   : > { %2468 = vmatpush.bf16.msra.mxu0 %v7103_v60  ;;  %v9002_v60 = vld [vmem:[#allocation3 + $0x604] sm:$0xf]  ;;  %v6891_v58 = vor.u32 %v8886_v52, %v6890_v50  ;;  %v8964_v32 = vld [vmem:[#allocation3 + $0x4cc] sm:$0xf0]  ;;  %v6602_v34 = vld [vmem:[#allocation3 + $0x8] sm:$0xf] }
  0xdd   : > { %2481 = vmatpush.bf16.msra.mxu1 %v7295_v62  ;;  %v7364_v62 = vld [vmem:[#allocation3 + $0x618] sm:$0xf0]  ;;  %v9048_v50 = vld [vmem:[#allocation3 + $0x76c] sm:$0xf0] }
  0xde   : > { %2494 = vmatpush.bf16.msra.mxu2 %v7487_v63  ;;  %v9050_v63 = vld [vmem:[#allocation3 + $0x784] sm:$0xf] }
  0xdf   : > { %2507 = vmatpush.bf16.msra.mxu3 %v7679_v3  ;;  %v6962_v3 = vld [vmem:[#allocation3 + $0x2d8] sm:$0xf]  ;;  %v7559_v12 = vor.u32 %v9050_v63, %v7556_v0  ;;  %v8880_v0 = vld [vmem:[#allocation3 + $0x22c] sm:$0xf0] }
  0xe0   : > { %2469 = vmatpush.bf16.msra.mxu0 %v7079_v9  ;;  %v7367_v9 = vor.u32 %v9002_v60, %v7364_v62  ;;  %v6963_v14 = vor.u32 %v8904_v5, %v6962_v3  ;;  %v6674_v60 = vld [vmem:[#allocation3 + $0x98] sm:$0xf] }
  0xe1   : > { %2482 = vmatpush.bf16.msra.mxu1 %v7271_v10  ;;  %v7346_v10 = vld [vmem:[#allocation3 + $0x5d8] sm:$0xf] }
  0xe2   : > { %2495 = vmatpush.bf16.msra.mxu2 %v7463_v11  ;;  %v9000_v11 = vld [vmem:[#allocation3 + $0x5ec] sm:$0xf0]  ;;  %v6866_v62 = vld [vmem:[#allocation3 + $0x218] sm:$0xf] }
  0xe3   : > { %2508 = vmatpush.bf16.msra.mxu3 %v7655_v15  ;;  %v7155_v15 = vor.u32 %v8952_v7, %v7154_v6  ;;  %v7347_v23 = vor.u32 %v9000_v11, %v7346_v10  ;;  %v7250_v3 = vld [vmem:[#allocation3 + $0x518] sm:$0xf]  ;;  %v6867_v6 = vor.u32 %v8880_v0, %v6866_v62  ;;  %v7059_v7 = vor.u32 %v8928_v2, %v7058_v1  ;;  %v6842_v10 = vld [vmem:[#allocation3 + $0x1e8] sm:$0xf]  ;;  %v9042_v1 = vld [vmem:[#allocation3 + $0x73c] sm:$0xf0] }
  0xe4   : > { %2470 = vmatpush.bf16.msra.mxu0 %v7055_v25  ;;  %v7130_v25 = vld [vmem:[#allocation3 + $0x428] sm:$0xf] }
  0xe5   : > { %2483 = vmatpush.bf16.msra.mxu1 %v7247_v26  ;;  %v8946_v26 = vld [vmem:[#allocation3 + $0x43c] sm:$0xf0]  ;;  %v7514_v0 = vld [vmem:[#allocation3 + $0x728] sm:$0xf] }
  0xe6   : > { %2496 = vmatpush.bf16.msra.mxu2 %v7439_v27  ;;  %v7322_v27 = vld [vmem:[#allocation3 + $0x5a8] sm:$0xf] }
  0xe7   : > { %2509 = vmatpush.bf16.msra.mxu3 %v7631_v31  ;;  %v7131_v31 = vor.u32 %v8946_v26, %v7130_v25  ;;  %v7323_v35 = vor.u32 %v8994_v28, %v7322_v27  ;;  %v8820_v25 = vld [vmem:[#allocation3 + $0x4c] sm:$0xf0]  ;;  %v6818_v26 = vld [vmem:[#allocation3 + $0x1b8] sm:$0xf]  ;;  %v7706_v2 = vld [vmem:[#allocation3 + $0x8a8] sm:$0xf] }
  0xe8   : > { %2471 = vmatpush.bf16.msra.mxu0 %v7031_v37  ;;  %v7106_v37 = vld [vmem:[#allocation3 + $0x3f8] sm:$0xf]  ;;  %v8868_v28 = vld [vmem:[#allocation3 + $0x1cc] sm:$0xf0]  ;;  %v6627_v33 = vor.u32 %v8820_v25, %v6626_v24  ;;  %v6916_v24 = vld [vmem:[#allocation3 + $0x290] sm:$0xf0] }
  0xe9   : > { %2484 = vmatpush.bf16.msra.mxu1 %v7223_v38  ;;  %v8940_v38 = vld [vmem:[#allocation3 + $0x40c] sm:$0xf0]  ;;  %v6819_v36 = vor.u32 %v8868_v28, %v6818_v26  ;;  %v7466_v28 = vld [vmem:[#allocation3 + $0x6c8] sm:$0xf] }
  0xea   : > { %2497 = vmatpush.bf16.msra.mxu2 %v7415_v39  ;;  %v7298_v39 = vld [vmem:[#allocation3 + $0x578] sm:$0xf] }
  0xeb   : > { %2510 = vmatpush.bf16.msra.mxu3 %v7607_v47  ;;  %v7107_v47 = vor.u32 %v8940_v38, %v7106_v37  ;;  %v7299_v51 = vor.u32 %v8988_v42, %v7298_v39  ;;  %v6794_v38 = vld [vmem:[#allocation3 + $0x188] sm:$0xf]  ;;  %v8862_v39 = vld [vmem:[#allocation3 + $0x19c] sm:$0xf0] }
  0xec   : > { %2472 = vmatpush.bf16.msra.mxu0 %v7007_v53  ;;  %v7082_v53 = vld [vmem:[#allocation3 + $0x3c8] sm:$0xf] }
  0xed   : > { %2485 = vmatpush.bf16.msra.mxu1 %v7199_v56  ;;  %v8982_v56 = vld [vmem:[#allocation3 + $0x55c] sm:$0xf0]  ;;  %v7083_v59 = vor.u32 %v8934_v54, %v7082_v53  ;;  %v6986_v42 = vld [vmem:[#allocation3 + $0x308] sm:$0xf]  ;;  %v9096_v53 = vld [vmem:[#allocation3 + $0x8ec] sm:$0xf0] }
  0xee   : > { %2498 = vmatpush.bf16.msra.mxu2 %v7391_v57  ;;  %v6699_v57 = vor.u32 %v8838_v49, %v6698_v48  ;;  %v7275_v63 = vor.u32 %v8982_v56, %v7274_v55  ;;  %v8958_v48 = vld [vmem:[#allocation3 + $0x49c] sm:$0xf0]  ;;  %v7538_v49 = vld [vmem:[#allocation3 + $0x758] sm:$0xf]  ;;  %v8853_v54 = vld [vmem:[#allocation3 + $0x15c] sm:$0xf]  ;;  %v6795_v56 = vor.u32 %v8862_v39, %v6794_v38 }
  0xef   : > { %2511 = vmatpush.bf16.msra.mxu3 %v7583_v61  ;;  %v8832_v61 = vld [vmem:[#allocation3 + $0xac] sm:$0xf0]  ;;  %v6772_v55 = vld [vmem:[#allocation3 + $0x170] sm:$0xf0] }
  0xf0   : > { %2473 = vmatpush.bf16.msra.mxu0 %v6983_v4  ;;  %v8976_v4 = vld [vmem:[#allocation3 + $0x52c] sm:$0xf0]  ;;  %v6675_v5 = vor.u32 %v8832_v61, %v6674_v60  ;;  %v7539_v61 = vor.u32 %v9048_v50, %v7538_v49  ;;  %v8829_v49 = vld [vmem:[#allocation3 + $0x9c] sm:$0xf]  ;;  %v6676_v50 = vld [vmem:[#allocation3 + $0xb0] sm:$0xf0] }
  0xf1   : > { %2486 = vmatpush.bf16.msra.mxu1 %v7175_v8  ;;  %v6650_v8 = vld [vmem:[#allocation3 + $0x68] sm:$0xf]  ;;  %v7251_v11 = vor.u32 %v8976_v4, %v7250_v3  ;;  %v9090_v4 = vld [vmem:[#allocation3 + $0x8bc] sm:$0xf0] }
  0xf2   : > { %2499 = vmatpush.bf16.msra.mxu2 %v7367_v9  ;;  %v8826_v9 = vld [vmem:[#allocation3 + $0x7c] sm:$0xf0] }
  0xf3   : > { %2512 = vmatpush.bf16.msra.mxu3 %v7559_v12  ;;  %2474 = vmatmul.bf16.vlgmr.msra.gmra.mxu0 %v10236_v18  ;;  %v8874_v12 = vld [vmem:[#allocation3 + $0x1fc] sm:$0xf0]  ;;  %v6651_v17 = vor.u32 %v8826_v9, %v6650_v8  ;;  %v6940_v8 = vld [vmem:[#allocation3 + $0x2c0] sm:$0xf0]  ;;  %v7515_v9 = vor.u32 %v9042_v1, %v7514_v0 }
  0xf4   : > { %2518 = vmatpush.bf16.msrb.mxu0 %v6771_v13  ;;  %2487 = vmatmul.bf16.vlgmr.msra.gmra.mxu1 %v10240_v20  ;;  %v7034_v13 = vld [vmem:[#allocation3 + $0x368] sm:$0xf]  ;;  %v6843_v21 = vor.u32 %v8874_v12, %v6842_v10  ;;  %v7707_v10 = vor.u32 %v9090_v4, %v7706_v2  ;;  %v7490_v12 = vld [vmem:[#allocation3 + $0x6f8] sm:$0xf]  ;;  %v6844_v0 = vld [vmem:[#allocation3 + $0x200] sm:$0xf0] }
  0xf5   : > { %2531 = vmatpush.bf16.msrb.mxu1 %v6963_v14  ;;  %2500 = vmatmul.bf16.vlgmr.msra.gmra.mxu2 %v10262_v40  ;;  %v8922_v14 = vld [vmem:[#allocation3 + $0x37c] sm:$0xf0]  ;;  %v7394_v4 = vld [vmem:[#allocation3 + $0x638] sm:$0xf] }
  0xf6   : > { %2544 = vmatpush.bf16.msrb.mxu2 %v7155_v15  ;;  %2513 = vmatmul.bf16.vlgmr.msra.gmra.mxu3 %v10269_v45  ;;  %v7226_v15 = vld [vmem:[#allocation3 + $0x4e8] sm:$0xf] }
  0xf7   : > { %2557 = vmatpush.bf16.msrb.mxu3 %v7347_v23  ;;  %v7035_v23 = vor.u32 %v8922_v14, %v7034_v13  ;;  %v7227_v27 = vor.u32 %v8970_v16, %v7226_v15  ;;  %v9036_v13 = vld [vmem:[#allocation3 + $0x70c] sm:$0xf0]  ;;  %v7682_v14 = vld [vmem:[#allocation3 + $0x878] sm:$0xf] }
  0xf8   : > { %2519 = vmatpush.bf16.msrb.mxu0 %v6747_v29  ;;  %v7010_v29 = vld [vmem:[#allocation3 + $0x338] sm:$0xf]  ;;  %v9084_v16 = vld [vmem:[#allocation3 + $0x88c] sm:$0xf0]  ;;  %v7491_v25 = vor.u32 %v9036_v13, %v7490_v12  ;;  %v6820_v12 = vld [vmem:[#allocation3 + $0x1d0] sm:$0xf0] }
  0xf9   : > { %2532 = vmatpush.bf16.msrb.mxu1 %v6939_v30  ;;  %v8916_v30 = vld [vmem:[#allocation3 + $0x34c] sm:$0xf0]  ;;  %v7683_v26 = vor.u32 %v9084_v16, %v7682_v14  ;;  %v7370_v14 = vld [vmem:[#allocation3 + $0x608] sm:$0xf] }
  0xfa   : > { %2545 = vmatpush.bf16.msrb.mxu2 %v7131_v31  ;;  %v7202_v31 = vld [vmem:[#allocation3 + $0x4b8] sm:$0xf]  ;;  %v7011_v37 = vor.u32 %v8916_v30, %v7010_v29  ;;  %v9030_v29 = vld [vmem:[#allocation3 + $0x6dc] sm:$0xf0]  ;;  %v7658_v30 = vld [vmem:[#allocation3 + $0x848] sm:$0xf] }
  0xfb   : > { %2558 = vmatpush.bf16.msrb.mxu3 %v7323_v35  ;;  %v8814_v35 = vld [vmem:[#allocation3 + $0x1c] sm:$0xf0] }
  0xfc   : > { %2520 = vmatpush.bf16.msrb.mxu0 %v6723_v43  ;;  %v7203_v43 = vor.u32 %v8964_v32, %v7202_v31  ;;  %v6603_v52 = vor.u32 %v8814_v35, %v6602_v34  ;;  %v9078_v32 = vld [vmem:[#allocation3 + $0x85c] sm:$0xf0]  ;;  %v6700_v34 = vld [vmem:[#allocation3 + $0xe0] sm:$0xf0]  ;;  %v8883_v35 = vld [vmem:[#allocation3 + $0x24c] sm:$0xf] }
  0xfd   : > { %2533 = vmatpush.bf16.msrb.mxu1 %v6915_v44  ;;  %v8910_v44 = vld [vmem:[#allocation3 + $0x31c] sm:$0xf0]  ;;  %v7659_v38 = vor.u32 %v9078_v32, %v7658_v30  ;;  %v7156_v30 = vld [vmem:[#allocation3 + $0x470] sm:$0xf0] }
  0xfe   : > { %2546 = vmatpush.bf16.msrb.mxu2 %v7107_v47  ;;  %v7178_v47 = vld [vmem:[#allocation3 + $0x488] sm:$0xf] }
  0xff   : > { %2559 = vmatpush.bf16.msrb.mxu3 %v7299_v51  ;;  %v7730_v51 = vld [vmem:[#allocation3 + $0x8d8] sm:$0xf]  ;;  %v7179_v60 = vor.u32 %v8958_v48, %v7178_v47  ;;  %v9072_v48 = vld [vmem:[#allocation3 + $0x82c] sm:$0xf0] }
 0x100   : > { %2521 = vmatpush.bf16.msrb.mxu0 %v6699_v57  ;;  %v6987_v57 = vor.u32 %v8910_v44, %v6986_v42  ;;  %v7731_v62 = vor.u32 %v9096_v53, %v7730_v51  ;;  %v7442_v42 = vld [vmem:[#allocation3 + $0x698] sm:$0xf]  ;;  %v8877_v51 = vld [vmem:[#allocation3 + $0x21c] sm:$0xf] }
 0x101   : > { %2534 = vmatpush.bf16.msrb.mxu1 %v6891_v58  ;;  %v8901_v58 = vld [vmem:[#allocation3 + $0x2dc] sm:$0xf]  ;;  %v7634_v44 = vld [vmem:[#allocation3 + $0x818] sm:$0xf] }
 0x102   : > { %2547 = vmatpush.bf16.msrb.mxu2 %v7083_v59  ;;  %v6964_v59 = vld [vmem:[#allocation3 + $0x2f0] sm:$0xf0] }
 0x103   : > { %2560 = vmatpush.bf16.msrb.mxu3 %v7275_v63  ;;  %v6775_v63 = vor.u32 %v8853_v54, %v6772_v55  ;;  %v6967_v3 = vor.u32 %v8901_v58, %v6964_v59  ;;  %v7635_v54 = vor.u32 %v9072_v48, %v7634_v44  ;;  %v6679_v55 = vor.u32 %v8829_v49, %v6676_v50  ;;  %v7610_v58 = vld [vmem:[#allocation3 + $0x7e8] sm:$0xf]  ;;  %v8943_v48 = vld [vmem:[#allocation3 + $0x42c] sm:$0xf]  ;;  %v7132_v49 = vld [vmem:[#allocation3 + $0x440] sm:$0xf0] }
 0x104   : > { %2522 = vmatpush.bf16.msrb.mxu0 %v6675_v5  ;;  %v8847_v5 = vld [vmem:[#allocation3 + $0x12c] sm:$0xf] }
 0x105   : > { %2535 = vmatpush.bf16.msrb.mxu1 %v6867_v6  ;;  %v6748_v6 = vld [vmem:[#allocation3 + $0x140] sm:$0xf0]  ;;  %v8991_v50 = vld [vmem:[#allocation3 + $0x5ac] sm:$0xf] }
 0x106   : > { %2548 = vmatpush.bf16.msrb.mxu2 %v7059_v7  ;;  %v8895_v7 = vld [vmem:[#allocation3 + $0x2ac] sm:$0xf] }
 0x107   : > { %2561 = vmatpush.bf16.msrb.mxu3 %v7251_v11  ;;  %v6751_v11 = vor.u32 %v8847_v5, %v6748_v6  ;;  %v6943_v15 = vor.u32 %v8895_v7, %v6940_v8  ;;  %v9012_v5 = vld [vmem:[#allocation3 + $0x64c] sm:$0xf0]  ;;  %v7586_v6 = vld [vmem:[#allocation3 + $0x7b8] sm:$0xf] }
 0x108   : > { %2523 = vmatpush.bf16.msrb.mxu0 %v6651_v17  ;;  %v8841_v17 = vld [vmem:[#allocation3 + $0xfc] sm:$0xf]  ;;  %v9060_v8 = vld [vmem:[#allocation3 + $0x7cc] sm:$0xf0]  ;;  %v7395_v13 = vor.u32 %v9012_v5, %v7394_v4  ;;  %v7684_v4 = vld [vmem:[#allocation3 + $0x890] sm:$0xf0] }
 0x109   : > { %2536 = vmatpush.bf16.msrb.mxu1 %v6843_v21  ;;  %v6724_v21 = vld [vmem:[#allocation3 + $0x110] sm:$0xf0]  ;;  %v7587_v16 = vor.u32 %v9060_v8, %v7586_v6  ;;  %v8931_v8 = vld [vmem:[#allocation3 + $0x3cc] sm:$0xf] }
 0x10a   : > { %2549 = vmatpush.bf16.msrb.mxu2 %v7035_v23  ;;  %v8889_v23 = vld [vmem:[#allocation3 + $0x27c] sm:$0xf] }
 0x10b   : > { %2562 = vmatpush.bf16.msrb.mxu3 %v7227_v27  ;;  %v6727_v27 = vor.u32 %v8841_v17, %v6724_v21  ;;  %v6919_v31 = vor.u32 %v8889_v23, %v6916_v24  ;;  %v7562_v21 = vld [vmem:[#allocation3 + $0x788] sm:$0xf]  ;;  %v9054_v23 = vld [vmem:[#allocation3 + $0x79c] sm:$0xf0]  ;;  %v8811_v24 = vld [vmem:[#allocation3 + $0xc] sm:$0xf] }
 0x10c   : > { %2524 = vmatpush.bf16.msrb.mxu0 %v6627_v33  ;;  %v8835_v33 = vld [vmem:[#allocation3 + $0xcc] sm:$0xf] }
 0x10d   : > { %2537 = vmatpush.bf16.msrb.mxu1 %v6819_v36  ;;  %v6892_v36 = vld [vmem:[#allocation3 + $0x260] sm:$0xf0]  ;;  %v6703_v39 = vor.u32 %v8835_v33, %v6700_v34  ;;  %v7348_v33 = vld [vmem:[#allocation3 + $0x5f0] sm:$0xf0]  ;;  %v9045_v34 = vld [vmem:[#allocation3 + $0x75c] sm:$0xf] }
 0x10e   : > { %2550 = vmatpush.bf16.msrb.mxu2 %v7011_v37  ;;  %v7467_v37 = vor.u32 %v9030_v29, %v7466_v28  ;;  %v6895_v47 = vor.u32 %v8883_v35, %v6892_v36  ;;  %v6796_v28 = vld [vmem:[#allocation3 + $0x1a0] sm:$0xf0]  ;;  %v8949_v29 = vld [vmem:[#allocation3 + $0x45c] sm:$0xf]  ;;  %v7540_v35 = vld [vmem:[#allocation3 + $0x770] sm:$0xf0]  ;;  %v7563_v36 = vor.u32 %v9054_v23, %v7562_v21 }
 0x10f   : > { %2563 = vmatpush.bf16.msrb.mxu3 %v7203_v43  ;;  %v9024_v43 = vld [vmem:[#allocation3 + $0x6ac] sm:$0xf0]  ;;  %v8925_v21 = vld [vmem:[#allocation3 + $0x39c] sm:$0xf] }
 0x110   : > { %2525 = vmatpush.bf16.msrb.mxu0 %v6603_v52  ;;  %v6868_v52 = vld [vmem:[#allocation3 + $0x230] sm:$0xf0]  ;;  %v7443_v53 = vor.u32 %v9024_v43, %v7442_v42  ;;  %v7159_v43 = vor.u32 %v8949_v29, %v7156_v30  ;;  %v9021_v29 = vld [vmem:[#allocation3 + $0x69c] sm:$0xf] }
 0x111   : > { %2538 = vmatpush.bf16.msrb.mxu1 %v6795_v56  ;;  %v7418_v56 = vld [vmem:[#allocation3 + $0x668] sm:$0xf]  ;;  %v6871_v59 = vor.u32 %v8877_v51, %v6868_v52  ;;  %v7324_v52 = vld [vmem:[#allocation3 + $0x5c0] sm:$0xf0]  ;;  %v7444_v30 = vld [vmem:[#allocation3 + $0x6b0] sm:$0xf0] }
 0x112   : > { %2551 = vmatpush.bf16.msrb.mxu2 %v6987_v57  ;;  %v9018_v57 = vld [vmem:[#allocation3 + $0x67c] sm:$0xf0] }
 0x113   : > { %2564 = vmatpush.bf16.msrb.mxu3 %v7179_v60  ;;  %2526 = vmatmul.bf16.vlgmr.msrb.gmra.mxu0 %v10238_v19  ;;  %v9066_v60 = vld [vmem:[#allocation3 + $0x7fc] sm:$0xf0]  ;;  %v7419_v1 = vor.u32 %v9018_v57, %v7418_v56  ;;  %v7708_v56 = vld [vmem:[#allocation3 + $0x8c0] sm:$0xf0]  ;;  %v7135_v57 = vor.u32 %v8943_v48, %v7132_v49  ;;  %v9063_v49 = vld [vmem:[#allocation3 + $0x7ec] sm:$0xf] }
 0x114   : > { %2570 = vmatpush.bf16.msra.mxu0 %v7539_v61  ;;  %2539 = vmatmul.bf16.vlgmr.msrb.gmra.mxu1 %v10242_v22  ;;  %v8823_v61 = vld [vmem:[#allocation3 + $0x6c] sm:$0xf]  ;;  %v7611_v2 = vor.u32 %v9066_v60, %v7610_v58  ;;  %v7327_v58 = vor.u32 %v8991_v50, %v7324_v52  ;;  %v8937_v60 = vld [vmem:[#allocation3 + $0x3fc] sm:$0xf]  ;;  %v7420_v48 = vld [vmem:[#allocation3 + $0x680] sm:$0xf0] }
 0x115   : > { %2583 = vmatpush.bf16.msra.mxu1 %v7731_v62  ;;  %2552 = vmatmul.bf16.vlgmr.msrb.gmra.mxu2 %v10236_v18  ;;  %v6652_v62 = vld [vmem:[#allocation3 + $0x80] sm:$0xf0] }
 0x116   : > { %2596 = vmatpush.bf16.msra.mxu2 %v6775_v63  ;;  %2565 = vmatmul.bf16.vlgmr.msrb.gmra.mxu3 %v10240_v20  ;;  %v8871_v63 = vld [vmem:[#allocation3 + $0x1ec] sm:$0xf]  ;;  %v7612_v50 = vld [vmem:[#allocation3 + $0x800] sm:$0xf0] }
 0x117   : > { %2609 = vmatpush.bf16.msra.mxu3 %v6967_v3  ;;  %v6655_v3 = vor.u32 %v8823_v61, %v6652_v62  ;;  %v6847_v7 = vor.u32 %v8871_v63, %v6844_v0  ;;  %v7108_v61 = vld [vmem:[#allocation3 + $0x410] sm:$0xf0]  ;;  %v8985_v62 = vld [vmem:[#allocation3 + $0x57c] sm:$0xf] }
 0x118   : > { %2571 = vmatpush.bf16.msra.mxu0 %v7515_v9  ;;  %v8817_v9 = vld [vmem:[#allocation3 + $0x3c] sm:$0xf]  ;;  %v7300_v0 = vld [vmem:[#allocation3 + $0x590] sm:$0xf0]  ;;  %v7111_v5 = vor.u32 %v8937_v60, %v7108_v61  ;;  %v7615_v60 = vor.u32 %v9063_v49, %v7612_v50  ;;  %v7354_v50 = vld [vmem:[#allocation3 + $0x5e0] sm:$0xf] }
 0x119   : > { %2584 = vmatpush.bf16.msra.mxu1 %v7707_v10  ;;  %v6628_v10 = vld [vmem:[#allocation3 + $0x50] sm:$0xf0]  ;;  %v7303_v6 = vor.u32 %v8985_v62, %v7300_v0  ;;  %v9009_v62 = vld [vmem:[#allocation3 + $0x63c] sm:$0xf] }
 0x11a   : > { %2597 = vmatpush.bf16.msra.mxu2 %v6751_v11  ;;  %v8865_v11 = vld [vmem:[#allocation3 + $0x1bc] sm:$0xf]  ;;  %v6631_v17 = vor.u32 %v8817_v9, %v6628_v10  ;;  %v7084_v9 = vld [vmem:[#allocation3 + $0x3e0] sm:$0xf0]  ;;  %v8979_v10 = vld [vmem:[#allocation3 + $0x54c] sm:$0xf] }
 0x11b   : > { %2610 = vmatpush.bf16.msra.mxu3 %v6943_v15  ;;  %v9006_v15 = vld [vmem:[#allocation3 + $0x61c] sm:$0xf0]  ;;  %v7204_v61 = vld [vmem:[#allocation3 + $0x4d0] sm:$0xf0]  ;;  %v9057_v0 = vld [vmem:[#allocation3 + $0x7bc] sm:$0xf] }
 0x11c   : > { %2572 = vmatpush.bf16.msra.mxu0 %v7491_v25  ;;  %v6823_v25 = vor.u32 %v8865_v11, %v6820_v12  ;;  %v7371_v32 = vor.u32 %v9006_v15, %v7370_v14  ;;  %v7276_v12 = vld [vmem:[#allocation3 + $0x560] sm:$0xf0]  ;;  %v9075_v15 = vld [vmem:[#allocation3 + $0x84c] sm:$0xf] }
 0x11d   : > { %2585 = vmatpush.bf16.msra.mxu1 %v7683_v26  ;;  %v6604_v26 = vld [vmem:[#allocation3 + $0x20] sm:$0xf0]  ;;  %v7279_v23 = vor.u32 %v8979_v10, %v7276_v12  ;;  %v9003_v12 = vld [vmem:[#allocation3 + $0x60c] sm:$0xf] }
 0x11e   : > { %2598 = vmatpush.bf16.msra.mxu2 %v6727_v27  ;;  %v8859_v27 = vld [vmem:[#allocation3 + $0x18c] sm:$0xf]  ;;  %v7468_v14 = vld [vmem:[#allocation3 + $0x6e0] sm:$0xf0] }
 0x11f   : > { %2611 = vmatpush.bf16.msra.mxu3 %v6919_v31  ;;  %v8997_v31 = vld [vmem:[#allocation3 + $0x5dc] sm:$0xf]  ;;  %v6799_v42 = vor.u32 %v8859_v27, %v6796_v28  ;;  %v7252_v27 = vld [vmem:[#allocation3 + $0x530] sm:$0xf0] }
 0x120   : > { %2573 = vmatpush.bf16.msra.mxu0 %v7467_v37  ;;  %v6607_v37 = vor.u32 %v8811_v24, %v6604_v26  ;;  %v7351_v44 = vor.u32 %v8997_v31, %v7348_v33  ;;  %v8973_v26 = vld [vmem:[#allocation3 + $0x51c] sm:$0xf]  ;;  %v10291_v31 = vld [vmem:[#allocation6] sm:$0x3f]  ;;  %v7636_v33 = vld [vmem:[#allocation3 + $0x830] sm:$0xf0] }
 0x121   : > { %2586 = vmatpush.bf16.msra.mxu1 %v7659_v38  ;;  %v9093_v38 = vld [vmem:[#allocation3 + $0x8dc] sm:$0xf] }
 0x122   : > { %2599 = vmatpush.bf16.msra.mxu2 %v6703_v39  ;;  %v7732_v39 = vld [vmem:[#allocation3 + $0x8f0] sm:$0xf0] }
 0x123   : > { %2612 = vmatpush.bf16.msra.mxu3 %v6895_v47  ;;  %v7543_v47 = vor.u32 %v9045_v34, %v7540_v35  ;;  %v7735_v51 = vor.u32 %v9093_v38, %v7732_v39  ;;  %v8919_v35 = vld [vmem:[#allocation3 + $0x36c] sm:$0xf]  ;;  %v7036_v38 = vld [vmem:[#allocation3 + $0x380] sm:$0xf0] }
 0x124   : > { %2574 = vmatpush.bf16.msra.mxu0 %v7443_v53  ;;  %v9039_v53 = vld [vmem:[#allocation3 + $0x72c] sm:$0xf] }
 0x125   : > { %2587 = vmatpush.bf16.msra.mxu1 %v7635_v54  ;;  %v7516_v54 = vld [vmem:[#allocation3 + $0x740] sm:$0xf0]  ;;  %v8967_v39 = vld [vmem:[#allocation3 + $0x4ec] sm:$0xf] }
 0x126   : > { %2600 = vmatpush.bf16.msra.mxu2 %v6679_v55  ;;  %v9087_v55 = vld [vmem:[#allocation3 + $0x8ac] sm:$0xf] }
 0x127   : > { %2613 = vmatpush.bf16.msra.mxu3 %v6871_v59  ;;  %v7519_v59 = vor.u32 %v9039_v53, %v7516_v54  ;;  %v7711_v63 = vor.u32 %v9087_v55, %v7708_v56  ;;  %v8913_v55 = vld [vmem:[#allocation3 + $0x33c] sm:$0xf]  ;;  %v7012_v56 = vld [vmem:[#allocation3 + $0x350] sm:$0xf0] }
 0x128   : > { %2575 = vmatpush.bf16.msra.mxu0 %v7419_v1  ;;  %v9033_v1 = vld [vmem:[#allocation3 + $0x6fc] sm:$0xf] }
 0x129   : > { %2588 = vmatpush.bf16.msra.mxu1 %v7611_v2  ;;  %v7492_v2 = vld [vmem:[#allocation3 + $0x710] sm:$0xf0] }
 0x12a   : > { %2601 = vmatpush.bf16.msra.mxu2 %v6655_v3  ;;  %v9081_v3 = vld [vmem:[#allocation3 + $0x87c] sm:$0xf] }
 0x12b   : > { %2614 = vmatpush.bf16.msra.mxu3 %v6847_v7  ;;  %v7495_v7 = vor.u32 %v9033_v1, %v7492_v2  ;;  %v7687_v11 = vor.u32 %v9081_v3, %v7684_v4  ;;  %v7588_v1 = vld [vmem:[#allocation3 + $0x7d0] sm:$0xf0]  ;;  %v7015_v3 = vor.u32 %v8913_v55, %v7012_v56  ;;  %v8907_v4 = vld [vmem:[#allocation3 + $0x30c] sm:$0xf]  ;;  %v7330_v56 = vld [vmem:[#allocation3 + $0x5b0] sm:$0xf] }
 0x12c   : > { %2576 = vmatpush.bf16.msra.mxu0 %v7395_v13  ;;  %v9027_v13 = vld [vmem:[#allocation3 + $0x6cc] sm:$0xf] }
 0x12d   : > { %2589 = vmatpush.bf16.msra.mxu1 %v7587_v16  ;;  %v7660_v16 = vld [vmem:[#allocation3 + $0x860] sm:$0xf0]  ;;  %v7471_v24 = vor.u32 %v9027_v13, %v7468_v14  ;;  %v9051_v14 = vld [vmem:[#allocation3 + $0x78c] sm:$0xf] }
 0x12e   : > { %2602 = vmatpush.bf16.msra.mxu2 %v6631_v17  ;;  %v7087_v17 = vor.u32 %v8931_v8, %v7084_v9  ;;  %v7663_v28 = vor.u32 %v9075_v15, %v7660_v16  ;;  %v8955_v8 = vld [vmem:[#allocation3 + $0x48c] sm:$0xf]  ;;  %v7180_v9 = vld [vmem:[#allocation3 + $0x4a0] sm:$0xf0] }
 0x12f   : > { %2615 = vmatpush.bf16.msra.mxu3 %v6823_v25  ;;  %v7060_v25 = vld [vmem:[#allocation3 + $0x3b0] sm:$0xf0]  ;;  %v7372_v13 = vld [vmem:[#allocation3 + $0x620] sm:$0xf0] }
 0x130   : > { %2577 = vmatpush.bf16.msra.mxu0 %v7371_v32  ;;  %v9069_v32 = vld [vmem:[#allocation3 + $0x81c] sm:$0xf]  ;;  %v7063_v34 = vor.u32 %v8925_v21, %v7060_v25  ;;  %v2371_v52 = vpop.f32.mrf.mxu0  ;;  %v6778_v21 = vld [vmem:[#allocation3 + $0x160] sm:$0xf] }
 0x131   : > { %2590 = vmatpush.bf16.msra.mxu1 %v7563_v36  ;;  %v7255_v36 = vor.u32 %v8973_v26, %v7252_v27  ;;  %v7162_v25 = vld [vmem:[#allocation3 + $0x460] sm:$0xf]  ;;  %v8953_v26 = vld [vmem:[#allocation3 + $0x474] sm:$0xf0] }
 0x132   : > { %2603 = vmatpush.bf16.msra.mxu2 %v6607_v37  ;;  %v7447_v37 = vor.u32 %v9021_v29, %v7444_v30  ;;  %v7183_v29 = vor.u32 %v8955_v8, %v7180_v9  ;;  %v7375_v30 = vor.u32 %v9003_v12, %v7372_v13 }
 0x133   : > { %2616 = vmatpush.bf16.msra.mxu3 %v6799_v42  ;;  %2578 = vmatmul.bf16.vlgmr.msra.gmra.mxu0 %v10262_v40  ;;  %v889_v42 = vperm.slane %v10291_v31, 0 }
 0x134   : > { %2622 = vmatpush.bf16.msrb.mxu0 %v7159_v43  ;;  %2591 = vmatmul.bf16.vlgmr.msra.gmra.mxu1 %v10269_v45  ;;  %v7639_v43 = vor.u32 %v9069_v32, %v7636_v33 }
 0x135   : > { %2635 = vmatpush.bf16.msrb.mxu1 %v7351_v44  ;;  %2604 = vmatmul.bf16.vlgmr.msra.gmra.mxu2 %v10238_v19  ;;  %v7228_v44 = vld [vmem:[#allocation3 + $0x500] sm:$0xf0] }
 0x136   : > { %2648 = vmatpush.bf16.msrb.mxu2 %v7543_v47  ;;  %2617 = vmatmul.bf16.vlgmr.msra.gmra.mxu3 %v10242_v22  ;;  %v9015_v47 = vld [vmem:[#allocation3 + $0x66c] sm:$0xf]  ;;  %v7231_v53 = vor.u32 %v8967_v39, %v7228_v44  ;;  %v8947_v39 = vld [vmem:[#allocation3 + $0x444] sm:$0xf0]  ;;  %v8905_v44 = vld [vmem:[#allocation3 + $0x2f4] sm:$0xf0] }
 0x137   : > { %2661 = vmatpush.bf16.msrb.mxu3 %v7735_v51  ;;  %v7039_v51 = vor.u32 %v8919_v35, %v7036_v38  ;;  %v7423_v54 = vor.u32 %v9015_v47, %v7420_v48  ;;  %v7163_v35 = vor.u32 %v8953_v26, %v7162_v25  ;;  %v7138_v38 = vld [vmem:[#allocation3 + $0x430] sm:$0xf]  ;;  %v8929_v25 = vld [vmem:[#allocation3 + $0x3b4] sm:$0xf0] }
 0x138   : > { %2623 = vmatpush.bf16.msrb.mxu0 %v7135_v57  ;;  %v8961_v57 = vld [vmem:[#allocation3 + $0x4bc] sm:$0xf]  ;;  %v2397_v10 = vpop.f32.mrf.mxu2 }
 0x139   : > { %2636 = vmatpush.bf16.msrb.mxu1 %v7327_v58  ;;  %v2372_v58 = vadd.f32 %v2371_v52, %v889_v42  ;;  %v2410_v16 = vpop.f32.mrf.mxu3  ;;  %v7139_v52 = vor.u32 %v8947_v39, %v7138_v38  ;;  %v7258_v38 = vld [vmem:[#allocation3 + $0x520] sm:$0xf]  ;;  %v7042_v39 = vld [vmem:[#allocation3 + $0x370] sm:$0xf] }
 0x13a   : > { %2649 = vmatpush.bf16.msrb.mxu2 %v7519_v59  ;;  %v2384_v59 = vpop.f32.mrf.mxu1 }
 0x13b   : > { %2662 = vmatpush.bf16.msrb.mxu3 %v7711_v63  ;;  %v7396_v63 = vld [vmem:[#allocation3 + $0x650] sm:$0xf0]  ;;  %v2385_v2 = vadd.f32 %v2384_v59, %v2372_v58  ;;  %v8941_v58 = vld [vmem:[#allocation3 + $0x414] sm:$0xf0]  ;;  %v8995_v59 = vld [vmem:[#allocation3 + $0x5c4] sm:$0xf0] }
 0x13c   : > { %2624 = vmatpush.bf16.msrb.mxu0 %v7111_v5  ;;  %v7207_v5 = vor.u32 %v8961_v57, %v7204_v61  ;;  %v7114_v57 = vld [vmem:[#allocation3 + $0x400] sm:$0xf]  ;;  %v8899_v61 = vld [vmem:[#allocation3 + $0x2c4] sm:$0xf0] }
 0x13d   : > { %2637 = vmatpush.bf16.msrb.mxu1 %v7303_v6  ;;  %v7399_v6 = vor.u32 %v9009_v62, %v7396_v63  ;;  %v2398_v15 = vadd.f32 %v2397_v10, %v2385_v2  ;;  %v6706_v63 = vld [vmem:[#allocation3 + $0xd0] sm:$0xf]  ;;  %v7331_v2 = vor.u32 %v8995_v59, %v7330_v56  ;;  %v6922_v10 = vld [vmem:[#allocation3 + $0x280] sm:$0xf] }
 0x13e   : > { %2650 = vmatpush.bf16.msrb.mxu2 %v7495_v7  ;;  %v6988_v7 = vld [vmem:[#allocation3 + $0x320] sm:$0xf0] }
 0x13f   : > { %2663 = vmatpush.bf16.msrb.mxu3 %v7687_v11  ;;  %v7591_v11 = vor.u32 %v9057_v0, %v7588_v1  ;;  %v10294_v27 = vadd.f32 %v2410_v16, %v2398_v15  ;;  %v8839_v0 = vld [vmem:[#allocation3 + $0xe4] sm:$0xf0] }
 0x140   : > { %2625 = vmatpush.bf16.msrb.mxu0 %v7087_v17  ;;  %v7564_v17 = vld [vmem:[#allocation3 + $0x7a0] sm:$0xf0]  ;;  %v2399_v42 = vpop.f32.mrf.mxu2  ;;  %v6707_v8 = vor.u32 %v8839_v0, %v6706_v63  ;;  %v8971_v63 = vld [vmem:[#allocation3 + $0x504] sm:$0xf0]  ;;  %v6850_v0 = vld [vmem:[#allocation3 + $0x1f0] sm:$0xf] }
 0x141   : > { %2638 = vmatpush.bf16.msrb.mxu1 %v7279_v23  ;;  %v8857_v23 = vld [vmem:[#allocation3 + $0x174] sm:$0xf0]  ;;  %v7567_v33 = vor.u32 %v9051_v14, %v7564_v17  ;;  %v2412_v48 = vpop.f32.mrf.mxu3  ;;  %v6682_v17 = vld [vmem:[#allocation3 + $0xa0] sm:$0xf]  ;;  %v8923_v42 = vld [vmem:[#allocation3 + $0x384] sm:$0xf0] }
 0x142   : > { %2651 = vmatpush.bf16.msrb.mxu2 %v7471_v24  ;;  %v6991_v24 = vor.u32 %v8907_v4, %v6988_v7  ;;  %v2386_v32 = vpop.f32.mrf.mxu1  ;;  %v7306_v4 = vld [vmem:[#allocation3 + $0x580] sm:$0xf]  ;;  %v8989_v7 = vld [vmem:[#allocation3 + $0x594] sm:$0xf0]  ;;  %v7043_v56 = vor.u32 %v8923_v42, %v7042_v39  ;;  %v8959_v39 = vld [vmem:[#allocation3 + $0x4a4] sm:$0xf0] }
 0x143   : > { %2664 = vmatpush.bf16.msrb.mxu3 %v7663_v28  ;;  %v2373_v28 = vpop.f32.mrf.mxu0  ;;  %v7307_v15 = vor.u32 %v8989_v7, %v7306_v4  ;;  %v8887_v32 = vld [vmem:[#allocation3 + $0x264] sm:$0xf0] }
 0x144   : > { %2626 = vmatpush.bf16.msrb.mxu0 %v7063_v34  ;;  %v6779_v34 = vor.u32 %v8857_v23, %v6778_v21  ;;  %v8833_v21 = vld [vmem:[#allocation3 + $0xb4] sm:$0xf0]  ;;  %v7282_v23 = vld [vmem:[#allocation3 + $0x550] sm:$0xf]  ;;  %v8983_v28 = vld [vmem:[#allocation3 + $0x564] sm:$0xf0] }
 0x145   : > { %2639 = vmatpush.bf16.msrb.mxu1 %v7255_v36  ;;  %v6754_v36 = vld [vmem:[#allocation3 + $0x130] sm:$0xf]  ;;  %v8815_v4 = vld [vmem:[#allocation3 + $0x24] sm:$0xf0] }
 0x146   : > { %2652 = vmatpush.bf16.msrb.mxu2 %v7447_v37  ;;  %v8851_v37 = vld [vmem:[#allocation3 + $0x144] sm:$0xf0] }
 0x147   : > { %2665 = vmatpush.bf16.msrb.mxu3 %v7639_v43  ;;  %v6970_v43 = vld [vmem:[#allocation3 + $0x2e0] sm:$0xf]  ;;  %v6755_v47 = vor.u32 %v8851_v37, %v6754_v36  ;;  %v6658_v36 = vld [vmem:[#allocation3 + $0x70] sm:$0xf]  ;;  %v8827_v37 = vld [vmem:[#allocation3 + $0x84] sm:$0xf0] }
 0x148   : > { %2627 = vmatpush.bf16.msrb.mxu0 %v7039_v51  ;;  %v6971_v49 = vor.u32 %v8905_v44, %v6970_v43  ;;  %v9001_v51 = vld [vmem:[#allocation3 + $0x5f4] sm:$0xf0] }
 0x149   : > { %2640 = vmatpush.bf16.msrb.mxu1 %v7231_v53  ;;  %v6730_v53 = vld [vmem:[#allocation3 + $0x100] sm:$0xf]  ;;  %v7355_v55 = vor.u32 %v9001_v51, %v7354_v50  ;;  %v8977_v44 = vld [vmem:[#allocation3 + $0x534] sm:$0xf0] }
 0x14a   : > { %2653 = vmatpush.bf16.msrb.mxu2 %v7423_v54  ;;  %v8845_v54 = vld [vmem:[#allocation3 + $0x114] sm:$0xf0]  ;;  %v6874_v50 = vld [vmem:[#allocation3 + $0x220] sm:$0xf] }
 0x14b   : > { %2666 = vmatpush.bf16.msrb.mxu3 %v7615_v60  ;;  %v6946_v60 = vld [vmem:[#allocation3 + $0x2b0] sm:$0xf]  ;;  %v6731_v62 = vor.u32 %v8845_v54, %v6730_v53  ;;  %v8881_v51 = vld [vmem:[#allocation3 + $0x234] sm:$0xf0] }
 0x14c   : > { %2628 = vmatpush.bf16.msrb.mxu0 %v7015_v3  ;;  %v6947_v1 = vor.u32 %v8899_v61, %v6946_v60  ;;  %v7115_v3 = vor.u32 %v8941_v58, %v7114_v57  ;;  %v6875_v54 = vor.u32 %v8881_v51, %v6874_v50  ;;  %v6634_v57 = vld [vmem:[#allocation3 + $0x40] sm:$0xf]  ;;  %v8821_v58 = vld [vmem:[#allocation3 + $0x54] sm:$0xf0]  ;;  %v7234_v60 = vld [vmem:[#allocation3 + $0x4f0] sm:$0xf] }
 0x14d   : > { %2641 = vmatpush.bf16.msrb.mxu1 %v7207_v5  ;;  %v7090_v5 = vld [vmem:[#allocation3 + $0x3d0] sm:$0xf]  ;;  %v7018_v61 = vld [vmem:[#allocation3 + $0x340] sm:$0xf]  ;;  %v7235_v7 = vor.u32 %v8971_v63, %v7234_v60 }
 0x14e   : > { %2654 = vmatpush.bf16.msrb.mxu2 %v7399_v6  ;;  %v8935_v6 = vld [vmem:[#allocation3 + $0x3e4] sm:$0xf0]  ;;  %v7498_v51 = vld [vmem:[#allocation3 + $0x700] sm:$0xf]  ;;  %v7714_v60 = vld [vmem:[#allocation3 + $0x8b0] sm:$0xf] }
 0x14f   : > { %2667 = vmatpush.bf16.msrb.mxu3 %v7591_v11  ;;  %v8893_v11 = vld [vmem:[#allocation3 + $0x294] sm:$0xf0]  ;;  %v7091_v16 = vor.u32 %v8935_v6, %v7090_v5  ;;  %v6994_v5 = vld [vmem:[#allocation3 + $0x310] sm:$0xf] }
 0x150   : > { %2629 = vmatpush.bf16.msrb.mxu0 %v6991_v24  ;;  %v2423_v9 = vpop.f32.mrf.mxu0  ;;  %v6923_v14 = vor.u32 %v8893_v11, %v6922_v10  ;;  %v7066_v24 = vld [vmem:[#allocation3 + $0x3a0] sm:$0xf] }
 0x151   : > { %2642 = vmatpush.bf16.msrb.mxu1 %v7183_v29  ;;  %v2424_v12 = vadd.f32 %v2423_v9, %v10294_v27  ;;  %v2436_v13 = vpop.f32.mrf.mxu1  ;;  %v890_v29 = vperm.slane %v10291_v31, 1  ;;  %v6683_v27 = vor.u32 %v8833_v21, %v6682_v17  ;;  %v8911_v9 = vld [vmem:[#allocation3 + $0x324] sm:$0xf0]  ;;  %v7546_v10 = vld [vmem:[#allocation3 + $0x760] sm:$0xf] }
 0x152   : > { %2655 = vmatpush.bf16.msrb.mxu2 %v7375_v30  ;;  %v6898_v30 = vld [vmem:[#allocation3 + $0x250] sm:$0xf]  ;;  %v7210_v11 = vld [vmem:[#allocation3 + $0x4c0] sm:$0xf] }
 0x153   : > { %2668 = vmatpush.bf16.msrb.mxu3 %v7567_v33  ;;  %2630 = vmatmul.bf16.vlgmr.msrb.gmra.mxu0 %v10236_v18  ;;  %v10301_v26 = vadd.f32 %v2436_v13, %v2424_v12  ;;  %v6899_v33 = vor.u32 %v8887_v32, %v6898_v30  ;;  %v9049_v12 = vld [vmem:[#allocation3 + $0x774] sm:$0xf0]  ;;  %v8854_v13 = vld [vmem:[#allocation3 + $0x164] sm:$0xf]  ;;  %v6826_v21 = vld [vmem:[#allocation3 + $0x1c0] sm:$0xf] }
 0x154   : > { %2674 = vmatpush.bf16.msra.mxu0 %v6779_v34  ;;  %2643 = vmatmul.bf16.vlgmr.msrb.gmra.mxu1 %v10240_v20  ;;  %v7283_v34 = vor.u32 %v8983_v28, %v7282_v23  ;;  %v8869_v23 = vld [vmem:[#allocation3 + $0x1d4] sm:$0xf0]  ;;  %v7547_v30 = vor.u32 %v9049_v12, %v7546_v10 }
 0x155   : > { %2656 = vmatmul.bf16.vlgmr.msrb.gmra.mxu2 %v10262_v40  ;;  %2687 = vmatpush.bf16.msra.mxu1 %v6971_v49  ;;  %v9085_v10 = vld [vmem:[#allocation3 + $0x894] sm:$0xf0] }
 0x156   : > { %2700 = vmatpush.bf16.msra.mxu2 %v7163_v35  ;;  %2669 = vmatmul.bf16.vlgmr.msrb.gmra.mxu3 %v10269_v45  ;;  %v7067_v35 = vor.u32 %v8929_v25, %v7066_v24  ;;  %v6827_v25 = vor.u32 %v8869_v23, %v6826_v21 }
 0x157   : > { %2713 = vmatpush.bf16.msra.mxu3 %v7355_v55  ;;  %v7259_v55 = vor.u32 %v8977_v44, %v7258_v38  ;;  %v8863_v38 = vld [vmem:[#allocation3 + $0x1a4] sm:$0xf0] }
 0x158   : > { %2675 = vmatpush.bf16.msra.mxu0 %v6755_v47  ;;  %v2449_v43 = vpop.f32.mrf.mxu2  ;;  %v2425_v49 = vpop.f32.mrf.mxu0 }
 0x159   : > { %2688 = vmatpush.bf16.msra.mxu1 %v6947_v1  ;;  %v2450_v47 = vadd.f32 %v2449_v43, %v890_v29  ;;  %v2462_v48 = vpop.f32.mrf.mxu3  ;;  %v2438_v53 = vpop.f32.mrf.mxu1  ;;  %v8875_v1 = vld [vmem:[#allocation3 + $0x204] sm:$0xf0]  ;;  %v6995_v29 = vor.u32 %v8911_v9, %v6994_v5  ;;  %v8902_v49 = vld [vmem:[#allocation3 + $0x2e4] sm:$0xf]  ;;  %v7690_v9 = vld [vmem:[#allocation3 + $0x880] sm:$0xf] }
 0x15a   : > { %2701 = vmatpush.bf16.msra.mxu2 %v7139_v52  ;;  %v6659_v52 = vor.u32 %v8827_v37, %v6658_v36  ;;  %v6851_v6 = vor.u32 %v8875_v1, %v6850_v0  ;;  %v6756_v36 = vld [vmem:[#allocation3 + $0x148] sm:$0xf0]  ;;  %v6802_v37 = vld [vmem:[#allocation3 + $0x190] sm:$0xf]  ;;  %v7691_v12 = vor.u32 %v9085_v10, %v7690_v9  ;;  %v8950_v10 = vld [vmem:[#allocation3 + $0x464] sm:$0xf] }
 0x15b   : > { %2714 = vmatpush.bf16.msra.mxu3 %v7331_v2  ;;  %v10304_v59 = vadd.f32 %v2462_v48, %v2450_v47  ;;  %v6635_v2 = vor.u32 %v8821_v58, %v6634_v57  ;;  %v6803_v43 = vor.u32 %v8863_v38, %v6802_v37  ;;  %v7738_v47 = vld [vmem:[#allocation3 + $0x8e0] sm:$0xf]  ;;  %v9097_v48 = vld [vmem:[#allocation3 + $0x8f4] sm:$0xf0]  ;;  %v8896_v58 = vld [vmem:[#allocation3 + $0x2b4] sm:$0xf] }
 0x15c   : > { %2676 = vmatpush.bf16.msra.mxu0 %v6731_v62  ;;  %v8917_v62 = vld [vmem:[#allocation3 + $0x354] sm:$0xf0]  ;;  %v7739_v53 = vor.u32 %v9097_v48, %v7738_v47  ;;  %v9019_v37 = vld [vmem:[#allocation3 + $0x684] sm:$0xf0]  ;;  %v7642_v48 = vld [vmem:[#allocation3 + $0x820] sm:$0xf] }
 0x15d   : > { %2689 = vmatpush.bf16.msra.mxu1 %v6923_v14  ;;  %v6612_v9 = vld [vmem:[#allocation3 + $0x28] sm:$0xf0] }
 0x15e   : > { %2702 = vmatpush.bf16.msra.mxu2 %v7115_v3  ;;  %v6610_v3 = vld [vmem:[#allocation3 + $0x10] sm:$0xf] }
 0x15f   : > { %2715 = vmatpush.bf16.msra.mxu3 %v7307_v15  ;;  %v8965_v15 = vld [vmem:[#allocation3 + $0x4d4] sm:$0xf0]  ;;  %v6611_v24 = vor.u32 %v8815_v4, %v6610_v3  ;;  %v9031_v3 = vld [vmem:[#allocation3 + $0x6e4] sm:$0xf0]  ;;  %v8836_v4 = vld [vmem:[#allocation3 + $0xd4] sm:$0xf] }
 0x160   : > { %2677 = vmatpush.bf16.msra.mxu0 %v6707_v8  ;;  %v7019_v8 = vor.u32 %v8917_v62, %v7018_v61  ;;  %v2451_v14 = vpop.f32.mrf.mxu2  ;;  %v7211_v28 = vor.u32 %v8965_v15, %v7210_v11  ;;  %v9091_v61 = vld [vmem:[#allocation3 + $0x8c4] sm:$0xf0]  ;;  %v6948_v62 = vld [vmem:[#allocation3 + $0x2c8] sm:$0xf0]  ;;  %v7450_v15 = vld [vmem:[#allocation3 + $0x6a0] sm:$0xf] }
 0x161   : > { %2690 = vmatpush.bf16.msra.mxu1 %v6899_v33  ;;  %v2464_v17 = vpop.f32.mrf.mxu3  ;;  %v9043_v33 = vld [vmem:[#allocation3 + $0x744] sm:$0xf0]  ;;  %v7715_v0 = vor.u32 %v9091_v61, %v7714_v60  ;;  %v6951_v5 = vor.u32 %v8896_v58, %v6948_v62  ;;  %v6636_v61 = vld [vmem:[#allocation3 + $0x58] sm:$0xf0] }
 0x162   : > { %2703 = vmatpush.bf16.msra.mxu2 %v7091_v16  ;;  %v6780_v16 = vld [vmem:[#allocation3 + $0x178] sm:$0xf0]  ;;  %v8830_v17 = vld [vmem:[#allocation3 + $0xa4] sm:$0xf] }
 0x163   : > { %2716 = vmatpush.bf16.msra.mxu3 %v7283_v34  ;;  %v6783_v32 = vor.u32 %v8854_v13, %v6780_v16  ;;  %v7186_v34 = vld [vmem:[#allocation3 + $0x490] sm:$0xf]  ;;  %v9025_v16 = vld [vmem:[#allocation3 + $0x6b4] sm:$0xf0] }
 0x164   : > { %2678 = vmatpush.bf16.msra.mxu0 %v6683_v27  ;;  %v7522_v27 = vld [vmem:[#allocation3 + $0x730] sm:$0xf]  ;;  %v7187_v44 = vor.u32 %v8959_v39, %v7186_v34 }
 0x165   : > { %2691 = vmatpush.bf16.msra.mxu1 %v6875_v54  ;;  %v7523_v42 = vor.u32 %v9043_v33, %v7522_v27  ;;  %v6972_v54 = vld [vmem:[#allocation3 + $0x2f8] sm:$0xf0]  ;;  %v7451_v27 = vor.u32 %v9025_v16, %v7450_v15  ;;  %v8866_v16 = vld [vmem:[#allocation3 + $0x1c4] sm:$0xf] }
 0x166   : > { %2704 = vmatpush.bf16.msra.mxu2 %v7067_v35  ;;  %v8848_v35 = vld [vmem:[#allocation3 + $0x134] sm:$0xf]  ;;  %v6975_v57 = vor.u32 %v8902_v49, %v6972_v54  ;;  %v9073_v49 = vld [vmem:[#allocation3 + $0x834] sm:$0xf0] }
 0x167   : > { %2717 = vmatpush.bf16.msra.mxu3 %v7259_v55  ;;  %v6759_v50 = vor.u32 %v8848_v35, %v6756_v36  ;;  %v8842_v55 = vld [vmem:[#allocation3 + $0x104] sm:$0xf]  ;;  %v7426_v36 = vld [vmem:[#allocation3 + $0x670] sm:$0xf] }
 0x168   : > { %2679 = vmatpush.bf16.msra.mxu0 %v6659_v52  ;;  %v9037_v52 = vld [vmem:[#allocation3 + $0x714] sm:$0xf0] }
 0x169   : > { %2692 = vmatpush.bf16.msra.mxu1 %v6851_v6  ;;  %v7499_v63 = vor.u32 %v9037_v52, %v7498_v51  ;;  %v6708_v6 = vld [vmem:[#allocation3 + $0xe8] sm:$0xf0]  ;;  %v7427_v51 = vor.u32 %v9019_v37, %v7426_v36  ;;  %v7643_v52 = vor.u32 %v9073_v49, %v7642_v48  ;;  %v8860_v37 = vld [vmem:[#allocation3 + $0x194] sm:$0xf]  ;;  %v7740_v48 = vld [vmem:[#allocation3 + $0x8f8] sm:$0xf0] }
 0x16a   : > { %2705 = vmatpush.bf16.msra.mxu2 %v7043_v56  ;;  %v6732_v56 = vld [vmem:[#allocation3 + $0x118] sm:$0xf0]  ;;  %v6711_v13 = vor.u32 %v8836_v4, %v6708_v6  ;;  %v7378_v4 = vld [vmem:[#allocation3 + $0x610] sm:$0xf]  ;;  %v8812_v6 = vld [vmem:[#allocation3 + $0x14] sm:$0xf] }
 0x16b   : > { %2718 = vmatpush.bf16.msra.mxu3 %v7235_v7  ;;  %v6735_v1 = vor.u32 %v8842_v55, %v6732_v56  ;;  %v8890_v7 = vld [vmem:[#allocation3 + $0x284] sm:$0xf]  ;;  %v7402_v55 = vld [vmem:[#allocation3 + $0x640] sm:$0xf]  ;;  %v9013_v56 = vld [vmem:[#allocation3 + $0x654] sm:$0xf0] }
 0x16c   : > { %2680 = vmatpush.bf16.msra.mxu0 %v6635_v2  ;;  %v7474_v2 = vld [vmem:[#allocation3 + $0x6d0] sm:$0xf] }
 0x16d   : > { %2693 = vmatpush.bf16.msra.mxu1 %v6827_v25  ;;  %v7475_v11 = vor.u32 %v9031_v3, %v7474_v2  ;;  %v9067_v2 = vld [vmem:[#allocation3 + $0x804] sm:$0xf0]  ;;  %v7403_v3 = vor.u32 %v9013_v56, %v7402_v55  ;;  %v9034_v56 = vld [vmem:[#allocation3 + $0x704] sm:$0xf] }
 0x16e   : > { %2706 = vmatpush.bf16.msra.mxu2 %v7019_v8  ;;  %v6924_v8 = vld [vmem:[#allocation3 + $0x298] sm:$0xf0] }
 0x16f   : > { %2719 = vmatpush.bf16.msra.mxu3 %v7211_v28  ;;  %v6927_v21 = vor.u32 %v8890_v7, %v6924_v8  ;;  %v8884_v28 = vld [vmem:[#allocation3 + $0x254] sm:$0xf] }
 0x170   : > { %2681 = vmatpush.bf16.msra.mxu0 %v6611_v24  ;;  %v2475_v14 = vpop.f32.mrf.mxu0  ;;  %v6684_v24 = vld [vmem:[#allocation3 + $0xb8] sm:$0xf0] }
 0x171   : > { %2694 = vmatpush.bf16.msra.mxu1 %v6803_v43  ;;  %v2476_v23 = vadd.f32 %v2475_v14, %v10304_v59  ;;  %v2488_v25 = vpop.f32.mrf.mxu1  ;;  %v6687_v35 = vor.u32 %v8830_v17, %v6684_v24  ;;  %v6660_v59 = vld [vmem:[#allocation3 + $0x88] sm:$0xf0]  ;;  %v8878_v43 = vld [vmem:[#allocation3 + $0x224] sm:$0xf]  ;;  %v7548_v14 = vld [vmem:[#allocation3 + $0x778] sm:$0xf0] }
 0x172   : > { %2707 = vmatpush.bf16.msra.mxu2 %v6995_v29  ;;  %v6900_v29 = vld [vmem:[#allocation3 + $0x268] sm:$0xf0]  ;;  %v6828_v24 = vld [vmem:[#allocation3 + $0x1d8] sm:$0xf0] }
 0x173   : > { %2682 = vmatmul.bf16.vlgmr.msra.gmra.mxu0 %v10238_v19  ;;  %2720 = vmatpush.bf16.msra.mxu3 %v7187_v44  ;;  %v2489_v33 = vadd.f32 %v2488_v25, %v2476_v23  ;;  %v6903_v38 = vor.u32 %v8884_v28, %v6900_v29  ;;  %v9061_v23 = vld [vmem:[#allocation3 + $0x7d4] sm:$0xf0]  ;;  %v6615_v29 = vor.u32 %v8812_v6, %v6612_v9  ;;  %v7476_v6 = vld [vmem:[#allocation3 + $0x6e8] sm:$0xf0]  ;;  %v7308_v9 = vld [vmem:[#allocation3 + $0x598] sm:$0xf0] }
 0x174   : > { %2726 = vmatpush.bf16.msrb.mxu0 %v7547_v30  ;;  %2695 = vmatmul.bf16.vlgmr.msra.gmra.mxu1 %v10242_v22  ;;  %v7666_v30 = vld [vmem:[#allocation3 + $0x850] sm:$0xf]  ;;  %v6831_v36 = vor.u32 %v8866_v16, %v6828_v24 }
 0x175   : > { %2708 = vmatmul.bf16.vlgmr.msra.gmra.mxu2 %v10236_v18  ;;  %2739 = vmatpush.bf16.msrb.mxu1 %v7739_v53 }
 0x176   : > { %2752 = vmatpush.bf16.msrb.mxu2 %v6783_v32  ;;  %2721 = vmatmul.bf16.vlgmr.msra.gmra.mxu3 %v10240_v20  ;;  %v9079_v32 = vld [vmem:[#allocation3 + $0x864] sm:$0xf0] }
 0x177   : > { %2765 = vmatpush.bf16.msrb.mxu3 %v6975_v57  ;;  %v7667_v34 = vor.u32 %v9079_v32, %v7666_v30  ;;  %v8818_v57 = vld [vmem:[#allocation3 + $0x44] sm:$0xf]  ;;  %v8944_v32 = vld [vmem:[#allocation3 + $0x434] sm:$0xf] }
 0x178   : > { %2727 = vmatpush.bf16.msrb.mxu0 %v7523_v42  ;;  %v2501_v39 = vpop.f32.mrf.mxu2  ;;  %v8824_v42 = vld [vmem:[#allocation3 + $0x74] sm:$0xf]  ;;  %v2477_v58 = vpop.f32.mrf.mxu0  ;;  %v6639_v8 = vor.u32 %v8818_v57, %v6636_v61  ;;  %v7500_v57 = vld [vmem:[#allocation3 + $0x718] sm:$0xf0] }
 0x179   : > { %2740 = vmatpush.bf16.msrb.mxu1 %v7715_v0  ;;  %v2502_v44 = vadd.f32 %v2501_v39, %v2489_v33  ;;  %v2514_v47 = vpop.f32.mrf.mxu3  ;;  %v6663_v53 = vor.u32 %v8824_v42, %v6660_v59  ;;  %v2490_v62 = vpop.f32.mrf.mxu1  ;;  %v6852_v0 = vld [vmem:[#allocation3 + $0x208] sm:$0xf0]  ;;  %v9040_v33 = vld [vmem:[#allocation3 + $0x734] sm:$0xf]  ;;  %v7570_v39 = vld [vmem:[#allocation3 + $0x790] sm:$0xf] }
 0x17a   : > { %2753 = vmatpush.bf16.msrb.mxu2 %v6759_v50  ;;  %v6876_v50 = vld [vmem:[#allocation3 + $0x238] sm:$0xf0]  ;;  %v9055_v42 = vld [vmem:[#allocation3 + $0x7a4] sm:$0xf0]  ;;  %v9094_v59 = vld [vmem:[#allocation3 + $0x8e4] sm:$0xf] }
 0x17b   : > { %2766 = vmatpush.bf16.msrb.mxu3 %v6951_v5  ;;  %v10311_v54 = vadd.f32 %v2514_v47, %v2502_v44  ;;  %v6879_v60 = vor.u32 %v8878_v43, %v6876_v50  ;;  %v9007_v5 = vld [vmem:[#allocation3 + $0x624] sm:$0xf0]  ;;  %v7571_v43 = vor.u32 %v9055_v42, %v7570_v39  ;;  %v8998_v44 = vld [vmem:[#allocation3 + $0x5e4] sm:$0xf]  ;;  %v7356_v47 = vld [vmem:[#allocation3 + $0x5f8] sm:$0xf0]  ;;  %v7743_v58 = vor.u32 %v9094_v59, %v7740_v48 }
 0x17c   : > { %2728 = vmatpush.bf16.msrb.mxu0 %v7499_v63  ;;  %v8872_v63 = vld [vmem:[#allocation3 + $0x1f4] sm:$0xf]  ;;  %v7379_v25 = vor.u32 %v9007_v5, %v7378_v4  ;;  %v7359_v50 = vor.u32 %v8998_v44, %v7356_v47  ;;  %v7332_v62 = vld [vmem:[#allocation3 + $0x5c8] sm:$0xf0]  ;;  %v8974_v39 = vld [vmem:[#allocation3 + $0x524] sm:$0xf] }
 0x17d   : > { %2741 = vmatpush.bf16.msrb.mxu1 %v7691_v12  ;;  %v6855_v12 = vor.u32 %v8872_v63, %v6852_v0  ;;  %v8992_v61 = vld [vmem:[#allocation3 + $0x5b4] sm:$0xf]  ;;  %v7716_v63 = vld [vmem:[#allocation3 + $0x8c8] sm:$0xf0]  ;;  %v7260_v42 = vld [vmem:[#allocation3 + $0x538] sm:$0xf0] }
 0x17e   : > { %2754 = vmatpush.bf16.msrb.mxu2 %v6735_v1  ;;  %v7618_v1 = vld [vmem:[#allocation3 + $0x7f0] sm:$0xf]  ;;  %v7092_v4 = vld [vmem:[#allocation3 + $0x3e8] sm:$0xf0]  ;;  %v9028_v5 = vld [vmem:[#allocation3 + $0x6d4] sm:$0xf]  ;;  %v7263_v47 = vor.u32 %v8974_v39, %v7260_v42 }
 0x17f   : > { %2767 = vmatpush.bf16.msrb.mxu3 %v6927_v21  ;;  %v7619_v7 = vor.u32 %v9067_v2, %v7618_v1  ;;  %v7594_v21 = vld [vmem:[#allocation3 + $0x7c0] sm:$0xf]  ;;  %v7335_v1 = vor.u32 %v8992_v61, %v7332_v62  ;;  %v7503_v2 = vor.u32 %v9034_v56, %v7500_v57  ;;  %v7644_v59 = vld [vmem:[#allocation3 + $0x838] sm:$0xf0]  ;;  %v7236_v61 = vld [vmem:[#allocation3 + $0x508] sm:$0xf0] }
 0x180   : > { %2729 = vmatpush.bf16.msrb.mxu0 %v7475_v11  ;;  %v7164_v11 = vld [vmem:[#allocation3 + $0x478] sm:$0xf0]  ;;  %v2503_v15 = vpop.f32.mrf.mxu2  ;;  %v7595_v28 = vor.u32 %v9061_v23, %v7594_v21  ;;  %v7620_v62 = vld [vmem:[#allocation3 + $0x808] sm:$0xf0]  ;;  %v10333_v39 = vld [vmem:[#allocation6] sm:$0x3f] }
 0x181   : > { %2742 = vmatpush.bf16.msrb.mxu1 %v7667_v34  ;;  %v2516_v17 = vpop.f32.mrf.mxu3  ;;  %v7167_v30 = vor.u32 %v8950_v10, %v7164_v11  ;;  %v7692_v10 = vld [vmem:[#allocation3 + $0x898] sm:$0xf0]  ;;  %v892_v42 = vperm.slane %v10333_v39, 3 }
 0x182   : > { %2755 = vmatpush.bf16.msrb.mxu2 %v6711_v13  ;;  %v9046_v13 = vld [vmem:[#allocation3 + $0x764] sm:$0xf]  ;;  %v7068_v15 = vld [vmem:[#allocation3 + $0x3b8] sm:$0xf0] }
 0x183   : > { %2768 = vmatpush.bf16.msrb.mxu3 %v6903_v38  ;;  %v7551_v34 = vor.u32 %v9046_v13, %v7548_v14  ;;  %v6804_v38 = vld [vmem:[#allocation3 + $0x1a8] sm:$0xf0]  ;;  %v7479_v13 = vor.u32 %v9028_v5, %v7476_v6  ;;  %v8926_v14 = vld [vmem:[#allocation3 + $0x3a4] sm:$0xf]  ;;  %v7452_v21 = vld [vmem:[#allocation3 + $0x6b8] sm:$0xf0] }
 0x184   : > { %2730 = vmatpush.bf16.msrb.mxu0 %v7451_v27  ;;  %v7140_v27 = vld [vmem:[#allocation3 + $0x448] sm:$0xf0]  ;;  %v6807_v55 = vor.u32 %v8860_v37, %v6804_v38  ;;  %v9022_v17 = vld [vmem:[#allocation3 + $0x6a4] sm:$0xf]  ;;  %v9004_v5 = vld [vmem:[#allocation3 + $0x614] sm:$0xf] }
 0x185   : > { %2743 = vmatpush.bf16.msrb.mxu1 %v7643_v52  ;;  %v7143_v49 = vor.u32 %v8944_v32, %v7140_v27  ;;  %v8938_v52 = vld [vmem:[#allocation3 + $0x404] sm:$0xf]  ;;  %v7071_v32 = vor.u32 %v8926_v14, %v7068_v15  ;;  %v7380_v6 = vld [vmem:[#allocation3 + $0x628] sm:$0xf0] }
 0x186   : > { %2756 = vmatpush.bf16.msrb.mxu2 %v6687_v35  ;;  %v7524_v35 = vld [vmem:[#allocation3 + $0x748] sm:$0xf0]  ;;  %v9070_v38 = vld [vmem:[#allocation3 + $0x824] sm:$0xf]  ;;  %v7383_v14 = vor.u32 %v9004_v5, %v7380_v6 }
 0x187   : > { %2769 = vmatpush.bf16.msrb.mxu3 %v6879_v60  ;;  %v9088_v60 = vld [vmem:[#allocation3 + $0x8b4] sm:$0xf]  ;;  %v7647_v57 = vor.u32 %v9070_v38, %v7644_v59 }
 0x188   : > { %2731 = vmatpush.bf16.msrb.mxu0 %v7427_v51  ;;  %v7527_v51 = vor.u32 %v9040_v33, %v7524_v35  ;;  %v7455_v33 = vor.u32 %v9022_v17, %v7452_v21  ;;  %v7044_v35 = vld [vmem:[#allocation3 + $0x388] sm:$0xf0]  ;;  %v8956_v17 = vld [vmem:[#allocation3 + $0x494] sm:$0xf] }
 0x189   : > { %2744 = vmatpush.bf16.msrb.mxu1 %v7619_v7  ;;  %v7719_v7 = vor.u32 %v9088_v60, %v7716_v63  ;;  %v8968_v60 = vld [vmem:[#allocation3 + $0x4f4] sm:$0xf]  ;;  %v891_v63 = vperm.slane %v10291_v31, 2  ;;  %v7188_v21 = vld [vmem:[#allocation3 + $0x4a8] sm:$0xf0] }
 0x18a   : > { %2757 = vmatpush.bf16.msrb.mxu2 %v6663_v53  ;;  %v7116_v53 = vld [vmem:[#allocation3 + $0x418] sm:$0xf0] }
 0x18b   : > { %2770 = vmatpush.bf16.msrb.mxu3 %v6855_v12  ;;  %v7119_v0 = vor.u32 %v8938_v52, %v7116_v53  ;;  %v9010_v53 = vld [vmem:[#allocation3 + $0x644] sm:$0xf] }
 0x18c   : > { %2732 = vmatpush.bf16.msrb.mxu0 %v7403_v3  ;;  %v8932_v3 = vld [vmem:[#allocation3 + $0x3d4] sm:$0xf] }
 0x18d   : > { %2745 = vmatpush.bf16.msrb.mxu1 %v7595_v28  ;;  %v7095_v11 = vor.u32 %v8932_v3, %v7092_v4  ;;  %v8980_v28 = vld [vmem:[#allocation3 + $0x554] sm:$0xf]  ;;  %v6996_v4 = vld [vmem:[#allocation3 + $0x328] sm:$0xf0] }
 0x18e   : > { %2758 = vmatpush.bf16.msrb.mxu2 %v6639_v8  ;;  %v9082_v8 = vld [vmem:[#allocation3 + $0x884] sm:$0xf]  ;;  %v8908_v3 = vld [vmem:[#allocation3 + $0x314] sm:$0xf] }
 0x18f   : > { %2771 = vmatpush.bf16.msrb.mxu3 %v6831_v36  ;;  %v7695_v24 = vor.u32 %v9082_v8, %v7692_v10  ;;  %v9016_v36 = vld [vmem:[#allocation3 + $0x674] sm:$0xf]  ;;  %v9058_v8 = vld [vmem:[#allocation3 + $0x7c4] sm:$0xf]  ;;  %v7596_v10 = vld [vmem:[#allocation3 + $0x7d8] sm:$0xf0]  ;;  %v6999_v31 = vor.u32 %v8908_v3, %v6996_v4 }
 0x190   : > { %2733 = vmatpush.bf16.msrb.mxu0 %v7379_v25  ;;  %v10316_v16 = vpop.f32.mrf.mxu0  ;;  %v9076_v25 = vld [vmem:[#allocation3 + $0x854] sm:$0xf]  ;;  %v893_v4 = vperm.slane %v10333_v39, 4 }
 0x191   : > { %2746 = vmatpush.bf16.msrb.mxu1 %v7571_v43  ;;  %v10319_v23 = vpop.f32.mrf.mxu1 }
 0x192   : > { %2759 = vmatpush.bf16.msrb.mxu2 %v6615_v29  ;;  %v7284_v29 = vld [vmem:[#allocation3 + $0x568] sm:$0xf0] }
 0x193   : > { %2734 = vmatmul.bf16.vlgmr.msrb.gmra.mxu0 %v10262_v40  ;;  %2772 = vmatpush.bf16.msrb.mxu3 %v6807_v55  ;;  %v7287_v27 = vor.u32 %v8980_v28, %v7284_v29  ;;  %v7404_v55 = vld [vmem:[#allocation3 + $0x658] sm:$0xf0]  ;;  %v7572_v28 = vld [vmem:[#allocation3 + $0x7a8] sm:$0xf0] }
 0x194   : > { %2778 = vmatpush.bf16.msra.mxu0 %v7167_v30  ;;  %2747 = vmatmul.bf16.vlgmr.msrb.gmra.mxu1 %v10269_v45  ;;  %v7668_v30 = vld [vmem:[#allocation3 + $0x868] sm:$0xf0] }
 0x195   : > { %2760 = vmatmul.bf16.vlgmr.msrb.gmra.mxu2 %v10238_v19  ;;  %2791 = vmatpush.bf16.msra.mxu1 %v7359_v50  ;;  %v8986_v19 = vld [vmem:[#allocation3 + $0x584] sm:$0xf]  ;;  %v7671_v37 = vor.u32 %v9076_v25, %v7668_v30  ;;  %v7020_v50 = vld [vmem:[#allocation3 + $0x358] sm:$0xf0]  ;;  %v9052_v25 = vld [vmem:[#allocation3 + $0x794] sm:$0xf]  ;;  %v7191_v30 = vor.u32 %v8956_v17, %v7188_v21 }
 0x196   : > { %2804 = vmatpush.bf16.msra.mxu2 %v7551_v34  ;;  %v7311_v12 = vor.u32 %v8986_v19, %v7308_v9  ;;  %2773 = vmatmul.bf16.vlgmr.msrb.gmra.mxu3 %v10242_v22  ;;  %v8920_v34 = vld [vmem:[#allocation3 + $0x374] sm:$0xf]  ;;  %v7428_v22 = vld [vmem:[#allocation3 + $0x688] sm:$0xf0]  ;;  %v8962_v19 = vld [vmem:[#allocation3 + $0x4c4] sm:$0xf] }
 0x197   : > { %2817 = vmatpush.bf16.msra.mxu3 %v7743_v58  ;;  %v7047_v43 = vor.u32 %v8920_v34, %v7044_v35  ;;  %v7431_v48 = vor.u32 %v9016_v36, %v7428_v22  ;;  %v9064_v58 = vld [vmem:[#allocation3 + $0x7f4] sm:$0xf]  ;;  %v7212_v9 = vld [vmem:[#allocation3 + $0x4d8] sm:$0xf0] }
 0x198   : > { %2779 = vmatpush.bf16.msra.mxu0 %v7143_v49  ;;  %v2553_v44 = vpop.f32.mrf.mxu2  ;;  %v8914_v49 = vld [vmem:[#allocation3 + $0x344] sm:$0xf] }
 0x199   : > { %2792 = vmatpush.bf16.msra.mxu1 %v7335_v1  ;;  %v2566_v52 = vpop.f32.mrf.mxu3  ;;  %v2542_v56 = vpop.f32.mrf.mxu1  ;;  %v7239_v1 = vor.u32 %v8968_v60, %v7236_v61 }
 0x19a   : > { %2805 = vmatpush.bf16.msra.mxu2 %v7527_v51  ;;  %v2529_v51 = vpop.f32.mrf.mxu0 }
 0x19b   : > { %2818 = vmatpush.bf16.msra.mxu3 %v7719_v7  ;;  %v7623_v7 = vor.u32 %v9064_v58, %v7620_v62 }
 0x19c   : > { %2780 = vmatpush.bf16.msra.mxu0 %v7119_v0  ;;  %v7023_v0 = vor.u32 %v8914_v49, %v7020_v50 }
 0x19d   : > { %2793 = vmatpush.bf16.msra.mxu1 %v7311_v12 }
 0x19e   : > { %2806 = vmatpush.bf16.msra.mxu2 %v7503_v2  ;;  %v7407_v2 = vor.u32 %v9010_v53, %v7404_v55 }
 0x19f   : > { %2819 = vmatpush.bf16.msra.mxu3 %v7695_v24  ;;  %v7599_v24 = vor.u32 %v9058_v8, %v7596_v10 }
 0x1a0   : > { %2781 = vmatpush.bf16.msra.mxu0 %v7095_v11  ;;  %v2528_v11 = vadd.f32 %v10316_v16, %v891_v63  ;;  %v2555_v12 = vpop.f32.mrf.mxu2  ;;  %v7575_v16 = vor.u32 %v9052_v25, %v7572_v28 }
 0x1a1   : > { %2794 = vmatpush.bf16.msra.mxu1 %v7287_v27  ;;  %v2568_v15 = vpop.f32.mrf.mxu3 }
 0x1a2   : > { %2807 = vmatpush.bf16.msra.mxu2 %v7479_v13  ;;  %v7215_v13 = vor.u32 %v8962_v19, %v7212_v9  ;;  %v2541_v29 = vadd.f32 %v10319_v23, %v2528_v11 }
 0x1a3   : > { %2820 = vmatpush.bf16.msra.mxu3 %v7671_v37 }
 0x1a4   : > { %2782 = vmatpush.bf16.msra.mxu0 %v7071_v32  ;;  %v2554_v32 = vadd.f32 %v2553_v44, %v2541_v29  ;;  %v2837_v29 = vpop.xlane.xlu0 %2836 }
 0x1a5   : > { %2795 = vmatpush.bf16.msra.mxu1 %v7263_v47 }
 0x1a6   : > { %2808 = vmatpush.bf16.msra.mxu2 %v7455_v33  ;;  %v2567_v27 = vadd.f32 %v2566_v52, %v2554_v32  ;;  %v2902_v32 = vmul.f32 %v2837_v29, %v10301_v26 }
 0x1a7   : > { %2821 = vmatpush.bf16.msra.mxu3 %v7647_v57 }
 0x1a8   : > { %2783 = vmatpush.bf16.msra.mxu0 %v7047_v43 }
 0x1a9   : > { %2796 = vmatpush.bf16.msra.mxu1 %v7239_v1 }
 0x1aa   : > { %2809 = vmatpush.bf16.msra.mxu2 %v7431_v48 }
 0x1ab   : > { %2822 = vmatpush.bf16.msra.mxu3 %v7623_v7 }
 0x1ac   : > { %2784 = vmatpush.bf16.msra.mxu0 %v7023_v0 }
 0x1ad   : > { %2797 = vmatpush.bf16.msra.mxu1 %v7215_v13 }
 0x1ae   : > { %2810 = vmatpush.bf16.msra.mxu2 %v7407_v2 }
 0x1af   : > { %2823 = vmatpush.bf16.msra.mxu3 %v7599_v24 }
 0x1b0   : > { %2785 = vmatpush.bf16.msra.mxu0 %v6999_v31  ;;  %v2579_v33 = vpop.f32.mrf.mxu0 }
 0x1b1   : > { %2798 = vmatpush.bf16.msra.mxu1 %v7191_v30  ;;  %v2580_v23 = vadd.f32 %v2579_v33, %v2567_v27  ;;  %v2592_v34 = vpop.f32.mrf.mxu1  ;;  %v2843_v27 = vpop.xlane.xlu1 %2842 }
 0x1b2   : > { %2811 = vmatpush.bf16.msra.mxu2 %v7383_v14 }
 0x1b3   : > { %2786 = vmatmul.bf16.vlgmr.msra.gmra.mxu0 %v10236_v18  ;;  %2824 = vmatpush.bf16.msra.mxu3 %v7575_v16  ;;  %v2593_v35 = vadd.f32 %v2592_v34, %v2580_v23 }
 0x1b4   : > { %2799 = vmatmul.bf16.vlgmr.msra.gmra.mxu1 %v10240_v20 }
 0x1b5   : > { %2812 = vmatmul.bf16.vlgmr.msra.gmra.mxu2 %v10262_v40  ;;  %v2849_v36 = vpack.c.bf16 %v2593_v35, %v2593_v35 }
 0x1b6   : > { %2825 = vmatmul.bf16.vlgmr.msra.gmra.mxu3 %v10269_v45 }
 0x1b7   : > { %v2859_v22 = vsel %vm2857_vm1, %v2849_v36, 0 }
 0x1b8   : > { %v2605_v37 = vpop.f32.mrf.mxu2  ;;  %2871 = vmatpush.bf16.msrb.mxu0 %v2859_v22  ;;  %9356 = vmatpush.bf16.msrb.mxu2 %v2859_v22  ;;  %v2581_v40 = vpop.f32.mrf.mxu0 }
 0x1b9   : > { %v2618_v18 = vpop.f32.mrf.mxu3  ;;  %v2594_v38 = vpop.f32.mrf.mxu1  ;;  %v2606_v59 = vadd.f32 %v2605_v37, %v892_v42 }
 0x1ba   : > { %v2840_v22 = vpop.xlane.xlu0 %2839 }
 0x1bb   : > { %v2619_v43 = vadd.f32 %v2618_v18, %v2606_v59  ;;  %v2906_v18 = vmul.f32 %v2843_v27, %v10301_v26  ;;  %v2904_v38 = vmul.f32 %v2840_v22, %v10301_v26 }
 0x1c0   : > { %v2607_v20 = vpop.f32.mrf.mxu2 }
 0x1c1   : > { %v2620_v45 = vpop.f32.mrf.mxu3 }
 0x1c3   : > { %7744 = vmatmul.msk.bf16.vlgmr.msrb.gmra.mxu0 %vm2834_vm0, %v10271_v46 }
 0x1c5   : > { %7745 = vmatmul.msk.bf16.vlgmr.msrb.gmra.mxu2 %vm2834_vm0, %v10264_v41 }
 0x1d0   : > { %v2631_v44 = vpop.f32.mrf.mxu0 }
 0x1d1   : > { %v2644_v47 = vpop.f32.mrf.mxu1  ;;  %v2632_v48 = vadd.f32 %v2631_v44, %v2619_v43  ;;  %v2846_v43 = vpop.xlane.xlu1 %2845 }
 0x1d3   : > { %v2645_v49 = vadd.f32 %v2644_v47, %v2632_v48  ;;  %v2908_v48 = vmul.f32 %v2846_v43, %v10301_v26 }
 0x1d8   : > { %v2657_v50 = vpop.f32.mrf.mxu2  ;;  %v2633_v53 = vpop.f32.mrf.mxu0 }
 0x1d9   : > { %v2658_v51 = vadd.f32 %v2657_v50, %v2645_v49  ;;  %v2670_v52 = vpop.f32.mrf.mxu3  ;;  %v2646_v55 = vpop.f32.mrf.mxu1  ;;  %v894_v49 = vperm.slane %v10333_v39, 5 }
 0x1db   : > { %v2671_v56 = vadd.f32 %v2670_v52, %v2658_v51 }
 0x1dd   : > { %v2850_v57 = vpack.c.bf16 %v2671_v56, %v2671_v56 }
 0x1df   : > { %v2862_v58 = vsel %vm2857_vm1, %v2850_v57, 0 }
 0x1e0   : > { %v2659_v60 = vpop.f32.mrf.mxu2  ;;  %2890 = vmatpush.bf16.msrb.mxu1 %v2862_v58  ;;  %9357 = vmatpush.bf16.msrb.mxu3 %v2862_v58 }
 0x1e1   : > { %v2672_v61 = vpop.f32.mrf.mxu3 }
 0x1e3   : > { %7746 = vmatmul.msk.bf16.vlgmr.msrb.gmra.mxu1 %vm2834_vm0, %v10271_v46  ;;  %7747 = vmatmul.msk.bf16.vlgmr.msrb.gmra.mxu3 %vm2834_vm0, %v10264_v41 }
 0x1f0   : > { %v2683_v62 = vpop.f32.mrf.mxu0 }
 0x1f1   : > { %v2696_v1 = vpop.f32.mrf.mxu1  ;;  %v2684_v5 = vadd.f32 %v2683_v62, %v893_v4  ;;  %v2903_v62 = vmul.f32 %v2837_v29, %v10311_v54 }
 0x1f3   : > { %v2697_v7 = vadd.f32 %v2696_v1, %v2684_v5  ;;  %v2905_v5 = vmul.f32 %v2840_v22, %v10311_v54 }
 0x1f8   : > { %v2709_v63 = vpop.f32.mrf.mxu2  ;;  %v2685_v0 = vpop.f32.mrf.mxu0 }
 0x1f9   : > { %v2698_v3 = vpop.f32.mrf.mxu1  ;;  %v2722_v8 = vpop.f32.mrf.mxu3  ;;  %v2710_v19 = vadd.f32 %v2709_v63, %v2697_v7 }
 0x1fb   : > { %v2723_v24 = vadd.f32 %v2722_v8, %v2710_v19 }
 0x200   : > { %v2711_v2 = vpop.f32.mrf.mxu2 }
 0x201   : > { %v2724_v11 = vpop.f32.mrf.mxu3  ;;  %v2907_v2 = vmul.f32 %v2843_v27, %v10311_v54 }
 0x202   : > { %v2909_v11 = vmul.f32 %v2846_v43, %v10311_v54 }
 0x210   : > { %v2735_v6 = vpop.f32.mrf.mxu0 }
 0x211   : > { %v2748_v46 = vpop.f32.mrf.mxu1  ;;  %v2736_v16 = vadd.f32 %v2735_v6, %v2723_v24 }
 0x213   : > { %v2749_v23 = vadd.f32 %v2748_v46, %v2736_v16 }
 0x218   : > { %v2761_v9 = vpop.f32.mrf.mxu2  ;;  %v2737_v10 = vpop.f32.mrf.mxu0 }
 0x219   : > { %v2774_v12 = vpop.f32.mrf.mxu3  ;;  %v2750_v41 = vpop.f32.mrf.mxu1  ;;  %v2762_v53 = vadd.f32 %v2761_v9, %v894_v49 }
 0x21b   : > { %v2775_v57 = vadd.f32 %v2774_v12, %v2762_v53 }
 0x220   : > { %v2763_v31 = vpop.f32.mrf.mxu2 }
 0x221   : > { %v2776_v13 = vpop.f32.mrf.mxu3 }
 0x230   : > { %v2787_v14 = vpop.f32.mrf.mxu0 }
 0x231   : > { %v2800_v15 = vpop.f32.mrf.mxu1  ;;  %v2788_v58 = vadd.f32 %v2787_v14, %v2775_v57 }
 0x233   : > { %v2801_v60 = vadd.f32 %v2800_v15, %v2788_v58 }
 0x238   : > { %v2813_v17 = vpop.f32.mrf.mxu2  ;;  %v2789_v21 = vpop.f32.mrf.mxu0 }
 0x239   : > { %v2826_v25 = vpop.f32.mrf.mxu3  ;;  %v2802_v28 = vpop.f32.mrf.mxu1  ;;  %v2814_v61 = vadd.f32 %v2813_v17, %v2801_v60 }
 0x23b   : > { %v2827_v0 = vadd.f32 %v2826_v25, %v2814_v61 }
 0x240   : > { %v2815_v30 = vpop.f32.mrf.mxu2  ;;  %v2873_v33 = vpop.f32.mrf.mxu0 }
 0x241   : > { %v2910_v34 = vsub.f32 %v2902_v32, %v2873_v33  ;;  %v2828_v35 = vpop.f32.mrf.mxu3 }
 0x243   : > { %v2918_v36 = vadd.f32 %v2910_v34, %v2749_v23 }
 0x245   : > { %v2926_v37 = vmax.f32 %v2918_v36, 0.0 }
 0x247   : > { %2934 = vst [vmem:[#allocation13] sm:$0xff] %v2926_v37 }
 0x248   : > { %v2878_v40 = vpop.f32.mrf.mxu2  ;;  %v2875_v45 = vpop.f32.mrf.mxu0 }
 0x249   : > { %v2914_v20 = vsub.f32 %v2906_v18, %v2878_v40  ;;  %v2912_v59 = vsub.f32 %v2904_v38, %v2875_v45 }
 0x24b   : > { %v2922_v42 = vadd.f32 %v2914_v20, %v2749_v23  ;;  %v2920_v47 = vadd.f32 %v2912_v59, %v2749_v23 }
 0x24d   : > { %v2930_v44 = vmax.f32 %v2922_v42, 0.0  ;;  %v2928_v50 = vmax.f32 %v2920_v47, 0.0 }
 0x24f   : > { %2938 = vst [vmem:[#allocation13 + $0x20] sm:$0xff] %v2930_v44 }
 0x250   : > { %v2880_v51 = vpop.f32.mrf.mxu2  ;;  %2936 = vst [vmem:[#allocation13 + $0x10] sm:$0xff] %v2928_v50 }
 0x251   : > { %v2916_v52 = vsub.f32 %v2908_v48, %v2880_v51 }
 0x253   : > { %v2924_v55 = vadd.f32 %v2916_v52, %v2749_v23 }
 0x255   : > { %v2932_v56 = vmax.f32 %v2924_v55, 0.0 }
 0x257   : > { %2940 = vst [vmem:[#allocation13 + $0x30] sm:$0xff] %v2932_v56 }
 0x260   : > { %v2892_v63 = vpop.f32.mrf.mxu1 }
 0x261   : > { %v2911_v26 = vsub.f32 %v2903_v62, %v2892_v63 }
 0x263   : > { %v2919_v1 = vadd.f32 %v2911_v26, %v2827_v0 }
 0x265   : > { %v2927_v39 = vmax.f32 %v2919_v1, 0.0 }
 0x266   : > { %v2897_v3 = vpop.f32.mrf.mxu3 }
 0x267   : > { %2935 = vst [vmem:[#allocation13 + $0x8] sm:$0xff] %v2927_v39  ;;  %v2915_v4 = vsub.f32 %v2907_v2, %v2897_v3 }
 0x268   : > { %v2894_v6 = vpop.f32.mrf.mxu1 }
 0x269   : > { %v2923_v7 = vadd.f32 %v2915_v4, %v2827_v0  ;;  %v2913_v8 = vsub.f32 %v2905_v5, %v2894_v6 }
 0x26b   : > { %v2931_v19 = vmax.f32 %v2923_v7, 0.0  ;;  %v2921_v9 = vadd.f32 %v2913_v8, %v2827_v0 }
 0x26d   : > { %2939 = vst [vmem:[#allocation13 + $0x28] sm:$0xff] %v2931_v19  ;;  %v2929_v10 = vmax.f32 %v2921_v9, 0.0 }
 0x26e   : > { %v2899_v46 = vpop.f32.mrf.mxu3 }
 0x26f   : > { %2937 = vst [vmem:[#allocation13 + $0x18] sm:$0xff] %v2929_v10  ;;  %v2917_v31 = vsub.f32 %v2909_v11, %v2899_v46 }
 0x271   : > { %v2925_v12 = vadd.f32 %v2917_v31, %v2827_v0 }
 0x273   : > { %v2933_v41 = vmax.f32 %v2925_v12, 0.0 }
 0x275   : > { %2941 = vst [vmem:[#allocation13 + $0x38] sm:$0xff] %v2933_v41 }
 0x276 PF: > { %v7974_v13 = vld [vmem:[%s10208_s14 + $0x1c0] sm:$0xf]  ;;  %v9154_v21 = vld [vmem:[%s10208_s14 + $0x1c4] sm:$0xf]  ;;  %s13067_s16 = sld [smem:[#allocation211_spill]]  ;;  %s9944_s4 = smov [#allocation13]  }
 0x277   : > { %v9158_v54 = vld [vmem:[%s10208_s14 + $0x1dc] sm:$0xf0]  ;;  %v7976_v24 = vld [vmem:[%s10208_s14 + $0x1e0] sm:$0xf0]  ;;  %s12189_s22 = sshll.u32 %s9944_s4, 4  ;;  %s13068_s0 = sld [smem:[#allocation209_spill]]  ;;  %s6308_s22 = int_to_ptr.vmem [resolvable:$true] %s12189_s22 }
 0x278   : > { %v8230_v14 = vld [vmem:[%s10208_s14 + $0x3c0] sm:$0xf]  ;;  %v7975_v15 = vor.u32 %v9158_v54, %v7974_v13  ;;  %v7979_v28 = vor.u32 %v9154_v21, %v7976_v24  ;;  %v9218_v29 = vld [vmem:[%s10208_s14 + $0x3c4] sm:$0xf] }
 0x279   : > { %v9222_v17 = vld [vmem:[%s10208_s14 + $0x3dc] sm:$0xf0]  ;;  %v8232_v30 = vld [vmem:[%s10208_s14 + $0x3e0] sm:$0xf0] }
 0x27a   : > { %v8231_v25 = vor.u32 %v9222_v17, %v8230_v14  ;;  %v7942_v16 = vld [vmem:[%s10208_s14 + $0x180] sm:$0xf]  ;;  %3868 = vmatpush.bf16.msra.mxu0 %v7975_v15  ;;  %v8235_v32 = vor.u32 %v9218_v29, %v8232_v30  ;;  %3906 = vmatpush.bf16.msra.mxu2 %v7979_v28  ;;  %v9146_v36 = vld [vmem:[%s10208_s14 + $0x184] sm:$0xf] }
 0x27b   : > { %v9150_v27 = vld [vmem:[%s10208_s14 + $0x19c] sm:$0xf0]  ;;  %v7944_v22 = vld [vmem:[%s10208_s14 + $0x1a0] sm:$0xf0] }
 0x27c   : > { %v8198_v33 = vld [vmem:[%s10208_s14 + $0x380] sm:$0xf]  ;;  %3887 = vmatpush.bf16.msra.mxu1 %v8231_v25  ;;  %v7943_v34 = vor.u32 %v9150_v27, %v7942_v16  ;;  %v9210_v37 = vld [vmem:[%s10208_s14 + $0x384] sm:$0xf]  ;;  %3925 = vmatpush.bf16.msra.mxu3 %v8235_v32  ;;  %v7947_v18 = vor.u32 %v9146_v36, %v7944_v22 }
 0x27d   : > { %v9214_v23 = vld [vmem:[%s10208_s14 + $0x39c] sm:$0xf0]  ;;  %v8200_v40 = vld [vmem:[%s10208_s14 + $0x3a0] sm:$0xf0]  ;;  %s6309_s23 = sshll.u32 %s13068_s0, 4  ;;  %s6310_s23 = int_to_ptr.hbm [resolvable:$true] %s6309_s23 }
 0x27e   : > { %v8199_v35 = vor.u32 %v9214_v23, %v8198_v33  ;;  %v7910_v38 = vld [vmem:[%s10208_s14 + $0x140] sm:$0xf]  ;;  %v8203_v45 = vor.u32 %v9210_v37, %v8200_v40  ;;  %v9138_v43 = vld [vmem:[%s10208_s14 + $0x144] sm:$0xf]  ;;  %3869 = vmatpush.bf16.msra.mxu0 %v7943_v34  ;;  %3907 = vmatpush.bf16.msra.mxu2 %v7947_v18 }
 0x27f   : > { %v9142_v20 = vld [vmem:[%s10208_s14 + $0x15c] sm:$0xf0]  ;;  %v7912_v47 = vld [vmem:[%s10208_s14 + $0x160] sm:$0xf0] }
 0x280   : > { %v8166_v42 = vld [vmem:[%s10208_s14 + $0x340] sm:$0xf]  ;;  %v7911_v44 = vor.u32 %v9142_v20, %v7910_v38  ;;  %v9202_v48 = vld [vmem:[%s10208_s14 + $0x344] sm:$0xf]  ;;  %3888 = vmatpush.bf16.msra.mxu1 %v8199_v35  ;;  %v7915_v51 = vor.u32 %v9138_v43, %v7912_v47  ;;  %3926 = vmatpush.bf16.msra.mxu3 %v8203_v45  ;;  %v7982_v43 = vld [vmem:[%s10208_s14 + $0x1c8] sm:$0xf] }
 0x281   : > { %v9206_v59 = vld [vmem:[%s10208_s14 + $0x35c] sm:$0xf0]  ;;  %v8168_v49 = vld [vmem:[%s10208_s14 + $0x360] sm:$0xf0]  ;;  %v8238_v47 = vld [vmem:[%s10208_s14 + $0x3c8] sm:$0xf] }
 0x282   : > { %v8167_v50 = vor.u32 %v9206_v59, %v8166_v42  ;;  %v7878_v52 = vld [vmem:[%s10208_s14 + $0x100] sm:$0xf]  ;;  %v8171_v56 = vor.u32 %v9202_v48, %v8168_v49  ;;  %v9130_v58 = vld [vmem:[%s10208_s14 + $0x104] sm:$0xf]  ;;  %3870 = vmatpush.bf16.msra.mxu0 %v7911_v44  ;;  %3908 = vmatpush.bf16.msra.mxu2 %v7915_v51  ;;  %v9159_v44 = vld [vmem:[%s10208_s14 + $0x1e4] sm:$0xf0] }
 0x283   : > { %v9134_v53 = vld [vmem:[%s10208_s14 + $0x11c] sm:$0xf0]  ;;  %v7880_v60 = vld [vmem:[%s10208_s14 + $0x120] sm:$0xf0]  ;;  %v9223_v48 = vld [vmem:[%s10208_s14 + $0x3e4] sm:$0xf0] }
 0x284   : > { %v8134_v55 = vld [vmem:[%s10208_s14 + $0x300] sm:$0xf]  ;;  %v9194_v61 = vld [vmem:[%s10208_s14 + $0x304] sm:$0xf]  ;;  %v7879_v63 = vor.u32 %v9134_v53, %v7878_v52  ;;  %3889 = vmatpush.bf16.msra.mxu1 %v8167_v50  ;;  %v7883_v26 = vor.u32 %v9130_v58, %v7880_v60  ;;  %3927 = vmatpush.bf16.msra.mxu3 %v8171_v56  ;;  %v9155_v50 = vld [vmem:[%s10208_s14 + $0x1cc] sm:$0xf] }
 0x285   : > { %v9198_v57 = vld [vmem:[%s10208_s14 + $0x31c] sm:$0xf0]  ;;  %v8136_v62 = vld [vmem:[%s10208_s14 + $0x320] sm:$0xf0]  ;;  %v7984_v51 = vld [vmem:[%s10208_s14 + $0x1e8] sm:$0xf0] }
 0x286   : > { %v8135_v0 = vor.u32 %v9198_v57, %v8134_v55  ;;  %v7846_v1 = vld [vmem:[%s10208_s14 + $0xc0] sm:$0xf]  ;;  %v8139_v3 = vor.u32 %v9194_v61, %v8136_v62  ;;  %v9122_v5 = vld [vmem:[%s10208_s14 + $0xc4] sm:$0xf]  ;;  %3871 = vmatpush.bf16.msra.mxu0 %v7879_v63  ;;  %3909 = vmatpush.bf16.msra.mxu2 %v7883_v26  ;;  %v9219_v52 = vld [vmem:[%s10208_s14 + $0x3cc] sm:$0xf]  ;;  %v7983_v61 = vor.u32 %v9159_v44, %v7982_v43 }
 0x287   : > { %v9126_v39 = vld [vmem:[%s10208_s14 + $0xdc] sm:$0xf0]  ;;  %v7848_v6 = vld [vmem:[%s10208_s14 + $0xe0] sm:$0xf0]  ;;  %v8240_v56 = vld [vmem:[%s10208_s14 + $0x3e8] sm:$0xf0]  ;;  %v7987_v26 = vor.u32 %v9155_v50, %v7984_v51 }
 0x288   : > { %v8102_v2 = vld [vmem:[%s10208_s14 + $0x2c0] sm:$0xf]  ;;  %v9186_v7 = vld [vmem:[%s10208_s14 + $0x2c4] sm:$0xf]  ;;  %v7847_v19 = vor.u32 %v9126_v39, %v7846_v1  ;;  %3890 = vmatpush.bf16.msra.mxu1 %v8135_v0  ;;  %v7851_v10 = vor.u32 %v9122_v5, %v7848_v6  ;;  %3928 = vmatpush.bf16.msra.mxu3 %v8139_v3  ;;  %v3199_v57 = vld [vmem:[#allocation13] sm:$0xff]  ;;  %v8239_v0 = vor.u32 %v9223_v48, %v8238_v47 }
 0x289   : > { %v9190_v4 = vld [vmem:[%s10208_s14 + $0x2dc] sm:$0xf0]  ;;  %v8104_v8 = vld [vmem:[%s10208_s14 + $0x2e0] sm:$0xf0]  ;;  %v3200_v62 = vld [vmem:[#allocation13 + $0x8] sm:$0xff]  ;;  %v8243_v3 = vor.u32 %v9219_v52, %v8240_v56 }
 0x28a   : > { %v8103_v9 = vor.u32 %v9190_v4, %v8102_v2  ;;  %v7814_v11 = vld [vmem:[%s10208_s14 + $0x80] sm:$0xf]  ;;  %v8107_v12 = vor.u32 %v9186_v7, %v8104_v8  ;;  %v9114_v13 = vld [vmem:[%s10208_s14 + $0x84] sm:$0xf]  ;;  %3872 = vmatpush.bf16.msra.mxu0 %v7847_v19  ;;  %3910 = vmatpush.bf16.msra.mxu2 %v7851_v10  ;;  %v3202_v63 = vld [vmem:[#allocation13 + $0x18] sm:$0xff] }
 0x28b   : > { %v9118_v46 = vld [vmem:[%s10208_s14 + $0x9c] sm:$0xf0]  ;;  %v7816_v54 = vld [vmem:[%s10208_s14 + $0xa0] sm:$0xf0]  ;;  %v7950_v1 = vld [vmem:[%s10208_s14 + $0x188] sm:$0xf]  ;;  %v10431_v8 = vpack.c.bf16 %v3202_v63, %v3200_v62 }
 0x28c   : > { %v8070_v31 = vld [vmem:[%s10208_s14 + $0x280] sm:$0xf]  ;;  %v9178_v14 = vld [vmem:[%s10208_s14 + $0x284] sm:$0xf]  ;;  %v7815_v17 = vor.u32 %v9118_v46, %v7814_v11  ;;  %3891 = vmatpush.bf16.msra.mxu1 %v8103_v9  ;;  %v7819_v24 = vor.u32 %v9114_v13, %v7816_v54  ;;  %3929 = vmatpush.bf16.msra.mxu3 %v8107_v12  ;;  %v9151_v39 = vld [vmem:[%s10208_s14 + $0x1a4] sm:$0xf0] }
 0x28d   : > { %v9182_v41 = vld [vmem:[%s10208_s14 + $0x29c] sm:$0xf0]  ;;  %v8072_v15 = vld [vmem:[%s10208_s14 + $0x2a0] sm:$0xf0]  ;;  %v8206_v2 = vld [vmem:[%s10208_s14 + $0x388] sm:$0xf]  ;;  %v7951_v10 = vor.u32 %v9151_v39, %v7950_v1 }
 0x28e   : > { %v8071_v21 = vor.u32 %v9182_v41, %v8070_v31  ;;  %v7782_v25 = vld [vmem:[%s10208_s14 + $0x40] sm:$0xf]  ;;  %v8075_v30 = vor.u32 %v9178_v14, %v8072_v15  ;;  %v9106_v32 = vld [vmem:[%s10208_s14 + $0x44] sm:$0xf]  ;;  %3873 = vmatpush.bf16.msra.mxu0 %v7815_v17  ;;  %3911 = vmatpush.bf16.msra.mxu2 %v7819_v24  ;;  %v9215_v5 = vld [vmem:[%s10208_s14 + $0x3a4] sm:$0xf0] }
 0x28f   : > { %v9110_v28 = vld [vmem:[%s10208_s14 + $0x5c] sm:$0xf0]  ;;  %v7784_v27 = vld [vmem:[%s10208_s14 + $0x60] sm:$0xf0]  ;;  %v9147_v6 = vld [vmem:[%s10208_s14 + $0x18c] sm:$0xf]  ;;  %v8207_v11 = vor.u32 %v9215_v5, %v8206_v2 }
 0x290   : > { %v8038_v29 = vld [vmem:[%s10208_s14 + $0x240] sm:$0xf]  ;;  %v9170_v33 = vld [vmem:[%s10208_s14 + $0x244] sm:$0xf]  ;;  %v7783_v35 = vor.u32 %v9110_v28, %v7782_v25  ;;  %3892 = vmatpush.bf16.msra.mxu1 %v8071_v21  ;;  %v7787_v40 = vor.u32 %v9106_v32, %v7784_v27  ;;  %3930 = vmatpush.bf16.msra.mxu3 %v8075_v30  ;;  %v7952_v7 = vld [vmem:[%s10208_s14 + $0x1a8] sm:$0xf0] }
 0x291   : > { %v9174_v16 = vld [vmem:[%s10208_s14 + $0x25c] sm:$0xf0]  ;;  %v8040_v23 = vld [vmem:[%s10208_s14 + $0x260] sm:$0xf0]  ;;  %v9211_v19 = vld [vmem:[%s10208_s14 + $0x38c] sm:$0xf]  ;;  %v7955_v46 = vor.u32 %v9147_v6, %v7952_v7 }
 0x292   : > { %v7750_v34 = vld [vmem:[%s10208_s14] sm:$0xf]  ;;  %v8039_v18 = vor.u32 %v9174_v16, %v8038_v29  ;;  %v9098_v38 = vld [vmem:[%s10208_s14 + $0x4] sm:$0xf]  ;;  %v8043_v45 = vor.u32 %v9170_v33, %v8040_v23  ;;  %3874 = vmatpush.bf16.msra.mxu0 %v7783_v35  ;;  %3912 = vmatpush.bf16.msra.mxu2 %v7787_v40  ;;  %v8208_v9 = vld [vmem:[%s10208_s14 + $0x3a8] sm:$0xf0] }
 0x293   : > { %v9102_v36 = vld [vmem:[%s10208_s14 + $0x1c] sm:$0xf0]  ;;  %v7752_v20 = vld [vmem:[%s10208_s14 + $0x20] sm:$0xf0]  ;;  %v7918_v31 = vld [vmem:[%s10208_s14 + $0x148] sm:$0xf]  ;;  %v8211_v13 = vor.u32 %v9211_v19, %v8208_v9 }
 0x294   : > { %v8006_v22 = vld [vmem:[%s10208_s14 + $0x200] sm:$0xf]  ;;  %v9162_v42 = vld [vmem:[%s10208_s14 + $0x204] sm:$0xf]  ;;  %v7751_v49 = vor.u32 %v9102_v36, %v7750_v34  ;;  %3893 = vmatpush.bf16.msra.mxu1 %v8039_v18  ;;  %v7755_v55 = vor.u32 %v9098_v38, %v7752_v20  ;;  %3931 = vmatpush.bf16.msra.mxu3 %v8043_v45  ;;  %v9143_v12 = vld [vmem:[%s10208_s14 + $0x164] sm:$0xf0] }
 0x295   : > { %v9166_v37 = vld [vmem:[%s10208_s14 + $0x21c] sm:$0xf0]  ;;  %v8008_v59 = vld [vmem:[%s10208_s14 + $0x220] sm:$0xf0]  ;;  %v8174_v41 = vld [vmem:[%s10208_s14 + $0x348] sm:$0xf]  ;;  %v7919_v24 = vor.u32 %v9143_v12, %v7918_v31 }
 0x296   : > { %v8007_v53 = vor.u32 %v9166_v37, %v8006_v22  ;;  %v3201_v58 = vld [vmem:[#allocation13 + $0x10] sm:$0xff]  ;;  %v8011_v60 = vor.u32 %v9162_v42, %v8008_v59  ;;  %3875 = vmatpush.bf16.msra.mxu0 %v7751_v49  ;;  %3913 = vmatpush.bf16.msra.mxu2 %v7755_v55  ;;  %v9207_v54 = vld [vmem:[%s10208_s14 + $0x364] sm:$0xf0]  ;;  %v9139_v14 = vld [vmem:[%s10208_s14 + $0x14c] sm:$0xf] }
 0x297   : > { %v10426_v4 = vpack.c.bf16 %v3201_v58, %v3199_v57  ;;  %v7920_v15 = vld [vmem:[%s10208_s14 + $0x168] sm:$0xf0]  ;;  %v8175_v25 = vor.u32 %v9207_v54, %v8174_v41  ;;  %v7886_v29 = vld [vmem:[%s10208_s14 + $0x108] sm:$0xf]  ;;  %v3203_v47 = vld [vmem:[#allocation13 + $0x20] sm:$0xff] }
 0x298   : > { %3894 = vmatpush.bf16.msra.mxu1 %v8007_v53  ;;  %3932 = vmatpush.bf16.msra.mxu3 %v8011_v60  ;;  %v9203_v17 = vld [vmem:[%s10208_s14 + $0x34c] sm:$0xf]  ;;  %v7923_v28 = vor.u32 %v9139_v14, %v7920_v15  ;;  %v9135_v30 = vld [vmem:[%s10208_s14 + $0x124] sm:$0xf0]  ;;  %v3205_v48 = vld [vmem:[#allocation13 + $0x30] sm:$0xff] }
 0x299   : > { %3876 = vmatmul.bf16.vlgmr.msra.gmra.mxu0 %v10426_v4  ;;  %3914 = vmatmul.bf16.vlgmr.msra.gmra.mxu2 %v10426_v4  ;;  %v8176_v21 = vld [vmem:[%s10208_s14 + $0x368] sm:$0xf0]  ;;  %v8142_v16 = vld [vmem:[%s10208_s14 + $0x308] sm:$0xf]  ;;  %v7887_v36 = vor.u32 %v9135_v30, %v7886_v29  ;;  %v3204_v50 = vld [vmem:[#allocation13 + $0x28] sm:$0xff]  ;;  %v10466_v60 = vpack.c.bf16 %v3205_v48, %v3203_v47 }
 0x29a   : > { %3944 = vmatpush.bf16.msrb.mxu0 %v7983_v61  ;;  %3982 = vmatpush.bf16.msrb.mxu2 %v7987_v26  ;;  %v8179_v32 = vor.u32 %v9203_v17, %v8176_v21  ;;  %v9199_v27 = vld [vmem:[%s10208_s14 + $0x324] sm:$0xf0]  ;;  %v9131_v33 = vld [vmem:[%s10208_s14 + $0x10c] sm:$0xf]  ;;  %v7990_v30 = vld [vmem:[%s10208_s14 + $0x1d0] sm:$0xf] }
 0x29b   : > { %3895 = vmatmul.bf16.vlgmr.msra.gmra.mxu1 %v10431_v8  ;;  %3933 = vmatmul.bf16.vlgmr.msra.gmra.mxu3 %v10431_v8  ;;  %v7888_v23 = vld [vmem:[%s10208_s14 + $0x128] sm:$0xf0]  ;;  %v7854_v22 = vld [vmem:[%s10208_s14 + $0xc8] sm:$0xf]  ;;  %v8143_v37 = vor.u32 %v9199_v27, %v8142_v16  ;;  %v9160_v16 = vld [vmem:[%s10208_s14 + $0x1ec] sm:$0xf0] }
 0x29c   : > { %3963 = vmatpush.bf16.msrb.mxu1 %v8239_v0  ;;  %4001 = vmatpush.bf16.msrb.mxu3 %v8243_v3  ;;  %v9195_v34 = vld [vmem:[%s10208_s14 + $0x30c] sm:$0xf]  ;;  %v7891_v18 = vor.u32 %v9131_v33, %v7888_v23  ;;  %v9127_v40 = vld [vmem:[%s10208_s14 + $0xe4] sm:$0xf0]  ;;  %v9224_v33 = vld [vmem:[%s10208_s14 + $0x3ec] sm:$0xf0] }
 0x29d   : > { %v8144_v35 = vld [vmem:[%s10208_s14 + $0x328] sm:$0xf0]  ;;  %v8110_v38 = vld [vmem:[%s10208_s14 + $0x2c8] sm:$0xf]  ;;  %v7855_v49 = vor.u32 %v9127_v40, %v7854_v22  ;;  %v9156_v23 = vld [vmem:[%s10208_s14 + $0x1d4] sm:$0xf]  ;;  %v7991_v40 = vor.u32 %v9160_v16, %v7990_v30 }
 0x29e   : > { %3945 = vmatpush.bf16.msrb.mxu0 %v7951_v10  ;;  %3983 = vmatpush.bf16.msrb.mxu2 %v7955_v46  ;;  %v9191_v20 = vld [vmem:[%s10208_s14 + $0x2e4] sm:$0xf0]  ;;  %v8147_v45 = vor.u32 %v9195_v34, %v8144_v35  ;;  %v9123_v42 = vld [vmem:[%s10208_s14 + $0xcc] sm:$0xf]  ;;  %v7992_v34 = vld [vmem:[%s10208_s14 + $0x1f0] sm:$0xf0] }
 0x29f   : > { %v7856_v59 = vld [vmem:[%s10208_s14 + $0xe8] sm:$0xf0]  ;;  %v8111_v52 = vor.u32 %v9191_v20, %v8110_v38  ;;  %v7822_v55 = vld [vmem:[%s10208_s14 + $0x88] sm:$0xf]  ;;  %v9220_v22 = vld [vmem:[%s10208_s14 + $0x3d4] sm:$0xf]  ;;  %v7995_v20 = vor.u32 %v9156_v23, %v7992_v34 }
 0x2a0   : > { %3964 = vmatpush.bf16.msrb.mxu1 %v8207_v11  ;;  %4002 = vmatpush.bf16.msrb.mxu3 %v8211_v13  ;;  %v9187_v43 = vld [vmem:[%s10208_s14 + $0x2cc] sm:$0xf]  ;;  %v7859_v53 = vor.u32 %v9123_v42, %v7856_v59  ;;  %v9119_v56 = vld [vmem:[%s10208_s14 + $0xa4] sm:$0xf0]  ;;  %v9152_v42 = vld [vmem:[%s10208_s14 + $0x1ac] sm:$0xf0] }
 0x2a1   : > { %v8112_v44 = vld [vmem:[%s10208_s14 + $0x2e8] sm:$0xf0]  ;;  %v8078_v57 = vld [vmem:[%s10208_s14 + $0x288] sm:$0xf]  ;;  %v7823_v39 = vor.u32 %v9119_v56, %v7822_v55  ;;  %v8214_v59 = vld [vmem:[%s10208_s14 + $0x390] sm:$0xf] }
 0x2a2   : > { %3946 = vmatpush.bf16.msrb.mxu0 %v7919_v24  ;;  %3984 = vmatpush.bf16.msrb.mxu2 %v7923_v28  ;;  %v3206_v51 = vld [vmem:[#allocation13 + $0x38] sm:$0xff]  ;;  %v8115_v58 = vor.u32 %v9187_v43, %v8112_v44  ;;  %v9216_v44 = vld [vmem:[%s10208_s14 + $0x3ac] sm:$0xf0]  ;;  %v9148_v47 = vld [vmem:[%s10208_s14 + $0x194] sm:$0xf] }
 0x2a3   : > { %v9183_v61 = vld [vmem:[%s10208_s14 + $0x2a4] sm:$0xf0]  ;;  %v9115_v62 = vld [vmem:[%s10208_s14 + $0x8c] sm:$0xf]  ;;  %v10471_v0 = vpack.c.bf16 %v3206_v51, %v3204_v50  ;;  %v7960_v48 = vld [vmem:[%s10208_s14 + $0x1b0] sm:$0xf0] }
 0x2a4   : > { %3965 = vmatpush.bf16.msrb.mxu1 %v8175_v25  ;;  %4003 = vmatpush.bf16.msrb.mxu3 %v8179_v32  ;;  %v7824_v63 = vld [vmem:[%s10208_s14 + $0xa8] sm:$0xf0]  ;;  %v8079_v2 = vor.u32 %v9183_v61, %v8078_v57  ;;  %v7790_v5 = vld [vmem:[%s10208_s14 + $0x48] sm:$0xf]  ;;  %v8246_v32 = vld [vmem:[%s10208_s14 + $0x3d0] sm:$0xf] }
 0x2a5   : > { %v9179_v26 = vld [vmem:[%s10208_s14 + $0x28c] sm:$0xf]  ;;  %v7827_v3 = vor.u32 %v9115_v62, %v7824_v63  ;;  %v9111_v6 = vld [vmem:[%s10208_s14 + $0x64] sm:$0xf0]  ;;  %v8247_v38 = vor.u32 %v9224_v33, %v8246_v32  ;;  %v8216_v50 = vld [vmem:[%s10208_s14 + $0x3b0] sm:$0xf0] }
 0x2a6   : > { %3947 = vmatpush.bf16.msrb.mxu0 %v7887_v36  ;;  %3985 = vmatpush.bf16.msrb.mxu2 %v7891_v18  ;;  %v8080_v1 = vld [vmem:[%s10208_s14 + $0x2a8] sm:$0xf0]  ;;  %v8046_v7 = vld [vmem:[%s10208_s14 + $0x248] sm:$0xf]  ;;  %v7791_v12 = vor.u32 %v9111_v6, %v7790_v5  ;;  %v7926_v55 = vld [vmem:[%s10208_s14 + $0x150] sm:$0xf] }
 0x2a7   : > { %v8083_v19 = vor.u32 %v9179_v26, %v8080_v1  ;;  %v9175_v9 = vld [vmem:[%s10208_s14 + $0x264] sm:$0xf0]  ;;  %v9107_v10 = vld [vmem:[%s10208_s14 + $0x4c] sm:$0xf]  ;;  %v9144_v56 = vld [vmem:[%s10208_s14 + $0x16c] sm:$0xf0] }
 0x2a8   : > { %3966 = vmatpush.bf16.msrb.mxu1 %v8143_v37  ;;  %4004 = vmatpush.bf16.msrb.mxu3 %v8147_v45  ;;  %v7792_v11 = vld [vmem:[%s10208_s14 + $0x68] sm:$0xf0]  ;;  %v7758_v41 = vld [vmem:[%s10208_s14 + $0x8] sm:$0xf]  ;;  %v8047_v54 = vor.u32 %v9175_v9, %v8046_v7  ;;  %v8248_v37 = vld [vmem:[%s10208_s14 + $0x3f0] sm:$0xf0] }
 0x2a9   : > { %3881 = vmatmul.bf16.gmra.mxu0 %v10466_v60  ;;  %3919 = vmatmul.bf16.gmra.mxu2 %v10466_v60  ;;  %v9171_v46 = vld [vmem:[%s10208_s14 + $0x24c] sm:$0xf]  ;;  %v9103_v13 = vld [vmem:[%s10208_s14 + $0x24] sm:$0xf0]  ;;  %v7795_v14 = vor.u32 %v9107_v10, %v7792_v11  ;;  %v7958_v45 = vld [vmem:[%s10208_s14 + $0x190] sm:$0xf]  ;;  %v8251_v43 = vor.u32 %v9220_v22, %v8248_v37 }
 0x2aa   : > { %3948 = vmatpush.bf16.msrb.mxu0 %v7855_v49  ;;  %3986 = vmatpush.bf16.msrb.mxu2 %v7859_v53  ;;  %v8048_v31 = vld [vmem:[%s10208_s14 + $0x268] sm:$0xf0]  ;;  %v8014_v15 = vld [vmem:[%s10208_s14 + $0x208] sm:$0xf]  ;;  %v7759_v27 = vor.u32 %v9103_v13, %v7758_v41  ;;  %v9212_v49 = vld [vmem:[%s10208_s14 + $0x394] sm:$0xf]  ;;  %v7959_v51 = vor.u32 %v9152_v42, %v7958_v45  ;;  %v7963_v53 = vor.u32 %v9148_v47, %v7960_v48 }
 0x2ab   : > { %3900 = vmatmul.bf16.gmra.mxu1 %v10471_v0  ;;  %3938 = vmatmul.bf16.gmra.mxu3 %v10471_v0  ;;  %v9167_v17 = vld [vmem:[%s10208_s14 + $0x224] sm:$0xf0]  ;;  %v9099_v21 = vld [vmem:[%s10208_s14 + $0xc] sm:$0xf]  ;;  %v8051_v24 = vor.u32 %v9171_v46, %v8048_v31  ;;  %v8182_v57 = vld [vmem:[%s10208_s14 + $0x350] sm:$0xf] }
 0x2ac   : > { %3967 = vmatpush.bf16.msrb.mxu1 %v8111_v52  ;;  %4005 = vmatpush.bf16.msrb.mxu3 %v8115_v58  ;;  %v7760_v25 = vld [vmem:[%s10208_s14 + $0x28] sm:$0xf0]  ;;  %v8015_v35 = vor.u32 %v9167_v17, %v8014_v15  ;;  %v8215_v52 = vor.u32 %v9216_v44, %v8214_v59  ;;  %v8219_v58 = vor.u32 %v9212_v49, %v8216_v50  ;;  %v9208_v61 = vld [vmem:[%s10208_s14 + $0x36c] sm:$0xf0]  ;;  %v9140_v62 = vld [vmem:[%s10208_s14 + $0x154] sm:$0xf] }
 0x2ad   : > { %v9163_v28 = vld [vmem:[%s10208_s14 + $0x20c] sm:$0xf]  ;;  %v7763_v36 = vor.u32 %v9099_v21, %v7760_v25  ;;  %v7928_v63 = vld [vmem:[%s10208_s14 + $0x170] sm:$0xf0]  ;;  %v7894_v5 = vld [vmem:[%s10208_s14 + $0x110] sm:$0xf] }
 0x2ae   : > { %3949 = vmatpush.bf16.msrb.mxu0 %v7823_v39  ;;  %3987 = vmatpush.bf16.msrb.mxu2 %v7827_v3  ;;  %v8016_v29 = vld [vmem:[%s10208_s14 + $0x228] sm:$0xf0]  ;;  %v9204_v26 = vld [vmem:[%s10208_s14 + $0x354] sm:$0xf]  ;;  %v7927_v39 = vor.u32 %v9144_v56, %v7926_v55  ;;  %v7931_v3 = vor.u32 %v9140_v62, %v7928_v63  ;;  %v9136_v6 = vld [vmem:[%s10208_s14 + $0x12c] sm:$0xf0] }
 0x2af   : > { %v8019_v18 = vor.u32 %v9163_v28, %v8016_v29  ;;  %v8184_v1 = vld [vmem:[%s10208_s14 + $0x370] sm:$0xf0]  ;;  %v8150_v7 = vld [vmem:[%s10208_s14 + $0x310] sm:$0xf] }
 0x2b0   : > { %3968 = vmatpush.bf16.msrb.mxu1 %v8079_v2  ;;  %4006 = vmatpush.bf16.msrb.mxu3 %v8083_v19  ;;  %v8183_v2 = vor.u32 %v9208_v61, %v8182_v57  ;;  %v8187_v19 = vor.u32 %v9204_v26, %v8184_v1  ;;  %v9200_v9 = vld [vmem:[%s10208_s14 + $0x32c] sm:$0xf0]  ;;  %v9132_v10 = vld [vmem:[%s10208_s14 + $0x114] sm:$0xf] }
 0x2b1   : > { %v7896_v11 = vld [vmem:[%s10208_s14 + $0x130] sm:$0xf0]  ;;  %v8151_v41 = vor.u32 %v9200_v9, %v8150_v7  ;;  %v8118_v15 = vld [vmem:[%s10208_s14 + $0x2d0] sm:$0xf]  ;;  %v9157_v7 = vld [vmem:[%s10208_s14 + $0x1dc] sm:$0xf] }
 0x2b2   : > { %3950 = vmatpush.bf16.msrb.mxu0 %v7791_v12  ;;  %3988 = vmatpush.bf16.msrb.mxu2 %v7795_v14  ;;  %v9196_v46 = vld [vmem:[%s10208_s14 + $0x314] sm:$0xf]  ;;  %v7895_v12 = vor.u32 %v9136_v6, %v7894_v5  ;;  %v7899_v13 = vor.u32 %v9132_v10, %v7896_v11  ;;  %v9128_v14 = vld [vmem:[%s10208_s14 + $0xec] sm:$0xf0]  ;;  %v9225_v6 = vld [vmem:[%s10208_s14 + $0x3f4] sm:$0xf0] }
 0x2b3   : > { %v8152_v31 = vld [vmem:[%s10208_s14 + $0x330] sm:$0xf0]  ;;  %v9192_v21 = vld [vmem:[%s10208_s14 + $0x2ec] sm:$0xf0]  ;;  %v9221_v11 = vld [vmem:[%s10208_s14 + $0x3dc] sm:$0xf] }
 0x2b4   : > { %3969 = vmatpush.bf16.msrb.mxu1 %v8047_v54  ;;  %4007 = vmatpush.bf16.msrb.mxu3 %v8051_v24  ;;  %v7862_v54 = vld [vmem:[%s10208_s14 + $0xd0] sm:$0xf]  ;;  %v8155_v17 = vor.u32 %v9196_v46, %v8152_v31  ;;  %v9124_v24 = vld [vmem:[%s10208_s14 + $0xd4] sm:$0xf]  ;;  %v8119_v16 = vor.u32 %v9192_v21, %v8118_v15  ;;  %v8256_v46 = vld [vmem:[%s10208_s14 + $0x3f8] sm:$0xf0] }
 0x2b5   : > { %v7864_v25 = vld [vmem:[%s10208_s14 + $0xf0] sm:$0xf0]  ;;  %v7863_v30 = vor.u32 %v9128_v14, %v7862_v54  ;;  %v9120_v33 = vld [vmem:[%s10208_s14 + $0xac] sm:$0xf0]  ;;  %v7966_v54 = vld [vmem:[%s10208_s14 + $0x198] sm:$0xf] }
 0x2b6   : > { %3951 = vmatpush.bf16.msrb.mxu0 %v7759_v27  ;;  %3989 = vmatpush.bf16.msrb.mxu2 %v7763_v36  ;;  %v9188_v28 = vld [vmem:[%s10208_s14 + $0x2d4] sm:$0xf]  ;;  %v7867_v32 = vor.u32 %v9124_v24, %v7864_v25  ;;  %v7830_v27 = vld [vmem:[%s10208_s14 + $0x90] sm:$0xf]  ;;  %v9153_v14 = vld [vmem:[%s10208_s14 + $0x1b4] sm:$0xf0] }
 0x2b7   : > { %v8120_v29 = vld [vmem:[%s10208_s14 + $0x2f0] sm:$0xf0]  ;;  %v8086_v23 = vld [vmem:[%s10208_s14 + $0x290] sm:$0xf]  ;;  %v8222_v15 = vld [vmem:[%s10208_s14 + $0x398] sm:$0xf] }
 0x2b8   : > { %3970 = vmatpush.bf16.msrb.mxu1 %v8015_v35  ;;  %4008 = vmatpush.bf16.msrb.mxu3 %v8019_v18  ;;  %v8123_v34 = vor.u32 %v9188_v28, %v8120_v29  ;;  %v9184_v35 = vld [vmem:[%s10208_s14 + $0x2ac] sm:$0xf0]  ;;  %v9116_v36 = vld [vmem:[%s10208_s14 + $0x94] sm:$0xf]  ;;  %v9217_v21 = vld [vmem:[%s10208_s14 + $0x3b4] sm:$0xf0] }
 0x2b9   : > { %3952 = vmatmul.bf16.vlgmr.msrb.gmra.mxu0 %v10426_v4  ;;  %3990 = vmatmul.bf16.vlgmr.msrb.gmra.mxu2 %v10426_v4  ;;  %v7832_v22 = vld [vmem:[%s10208_s14 + $0xb0] sm:$0xf0]  ;;  %v7798_v45 = vld [vmem:[%s10208_s14 + $0x50] sm:$0xf]  ;;  %v9149_v24 = vld [vmem:[%s10208_s14 + $0x19c] sm:$0xf] }
 0x2ba   : > { %4020 = vmatpush.bf16.msra.mxu0 %v7991_v40  ;;  %4058 = vmatpush.bf16.msra.mxu2 %v7995_v20  ;;  %v9180_v37 = vld [vmem:[%s10208_s14 + $0x294] sm:$0xf]  ;;  %v7831_v40 = vor.u32 %v9120_v33, %v7830_v27  ;;  %v7835_v20 = vor.u32 %v9116_v36, %v7832_v22  ;;  %v9112_v42 = vld [vmem:[%s10208_s14 + $0x6c] sm:$0xf0]  ;;  %v7968_v25 = vld [vmem:[%s10208_s14 + $0x1b8] sm:$0xf0] }
 0x2bb   : > { %3971 = vmatmul.bf16.vlgmr.msrb.gmra.mxu1 %v10431_v8  ;;  %4009 = vmatmul.bf16.vlgmr.msrb.gmra.mxu3 %v10431_v8  ;;  %v8088_v18 = vld [vmem:[%s10208_s14 + $0x2b0] sm:$0xf0]  ;;  %v8054_v59 = vld [vmem:[%s10208_s14 + $0x250] sm:$0xf]  ;;  %v9213_v28 = vld [vmem:[%s10208_s14 + $0x39c] sm:$0xf] }
 0x2bc   : > { %4039 = vmatpush.bf16.msra.mxu1 %v8247_v38  ;;  %4077 = vmatpush.bf16.msra.mxu3 %v8251_v43  ;;  %v8087_v38 = vor.u32 %v9184_v35, %v8086_v23  ;;  %v8091_v43 = vor.u32 %v9180_v37, %v8088_v18  ;;  %v9176_v44 = vld [vmem:[%s10208_s14 + $0x26c] sm:$0xf0]  ;;  %v9108_v47 = vld [vmem:[%s10208_s14 + $0x54] sm:$0xf]  ;;  %v8224_v29 = vld [vmem:[%s10208_s14 + $0x3b8] sm:$0xf0] }
 0x2bd   : > { %v7800_v48 = vld [vmem:[%s10208_s14 + $0x70] sm:$0xf0]  ;;  %v8055_v55 = vor.u32 %v9176_v44, %v8054_v59  ;;  %v8022_v57 = vld [vmem:[%s10208_s14 + $0x210] sm:$0xf]  ;;  %v8227_v27 = vor.u32 %v9213_v28, %v8224_v29  ;;  %v7934_v33 = vld [vmem:[%s10208_s14 + $0x158] sm:$0xf] }
 0x2be   : > { %4021 = vmatpush.bf16.msra.mxu0 %v7959_v51  ;;  %4059 = vmatpush.bf16.msra.mxu2 %v7963_v53  ;;  %v9172_v49 = vld [vmem:[%s10208_s14 + $0x254] sm:$0xf]  ;;  %v7799_v51 = vor.u32 %v9112_v42, %v7798_v45  ;;  %v9104_v53 = vld [vmem:[%s10208_s14 + $0x2c] sm:$0xf0]  ;;  %v7803_v56 = vor.u32 %v9108_v47, %v7800_v48  ;;  %v9145_v23 = vld [vmem:[%s10208_s14 + $0x174] sm:$0xf0] }
 0x2bf   : > { %v8056_v50 = vld [vmem:[%s10208_s14 + $0x270] sm:$0xf0]  ;;  %v9209_v35 = vld [vmem:[%s10208_s14 + $0x374] sm:$0xf0]  ;;  %v9141_v36 = vld [vmem:[%s10208_s14 + $0x15c] sm:$0xf] }
 0x2c0   : > { %4040 = vmatpush.bf16.msra.mxu1 %v8215_v52  ;;  %4078 = vmatpush.bf16.msra.mxu3 %v8219_v58  ;;  %v7766_v52 = vld [vmem:[%s10208_s14 + $0x10] sm:$0xf]  ;;  %v9100_v61 = vld [vmem:[%s10208_s14 + $0x14] sm:$0xf]  ;;  %v8059_v62 = vor.u32 %v9172_v49, %v8056_v50  ;;  %v7936_v22 = vld [vmem:[%s10208_s14 + $0x178] sm:$0xf0] }
 0x2c1   : > { %v9168_v58 = vld [vmem:[%s10208_s14 + $0x22c] sm:$0xf0]  ;;  %v7768_v63 = vld [vmem:[%s10208_s14 + $0x30] sm:$0xf0]  ;;  %v7767_v5 = vor.u32 %v9104_v53, %v7766_v52  ;;  %v9205_v37 = vld [vmem:[%s10208_s14 + $0x35c] sm:$0xf] }
 0x2c2   : > { %4022 = vmatpush.bf16.msra.mxu0 %v7927_v39  ;;  %4060 = vmatpush.bf16.msra.mxu2 %v7931_v3  ;;  %v9164_v26 = vld [vmem:[%s10208_s14 + $0x214] sm:$0xf]  ;;  %v7998_v39 = vld [vmem:[%s10208_s14 + $0x1d8] sm:$0xf]  ;;  %v8023_v9 = vor.u32 %v9168_v58, %v8022_v57  ;;  %v7771_v10 = vor.u32 %v9100_v61, %v7768_v63  ;;  %v8192_v18 = vld [vmem:[%s10208_s14 + $0x378] sm:$0xf0] }
 0x2c3   : > { %v8024_v1 = vld [vmem:[%s10208_s14 + $0x230] sm:$0xf0]  ;;  %v8254_v3 = vld [vmem:[%s10208_s14 + $0x3d8] sm:$0xf]  ;;  %v9133_v47 = vld [vmem:[%s10208_s14 + $0x11c] sm:$0xf] }
 0x2c4   : > { %4041 = vmatpush.bf16.msra.mxu1 %v8183_v2  ;;  %4079 = vmatpush.bf16.msra.mxu3 %v8187_v19  ;;  %v9161_v2 = vld [vmem:[%s10208_s14 + $0x1f4] sm:$0xf0]  ;;  %v8000_v19 = vld [vmem:[%s10208_s14 + $0x1f8] sm:$0xf0]  ;;  %v8027_v31 = vor.u32 %v9164_v26, %v8024_v1 }
 0x2c5   : > { %v7902_v45 = vld [vmem:[%s10208_s14 + $0x118] sm:$0xf]  ;;  %v7904_v48 = vld [vmem:[%s10208_s14 + $0x138] sm:$0xf0] }
 0x2c6   : > { %4023 = vmatpush.bf16.msra.mxu0 %v7895_v12  ;;  %4061 = vmatpush.bf16.msra.mxu2 %v7899_v13  ;;  %v7999_v12 = vor.u32 %v9161_v2, %v7998_v39  ;;  %v8003_v13 = vor.u32 %v9157_v7, %v8000_v19  ;;  %v9137_v42 = vld [vmem:[%s10208_s14 + $0x134] sm:$0xf0]  ;;  %v9197_v49 = vld [vmem:[%s10208_s14 + $0x31c] sm:$0xf]  ;;  %v7907_v53 = vor.u32 %v9133_v47, %v7904_v48  ;;  %v9346_v48 = vld [vmem:[%s10216_s24 + $0x3c4] sm:$0xf] }
 0x2c7   : > { %v8158_v59 = vld [vmem:[%s10208_s14 + $0x318] sm:$0xf]  ;;  %v8160_v50 = vld [vmem:[%s10208_s14 + $0x338] sm:$0xf0] }
 0x2c8   : > { %4042 = vmatpush.bf16.msra.mxu1 %v8151_v41  ;;  %4080 = vmatpush.bf16.msra.mxu3 %v8155_v17  ;;  %v8255_v41 = vor.u32 %v9225_v6, %v8254_v3  ;;  %v8259_v17 = vor.u32 %v9221_v11, %v8256_v46  ;;  %v9201_v44 = vld [vmem:[%s10208_s14 + $0x334] sm:$0xf0]  ;;  %v8163_v58 = vor.u32 %v9197_v49, %v8160_v50  ;;  %v7872_v63 = vld [vmem:[%s10208_s14 + $0xf8] sm:$0xf0]  ;;  %v8744_v49 = vld [vmem:[%s10216_s24 + $0x3e0] sm:$0xf0] }
 0x2c9   : > { %3957 = vmatmul.bf16.gmra.mxu0 %v10466_v60  ;;  %3995 = vmatmul.bf16.gmra.mxu2 %v10466_v60  ;;  %v8159_v52 = vor.u32 %v9201_v44, %v8158_v59  ;;  %v8126_v57 = vld [vmem:[%s10208_s14 + $0x2d8] sm:$0xf]  ;;  %v9189_v26 = vld [vmem:[%s10208_s14 + $0x2dc] sm:$0xf]  ;;  %v9282_v59 = vld [vmem:[%s10216_s24 + $0x1c4] sm:$0xf] }
 0x2ca   : > { %4024 = vmatpush.bf16.msra.mxu0 %v7863_v30  ;;  %4062 = vmatpush.bf16.msra.mxu2 %v7867_v32  ;;  %v7967_v30 = vor.u32 %v9153_v14, %v7966_v54  ;;  %v7971_v32 = vor.u32 %v9149_v24, %v7968_v25  ;;  %v9193_v61 = vld [vmem:[%s10208_s14 + $0x2f4] sm:$0xf0]  ;;  %v8128_v1 = vld [vmem:[%s10208_s14 + $0x2f8] sm:$0xf0] }
 0x2cb   : > { %3976 = vmatmul.bf16.gmra.mxu1 %v10471_v0  ;;  %4014 = vmatmul.bf16.gmra.mxu3 %v10471_v0  ;;  %v8127_v2 = vor.u32 %v9193_v61, %v8126_v57  ;;  %v9121_v6 = vld [vmem:[%s10208_s14 + $0xb4] sm:$0xf0]  ;;  %v8131_v19 = vor.u32 %v9189_v26, %v8128_v1  ;;  %v7840_v11 = vld [vmem:[%s10208_s14 + $0xb8] sm:$0xf0]  ;;  %v8710_v57 = vld [vmem:[%s10216_s24 + $0x380] sm:$0xf] }
 0x2cc   : > { %4043 = vmatpush.bf16.msra.mxu1 %v8119_v16  ;;  %4081 = vmatpush.bf16.msra.mxu3 %v8123_v34  ;;  %v8223_v16 = vor.u32 %v9217_v21, %v8222_v15  ;;  %v8190_v34 = vld [vmem:[%s10208_s14 + $0x358] sm:$0xf]  ;;  %v9181_v46 = vld [vmem:[%s10208_s14 + $0x29c] sm:$0xf]  ;;  %v9342_v61 = vld [vmem:[%s10216_s24 + $0x39c] sm:$0xf0] }
 0x2cd   : > { %v8094_v7 = vld [vmem:[%s10208_s14 + $0x298] sm:$0xf]  ;;  %v9109_v24 = vld [vmem:[%s10208_s14 + $0x5c] sm:$0xf]  ;;  %v9338_v26 = vld [vmem:[%s10216_s24 + $0x384] sm:$0xf] }
 0x2ce   : > { %4025 = vmatpush.bf16.msra.mxu0 %v7831_v40  ;;  %4063 = vmatpush.bf16.msra.mxu2 %v7835_v20  ;;  %v7935_v40 = vor.u32 %v9145_v23, %v7934_v33  ;;  %v7939_v20 = vor.u32 %v9141_v36, %v7936_v22  ;;  %v7806_v54 = vld [vmem:[%s10208_s14 + $0x58] sm:$0xf]  ;;  %v7808_v25 = vld [vmem:[%s10208_s14 + $0x78] sm:$0xf0]  ;;  %v8712_v1 = vld [vmem:[%s10216_s24 + $0x3a0] sm:$0xf0] }
 0x2cf   : > { %v9113_v14 = vld [vmem:[%s10208_s14 + $0x74] sm:$0xf0]  ;;  %v9173_v28 = vld [vmem:[%s10208_s14 + $0x25c] sm:$0xf]  ;;  %v7811_v33 = vor.u32 %v9109_v24, %v7808_v25  ;;  %v9258_v24 = vld [vmem:[%s10216_s24 + $0x104] sm:$0xf] }
 0x2d0   : > { %4044 = vmatpush.bf16.msra.mxu1 %v8087_v38  ;;  %4082 = vmatpush.bf16.msra.mxu3 %v8091_v43  ;;  %v8191_v38 = vor.u32 %v9209_v35, %v8190_v34  ;;  %v8195_v43 = vor.u32 %v9205_v37, %v8192_v18  ;;  %v8062_v15 = vld [vmem:[%s10208_s14 + $0x258] sm:$0xf]  ;;  %v8064_v29 = vld [vmem:[%s10208_s14 + $0x278] sm:$0xf0]  ;;  %v8392_v25 = vld [vmem:[%s10216_s24 + $0x120] sm:$0xf0] }
 0x2d1   : > { %v9177_v21 = vld [vmem:[%s10208_s14 + $0x274] sm:$0xf0]  ;;  %v9101_v35 = vld [vmem:[%s10208_s14 + $0x1c] sm:$0xf]  ;;  %v8067_v36 = vor.u32 %v9173_v28, %v8064_v29  ;;  %v9322_v28 = vld [vmem:[%s10216_s24 + $0x304] sm:$0xf] }
 0x2d2   : > { %4026 = vmatpush.bf16.msra.mxu0 %v7799_v51  ;;  %4064 = vmatpush.bf16.msra.mxu2 %v7803_v56  ;;  %v7903_v51 = vor.u32 %v9137_v42, %v7902_v45  ;;  %v9129_v56 = vld [vmem:[%s10208_s14 + $0xf4] sm:$0xf0]  ;;  %v7776_v22 = vld [vmem:[%s10208_s14 + $0x38] sm:$0xf0]  ;;  %v9350_v42 = vld [vmem:[%s10216_s24 + $0x3dc] sm:$0xf0] }
 0x2d3   : > { %v8030_v23 = vld [vmem:[%s10208_s14 + $0x218] sm:$0xf]  ;;  %v9165_v37 = vld [vmem:[%s10208_s14 + $0x21c] sm:$0xf]  ;;  %v7779_v47 = vor.u32 %v9101_v35, %v7776_v22  ;;  %v8648_v29 = vld [vmem:[%s10216_s24 + $0x320] sm:$0xf0] }
 0x2d4   : > { %4045 = vmatpush.bf16.msra.mxu1 %v8055_v55  ;;  %4083 = vmatpush.bf16.msra.mxu3 %v8059_v62  ;;  %v7870_v55 = vld [vmem:[%s10208_s14 + $0xd8] sm:$0xf]  ;;  %v9125_v62 = vld [vmem:[%s10208_s14 + $0xdc] sm:$0xf]  ;;  %v9318_v35 = vld [vmem:[%s10216_s24 + $0x2dc] sm:$0xf0] }
 0x2d5   : > { %v7871_v39 = vor.u32 %v9129_v56, %v7870_v55  ;;  %v7875_v3 = vor.u32 %v9125_v62, %v7872_v63  ;;  %v9169_v34 = vld [vmem:[%s10208_s14 + $0x234] sm:$0xf0]  ;;  %v8032_v18 = vld [vmem:[%s10208_s14 + $0x238] sm:$0xf0]  ;;  %v8454_v55 = vld [vmem:[%s10216_s24 + $0x180] sm:$0xf] }
 0x2d6   : > { %4027 = vmatpush.bf16.msra.mxu0 %v7767_v5  ;;  %4065 = vmatpush.bf16.msra.mxu2 %v7771_v10  ;;  %v7838_v5 = vld [vmem:[%s10208_s14 + $0x98] sm:$0xf]  ;;  %v9117_v10 = vld [vmem:[%s10208_s14 + $0x9c] sm:$0xf]  ;;  %v8031_v44 = vor.u32 %v9169_v34, %v8030_v23  ;;  %v8035_v50 = vor.u32 %v9165_v37, %v8032_v18  ;;  %v9278_v56 = vld [vmem:[%s10216_s24 + $0x19c] sm:$0xf0]  ;;  %v10717_v34 = vor.u32 %v9322_v28, %v8648_v29 }
 0x2d7   : > { %v9274_v62 = vld [vmem:[%s10216_s24 + $0x184] sm:$0xf]  ;;  %v8614_v23 = vld [vmem:[%s10216_s24 + $0x2c0] sm:$0xf]  ;;  %v8494_v28 = vld [vmem:[%s10216_s24 + $0x1c8] sm:$0xf] }
 0x2d8   : > { %4046 = vmatpush.bf16.msra.mxu1 %v8023_v9  ;;  %4084 = vmatpush.bf16.msra.mxu3 %v8027_v31  ;;  %v9185_v9 = vld [vmem:[%s10208_s14 + $0x2b4] sm:$0xf0]  ;;  %v8096_v31 = vld [vmem:[%s10208_s14 + $0x2b8] sm:$0xf0]  ;;  %v8456_v63 = vld [vmem:[%s10216_s24 + $0x1a0] sm:$0xf0] }
 0x2d9   : > { %4028 = vmatmul.bf16.vlgmr.msra.gmra.mxu0 %v10426_v4  ;;  %4066 = vmatmul.bf16.vlgmr.msra.gmra.mxu2 %v10426_v4  ;;  %12574 = vst [vmem:[#allocation40_spill] sm:$0xff] %v10717_v34  ;;  %v8360_v22 = vld [vmem:[%s10216_s24 + $0xe0] sm:$0xf0]  ;;  %v9287_v29 = vld [vmem:[%s10216_s24 + $0x1e4] sm:$0xf0] }
 0x2da   : > { %4096 = vmatpush.bf16.msrb.mxu0 %v7999_v12  ;;  %4134 = vmatpush.bf16.msrb.mxu2 %v8003_v13  ;;  %v7839_v12 = vor.u32 %v9121_v6, %v7838_v5  ;;  %v7843_v13 = vor.u32 %v9117_v10, %v7840_v11  ;;  %v8422_v5 = vld [vmem:[%s10216_s24 + $0x140] sm:$0xf]  ;;  %v9266_v10 = vld [vmem:[%s10216_s24 + $0x144] sm:$0xf] }
 0x2db   : > { %4047 = vmatmul.bf16.vlgmr.msra.gmra.mxu1 %v10431_v8  ;;  %4085 = vmatmul.bf16.vlgmr.msra.gmra.mxu3 %v10431_v8  ;;  %v9270_v6 = vld [vmem:[%s10216_s24 + $0x15c] sm:$0xf0]  ;;  %v8424_v11 = vld [vmem:[%s10216_s24 + $0x160] sm:$0xf0] }
 0x2dc   : > { %4115 = vmatpush.bf16.msrb.mxu1 %v8255_v41  ;;  %4153 = vmatpush.bf16.msrb.mxu3 %v8259_v17  ;;  %v8095_v41 = vor.u32 %v9185_v9, %v8094_v7  ;;  %v8099_v17 = vor.u32 %v9181_v46, %v8096_v31  ;;  %v8678_v7 = vld [vmem:[%s10216_s24 + $0x340] sm:$0xf]  ;;  %v9330_v46 = vld [vmem:[%s10216_s24 + $0x344] sm:$0xf] }
 0x2dd   : > { %v9334_v9 = vld [vmem:[%s10216_s24 + $0x35c] sm:$0xf0]  ;;  %v8680_v31 = vld [vmem:[%s10216_s24 + $0x360] sm:$0xf0] }
 0x2de   : > { %4097 = vmatpush.bf16.msrb.mxu0 %v7967_v30  ;;  %4135 = vmatpush.bf16.msrb.mxu2 %v7971_v32  ;;  %v7807_v30 = vor.u32 %v9113_v14, %v7806_v54  ;;  %v9105_v32 = vld [vmem:[%s10208_s14 + $0x34] sm:$0xf0]  ;;  %v8390_v54 = vld [vmem:[%s10216_s24 + $0x100] sm:$0xf]  ;;  %v9314_v37 = vld [vmem:[%s10216_s24 + $0x2c4] sm:$0xf] }
 0x2df   : > { %v9262_v14 = vld [vmem:[%s10216_s24 + $0x11c] sm:$0xf0]  ;;  %v8616_v18 = vld [vmem:[%s10216_s24 + $0x2e0] sm:$0xf0] }
 0x2e0   : > { %4116 = vmatpush.bf16.msrb.mxu1 %v8223_v16  ;;  %4154 = vmatpush.bf16.msrb.mxu3 %v8227_v27  ;;  %v7774_v16 = vld [vmem:[%s10208_s14 + $0x18] sm:$0xf]  ;;  %v8063_v27 = vor.u32 %v9177_v21, %v8062_v15  ;;  %v8646_v15 = vld [vmem:[%s10216_s24 + $0x300] sm:$0xf]  ;;  %s9354_s14 = sshll.u32 %s10026_s21, 4 }
 0x2e1   : > { %v7775_v45 = vor.u32 %v9105_v32, %v7774_v16  ;;  %v9326_v21 = vld [vmem:[%s10216_s24 + $0x31c] sm:$0xf0]  ;;  %v10710_v32 = vor.u32 %v9258_v24, %v8392_v25  ;;  %v9290_v24 = vld [vmem:[%s10216_s24 + $0x204] sm:$0xf]  ;;  %s6338_s27 = scalar_lea.hbm %s13067_s16, %s9354_s14 }
 0x2e2   : > { %4098 = vmatpush.bf16.msrb.mxu0 %v7935_v40  ;;  %4136 = vmatpush.bf16.msrb.mxu2 %v7939_v20  ;;  %v8486_v40 = vld [vmem:[%s10216_s24 + $0x1c0] sm:$0xf]  ;;  %v10708_v16 = vor.u32 %v9326_v21, %v8646_v15  ;;  %v8264_v21 = vld [vmem:[%s10216_s24 + $0x20] sm:$0xf0]  ;;  %s6342_s9 = sshll.u32 %s6338_s27, 4  ;;  %s12199_s9 = int_to_ptr.hbm [resolvable:$true] %s6342_s9 }
 0x2e3   : > { %v8742_v20 = vld [vmem:[%s10216_s24 + $0x3c0] sm:$0xf]  ;;  %12573 = vst [vmem:[#allocation39_spill] sm:$0xff] %v10710_v32  ;;  %v8520_v25 = vld [vmem:[%s10216_s24 + $0x220] sm:$0xf0] }
 0x2e4   : > { %4117 = vmatpush.bf16.msrb.mxu1 %v8191_v38  ;;  %4155 = vmatpush.bf16.msrb.mxu3 %v8195_v43  ;;  %v9286_v38 = vld [vmem:[%s10216_s24 + $0x1dc] sm:$0xf0]  ;;  %v8488_v43 = vld [vmem:[%s10216_s24 + $0x1e0] sm:$0xf0]  ;;  %12572 = vst [vmem:[#allocation38_spill] sm:$0xff] %v10708_v16 }
 0x2e6   : > { %4099 = vmatpush.bf16.msrb.mxu0 %v7903_v51  ;;  %4137 = vmatpush.bf16.msrb.mxu2 %v7907_v53  ;;  %v10647_v51 = vor.u32 %v9286_v38, %v8486_v40  ;;  %v10651_v53 = vor.u32 %v9282_v59, %v8488_v43  ;;  %v10732_v38 = vor.u32 %v9318_v35, %v8614_v23  ;;  %v9310_v59 = vld [vmem:[%s10216_s24 + $0x29c] sm:$0xf0]  ;;  %v9242_v43 = vld [vmem:[%s10216_s24 + $0x84] sm:$0xf]  ;;  %v9351_v23 = vld [vmem:[%s10216_s24 + $0x3e4] sm:$0xf0] }
 0x2e7   : > { %v9283_v35 = vld [vmem:[%s10216_s24 + $0x1cc] sm:$0xf] }
 0x2e8   : > { %4118 = vmatpush.bf16.msrb.mxu1 %v8159_v52  ;;  %4156 = vmatpush.bf16.msrb.mxu3 %v8163_v58  ;;  %v10649_v52 = vor.u32 %v9350_v42, %v8742_v20  ;;  %v10656_v58 = vor.u32 %v9346_v48, %v8744_v49  ;;  %12576 = vst [vmem:[#allocation42_spill] sm:$0xff] %v10732_v38  ;;  %v8582_v42 = vld [vmem:[%s10216_s24 + $0x280] sm:$0xf]  ;;  %v8584_v48 = vld [vmem:[%s10216_s24 + $0x2a0] sm:$0xf0] }
 0x2e9   : > { %4033 = vmatmul.bf16.gmra.mxu0 %v10466_v60  ;;  %4071 = vmatmul.bf16.gmra.mxu2 %v10466_v60 }
 0x2ea   : > { %4100 = vmatpush.bf16.msrb.mxu0 %v7871_v39  ;;  %4138 = vmatpush.bf16.msrb.mxu2 %v7875_v3  ;;  %12561 = vst [vmem:[#allocation27_spill] sm:$0xff] %v10649_v52  ;;  %v10664_v39 = vor.u32 %v9278_v56, %v8454_v55  ;;  %v10670_v3 = vor.u32 %v9274_v62, %v8456_v63  ;;  %v8294_v56 = vld [vmem:[%s10216_s24 + $0x40] sm:$0xf] }
 0x2eb   : > { %4052 = vmatmul.bf16.gmra.mxu1 %v10471_v0  ;;  %4090 = vmatmul.bf16.gmra.mxu3 %v10471_v0  ;;  %12562 = vst [vmem:[#allocation28_spill] sm:$0xff] %v10656_v58  ;;  %v9302_v63 = vld [vmem:[%s10216_s24 + $0x25c] sm:$0xf0] }
 0x2ec   : > { %4119 = vmatpush.bf16.msrb.mxu1 %v8127_v2  ;;  %4157 = vmatpush.bf16.msrb.mxu3 %v8131_v19  ;;  %12563 = vst [vmem:[#allocation29_spill] sm:$0xff] %v10664_v39  ;;  %v10668_v2 = vor.u32 %v9342_v61, %v8710_v57  ;;  %v10676_v19 = vor.u32 %v9338_v26, %v8712_v1  ;;  %v9238_v57 = vld [vmem:[%s10216_s24 + $0x5c] sm:$0xf0]  ;;  %v9234_v26 = vld [vmem:[%s10216_s24 + $0x44] sm:$0xf] }
 0x2ed   : > { %12565 = vst [vmem:[#allocation31_spill] sm:$0xff] %v10670_v3  ;;  %v8550_v61 = vld [vmem:[%s10216_s24 + $0x240] sm:$0xf]  ;;  %v8296_v1 = vld [vmem:[%s10216_s24 + $0x60] sm:$0xf0] }
 0x2ee   : > { %4101 = vmatpush.bf16.msrb.mxu0 %v7839_v12  ;;  %4139 = vmatpush.bf16.msrb.mxu2 %v7843_v13  ;;  %12564 = vst [vmem:[#allocation30_spill] sm:$0xff] %v10668_v2  ;;  %v10684_v12 = vor.u32 %v9270_v6, %v8422_v5  ;;  %v10690_v13 = vor.u32 %v9266_v10, %v8424_v11  ;;  %v9298_v5 = vld [vmem:[%s10216_s24 + $0x244] sm:$0xf]  ;;  %v9230_v10 = vld [vmem:[%s10216_s24 + $0x1c] sm:$0xf0] }
 0x2ef   : > { %12566 = vst [vmem:[#allocation32_spill] sm:$0xff] %v10676_v19  ;;  %v8552_v6 = vld [vmem:[%s10216_s24 + $0x260] sm:$0xf0]  ;;  %v10774_v11 = vor.u32 %v9302_v63, %v8550_v61  ;;  %v9275_v61 = vld [vmem:[%s10216_s24 + $0x18c] sm:$0xf] }
 0x2f0   : > { %4120 = vmatpush.bf16.msrb.mxu1 %v8095_v41  ;;  %4158 = vmatpush.bf16.msrb.mxu3 %v8099_v17  ;;  %12567 = vst [vmem:[#allocation33_spill] sm:$0xff] %v10684_v12  ;;  %v10688_v41 = vor.u32 %v9334_v9, %v8678_v7  ;;  %v10696_v17 = vor.u32 %v9330_v46, %v8680_v31  ;;  %v8262_v9 = vld [vmem:[%s10216_s24] sm:$0xf]  ;;  %v9339_v63 = vld [vmem:[%s10216_s24 + $0x38c] sm:$0xf] }
 0x2f1   : > { %12569 = vst [vmem:[#allocation35_spill] sm:$0xff] %v10690_v13  ;;  %v10768_v7 = vor.u32 %v9238_v57, %v8294_v56  ;;  %v10776_v46 = vor.u32 %v9234_v26, %v8296_v1  ;;  %v8518_v31 = vld [vmem:[%s10216_s24 + $0x200] sm:$0xf]  ;;  %v10782_v15 = vor.u32 %v9298_v5, %v8552_v6  ;;  %v9343_v57 = vld [vmem:[%s10216_s24 + $0x3a4] sm:$0xf0] }
 0x2f2   : > { %4102 = vmatpush.bf16.msrb.mxu0 %v7807_v30  ;;  %4140 = vmatpush.bf16.msrb.mxu2 %v7811_v33  ;;  %12568 = vst [vmem:[#allocation34_spill] sm:$0xff] %v10688_v41  ;;  %v10704_v30 = vor.u32 %v9262_v14, %v8390_v54  ;;  %v9254_v33 = vld [vmem:[%s10216_s24 + $0xdc] sm:$0xf0]  ;;  %v9226_v14 = vld [vmem:[%s10216_s24 + $0x4] sm:$0xf] }
 0x2f3   : > { %12570 = vst [vmem:[#allocation36_spill] sm:$0xff] %v10696_v17  ;;  %v9294_v54 = vld [vmem:[%s10216_s24 + $0x21c] sm:$0xf0]  ;;  %v8720_v26 = vld [vmem:[%s10216_s24 + $0x3a8] sm:$0xf0] }
 0x2f4   : > { %4121 = vmatpush.bf16.msrb.mxu1 %v8063_v27  ;;  %4159 = vmatpush.bf16.msrb.mxu3 %v8067_v36  ;;  %12571 = vst [vmem:[#allocation37_spill] sm:$0xff] %v10704_v30  ;;  %v8358_v27 = vld [vmem:[%s10216_s24 + $0xc0] sm:$0xf]  ;;  %v9250_v36 = vld [vmem:[%s10216_s24 + $0xc4] sm:$0xf] }
 0x2f5   : > { %v10728_v40 = vor.u32 %v9254_v33, %v8358_v27  ;;  %v10734_v20 = vor.u32 %v9250_v36, %v8360_v22  ;;  %12583 = vst [vmem:[#allocation49_spill] sm:$0xff] %v10768_v7  ;;  %v8750_v27 = vld [vmem:[%s10216_s24 + $0x3c8] sm:$0xf]  ;;  %v10791_v33 = vor.u32 %v9230_v10, %v8262_v9  ;;  %v8496_v36 = vld [vmem:[%s10216_s24 + $0x1e8] sm:$0xf0]  ;;  %v10798_v22 = vor.u32 %v9294_v54, %v8518_v31 }
 0x2f6   : > { %4103 = vmatpush.bf16.msrb.mxu0 %v7775_v45  ;;  %4141 = vmatpush.bf16.msrb.mxu2 %v7779_v47  ;;  %v9246_v45 = vld [vmem:[%s10216_s24 + $0x9c] sm:$0xf0]  ;;  %v9306_v47 = vld [vmem:[%s10216_s24 + $0x284] sm:$0xf]  ;;  %12584 = vst [vmem:[#allocation50_spill] sm:$0xff] %v10774_v11 }
 0x2f7   : > { %12575 = vst [vmem:[#allocation41_spill] sm:$0xff] %v10728_v40  ;;  %v10760_v62 = vor.u32 %v9306_v47, %v8584_v48  ;;  %v9279_v47 = vld [vmem:[%s10216_s24 + $0x1a4] sm:$0xf0] }
 0x2f8   : > { %4122 = vmatpush.bf16.msrb.mxu1 %v8031_v44  ;;  %4160 = vmatpush.bf16.msrb.mxu3 %v8035_v50  ;;  %12577 = vst [vmem:[#allocation43_spill] sm:$0xff] %v10734_v20  ;;  %v8328_v44 = vld [vmem:[%s10216_s24 + $0xa0] sm:$0xf0]  ;;  %v10752_v50 = vor.u32 %v9310_v59, %v8582_v42  ;;  %v10808_v42 = vor.u32 %v9287_v29, %v8494_v28  ;;  %v8718_v48 = vld [vmem:[%s10216_s24 + $0x388] sm:$0xf] }
 0x2f9   : > { %4104 = vmatmul.bf16.vlgmr.msrb.gmra.mxu0 %v10426_v4  ;;  %4142 = vmatmul.bf16.vlgmr.msrb.gmra.mxu2 %v10426_v4  ;;  %v8326_v4 = vld [vmem:[%s10216_s24 + $0x80] sm:$0xf]  ;;  %v10754_v55 = vor.u32 %v9242_v43, %v8328_v44  ;;  %12582 = vst [vmem:[#allocation48_spill] sm:$0xff] %v10760_v62  ;;  %v10812_v59 = vor.u32 %v9351_v23, %v8750_v27  ;;  %v8462_v44 = vld [vmem:[%s10216_s24 + $0x188] sm:$0xf] }
 0x2fa   : > { %4861 = vmatpush.bf16.msra.mxu0 %v10647_v51  ;;  %4887 = vmatpush.bf16.msra.mxu2 %v10651_v53  ;;  %v10748_v49 = vor.u32 %v9246_v45, %v8326_v4  ;;  %12580 = vst [vmem:[#allocation46_spill] sm:$0xff] %v10752_v50  ;;  %v8752_v4 = vld [vmem:[%s10216_s24 + $0x3e8] sm:$0xf0]  ;;  %v10806_v45 = vor.u32 %v9290_v24, %v8520_v25  ;;  %v8430_v5 = vld [vmem:[%s10216_s24 + $0x148] sm:$0xf] }
 0x2fb   : > { %4123 = vmatmul.bf16.vlgmr.msrb.gmra.mxu1 %v10431_v8  ;;  %4161 = vmatmul.bf16.vlgmr.msrb.gmra.mxu3 %v10431_v8  ;;  %v10740_v8 = vor.u32 %v9314_v37, %v8616_v18  ;;  %12581 = vst [vmem:[#allocation47_spill] sm:$0xff] %v10754_v55  ;;  %v10800_v37 = vor.u32 %v9226_v14, %v8264_v21  ;;  %v9347_v18 = vld [vmem:[%s10216_s24 + $0x3cc] sm:$0xf]  ;;  %v9271_v10 = vld [vmem:[%s10216_s24 + $0x164] sm:$0xf0] }
 0x2fc   : > { %4874 = vmatpush.bf16.msra.mxu1 %v10649_v52  ;;  %4900 = vmatpush.bf16.msra.mxu3 %v10656_v58  ;;  %12579 = vst [vmem:[#allocation45_spill] sm:$0xff] %v10748_v49  ;;  %v10814_v43 = vor.u32 %v9283_v35, %v8496_v36  ;;  %v10821_v56 = vor.u32 %v9347_v18, %v8752_v4  ;;  %v10831_v1 = vld [vmem:[%s10218_s26] sm:$0xff]  ;;  %s13066_s26 = sld [smem:[#allocation210_spill]] }
 0x2fd   : > { %12578 = vst [vmem:[#allocation44_spill] sm:$0xff] %v10740_v8  ;;  %v10840_v6 = vor.u32 %v9343_v57, %v8718_v48  ;;  %v8686_v31 = vld [vmem:[%s10216_s24 + $0x348] sm:$0xf]  ;;  %v10848_v14 = vor.u32 %v9339_v63, %v8720_v26  ;;  %v9267_v21 = vld [vmem:[%s10216_s24 + $0x14c] sm:$0xf]  ;;  %v10853_v25 = vperm.slane %v10831_v1, 0  ;;  %v10858_v27 = vor.u32 %v9271_v10, %v8430_v5 }
 0x2fe   : > { %4862 = vmatpush.bf16.msra.mxu0 %v10664_v39  ;;  %4888 = vmatpush.bf16.msra.mxu2 %v10670_v3  ;;  %12585 = vst [vmem:[#allocation51_spill] sm:$0xff] %v10776_v46  ;;  %v9335_v54 = vld [vmem:[%s10216_s24 + $0x364] sm:$0xf0]  ;;  %v8432_v24 = vld [vmem:[%s10216_s24 + $0x168] sm:$0xf0]  ;;  %v4204_v10 = vld [vmem:[%s516_s10] sm:$0xff] }
 0x2ff   : > { %12586 = vst [vmem:[#allocation52_spill] sm:$0xff] %v10782_v15  ;;  %v9331_v28 = vld [vmem:[%s10216_s24 + $0x34c] sm:$0xf]  ;;  %v10862_v23 = vor.u32 %v9335_v54, %v8686_v31  ;;  %v10864_v35 = vor.u32 %v9267_v21, %v8432_v24  ;;  %v8398_v18 = vld [vmem:[%s10216_s24 + $0x108] sm:$0xf] }
 0x300   : > { %4875 = vmatpush.bf16.msra.mxu1 %v10668_v2  ;;  %4901 = vmatpush.bf16.msra.mxu3 %v10676_v19  ;;  %12587 = vst [vmem:[#allocation53_spill] sm:$0xff] %v10791_v33  ;;  %v8688_v29 = vld [vmem:[%s10216_s24 + $0x368] sm:$0xf0]  ;;  %v9263_v4 = vld [vmem:[%s10216_s24 + $0x124] sm:$0xf0] }
 0x301   : > { %12588 = vst [vmem:[#allocation54_spill] sm:$0xff] %v10798_v22  ;;  %v8400_v63 = vld [vmem:[%s10216_s24 + $0x128] sm:$0xf0]  ;;  %v10883_v54 = vor.u32 %v9263_v4, %v8398_v18  ;;  %v8366_v24 = vld [vmem:[%s10216_s24 + $0xc8] sm:$0xf]  ;;  %v10902_v4 = vpack.c.bf16 %v4204_v10, %v4204_v10 }
 0x302   : > { %4863 = vmatpush.bf16.msra.mxu0 %v10684_v12  ;;  %4889 = vmatpush.bf16.msra.mxu2 %v10690_v13  ;;  %12589 = vst [vmem:[#allocation55_spill] sm:$0xff] %v10800_v37  ;;  %v9323_v26 = vld [vmem:[%s10216_s24 + $0x30c] sm:$0xf]  ;;  %s9822_s27 = scalar_lea.hbm %s13066_s26, 160 }
 0x303   : > { %12590 = vst [vmem:[#allocation56_spill] sm:$0xff] %v10806_v45  ;;  %v8656_v5 = vld [vmem:[%s10216_s24 + $0x328] sm:$0xf0] }
 0x304   : > { %4876 = vmatpush.bf16.msra.mxu1 %v10688_v41  ;;  %4902 = vmatpush.bf16.msra.mxu3 %v10696_v17  ;;  %12591 = vst [vmem:[#allocation57_spill] sm:$0xff] %v10808_v42  ;;  %v4205_v21 = vld [vmem:[%s516_s10 + $0x8] sm:$0xff]  ;;  %v10900_v18 = vor.u32 %v9323_v26, %v8656_v5  ;;  %s6323_s10 = scalar_lea.hbm %s13066_s26, %s9354_s14  ;;  %s6340_s14 = sshll.u32 %s10226_s30, 4  ;;  %s12197_s14 = int_to_ptr.vmem [resolvable:$true] %s6340_s14 }
 0x305   : > { %12592 = vst [vmem:[#allocation58_spill] sm:$0xff] %v10812_v59  ;;  %s6327_s29 = sshll.u32 %s6323_s10, 4  ;;  %s6328_s29 = int_to_ptr.hbm [resolvable:$true] %s6327_s29 }
 0x306   : > { %4864 = vmatpush.bf16.msra.mxu0 %v10704_v30  ;;  %4890 = vmatpush.bf16.msra.mxu2 %v10710_v32  ;;  %12593 = vst [vmem:[#allocation59_spill] sm:$0xff] %v10814_v43  ;;  %s9816_s10 = sshra.s32 %s6328_s29, 4  ;;  %s9817_s10 = int_to_ptr.hbm [resolvable:$true] %s9816_s10 }
 0x307   : > { %12594 = vst [vmem:[#allocation60_spill] sm:$0xff] %v10821_v56  ;;  %s9818_s2 = scalar_lea.hbm %s9817_s10, 16  ;;  %p9823_p11 = scmp.lt.s32.totalorder %s9817_s10, %s13066_s26 }
 0x308   : > { %4877 = vmatpush.bf16.msra.mxu1 %v10708_v16  ;;  %4903 = vmatpush.bf16.msra.mxu3 %v10717_v34  ;;  %12596 = vst [vmem:[#allocation62_spill] sm:$0xff] %v10840_v6  ;;  %p9819_p4 = scmp.ne.s32.totalorder %s9817_s10, %s9818_s2  ;;  %p9824_p12 = scmp.lt.s32.totalorder %s9822_s27, %s9818_s2 }
 0x309   : > { %4109 = vmatmul.bf16.gmra.mxu0 %v10466_v60  ;;  %4147 = vmatmul.bf16.gmra.mxu2 %v10466_v60  ;;  %v8464_v60 = vld [vmem:[%s10216_s24 + $0x1a8] sm:$0xf0]  ;;  %12598 = vst [vmem:[#allocation64_spill] sm:$0xff] %v10848_v14 }
 0x30a   : > { %4865 = vmatpush.bf16.msra.mxu0 %v10728_v40  ;;  %4891 = vmatpush.bf16.msra.mxu2 %v10734_v20  ;;  %v10842_v9 = vor.u32 %v9275_v61, %v8464_v60  ;;  %12599 = vst [vmem:[#allocation65_spill] sm:$0xff] %v10853_v25  ;;  %v9327_v61 = vld [vmem:[%s10216_s24 + $0x324] sm:$0xf0]  ;;  %v9259_v60 = vld [vmem:[%s10216_s24 + $0x10c] sm:$0xf]  ;;  %p9820_p10 = pnand %p9819_p4, %p10079_p7  ;;  %p9825_p0 = por %p9824_p12, %p9823_p11 }
 0x30b   : > { %4128 = vmatmul.bf16.gmra.mxu1 %v10471_v0  ;;  %4166 = vmatmul.bf16.gmra.mxu3 %v10471_v0  ;;  %v10835_v0 = vor.u32 %v9279_v47, %v8462_v44  ;;  %12600 = vst [vmem:[#allocation66_spill] sm:$0xff] %v10858_v27  ;;  %v8654_v44 = vld [vmem:[%s10216_s24 + $0x308] sm:$0xf]  ;;  %v10870_v47 = vor.u32 %v9331_v28, %v8688_v29 }
 0x30c   : > { %4878 = vmatpush.bf16.msra.mxu1 %v10732_v38  ;;  %4904 = vmatpush.bf16.msra.mxu3 %v10740_v8  ;;  %12597 = vst [vmem:[#allocation63_spill] sm:$0xff] %v10842_v9  ;;  %v10890_v28 = vor.u32 %v9327_v61, %v8654_v44  ;;  %v10892_v29 = vor.u32 %v9259_v60, %v8400_v63  ;;  %v9315_v61 = vld [vmem:[%s10216_s24 + $0x2cc] sm:$0xf]  ;;  %p9821_p8 = pneg %p9820_p10 }
 0x30d   : > { %12595 = vst [vmem:[#allocation61_spill] sm:$0xff] %v10835_v0  ;;  %v10907_v44 = vpack.c.bf16 %v4205_v21, %v4205_v21  ;;  %v8624_v60 = vld [vmem:[%s10216_s24 + $0x2e8] sm:$0xf0] }
 0x30e   : > { %4866 = vmatpush.bf16.msra.mxu0 %v10748_v49  ;;  %4892 = vmatpush.bf16.msra.mxu2 %v10754_v55  ;;  %12601 = vst [vmem:[#allocation67_spill] sm:$0xff] %v10862_v23  ;;  %p9826_p3 = pnand %p9825_p0, %p9821_p8 }
 0x30f   : > { %12602 = vst [vmem:[#allocation68_spill] sm:$0xff] %v10864_v35 }
 0x310   : > { %4879 = vmatpush.bf16.msra.mxu1 %v10752_v50  ;;  %4905 = vmatpush.bf16.msra.mxu3 %v10760_v62  ;;  %12603 = vst [vmem:[#allocation69_spill] sm:$0xff] %v10870_v47 }
 0x311   : > { %12605 = vst [vmem:[#allocation71_spill] sm:$0xff] %v10883_v54 }
 0x312   : > { %4867 = vmatpush.bf16.msra.mxu0 %v10768_v7  ;;  %4893 = vmatpush.bf16.msra.mxu2 %v10776_v46  ;;  %12606 = vst [vmem:[#allocation72_spill] sm:$0xff] %v10890_v28 }
 0x313   : > { %12607 = vst [vmem:[#allocation73_spill] sm:$0xff] %v10892_v29 }
 0x314   : > { %4880 = vmatpush.bf16.msra.mxu1 %v10774_v11  ;;  %4906 = vmatpush.bf16.msra.mxu3 %v10782_v15  ;;  %12609 = vst [vmem:[#allocation75_spill] sm:$0xff] %v10900_v18 }
 0x316   : > { %4868 = vmatpush.bf16.msra.mxu0 %v10791_v33  ;;  %4894 = vmatpush.bf16.msra.mxu2 %v10800_v37  ;;  %v3877_v36 = vpop.f32.mrf.mxu0 }
 0x317   : > { %v3878_v48 = vadd.f32 %v3877_v36, %v10853_v25  ;;  %v9255_v36 = vld [vmem:[%s10216_s24 + $0xe4] sm:$0xf0] }
 0x318   : > { %4881 = vmatpush.bf16.msra.mxu1 %v10798_v22  ;;  %4907 = vmatpush.bf16.msra.mxu3 %v10806_v45  ;;  %v3896_v57 = vpop.f32.mrf.mxu1  ;;  %v10912_v63 = vor.u32 %v9255_v36, %v8366_v24  ;;  %v8334_v24 = vld [vmem:[%s10216_s24 + $0x88] sm:$0xf] }
 0x319   : > { %v10881_v31 = vadd.f32 %v3896_v57, %v3878_v48  ;;  %v10897_v48 = vperm.slane %v10831_v1, 1  ;;  %v9319_v57 = vld [vmem:[%s10216_s24 + $0x2e4] sm:$0xf0]  ;;  %4869 = vmatmul.bf16.vlgmr.msra.gmra.mxu0 %v10902_v4  ;;  %4895 = vmatmul.bf16.vlgmr.msra.gmra.mxu2 %v10902_v4 }
 0x31a   : > { %4913 = vmatpush.bf16.msrb.mxu0 %v10808_v42  ;;  %4939 = vmatpush.bf16.msrb.mxu2 %v10814_v43  ;;  %12610 = vst [vmem:[#allocation76_spill] sm:$0xff] %v10912_v63  ;;  %v9247_v36 = vld [vmem:[%s10216_s24 + $0xa4] sm:$0xf0] }
 0x31b   : > { %12604 = vst [vmem:[#allocation70_spill] sm:$0xff] %v10881_v31  ;;  %v9251_v31 = vld [vmem:[%s10216_s24 + $0xcc] sm:$0xf]  ;;  %4882 = vmatmul.bf16.vlgmr.msra.gmra.mxu1 %v10907_v44  ;;  %4908 = vmatmul.bf16.vlgmr.msra.gmra.mxu3 %v10907_v44 }
 0x31c   : > { %4926 = vmatpush.bf16.msrb.mxu1 %v10812_v59  ;;  %4952 = vmatpush.bf16.msrb.mxu3 %v10821_v56  ;;  %12608 = vst [vmem:[#allocation74_spill] sm:$0xff] %v10897_v48 }
 0x31e   : > { %4914 = vmatpush.bf16.msrb.mxu0 %v10835_v0  ;;  %4940 = vmatpush.bf16.msrb.mxu2 %v10842_v9  ;;  %v3934_v21 = vpop.f32.mrf.mxu3  ;;  %v8734_v0 = vld [vmem:[%s10216_s24 + $0x398] sm:$0xf] }
 0x320   : > { %4927 = vmatpush.bf16.msrb.mxu1 %v10840_v6  ;;  %4953 = vmatpush.bf16.msrb.mxu3 %v10848_v14  ;;  %v8622_v14 = vld [vmem:[%s10216_s24 + $0x2c8] sm:$0xf]  ;;  %v8758_v6 = vld [vmem:[%s10216_s24 + $0x3d0] sm:$0xf] }
 0x321   : > { %v10916_v26 = vor.u32 %v9319_v57, %v8622_v14  ;;  %v10930_v14 = vpop.f32.mrf.mxu1 }
 0x322   : > { %4915 = vmatpush.bf16.msrb.mxu0 %v10858_v27  ;;  %4941 = vmatpush.bf16.msrb.mxu2 %v10864_v35  ;;  %v8590_v35 = vld [vmem:[%s10216_s24 + $0x288] sm:$0xf]  ;;  %12615 = vst [vmem:[#allocation81_spill] sm:$0xff] %v10930_v14  ;;  %v9288_v27 = vld [vmem:[%s10216_s24 + $0x1ec] sm:$0xf0] }
 0x323   : > { %12611 = vst [vmem:[#allocation77_spill] sm:$0xff] %v10916_v26 }
 0x324   : > { %4928 = vmatpush.bf16.msrb.mxu1 %v10862_v23  ;;  %4954 = vmatpush.bf16.msrb.mxu3 %v10870_v47  ;;  %v8368_v23 = vld [vmem:[%s10216_s24 + $0xe8] sm:$0xf0]  ;;  %v3915_v47 = vpop.f32.mrf.mxu2 }
 0x325   : > { %v10918_v5 = vor.u32 %v9251_v31, %v8368_v23  ;;  %v3916_v10 = vadd.f32 %v3915_v47, %v10897_v48  ;;  %v9311_v23 = vld [vmem:[%s10216_s24 + $0x2a4] sm:$0xf0]  ;;  %v9243_v47 = vld [vmem:[%s10216_s24 + $0x8c] sm:$0xf] }
 0x326   : > { %4916 = vmatpush.bf16.msrb.mxu0 %v10883_v54  ;;  %4942 = vmatpush.bf16.msrb.mxu2 %v10892_v29  ;;  %v10921_v54 = vpop.f32.mrf.mxu0  ;;  %v8336_v31 = vld [vmem:[%s10216_s24 + $0xa8] sm:$0xf0]  ;;  %v10947_v14 = vor.u32 %v9311_v23, %v8590_v35 }
 0x327   : > { %12612 = vst [vmem:[#allocation78_spill] sm:$0xff] %v10918_v5  ;;  %v10937_v57 = vadd.f32 %v3934_v21, %v3916_v10  ;;  %v10949_v10 = vor.u32 %v9243_v47, %v8336_v31  ;;  %v8302_v21 = vld [vmem:[%s10216_s24 + $0x48] sm:$0xf] }
 0x328   : > { %4929 = vmatpush.bf16.msrb.mxu1 %v10890_v28  ;;  %12613 = vst [vmem:[#allocation79_spill] sm:$0xff] %v10921_v54  ;;  %4955 = vmatpush.bf16.msrb.mxu3 %v10900_v18  ;;  %v10928_v28 = vor.u32 %v9315_v61, %v8624_v60  ;;  %v9307_v54 = vld [vmem:[%s10216_s24 + $0x28c] sm:$0xf]  ;;  %v10943_v60 = vor.u32 %v9247_v36, %v8334_v24  ;;  %v8558_v18 = vld [vmem:[%s10216_s24 + $0x248] sm:$0xf] }
 0x329   : > { %12616 = vst [vmem:[#allocation82_spill] sm:$0xff] %v10937_v57  ;;  %v8592_v61 = vld [vmem:[%s10216_s24 + $0x2a8] sm:$0xf0]  ;;  %v9239_v57 = vld [vmem:[%s10216_s24 + $0x64] sm:$0xf0] }
 0x32a   : > { %12614 = vst [vmem:[#allocation80_spill] sm:$0xff] %v10928_v28  ;;  %4917 = vmatpush.bf16.msrb.mxu0 %v10912_v63  ;;  %4943 = vmatpush.bf16.msrb.mxu2 %v10918_v5  ;;  %v10955_v29 = vor.u32 %v9307_v54, %v8592_v61  ;;  %v9303_v63 = vld [vmem:[%s10216_s24 + $0x264] sm:$0xf0]  ;;  %v9235_v24 = vld [vmem:[%s10216_s24 + $0x4c] sm:$0xf]  ;;  %v10963_v35 = vor.u32 %v9239_v57, %v8302_v21  ;;  %v10975_v57 = vpop.f32.mrf.mxu3 }
 0x32b   : > { %12617 = vst [vmem:[#allocation83_spill] sm:$0xff] %v10943_v60  ;;  %v8304_v36 = vld [vmem:[%s10216_s24 + $0x68] sm:$0xf0]  ;;  %v8270_v47 = vld [vmem:[%s10216_s24 + $0x8] sm:$0xf]  ;;  %v10971_v54 = vor.u32 %v9303_v63, %v8558_v18  ;;  %v3901_v18 = vpop.f32.mrf.mxu1 }
 0x32c   : > { %4930 = vmatpush.bf16.msrb.mxu1 %v10916_v26  ;;  %12618 = vst [vmem:[#allocation84_spill] sm:$0xff] %v10947_v14  ;;  %4956 = vmatpush.bf16.msrb.mxu3 %v10928_v28  ;;  %v9299_v26 = vld [vmem:[%s10216_s24 + $0x24c] sm:$0xf]  ;;  %v10965_v23 = vpop.f32.mrf.mxu2  ;;  %v9231_v31 = vld [vmem:[%s10216_s24 + $0x24] sm:$0xf0]  ;;  %v10973_v61 = vor.u32 %v9235_v24, %v8304_v36 }
 0x32d   : > { %12619 = vst [vmem:[#allocation85_spill] sm:$0xff] %v10949_v10  ;;  %v8560_v5 = vld [vmem:[%s10216_s24 + $0x268] sm:$0xf0]  ;;  %v9295_v28 = vld [vmem:[%s10216_s24 + $0x224] sm:$0xf0]  ;;  %v10993_v56 = vor.u32 %v9231_v31, %v8270_v47 }
 0x32e   : > { %12620 = vst [vmem:[#allocation86_spill] sm:$0xff] %v10955_v29  ;;  %4918 = vmatpush.bf16.msrb.mxu0 %v10943_v60  ;;  %4944 = vmatpush.bf16.msrb.mxu2 %v10949_v10  ;;  %v3882_v21 = vpop.f32.mrf.mxu0  ;;  %v9227_v60 = vld [vmem:[%s10216_s24 + $0xc] sm:$0xf] }
 0x32f   : > { %12621 = vst [vmem:[#allocation87_spill] sm:$0xff] %v10963_v35  ;;  %v3883_v10 = vadd.f32 %v3882_v21, %v10853_v25  ;;  %v8272_v63 = vld [vmem:[%s10216_s24 + $0x28] sm:$0xf0]  ;;  %v8504_v21 = vld [vmem:[%s10216_s24 + $0x1f0] sm:$0xf0] }
 0x330   : > { %12622 = vst [vmem:[#allocation88_spill] sm:$0xff] %v10965_v23  ;;  %4931 = vmatpush.bf16.msrb.mxu1 %v10947_v14  ;;  %v8526_v23 = vld [vmem:[%s10216_s24 + $0x208] sm:$0xf]  ;;  %4957 = vmatpush.bf16.msrb.mxu3 %v10955_v29  ;;  %v10981_v14 = vor.u32 %v9299_v26, %v8560_v5  ;;  %v9291_v24 = vld [vmem:[%s10216_s24 + $0x20c] sm:$0xf]  ;;  %v11002_v29 = vor.u32 %v9227_v60, %v8272_v63 }
 0x331   : > { %12623 = vst [vmem:[#allocation89_spill] sm:$0xff] %v10971_v54  ;;  %v8528_v36 = vld [vmem:[%s10216_s24 + $0x228] sm:$0xf0]  ;;  %v10991_v9 = vadd.f32 %v3901_v18, %v3883_v10  ;;  %v9352_v26 = vld [vmem:[%s10216_s24 + $0x3ec] sm:$0xf0]  ;;  %v11000_v25 = vor.u32 %v9295_v28, %v8526_v23 }
 0x332   : > { %12624 = vst [vmem:[#allocation90_spill] sm:$0xff] %v10973_v61  ;;  %4919 = vmatpush.bf16.msrb.mxu0 %v10963_v35  ;;  %v9284_v5 = vld [vmem:[%s10216_s24 + $0x1d4] sm:$0xf]  ;;  %4945 = vmatpush.bf16.msrb.mxu2 %v10973_v61  ;;  %v11007_v47 = vor.u32 %v9291_v24, %v8528_v36  ;;  %v8470_v28 = vld [vmem:[%s10216_s24 + $0x190] sm:$0xf] }
 0x333   : > { %12625 = vst [vmem:[#allocation91_spill] sm:$0xff] %v10975_v57  ;;  %v8502_v57 = vld [vmem:[%s10216_s24 + $0x1d0] sm:$0xf]  ;;  %v9348_v10 = vld [vmem:[%s10216_s24 + $0x3d4] sm:$0xf] }
 0x334   : > { %12626 = vst [vmem:[#allocation92_spill] sm:$0xff] %v10981_v14  ;;  %4932 = vmatpush.bf16.msrb.mxu1 %v10971_v54  ;;  %v8760_v18 = vld [vmem:[%s10216_s24 + $0x3f0] sm:$0xf0]  ;;  %4958 = vmatpush.bf16.msrb.mxu3 %v10981_v14  ;;  %v11009_v31 = vor.u32 %v9288_v27, %v8502_v57  ;;  %v11013_v54 = vor.u32 %v9284_v5, %v8504_v21  ;;  %v9280_v23 = vld [vmem:[%s10216_s24 + $0x1ac] sm:$0xf0]  ;;  %v3920_v63 = vpop.f32.mrf.mxu2  ;;  %v3939_v27 = vpop.f32.mrf.mxu3 }
 0x335   : > { %12627 = vst [vmem:[#allocation93_spill] sm:$0xff] %v10991_v9  ;;  %v11011_v9 = vor.u32 %v9352_v26, %v8758_v6  ;;  %v8726_v61 = vld [vmem:[%s10216_s24 + $0x390] sm:$0xf]  ;;  %v11019_v60 = vor.u32 %v9348_v10, %v8760_v18  ;;  %v9276_v14 = vld [vmem:[%s10216_s24 + $0x194] sm:$0xf]  ;;  %v3921_v6 = vadd.f32 %v3920_v63, %v10897_v48  ;;  %v11033_v5 = vor.u32 %v9280_v23, %v8470_v28  ;;  %v11035_v21 = vpop.f32.mrf.mxu1 }
 0x336   : > { %12628 = vst [vmem:[#allocation94_spill] sm:$0xff] %v10993_v56  ;;  %4920 = vmatpush.bf16.msrb.mxu0 %v10993_v56  ;;  %v9344_v35 = vld [vmem:[%s10216_s24 + $0x3ac] sm:$0xf0]  ;;  %v8472_v24 = vld [vmem:[%s10216_s24 + $0x1b0] sm:$0xf0]  ;;  %4946 = vmatpush.bf16.msrb.mxu2 %v11002_v29  ;;  %v11029_v26 = vpop.f32.mrf.mxu0 }
 0x337   : > { %12629 = vst [vmem:[#allocation95_spill] sm:$0xff] %v11000_v25  ;;  %v9340_v57 = vld [vmem:[%s10216_s24 + $0x394] sm:$0xf]  ;;  %v11039_v10 = vadd.f32 %v3939_v27, %v3921_v6  ;;  %v11041_v18 = vor.u32 %v9344_v35, %v8726_v61  ;;  %v11043_v63 = vor.u32 %v9276_v14, %v8472_v24  ;;  %v9272_v48 = vld [vmem:[%s10216_s24 + $0x16c] sm:$0xf0] }
 0x338   : > { %12630 = vst [vmem:[#allocation96_spill] sm:$0xff] %v11002_v29  ;;  %4933 = vmatpush.bf16.msrb.mxu1 %v11000_v25  ;;  %v8728_v36 = vld [vmem:[%s10216_s24 + $0x3b0] sm:$0xf0]  ;;  %4959 = vmatpush.bf16.msrb.mxu3 %v11007_v47  ;;  %v9336_v23 = vld [vmem:[%s10216_s24 + $0x36c] sm:$0xf0] }
 0x339   : > { %12631 = vst [vmem:[#allocation97_spill] sm:$0xff] %v11007_v47  ;;  %4921 = vmatmul.bf16.vlgmr.msrb.gmra.mxu0 %v10902_v4  ;;  %v11050_v28 = vor.u32 %v9340_v57, %v8728_v36  ;;  %v8440_v6 = vld [vmem:[%s10216_s24 + $0x170] sm:$0xf0]  ;;  %4947 = vmatmul.bf16.vlgmr.msrb.gmra.mxu2 %v10902_v4  ;;  %v8406_v24 = vld [vmem:[%s10216_s24 + $0x110] sm:$0xf] }
 0x33a   : > { %12632 = vst [vmem:[#allocation98_spill] sm:$0xff] %v11009_v31  ;;  %4965 = vmatpush.bf16.msra.mxu0 %v11009_v31  ;;  %4991 = vmatpush.bf16.msra.mxu2 %v11013_v54  ;;  %v8694_v31 = vld [vmem:[%s10216_s24 + $0x350] sm:$0xf]  ;;  %v9332_v14 = vld [vmem:[%s10216_s24 + $0x354] sm:$0xf] }
 0x33b   : > { %12633 = vst [vmem:[#allocation99_spill] sm:$0xff] %v11011_v9  ;;  %4934 = vmatmul.bf16.vlgmr.msrb.gmra.mxu1 %v10907_v44  ;;  %v8696_v35 = vld [vmem:[%s10216_s24 + $0x370] sm:$0xf0]  ;;  %4960 = vmatmul.bf16.vlgmr.msrb.gmra.mxu3 %v10907_v44  ;;  %v11066_v27 = vor.u32 %v9336_v23, %v8694_v31  ;;  %v9264_v36 = vld [vmem:[%s10216_s24 + $0x12c] sm:$0xf0] }
 0x33c   : > { %12634 = vst [vmem:[#allocation100_spill] sm:$0xff] %v11013_v54  ;;  %4978 = vmatpush.bf16.msra.mxu1 %v11011_v9  ;;  %5004 = vmatpush.bf16.msra.mxu3 %v11019_v60  ;;  %v11074_v9 = vor.u32 %v9332_v14, %v8696_v35  ;;  %v11083_v31 = vpop.f32.mrf.mxu3  ;;  %v8664_v23 = vld [vmem:[%s10216_s24 + $0x330] sm:$0xf0]  ;;  %v8342_v54 = vld [vmem:[%s10216_s24 + $0x90] sm:$0xf] }
 0x33d   : > { %12635 = vst [vmem:[#allocation101_spill] sm:$0xff] %v11019_v60  ;;  %v9328_v60 = vld [vmem:[%s10216_s24 + $0x32c] sm:$0xf0]  ;;  %v9353_v25 = vld [vmem:[%s10216_s24 + $0x3f4] sm:$0xf0] }
 0x33e   : > { %12636 = vst [vmem:[#allocation102_spill] sm:$0xff] %v11029_v26  ;;  %v8438_v26 = vld [vmem:[%s10216_s24 + $0x150] sm:$0xf]  ;;  %4966 = vmatpush.bf16.msra.mxu0 %v11033_v5  ;;  %4992 = vmatpush.bf16.msra.mxu2 %v11043_v63  ;;  %v9285_v29 = vld [vmem:[%s10216_s24 + $0x1dc] sm:$0xf] }
 0x33f   : > { %12637 = vst [vmem:[#allocation103_spill] sm:$0xff] %v11033_v5  ;;  %v11061_v61 = vor.u32 %v9272_v48, %v8438_v26  ;;  %v11076_v48 = vpop.f32.mrf.mxu2  ;;  %v9260_v26 = vld [vmem:[%s10216_s24 + $0x114] sm:$0xf]  ;;  %v8630_v5 = vld [vmem:[%s10216_s24 + $0x2d0] sm:$0xf] }
 0x340   : > { %12638 = vst [vmem:[#allocation104_spill] sm:$0xff] %v11035_v21  ;;  %v9268_v21 = vld [vmem:[%s10216_s24 + $0x154] sm:$0xf]  ;;  %4979 = vmatpush.bf16.msra.mxu1 %v11041_v18  ;;  %5005 = vmatpush.bf16.msra.mxu3 %v11050_v28  ;;  %v9248_v47 = vld [vmem:[%s10216_s24 + $0xac] sm:$0xf0] }
 0x341   : > { %12639 = vst [vmem:[#allocation105_spill] sm:$0xff] %v11039_v10  ;;  %v11068_v57 = vor.u32 %v9268_v21, %v8440_v6  ;;  %v8662_v10 = vld [vmem:[%s10216_s24 + $0x310] sm:$0xf]  ;;  %v9324_v21 = vld [vmem:[%s10216_s24 + $0x314] sm:$0xf]  ;;  %v11088_v6 = vor.u32 %v9264_v36, %v8406_v24  ;;  %v3972_v36 = vpop.f32.mrf.mxu1 }
 0x342   : > { %12640 = vst [vmem:[#allocation106_spill] sm:$0xff] %v11041_v18  ;;  %v8408_v18 = vld [vmem:[%s10216_s24 + $0x130] sm:$0xf0]  ;;  %4967 = vmatpush.bf16.msra.mxu0 %v11061_v61  ;;  %v11092_v14 = vor.u32 %v9328_v60, %v8662_v10  ;;  %v8512_v56 = vld [vmem:[%s10216_s24 + $0x1f8] sm:$0xf0] }
 0x343   : > { %12641 = vst [vmem:[#allocation107_spill] sm:$0xff] %v11043_v63  ;;  %v11081_v63 = vperm.slane %v10831_v1, 2  ;;  %4993 = vmatpush.bf16.msra.mxu2 %v11068_v57  ;;  %v11094_v35 = vor.u32 %v9260_v26, %v8408_v18  ;;  %v8376_v60 = vld [vmem:[%s10216_s24 + $0xf0] sm:$0xf0] }
 0x344   : > { %12642 = vst [vmem:[#allocation108_spill] sm:$0xff] %v11050_v28  ;;  %4980 = vmatpush.bf16.msra.mxu1 %v11066_v27  ;;  %v9256_v28 = vld [vmem:[%s10216_s24 + $0xec] sm:$0xf0]  ;;  %5006 = vmatpush.bf16.msra.mxu3 %v11074_v9  ;;  %v9316_v10 = vld [vmem:[%s10216_s24 + $0x2d4] sm:$0xf] }
 0x345   : > { %12643 = vst [vmem:[#allocation109_spill] sm:$0xff] %v11061_v61  ;;  %v11100_v61 = vor.u32 %v9324_v21, %v8664_v23  ;;  %v8632_v18 = vld [vmem:[%s10216_s24 + $0x2f0] sm:$0xf0] }
 0x346   : > { %12644 = vst [vmem:[#allocation110_spill] sm:$0xff] %v11066_v27  ;;  %v9320_v27 = vld [vmem:[%s10216_s24 + $0x2ec] sm:$0xf0]  ;;  %4968 = vmatpush.bf16.msra.mxu0 %v11088_v6 }
 0x347   : > { %12645 = vst [vmem:[#allocation111_spill] sm:$0xff] %v11068_v57  ;;  %v9252_v57 = vld [vmem:[%s10216_s24 + $0xd4] sm:$0xf]  ;;  %4994 = vmatpush.bf16.msra.mxu2 %v11094_v35  ;;  %v11118_v23 = vor.u32 %v9320_v27, %v8630_v5  ;;  %v3991_v5 = vpop.f32.mrf.mxu2  ;;  %v11134_v27 = vor.u32 %v9248_v47, %v8342_v54  ;;  %v8310_v54 = vld [vmem:[%s10216_s24 + $0x50] sm:$0xf] }
 0x348   : > { %12646 = vst [vmem:[#allocation112_spill] sm:$0xff] %v11074_v9  ;;  %4981 = vmatpush.bf16.msra.mxu1 %v11092_v14  ;;  %v11120_v9 = vor.u32 %v9252_v57, %v8376_v60  ;;  %5007 = vmatpush.bf16.msra.mxu3 %v11100_v61  ;;  %v4010_v60 = vpop.f32.mrf.mxu3  ;;  %v9240_v47 = vld [vmem:[%s10216_s24 + $0x6c] sm:$0xf0] }
 0x349   : > { %12647 = vst [vmem:[#allocation113_spill] sm:$0xff] %v11076_v48  ;;  %v8374_v48 = vld [vmem:[%s10216_s24 + $0xd0] sm:$0xf] }
 0x34a   : > { %12648 = vst [vmem:[#allocation114_spill] sm:$0xff] %v11081_v63  ;;  %v11111_v21 = vor.u32 %v9256_v28, %v8374_v48  ;;  %v9312_v28 = vld [vmem:[%s10216_s24 + $0x2ac] sm:$0xf0]  ;;  %v9244_v48 = vld [vmem:[%s10216_s24 + $0x94] sm:$0xf] }
 0x34b   : > { %12649 = vst [vmem:[#allocation115_spill] sm:$0xff] %v11083_v31  ;;  %v3953_v31 = vpop.f32.mrf.mxu0  ;;  %4995 = vmatpush.bf16.msra.mxu2 %v11120_v9 }
 0x34c   : > { %12650 = vst [vmem:[#allocation116_spill] sm:$0xff] %v11088_v6  ;;  %v3954_v24 = vadd.f32 %v3953_v31, %v11081_v63  ;;  %v11114_v31 = vperm.slane %v10831_v1, 3  ;;  %v8598_v6 = vld [vmem:[%s10216_s24 + $0x290] sm:$0xf]  ;;  %4969 = vmatpush.bf16.msra.mxu0 %v11111_v21  ;;  %4982 = vmatpush.bf16.msra.mxu1 %v11118_v23 }
 0x34d   : > { %12651 = vst [vmem:[#allocation117_spill] sm:$0xff] %v11092_v14  ;;  %v9308_v14 = vld [vmem:[%s10216_s24 + $0x294] sm:$0xf] }
 0x34e   : > { %12652 = vst [vmem:[#allocation118_spill] sm:$0xff] %v11094_v35  ;;  %v11109_v26 = vadd.f32 %v3972_v36, %v3954_v24  ;;  %v11126_v24 = vor.u32 %v9316_v10, %v8632_v18  ;;  %v8344_v36 = vld [vmem:[%s10216_s24 + $0xb0] sm:$0xf0]  ;;  %v3992_v57 = vadd.f32 %v3991_v5, %v11114_v31  ;;  %v11139_v10 = vor.u32 %v9312_v28, %v8598_v6  ;;  %v9304_v5 = vld [vmem:[%s10216_s24 + $0x26c] sm:$0xf0] }
 0x34f   : > { %12653 = vst [vmem:[#allocation119_spill] sm:$0xff] %v11100_v61  ;;  %v11141_v18 = vor.u32 %v9244_v48, %v8344_v36  ;;  %v9236_v6 = vld [vmem:[%s10216_s24 + $0x54] sm:$0xf] }
 0x350   : > { %12654 = vst [vmem:[#allocation120_spill] sm:$0xff] %v11109_v26  ;;  %v8600_v26 = vld [vmem:[%s10216_s24 + $0x2b0] sm:$0xf0]  ;;  %5008 = vmatpush.bf16.msra.mxu3 %v11126_v24  ;;  %v11156_v48 = vadd.f32 %v4010_v60, %v3992_v57  ;;  %4970 = vmatpush.bf16.msra.mxu0 %v11134_v27 }
 0x351   : > { %12655 = vst [vmem:[#allocation121_spill] sm:$0xff] %v11111_v21  ;;  %v8566_v21 = vld [vmem:[%s10216_s24 + $0x250] sm:$0xf]  ;;  %v8312_v28 = vld [vmem:[%s10216_s24 + $0x70] sm:$0xf0]  ;;  %4983 = vmatpush.bf16.msra.mxu1 %v11139_v10  ;;  %4996 = vmatpush.bf16.msra.mxu2 %v11141_v18 }
 0x352   : > { %12656 = vst [vmem:[#allocation122_spill] sm:$0xff] %v11114_v31  ;;  %v9300_v36 = vld [vmem:[%s10216_s24 + $0x254] sm:$0xf]  ;;  %v11167_v57 = vor.u32 %v9304_v5, %v8566_v21  ;;  %v11169_v60 = vor.u32 %v9236_v6, %v8312_v28  ;;  %v9289_v21 = vld [vmem:[%s10216_s24 + $0x1f4] sm:$0xf0]  ;;  %v11184_v6 = vpop.f32.mrf.mxu2 }
 0x353   : > { %12657 = vst [vmem:[#allocation123_spill] sm:$0xff] %v11118_v23  ;;  %v11143_v61 = vpop.f32.mrf.mxu0  ;;  %v11149_v23 = vor.u32 %v9308_v14, %v8600_v26  ;;  %v11161_v14 = vor.u32 %v9240_v47, %v8310_v54  ;;  %v8278_v26 = vld [vmem:[%s10216_s24 + $0x10] sm:$0xf]  ;;  %v9228_v35 = vld [vmem:[%s10216_s24 + $0x14] sm:$0xf] }
 0x354   : > { %12658 = vst [vmem:[#allocation124_spill] sm:$0xff] %v11120_v9  ;;  %v11151_v9 = vpop.f32.mrf.mxu1  ;;  %v8280_v47 = vld [vmem:[%s10216_s24 + $0x30] sm:$0xf0]  ;;  %v8766_v5 = vld [vmem:[%s10216_s24 + $0x3d8] sm:$0xf] }
 0x355   : > { %12659 = vst [vmem:[#allocation125_spill] sm:$0xff] %v11126_v24  ;;  %v8534_v24 = vld [vmem:[%s10216_s24 + $0x210] sm:$0xf]  ;;  %5009 = vmatpush.bf16.msra.mxu3 %v11149_v23  ;;  %4971 = vmatpush.bf16.msra.mxu0 %v11161_v14 }
 0x356   : > { %12660 = vst [vmem:[#allocation126_spill] sm:$0xff] %v11134_v27  ;;  %v9296_v27 = vld [vmem:[%s10216_s24 + $0x22c] sm:$0xf0]  ;;  %4984 = vmatpush.bf16.msra.mxu1 %v11167_v57  ;;  %4997 = vmatpush.bf16.msra.mxu2 %v11169_v60 }
 0x357   : > { %12661 = vst [vmem:[#allocation127_spill] sm:$0xff] %v11139_v10  ;;  %v8536_v10 = vld [vmem:[%s10216_s24 + $0x230] sm:$0xf0] }
 0x358   : > { %12662 = vst [vmem:[#allocation128_spill] sm:$0xff] %v11141_v18  ;;  %v8510_v18 = vld [vmem:[%s10216_s24 + $0x1d8] sm:$0xf] }
 0x359   : > { %12663 = vst [vmem:[#allocation129_spill] sm:$0xff] %v11143_v61  ;;  %v8568_v61 = vld [vmem:[%s10216_s24 + $0x270] sm:$0xf0] }
 0x35a   : > { %12664 = vst [vmem:[#allocation130_spill] sm:$0xff] %v11149_v23  ;;  %v11175_v54 = vor.u32 %v9300_v36, %v8568_v61  ;;  %v11193_v61 = vpop.f32.mrf.mxu3  ;;  %v11195_v36 = vor.u32 %v9296_v27, %v8534_v24  ;;  %v11197_v23 = vor.u32 %v9228_v35, %v8280_v47  ;;  %v11207_v27 = vor.u32 %v9353_v25, %v8766_v5  ;;  %v8478_v47 = vld [vmem:[%s10216_s24 + $0x198] sm:$0xf]  ;;  %v8736_v25 = vld [vmem:[%s10216_s24 + $0x3b8] sm:$0xf0] }
 0x35b   : > { %12665 = vst [vmem:[#allocation131_spill] sm:$0xff] %v11151_v9  ;;  %v9232_v9 = vld [vmem:[%s10216_s24 + $0x2c] sm:$0xf0]  ;;  %v11209_v35 = vor.u32 %v9285_v29, %v8512_v56  ;;  %v9341_v56 = vld [vmem:[%s10216_s24 + $0x39c] sm:$0xf] }
 0x35c   : > { %12666 = vst [vmem:[#allocation132_spill] sm:$0xff] %v11156_v48  ;;  %v9292_v48 = vld [vmem:[%s10216_s24 + $0x214] sm:$0xf]  ;;  %v11186_v28 = vor.u32 %v9232_v9, %v8278_v26  ;;  %v8768_v9 = vld [vmem:[%s10216_s24 + $0x3f8] sm:$0xf0]  ;;  %v3958_v26 = vpop.f32.mrf.mxu0  ;;  %5010 = vmatpush.bf16.msra.mxu3 %v11175_v54  ;;  %v3977_v24 = vpop.f32.mrf.mxu1  ;;  %4985 = vmatpush.bf16.msra.mxu1 %v11195_v36 }
 0x35d   : > { %12667 = vst [vmem:[#allocation133_spill] sm:$0xff] %v11161_v14  ;;  %v9349_v14 = vld [vmem:[%s10216_s24 + $0x3dc] sm:$0xf]  ;;  %4998 = vmatpush.bf16.msra.mxu2 %v11197_v23  ;;  %v8446_v5 = vld [vmem:[%s10216_s24 + $0x158] sm:$0xf] }
 0x35e   : > { %12668 = vst [vmem:[#allocation134_spill] sm:$0xff] %v11167_v57  ;;  %v11204_v57 = vor.u32 %v9289_v21, %v8510_v18  ;;  %4972 = vmatpush.bf16.msra.mxu0 %v11186_v28  ;;  %v11215_v59 = vor.u32 %v9349_v14, %v8768_v9  ;;  %v9345_v18 = vld [vmem:[%s10216_s24 + $0x3b4] sm:$0xf0]  ;;  %v8480_v21 = vld [vmem:[%s10216_s24 + $0x1b8] sm:$0xf0] }
 0x35f   : > { %12669 = vst [vmem:[#allocation135_spill] sm:$0xff] %v11169_v60  ;;  %v3959_v60 = vadd.f32 %v3958_v26, %v11081_v63  ;;  %v11232_v14 = vor.u32 %v9345_v18, %v8734_v0  ;;  %v9273_v9 = vld [vmem:[%s10216_s24 + $0x174] sm:$0xf0]  ;;  %v8448_v63 = vld [vmem:[%s10216_s24 + $0x178] sm:$0xf0]  ;;  %4986 = vmatmul.bf16.vlgmr.msra.gmra.mxu1 %v10907_v44 }
 0x360   : > { %12670 = vst [vmem:[#allocation136_spill] sm:$0xff] %v11175_v54  ;;  %5030 = vmatpush.bf16.msrb.mxu1 %v11207_v27  ;;  %v8702_v26 = vld [vmem:[%s10216_s24 + $0x358] sm:$0xf]  ;;  %4999 = vmatmul.bf16.vlgmr.msra.gmra.mxu2 %v10902_v4 }
 0x361   : > { %12671 = vst [vmem:[#allocation137_spill] sm:$0xff] %v11184_v6  ;;  %v11202_v6 = vor.u32 %v9292_v48, %v8536_v10  ;;  %v11217_v10 = vadd.f32 %v3977_v24, %v3959_v60  ;;  %v9277_v48 = vld [vmem:[%s10216_s24 + $0x19c] sm:$0xf]  ;;  %5043 = vmatpush.bf16.msrb.mxu2 %v11209_v35  ;;  %4973 = vmatmul.bf16.vlgmr.msra.gmra.mxu0 %v10902_v4 }
 0x362   : > { %12672 = vst [vmem:[#allocation138_spill] sm:$0xff] %v11186_v28  ;;  %5017 = vmatpush.bf16.msrb.mxu0 %v11204_v57  ;;  %v11234_v60 = vor.u32 %v9277_v48, %v8480_v21  ;;  %v11241_v24 = vor.u32 %v9341_v56, %v8736_v25  ;;  %v4015_v18 = vpop.f32.mrf.mxu3  ;;  %v9333_v48 = vld [vmem:[%s10216_s24 + $0x35c] sm:$0xf]  ;;  %v11255_v56 = vor.u32 %v9273_v9, %v8446_v5  ;;  %v9329_v9 = vld [vmem:[%s10216_s24 + $0x334] sm:$0xf0] }
 0x363   : > { %12673 = vst [vmem:[#allocation139_spill] sm:$0xff] %v11193_v61  ;;  %v9281_v61 = vld [vmem:[%s10216_s24 + $0x1b4] sm:$0xf0]  ;;  %5011 = vmatpush.bf16.msra.mxu3 %v11202_v6  ;;  %v8704_v21 = vld [vmem:[%s10216_s24 + $0x378] sm:$0xf0] }
 0x364   : > { %12674 = vst [vmem:[#allocation140_spill] sm:$0xff] %v11195_v36  ;;  %v11228_v29 = vor.u32 %v9281_v61, %v8478_v47  ;;  %v3996_v61 = vpop.f32.mrf.mxu2  ;;  %v9337_v47 = vld [vmem:[%s10216_s24 + $0x374] sm:$0xf0]  ;;  %v11257_v25 = vpop.f32.mrf.mxu1  ;;  %5031 = vmatpush.bf16.msrb.mxu1 %v11232_v14  ;;  %v11271_v5 = vor.u32 %v9333_v48, %v8704_v21 }
 0x365   : > { %12675 = vst [vmem:[#allocation141_spill] sm:$0xff] %v11197_v23  ;;  %v3997_v0 = vadd.f32 %v3996_v61, %v11114_v31  ;;  %5044 = vmatpush.bf16.msrb.mxu2 %v11234_v60  ;;  %v11263_v31 = vor.u32 %v9337_v47, %v8702_v26  ;;  %v8670_v36 = vld [vmem:[%s10216_s24 + $0x318] sm:$0xf]  ;;  %v8672_v26 = vld [vmem:[%s10216_s24 + $0x338] sm:$0xf0] }
 0x366   : > { %12676 = vst [vmem:[#allocation142_spill] sm:$0xff] %v11202_v6  ;;  %5012 = vmatmul.bf16.vlgmr.msra.gmra.mxu3 %v10907_v44  ;;  %5018 = vmatpush.bf16.msrb.mxu0 %v11228_v29  ;;  %v9265_v6 = vld [vmem:[%s10216_s24 + $0x134] sm:$0xf0]  ;;  %v11286_v47 = vor.u32 %v9329_v9, %v8670_v36  ;;  %v9317_v36 = vld [vmem:[%s10216_s24 + $0x2dc] sm:$0xf] }
 0x367   : > { %12677 = vst [vmem:[#allocation143_spill] sm:$0xff] %v11204_v57  ;;  %5056 = vmatpush.bf16.msrb.mxu3 %v11215_v59  ;;  %v11261_v61 = vadd.f32 %v4015_v18, %v3997_v0  ;;  %v9325_v0 = vld [vmem:[%s10216_s24 + $0x31c] sm:$0xf]  ;;  %v8382_v48 = vld [vmem:[%s10216_s24 + $0xd8] sm:$0xf] }
 0x368   : > { %12678 = vst [vmem:[#allocation144_spill] sm:$0xff] %v11207_v27  ;;  %v8414_v27 = vld [vmem:[%s10216_s24 + $0x118] sm:$0xf]  ;;  %5032 = vmatpush.bf16.msrb.mxu1 %v11263_v31  ;;  %v9293_v23 = vld [vmem:[%s10216_s24 + $0x21c] sm:$0xf] }
 0x369   : > { %12679 = vst [vmem:[#allocation145_spill] sm:$0xff] %v11209_v35  ;;  %v9257_v21 = vld [vmem:[%s10216_s24 + $0xf4] sm:$0xf0] }
 0x36a   : > { %12680 = vst [vmem:[#allocation146_spill] sm:$0xff] %v11215_v59  ;;  %v11251_v59 = vpop.f32.mrf.mxu0  ;;  %5019 = vmatpush.bf16.msrb.mxu0 %v11255_v56  ;;  %v11306_v9 = vor.u32 %v9257_v21, %v8382_v48  ;;  %v9233_v35 = vld [vmem:[%s10216_s24 + $0x34] sm:$0xf0] }
 0x36b   : > { %12681 = vst [vmem:[#allocation147_spill] sm:$0xff] %v11217_v10  ;;  %v9269_v10 = vld [vmem:[%s10216_s24 + $0x15c] sm:$0xf]  ;;  %5057 = vmatpush.bf16.msrb.mxu3 %v11241_v24  ;;  %v8542_v57 = vld [vmem:[%s10216_s24 + $0x218] sm:$0xf] }
 0x36c   : > { %12682 = vst [vmem:[#allocation148_spill] sm:$0xff] %v11228_v29  ;;  %5033 = vmatpush.bf16.msrb.mxu1 %v11286_v47  ;;  %v8606_v29 = vld [vmem:[%s10216_s24 + $0x298] sm:$0xf] }
 0x36d   : > { %12683 = vst [vmem:[#allocation149_spill] sm:$0xff] %v11232_v14  ;;  %v8416_v14 = vld [vmem:[%s10216_s24 + $0x138] sm:$0xf0] }
 0x36e   : > { %12684 = vst [vmem:[#allocation150_spill] sm:$0xff] %v11234_v60  ;;  %v9249_v60 = vld [vmem:[%s10216_s24 + $0xb4] sm:$0xf0] }
 0x36f   : > { %12685 = vst [vmem:[#allocation151_spill] sm:$0xff] %v11241_v24  ;;  %5058 = vmatpush.bf16.msrb.mxu3 %v11271_v5  ;;  %v9321_v24 = vld [vmem:[%s10216_s24 + $0x2f4] sm:$0xf0] }
 0x370   : > { %12686 = vst [vmem:[#allocation152_spill] sm:$0xff] %v11251_v59  ;;  %v11265_v59 = vor.u32 %v9269_v10, %v8448_v63  ;;  %v11279_v63 = vor.u32 %v9265_v6, %v8414_v27  ;;  %v11282_v10 = vperm.slane %v10831_v1, 4  ;;  %v11294_v6 = vor.u32 %v9325_v0, %v8672_v26  ;;  %v11296_v27 = vpop.f32.mrf.mxu2  ;;  %v4048_v26 = vpop.f32.mrf.mxu1 }
 0x371   : > { %12687 = vst [vmem:[#allocation153_spill] sm:$0xff] %v11255_v56  ;;  %v9253_v56 = vld [vmem:[%s10216_s24 + $0xdc] sm:$0xf] }
 0x372   : > { %12688 = vst [vmem:[#allocation154_spill] sm:$0xff] %v11257_v25  ;;  %v9261_v25 = vld [vmem:[%s10216_s24 + $0x11c] sm:$0xf]  ;;  %5045 = vmatpush.bf16.msrb.mxu2 %v11265_v59  ;;  %5020 = vmatpush.bf16.msrb.mxu0 %v11279_v63 }
 0x373   : > { %12689 = vst [vmem:[#allocation155_spill] sm:$0xff] %v11261_v61  ;;  %v11288_v18 = vor.u32 %v9261_v25, %v8416_v14  ;;  %v8638_v61 = vld [vmem:[%s10216_s24 + $0x2d8] sm:$0xf]  ;;  %v8640_v14 = vld [vmem:[%s10216_s24 + $0x2f8] sm:$0xf0]  ;;  %v4029_v25 = vpop.f32.mrf.mxu0  ;;  %5059 = vmatpush.bf16.msrb.mxu3 %v11294_v6 }
 0x374   : > { %12690 = vst [vmem:[#allocation156_spill] sm:$0xff] %v11263_v31  ;;  %v8384_v31 = vld [vmem:[%s10216_s24 + $0xf8] sm:$0xf0]  ;;  %v4030_v0 = vadd.f32 %v4029_v25, %v11282_v10  ;;  %v11319_v48 = vor.u32 %v9317_v36, %v8640_v14  ;;  %v9313_v25 = vld [vmem:[%s10216_s24 + $0x2b4] sm:$0xf0] }
 0x375   : > { %12691 = vst [vmem:[#allocation157_spill] sm:$0xff] %v11265_v59  ;;  %v11301_v59 = vpop.f32.mrf.mxu3  ;;  %v11336_v36 = vor.u32 %v9313_v25, %v8606_v29  ;;  %v9301_v25 = vld [vmem:[%s10216_s24 + $0x25c] sm:$0xf] }
 0x376   : > { %12692 = vst [vmem:[#allocation158_spill] sm:$0xff] %v11271_v5  ;;  %5046 = vmatpush.bf16.msrb.mxu2 %v11288_v18  ;;  %v8350_v5 = vld [vmem:[%s10216_s24 + $0x98] sm:$0xf]  ;;  %v11321_v21 = vadd.f32 %v4048_v26, %v4030_v0  ;;  %5021 = vmatpush.bf16.msrb.mxu0 %v11306_v9 }
 0x377   : > { %12693 = vst [vmem:[#allocation159_spill] sm:$0xff] %v11279_v63  ;;  %v8352_v63 = vld [vmem:[%s10216_s24 + $0xb8] sm:$0xf0]  ;;  %v8318_v0 = vld [vmem:[%s10216_s24 + $0x58] sm:$0xf]  ;;  %5060 = vmatpush.bf16.msrb.mxu3 %v11319_v48 }
 0x378   : > { %12694 = vst [vmem:[#allocation160_spill] sm:$0xff] %v11282_v10  ;;  %v9241_v26 = vld [vmem:[%s10216_s24 + $0x74] sm:$0xf0] }
 0x379   : > { %12695 = vst [vmem:[#allocation161_spill] sm:$0xff] %v11286_v47  ;;  %v9245_v47 = vld [vmem:[%s10216_s24 + $0x9c] sm:$0xf] }
 0x37a   : > { %12696 = vst [vmem:[#allocation162_spill] sm:$0xff] %v11288_v18  ;;  %v11338_v14 = vor.u32 %v9245_v47, %v8352_v63  ;;  %v8576_v63 = vld [vmem:[%s10216_s24 + $0x278] sm:$0xf0] }
 0x37b   : > { %12697 = vst [vmem:[#allocation163_spill] sm:$0xff] %v11294_v6  ;;  %v8574_v6 = vld [vmem:[%s10216_s24 + $0x258] sm:$0xf]  ;;  %v11352_v47 = vpop.f32.mrf.mxu0 }
 0x37c   : > { %12698 = vst [vmem:[#allocation164_spill] sm:$0xff] %v11296_v27  ;;  %v11313_v27 = vor.u32 %v9253_v56, %v8384_v31  ;;  %v8608_v31 = vld [vmem:[%s10216_s24 + $0x2b8] sm:$0xf0]  ;;  %v11329_v56 = vperm.slane %v10831_v1, 5 }
 0x37d   : > { %12699 = vst [vmem:[#allocation165_spill] sm:$0xff] %v11301_v59  ;;  %v11311_v59 = vor.u32 %v9321_v24, %v8638_v61  ;;  %v9309_v24 = vld [vmem:[%s10216_s24 + $0x29c] sm:$0xf]  ;;  %v11332_v61 = vor.u32 %v9249_v60, %v8350_v5  ;;  %v9305_v60 = vld [vmem:[%s10216_s24 + $0x274] sm:$0xf0]  ;;  %v4086_v29 = vpop.f32.mrf.mxu3 }
 0x37e   : > { %12700 = vst [vmem:[#allocation166_spill] sm:$0xff] %v11306_v9  ;;  %5047 = vmatpush.bf16.msrb.mxu2 %v11313_v27  ;;  %v11344_v18 = vor.u32 %v9309_v24, %v8608_v31  ;;  %v4067_v9 = vpop.f32.mrf.mxu2  ;;  %v9237_v5 = vld [vmem:[%s10216_s24 + $0x5c] sm:$0xf]  ;;  %v11355_v24 = vor.u32 %v9241_v26, %v8318_v0  ;;  %v11357_v31 = vpop.f32.mrf.mxu1  ;;  %v11371_v0 = vor.u32 %v9301_v25, %v8576_v63  ;;  %v9297_v26 = vld [vmem:[%s10216_s24 + $0x234] sm:$0xf0] }
 0x37f   : > { %12701 = vst [vmem:[#allocation167_spill] sm:$0xff] %v11311_v59  ;;  %5034 = vmatpush.bf16.msrb.mxu1 %v11311_v59  ;;  %v8320_v59 = vld [vmem:[%s10216_s24 + $0x78] sm:$0xf0]  ;;  %5022 = vmatpush.bf16.msrb.mxu0 %v11332_v61 }
 0x380   : > { %12702 = vst [vmem:[#allocation168_spill] sm:$0xff] %v11313_v27  ;;  %v4068_v27 = vadd.f32 %v4067_v9, %v11329_v56  ;;  %v11365_v54 = vor.u32 %v9237_v5, %v8320_v59  ;;  %5061 = vmatpush.bf16.msrb.mxu3 %v11344_v18  ;;  %v11383_v59 = vor.u32 %v9297_v26, %v8542_v57 }
 0x381   : > { %12703 = vst [vmem:[#allocation169_spill] sm:$0xff] %v11319_v48  ;;  %v11363_v48 = vor.u32 %v9305_v60, %v8574_v6 }
 0x382   : > { %12704 = vst [vmem:[#allocation170_spill] sm:$0xff] %v11329_v56  ;;  %5048 = vmatpush.bf16.msrb.mxu2 %v11338_v14  ;;  %v11361_v9 = vadd.f32 %v4086_v29, %v4068_v27 }
 0x383   : > { %12705 = vst [vmem:[#allocation171_spill] sm:$0xff] %v11332_v61  ;;  %5035 = vmatpush.bf16.msrb.mxu1 %v11336_v36  ;;  %v9229_v61 = vld [vmem:[%s10216_s24 + $0x1c] sm:$0xf]  ;;  %5023 = vmatpush.bf16.msrb.mxu0 %v11355_v24  ;;  %v4034_v25 = vpop.f32.mrf.mxu0 }
 0x384   : > { %12706 = vst [vmem:[#allocation172_spill] sm:$0xff] %v11336_v36  ;;  %v8544_v36 = vld [vmem:[%s10216_s24 + $0x238] sm:$0xf0]  ;;  %5062 = vmatpush.bf16.msrb.mxu3 %v11371_v0 }
 0x385   : > { %12707 = vst [vmem:[#allocation173_spill] sm:$0xff] %v11338_v14  ;;  %v11388_v60 = vor.u32 %v9293_v23, %v8544_v36  ;;  %v11392_v29 = vpop.f32.mrf.mxu3 }
 0x386   : > { %12708 = vst [vmem:[#allocation174_spill] sm:$0xff] %v11344_v18  ;;  %5049 = vmatpush.bf16.msrb.mxu2 %v11365_v54  ;;  %v11390_v5 = vpop.f32.mrf.mxu2  ;;  %v4053_v63 = vpop.f32.mrf.mxu1 }
 0x387   : > { %12709 = vst [vmem:[#allocation175_spill] sm:$0xff] %v11352_v47  ;;  %v8286_v47 = vld [vmem:[%s10216_s24 + $0x18] sm:$0xf]  ;;  %5036 = vmatpush.bf16.msrb.mxu1 %v11363_v48 }
 0x388   : > { %12710 = vst [vmem:[#allocation176_spill] sm:$0xff] %v11355_v24  ;;  %v11379_v27 = vor.u32 %v9233_v35, %v8286_v47  ;;  %v4035_v35 = vadd.f32 %v4034_v25, %v11282_v10  ;;  %5063 = vmatpush.bf16.msrb.mxu3 %v11388_v60 }
 0x389   : > { %12711 = vst [vmem:[#allocation177_spill] sm:$0xff] %v11357_v31  ;;  %v8288_v31 = vld [vmem:[%s10216_s24 + $0x38] sm:$0xf0]  ;;  %s12203_s24 = scalar_lea.sflag [#allocation15], %s482_s19 }
 0x38a   : > { %12712 = vst [vmem:[#allocation178_spill] sm:$0xff] %v11363_v48  ;;  %v11385_v6 = vor.u32 %v9229_v61, %v8288_v31  ;;  %5024 = vmatpush.bf16.msrb.mxu0 %v11379_v27  ;;  %v11399_v57 = vadd.f32 %v4053_v63, %v4035_v35 }
 0x38b   : > { %12713 = vst [vmem:[#allocation179_spill] sm:$0xff] %v11365_v54  ;;  %5037 = vmatpush.bf16.msrb.mxu1 %v11383_v59  ;;  %5064 = vmatmul.bf16.vlgmr.msrb.gmra.mxu3 %v10907_v44  ;;  %v11411_v47 = vpop.f32.mrf.mxu0 }
 0x38c   : > { %12714 = vst [vmem:[#allocation180_spill] sm:$0xff] %v11371_v0  ;;  %5050 = vmatpush.bf16.msrb.mxu2 %v11385_v6  ;;  %5260 = vmatpush.bf16.msra.mxu3 %v10656_v58 }
 0x38d   : > { %12715 = vst [vmem:[#allocation181_spill] sm:$0xff] %v11379_v27  ;;  %5025 = vmatmul.bf16.vlgmr.msrb.gmra.mxu0 %v10902_v4  ;;  %v4091_v36 = vpop.f32.mrf.mxu3 }
 0x38e   : > { %12716 = vst [vmem:[#allocation182_spill] sm:$0xff] %v11383_v59  ;;  %5221 = vmatpush.bf16.msra.mxu0 %v10647_v51  ;;  %5038 = vmatmul.bf16.vlgmr.msrb.gmra.mxu1 %v10907_v44  ;;  %v4072_v23 = vpop.f32.mrf.mxu2  ;;  %v11414_v31 = vpop.f32.mrf.mxu1  ;;  %v11426_v44 = vperm.slane %v10831_v1, 6 }
 0x38f   : > { %12717 = vst [vmem:[#allocation183_spill] sm:$0xff] %v11385_v6  ;;  %5051 = vmatmul.bf16.vlgmr.msrb.gmra.mxu2 %v10902_v4  ;;  %5234 = vmatpush.bf16.msra.mxu1 %v10649_v52  ;;  %v4073_v61 = vadd.f32 %v4072_v23, %v11329_v56 }
 0x390   : > { %12718 = vst [vmem:[#allocation184_spill] sm:$0xff] %v11388_v60  ;;  %5247 = vmatpush.bf16.msra.mxu2 %v10651_v53  ;;  %5261 = vmatpush.bf16.msra.mxu3 %v10676_v19 }
 0x391   : > { %12719 = vst [vmem:[#allocation185_spill] sm:$0xff] %v11390_v5  ;;  %v11416_v26 = vadd.f32 %v4091_v36, %v4073_v61  ;;  %v11441_v36 = vperm.slane %v10831_v1, 7  ;;  %v12740_v5 = vld [vmem:[#allocation64_spill] sm:$0xff] }
 0x392   : > { %12720 = vst [vmem:[#allocation186_spill] sm:$0xff] %v11392_v29  ;;  %5222 = vmatpush.bf16.msra.mxu0 %v10664_v39  ;;  %v12738_v29 = vld [vmem:[#allocation62_spill] sm:$0xff] }
 0x393   : > { %12721 = vst [vmem:[#allocation187_spill] sm:$0xff] %v11399_v57  ;;  %5235 = vmatpush.bf16.msra.mxu1 %v10668_v2  ;;  %v4105_v35 = vpop.f32.mrf.mxu0  ;;  %v12734_v57 = vld [vmem:[#allocation61_spill] sm:$0xff] }
 0x394   : > { %12722 = vst [vmem:[#allocation188_spill] sm:$0xff] %v11411_v47  ;;  %5248 = vmatpush.bf16.msra.mxu2 %v10670_v3  ;;  %5262 = vmatpush.bf16.msra.mxu3 %v10696_v17  ;;  %v4106_v63 = vadd.f32 %v4105_v35, %v11426_v44 }
 0x395   : > { %12723 = vst [vmem:[#allocation189_spill] sm:$0xff] %v11414_v31  ;;  %v11430_v25 = vpop.f32.mrf.mxu3 }
 0x396   : > { %12724 = vst [vmem:[#allocation190_spill] sm:$0xff] %v11416_v26  ;;  %5223 = vmatpush.bf16.msra.mxu0 %v10684_v12  ;;  %v11423_v4 = vpop.f32.mrf.mxu2  ;;  %v4124_v23 = vpop.f32.mrf.mxu1  ;;  %v12733_v26 = vld [vmem:[#allocation58_spill] sm:$0xff] }
 0x397   : > { %5236 = vmatpush.bf16.msra.mxu1 %v10688_v41  ;;  %12725 = vst [vmem:[#allocation191_spill] sm:$0xff] %v11423_v4  ;;  %v11438_v61 = vadd.f32 %v4124_v23, %v4106_v63 }
 0x398   : > { %5249 = vmatpush.bf16.msra.mxu2 %v10690_v13  ;;  %12726 = vst [vmem:[#allocation192_spill] sm:$0xff] %v11426_v44  ;;  %5263 = vmatpush.bf16.msra.mxu3 %v10717_v34 }
 0x399   : > { %12727 = vst [vmem:[#allocation193_spill] sm:$0xff] %v11430_v25 }
 0x39a   : > { %5224 = vmatpush.bf16.msra.mxu0 %v10704_v30  ;;  %12728 = vst [vmem:[#allocation194_spill] sm:$0xff] %v11441_v36 }
 0x39b   : > { %5237 = vmatpush.bf16.msra.mxu1 %v10708_v16  ;;  %v11448_v31 = vpop.f32.mrf.mxu0 }
 0x39c   : > { %5250 = vmatpush.bf16.msra.mxu2 %v10710_v32  ;;  %5264 = vmatpush.bf16.msra.mxu3 %v10740_v8  ;;  %12729 = vst [vmem:[#allocation195_spill] sm:$0xff] %v11448_v31 }
 0x39d   : > { %v4162_v4 = vpop.f32.mrf.mxu3 }
 0x39e   : > { %5225 = vmatpush.bf16.msra.mxu0 %v10728_v40  ;;  %v4143_v35 = vpop.f32.mrf.mxu2  ;;  %v11451_v63 = vpop.f32.mrf.mxu1 }
 0x39f   : > { %5238 = vmatpush.bf16.msra.mxu1 %v10732_v38  ;;  %v4144_v25 = vadd.f32 %v4143_v35, %v11441_v36  ;;  %12730 = vst [vmem:[#allocation196_spill] sm:$0xff] %v11451_v63  ;;  %v12735_v63 = vld [vmem:[#allocation60_spill] sm:$0xff] }
 0x3a0   : > { %5251 = vmatpush.bf16.msra.mxu2 %v10734_v20  ;;  %5265 = vmatpush.bf16.msra.mxu3 %v10760_v62  ;;  %v4206_v62 = vld [vmem:[%s526_s15] sm:$0xff] }
 0x3a1   : > { %v11455_v1 = vadd.f32 %v4162_v4, %v4144_v25 }
 0x3a2   : > { %5226 = vmatpush.bf16.msra.mxu0 %v10748_v49 }
 0x3a3   : > { %5239 = vmatpush.bf16.msra.mxu1 %v10752_v50  ;;  %v4110_v4 = vpop.f32.mrf.mxu0 }
 0x3a4   : > { %5252 = vmatpush.bf16.msra.mxu2 %v10754_v55  ;;  %5266 = vmatpush.bf16.msra.mxu3 %v10782_v15  ;;  %v4111_v25 = vadd.f32 %v4110_v4, %v11426_v44  ;;  %v12741_v44 = vld [vmem:[#allocation68_spill] sm:$0xff] }
 0x3a5   : > { %v11466_v35 = vpop.f32.mrf.mxu3 }
 0x3a6   : > { %5227 = vmatpush.bf16.msra.mxu0 %v10768_v7  ;;  %v11463_v23 = vpop.f32.mrf.mxu2  ;;  %12732 = vst [vmem:[#allocation198_spill] sm:$0xff] %v11466_v35  ;;  %v4129_v47 = vpop.f32.mrf.mxu1  ;;  %v12739_v35 = vld [vmem:[#allocation66_spill] sm:$0xff] }
 0x3a7   : > { %5240 = vmatpush.bf16.msra.mxu1 %v10774_v11  ;;  %12731 = vst [vmem:[#allocation197_spill] sm:$0xff] %v11463_v23  ;;  %v11474_v31 = vadd.f32 %v4129_v47, %v4111_v25  ;;  %v12737_v23 = vld [vmem:[#allocation63_spill] sm:$0xff]  ;;  %v12771_v11 = vld [vmem:[#allocation120_spill] sm:$0xff] }
 0x3a8   : > { %5253 = vmatpush.bf16.msra.mxu2 %v10776_v46  ;;  %5267 = vmatpush.bf16.msra.mxu3 %v10806_v45  ;;  %v12744_v47 = vld [vmem:[#allocation67_spill] sm:$0xff] }
 0x3a9   : > { %12736 = vst [vmem:[#allocation199_spill] sm:$0xff] %v11474_v31  ;;  %v12746_v31 = vld [vmem:[#allocation71_spill] sm:$0xff] }
 0x3aa   : > { %5228 = vmatpush.bf16.msra.mxu0 %v10791_v33 }
 0x3ab   : > { %5241 = vmatpush.bf16.msra.mxu1 %v10798_v22 }
 0x3ac   : > { %5254 = vmatpush.bf16.msra.mxu2 %v10800_v37  ;;  %5312 = vmatpush.bf16.msrb.mxu3 %v12735_v63  ;;  %v12764_v63 = vld [vmem:[#allocation89_spill] sm:$0xff] }
 0x3ad   : > { %v4167_v10 = vpop.f32.mrf.mxu3 }
 0x3ae   : > { %5273 = vmatpush.bf16.msrb.mxu0 %v10808_v42  ;;  %v4148_v4 = vpop.f32.mrf.mxu2  ;;  %v11484_v45 = vpop.f32.mrf.mxu1 }
 0x3af   : > { %5286 = vmatpush.bf16.msrb.mxu1 %v12733_v26  ;;  %v4149_v56 = vadd.f32 %v4148_v4, %v11441_v36  ;;  %v11482_v26 = vpop.f32.mrf.mxu0  ;;  %12743 = vst [vmem:[#allocation201_spill] sm:$0xff] %v11484_v45  ;;  %v12751_v4 = vld [vmem:[#allocation75_spill] sm:$0xff] }
 0x3b0   : > { %5299 = vmatpush.bf16.msrb.mxu2 %v10814_v43  ;;  %5313 = vmatpush.bf16.msrb.mxu3 %v12740_v5  ;;  %12742 = vst [vmem:[#allocation200_spill] sm:$0xff] %v11482_v26  ;;  %v12749_v5 = vld [vmem:[#allocation72_spill] sm:$0xff]  ;;  %v12753_v26 = vld [vmem:[#allocation78_spill] sm:$0xff] }
 0x3b1   : > { %v11487_v25 = vadd.f32 %v4167_v10, %v4149_v56  ;;  %v12755_v10 = vld [vmem:[#allocation77_spill] sm:$0xff] }
 0x3b2   : > { %5274 = vmatpush.bf16.msrb.mxu0 %v12734_v57 }
 0x3b3   : > { %5287 = vmatpush.bf16.msrb.mxu1 %v12738_v29  ;;  %12745 = vst [vmem:[#allocation202_spill] sm:$0xff] %v11487_v25  ;;  %v12747_v29 = vld [vmem:[#allocation69_spill] sm:$0xff]  ;;  %v12756_v25 = vld [vmem:[#allocation83_spill] sm:$0xff] }
 0x3b4   : > { %5300 = vmatpush.bf16.msrb.mxu2 %v12737_v23  ;;  %5314 = vmatpush.bf16.msrb.mxu3 %v12747_v29  ;;  %v12757_v29 = vld [vmem:[#allocation80_spill] sm:$0xff] }
 0x3b5   : > { %v11498_v45 = vpop.f32.mrf.mxu3  ;;  %v12766_v23 = vld [vmem:[#allocation92_spill] sm:$0xff] }
 0x3b6   : > { %5275 = vmatpush.bf16.msrb.mxu0 %v12739_v35  ;;  %v12748_v35 = vld [vmem:[#allocation73_spill] sm:$0xff]  ;;  %v11495_v36 = vpop.f32.mrf.mxu2  ;;  %12754 = vst [vmem:[#allocation204_spill] sm:$0xff] %v11498_v45  ;;  %v12763_v45 = vld [vmem:[#allocation90_spill] sm:$0xff] }
 0x3b7   : > { %5288 = vmatpush.bf16.msrb.mxu1 %v12744_v47  ;;  %12752 = vst [vmem:[#allocation203_spill] sm:$0xff] %v11495_v36  ;;  %v4870_v56 = vpop.f32.mrf.mxu0  ;;  %v4883_v47 = vpop.f32.mrf.mxu1  ;;  %v12761_v36 = vld [vmem:[#allocation87_spill] sm:$0xff] }
 0x3b8   : > { %5301 = vmatpush.bf16.msrb.mxu2 %v12741_v44  ;;  %v12750_v44 = vld [vmem:[#allocation76_spill] sm:$0xff]  ;;  %5315 = vmatpush.bf16.msrb.mxu3 %v12751_v4  ;;  %v12760_v4 = vld [vmem:[#allocation70_spill] sm:$0xff] }
 0x3ba   : > { %5276 = vmatpush.bf16.msrb.mxu0 %v12746_v31 }
 0x3bb   : > { %5289 = vmatpush.bf16.msrb.mxu1 %v12749_v5  ;;  %v4884_v5 = vadd.f32 %v4883_v47, %v4870_v56 }
 0x3bc   : > { %5302 = vmatpush.bf16.msrb.mxu2 %v12748_v35  ;;  %5316 = vmatpush.bf16.msrb.mxu3 %v12757_v29  ;;  %v12758_v35 = vld [vmem:[#allocation85_spill] sm:$0xff]  ;;  %v12765_v29 = vld [vmem:[#allocation94_spill] sm:$0xff] }
 0x3bd   : > { %v5069_v31 = vadd.f32 %v4884_v5, %v12760_v4  ;;  %v12768_v5 = vld [vmem:[#allocation82_spill] sm:$0xff] }
 0x3be   : > { %5277 = vmatpush.bf16.msrb.mxu0 %v12750_v44  ;;  %v12759_v44 = vld [vmem:[#allocation84_spill] sm:$0xff] }
 0x3bf   : > { %5290 = vmatpush.bf16.msrb.mxu1 %v12755_v10  ;;  %v4896_v10 = vpop.f32.mrf.mxu2  ;;  %v4872_v22 = vpop.f32.mrf.mxu0 }
 0x3c0   : > { %5303 = vmatpush.bf16.msrb.mxu2 %v12753_v26  ;;  %v12762_v26 = vld [vmem:[#allocation86_spill] sm:$0xff]  ;;  %v4885_v56 = vpop.f32.mrf.mxu1 }
 0x3c1   : > { %5317 = vmatpush.bf16.msrb.mxu3 %v12762_v26  ;;  %v12770_v26 = vld [vmem:[#allocation97_spill] sm:$0xff] }
 0x3c2   : > { %5278 = vmatpush.bf16.msrb.mxu0 %v12756_v25  ;;  %v4909_v25 = vpop.f32.mrf.mxu3 }
 0x3c3   : > { %5291 = vmatpush.bf16.msrb.mxu1 %v12759_v44  ;;  %v4910_v47 = vadd.f32 %v4909_v25, %v4896_v10  ;;  %v12767_v44 = vld [vmem:[#allocation96_spill] sm:$0xff] }
 0x3c4   : > { %5304 = vmatpush.bf16.msrb.mxu2 %v12758_v35 }
 0x3c5   : > { %5318 = vmatpush.bf16.msrb.mxu3 %v12766_v23  ;;  %v5070_v4 = vadd.f32 %v4910_v47, %v12768_v5 }
 0x3c6   : > { %5279 = vmatpush.bf16.msrb.mxu0 %v12761_v36  ;;  %v12769_v36 = vld [vmem:[#allocation95_spill] sm:$0xff] }
 0x3c7   : > { %5292 = vmatpush.bf16.msrb.mxu1 %v12764_v63  ;;  %v4898_v35 = vpop.f32.mrf.mxu2  ;;  %v4922_v63 = vpop.f32.mrf.mxu0 }
 0x3c8   : > { %5305 = vmatpush.bf16.msrb.mxu2 %v12763_v45  ;;  %v8772_v45 = vmul.f32 -1.442695, %v5069_v31  ;;  %v4935_v22 = vpop.f32.mrf.mxu1  ;;  %v12772_v31 = vld [vmem:[#allocation132_spill] sm:$0xff] }
 0x3c9   : > { %5319 = vmatpush.bf16.msrb.mxu3 %v12770_v26  ;;  %v4936_v15 = vadd.f32 %v4935_v22, %v4922_v63 }
 0x3ca   : > { %5280 = vmatpush.bf16.msrb.mxu0 %v12765_v29  ;;  %v4911_v57 = vpop.f32.mrf.mxu3  ;;  %9464 = vpow2.f32 %v8772_v45  ;;  %v8773_v29 = vmul.f32 -1.442695, %v5070_v4 }
 0x3cb   : > { %5293 = vmatpush.bf16.msrb.mxu1 %v12769_v36  ;;  %v5071_v23 = vadd.f32 %v4936_v15, %v12771_v11 }
 0x3cc   : > { %5306 = vmatpush.bf16.msrb.mxu2 %v12767_v44  ;;  %9466 = vpow2.f32 %v8773_v29 }
 0x3cd   : > { %v8774_v25 = vmul.f32 -1.442695, %v5071_v23 }
 0x3cf   : > { %v4948_v56 = vpop.f32.mrf.mxu2  ;;  %9468 = vpow2.f32 %v8774_v25  ;;  %v4924_v5 = vpop.f32.mrf.mxu0 }
 0x3d0   : > { %v9465_v10 = vpop.eup %9464  ;;  %v4937_v44 = vpop.f32.mrf.mxu1 }
 0x3d1   : > { %v11517_v26 = vadd.f32 1.0, %v9465_v10 }
 0x3d2   : > { %v4961_v47 = vpop.f32.mrf.mxu3  ;;  %v9467_v35 = vpop.eup %9466 }
 0x3d3   : > { %v4962_v36 = vadd.f32 %v4961_v47, %v4948_v56  ;;  %9470 = vrcp.f32 %v11517_v26  ;;  %v11521_v29 = vadd.f32 1.0, %v9467_v35  ;;  %vm5090_vm6 = vweird.f32 %v11517_v26 }
 0x3d5   : > { %v5072_v57 = vadd.f32 %v4962_v36, %v12772_v31  ;;  %v9469_v43 = vpop.eup %9468  ;;  %vm5105_vm14 = vweird.f32 %v11521_v29 }
 0x3d6   : > { %v5121_v63 = vadd.f32 1.0, %v9469_v43 }
 0x3d7   : > { %v8775_v45 = vmul.f32 -1.442695, %v5072_v57  ;;  %v4950_v11 = vpop.f32.mrf.mxu2 }
 0x3d8   : > { %v5134_v37 = vand.u32 2147483648, %v5121_v63  ;;  %vm5128_vm3 = vweird.f32 %v5121_v63  ;;  %v5132_v33 = vand.u32 2147483647, %v5121_v63 }
 0x3d9   : > { %9472 = vpow2.f32 %v8775_v45  ;;  %v9471_v23 = vpop.eup %9470 }
 0x3da   : > { %v4963_v15 = vpop.f32.mrf.mxu3  ;;  %9474 = vrcp.f32 %v5121_v63  ;;  %v5086_v36 = vmul.f32 %v9471_v23, %v11517_v26  ;;  %vm5091_vm4 = vweird.f32 %v9471_v23  ;;  %vm5133_vm8 = vcmp.eq.f32.partialorder %v5132_v33, 8.507059e+37 }
 0x3db   : > { %9476 = vrcp.f32 %v11521_v29  ;;  %vm11547_vm7 = vmor %vm5090_vm6, %vm5091_vm4 }
 0x3dc   : > { %v5087_v56 = vsub.f32 1.0, %v5086_v36  ;;  %v4987_v45 = vpop.f32.mrf.mxu1 }
 0x3de   : > { %v4974_v57 = vpop.f32.mrf.mxu0  ;;  %v5088_v11 = vmul.f32 %v9471_v23, %v5087_v56  ;;  %v5096_v56 = vand.u32 2147483648, %v11517_v26 }
 0x3df   : > { %v9473_v4 = vpop.eup %9472  ;;  %v4988_v15 = vadd.f32 %v4987_v45, %v4974_v57  ;;  %v5135_v57 = vor.u32 1.1754944e-38, %v5134_v37 }
 0x3e0   : > { %v11524_v44 = vadd.f32 1.0, %v9473_v4  ;;  %v9475_v22 = vpop.eup %9474 }
 0x3e1   : > { %v5124_v25 = vmul.f32 %v9475_v22, %v5121_v63  ;;  %v11528_v43 = vpop.eup %9476  ;;  %vm5129_vm2 = vweird.f32 %v9475_v22  ;;  %v5073_v36 = vadd.f32 %v4988_v15, %v11321_v21 }
 0x3e2   : > { %9478 = vrcp.f32 %v11524_v44  ;;  %v5101_v31 = vmul.f32 %v11528_v43, %v11521_v29  ;;  %vm11537_vm5 = vmor %vm5128_vm3, %vm5129_vm2  ;;  %vm5106_vm11 = vweird.f32 %v11528_v43  ;;  %vm5143_vm12 = vweird.f32 %v11524_v44 }
 0x3e3   : > { %v5125_v10 = vsub.f32 1.0, %v5124_v25  ;;  %9480 = vtanh.f32 %v5073_v36  ;;  %vm5107_vm15 = vmor %vm5105_vm14, %vm5106_vm11 }
 0x3e4   : > { %v5102_v25 = vsub.f32 1.0, %v5101_v31  ;;  %v5000_v31 = vpop.f32.mrf.mxu2  ;;  %v4989_v36 = vpop.f32.mrf.mxu1 }
 0x3e5   : > { %v5126_v47 = vmul.f32 %v9475_v22, %v5125_v10  ;;  %v5089_v10 = vadd.f32 %v9471_v23, %v5088_v11 }
 0x3e6   : > { %v5103_v45 = vmul.f32 %v11528_v43, %v5102_v25  ;;  %v4976_v11 = vpop.f32.mrf.mxu0 }
 0x3e7   : > { %v5127_v42 = vadd.f32 %v9475_v22, %v5126_v47  ;;  %v5094_v47 = vand.u32 2147483647, %v11517_v26  ;;  %v5093_v15 = vsel %vm11547_vm7, %v9471_v23, %v5089_v10  ;;  %v5147_v10 = vand.u32 2147483647, %v11524_v44 }
 0x3e8   : > { %v11530_v5 = vpop.eup %9478  ;;  %v5104_v23 = vadd.f32 %v11528_v43, %v5103_v45 }
 0x3e9   : > { %v5139_v35 = vmul.f32 %v11530_v5, %v11524_v44  ;;  %v5131_v21 = vsel %vm11537_vm5, %v9475_v22, %v5127_v42  ;;  %vm5144_vm9 = vweird.f32 %v11530_v5  ;;  %v5097_v42 = vor.u32 1.1754944e-38, %v5096_v56  ;;  %v9481_v63 = vpop.eup %9480 }
 0x3ea   : > { %v5136_v37 = vsel %vm5133_vm8, %v5135_v57, %v5131_v21  ;;  %v5149_v22 = vand.u32 2147483648, %v11524_v44  ;;  %vm5095_vm10 = vcmp.eq.f32.partialorder %v5094_v47, 8.507059e+37  ;;  %vm11564_vm13 = vmor %vm5143_vm12, %vm5144_vm9  ;;  %v5111_v47 = vand.u32 2147483648, %v11521_v29 }
 0x3eb   : > { %v5140_v4 = vsub.f32 1.0, %v5139_v35  ;;  %v5013_v35 = vpop.f32.mrf.mxu3  ;;  %v5098_v33 = vsel %vm5095_vm10, %v5097_v42, %v5093_v15  ;;  %v5108_v45 = vsel %vm5107_vm15, %v11528_v43, %v5104_v23  ;;  %vm5148_vm0 = vcmp.eq.f32.partialorder %v5147_v10, 8.507059e+37  ;;  %v4207_v15 = vld [vmem:[%s526_s15 + $0x8] sm:$0xff]  ;;  %s6325_s15 = sshll.u32 %s10223_s25, 4  ;;  %s6326_s15 = int_to_ptr.vmem [resolvable:$true] %s6325_s15 }
 0x3ec   : > { %v5195_v21 = vmul.f32 %v9481_v63, %v5098_v33  ;;  %v5150_v57 = vor.u32 1.1754944e-38, %v5149_v22 }
 0x3ed   : > { %v5141_v50 = vmul.f32 %v11530_v5, %v5140_v4  ;;  %v5014_v4 = vadd.f32 %v5013_v35, %v5000_v31  ;;  %v5002_v35 = vpop.f32.mrf.mxu2 }
 0x3ef   : > { %v5142_v26 = vadd.f32 %v11530_v5, %v5141_v50  ;;  %v5074_v25 = vadd.f32 %v5014_v4, %v11361_v9  ;;  %v5193_v50 = vmul.f32 %v5136_v37, %v4206_v62  ;;  %v5109_v9 = vand.u32 2147483647, %v11521_v29 }
 0x3f0   : > { %v5112_v4 = vor.u32 1.1754944e-38, %v5111_v47 }
 0x3f1   : > { %9482 = vtanh.f32 %v5074_v25  ;;  %v5146_v31 = vsel %vm11564_vm13, %v11530_v5, %v5142_v26  ;;  %v11574_v44 = vadd.f32 %v5195_v21, %v5193_v50  ;;  %vm5110_vm1 = vcmp.eq.f32.partialorder %v5109_v9, 8.507059e+37 }
 0x3f2   : > { %v5151_v36 = vsel %vm5148_vm0, %v5150_v57, %v5146_v31  ;;  %v5113_v62 = vsel %vm5110_vm1, %v5112_v4, %v5108_v45 }
 0x3f3   : > { %v5015_v11 = vpop.f32.mrf.mxu3  ;;  %v5194_v42 = vmul.f32 %v5151_v36, %v4207_v15 }
 0x3f7   : > { %v9483_v29 = vpop.eup %9482 }
 0x3f8   : > { %v5196_v5 = vmul.f32 %v9483_v29, %v5113_v62 }
 0x3fa   : > { %v11581_v37 = vadd.f32 %v5196_v5, %v5194_v42 }
 0x40a   : > { %v5026_v26 = vpop.f32.mrf.mxu0 }
 0x40b   : > { %v5039_v22 = vpop.f32.mrf.mxu1 }
 0x40c   : > { %v5040_v25 = vadd.f32 %v5039_v22, %v5026_v26 }
 0x40e   : > { %v5075_v63 = vadd.f32 %v5040_v25, %v11438_v61  ;;  %v5065_v23 = vpop.f32.mrf.mxu3 }
 0x410   : > { %v8776_v33 = vmul.f32 -1.442695, %v5075_v63 }
 0x412   : > { %v5052_v43 = vpop.f32.mrf.mxu2  ;;  %9484 = vpow2.f32 %v8776_v33  ;;  %v5028_v10 = vpop.f32.mrf.mxu0 }
 0x413   : > { %v5066_v56 = vadd.f32 %v5065_v23, %v5052_v43  ;;  %v5041_v50 = vpop.f32.mrf.mxu1 }
 0x415   : > { %v5076_v21 = vadd.f32 %v5066_v56, %v11455_v1 }
 0x416   : > { %v5067_v35 = vpop.f32.mrf.mxu3 }
 0x417   : > { %v8777_v47 = vmul.f32 -1.442695, %v5076_v21 }
 0x418   : > { %v9485_v9 = vpop.eup %9484 }
 0x419   : > { %v5161_v31 = vadd.f32 1.0, %v9485_v9  ;;  %9486 = vpow2.f32 %v8777_v47 }
 0x41a   : > { %v5054_v57 = vpop.f32.mrf.mxu2 }
 0x41b   : > { %9488 = vrcp.f32 %v5161_v31  ;;  %v5174_v36 = vand.u32 2147483648, %v5161_v31  ;;  %v5172_v62 = vand.u32 2147483647, %v5161_v31  ;;  %vm5168_vm3 = vweird.f32 %v5161_v31  ;;  %v12780_v57 = vld [vmem:[#allocation100_spill] sm:$0xff] }
 0x41d   : > { %v5175_v5 = vor.u32 1.1754944e-38, %v5174_v36  ;;  %vm5173_vm5 = vcmp.eq.f32.partialorder %v5172_v62, 8.507059e+37  ;;  %v12783_v36 = vld [vmem:[#allocation99_spill] sm:$0xff]  ;;  %v12785_v62 = vld [vmem:[#allocation109_spill] sm:$0xff] }
 0x41f   : > { %v9487_v45 = vpop.eup %9486 }
 0x420   : > { %v5162_v11 = vadd.f32 1.0, %v9487_v45 }
 0x421   : > { %v9489_v15 = vpop.eup %9488 }
 0x422   : > { %v5164_v61 = vmul.f32 %v9489_v15, %v5161_v31  ;;  %9490 = vrcp.f32 %v5162_v11  ;;  %vm5169_vm2 = vweird.f32 %v9489_v15  ;;  %v5189_v23 = vand.u32 2147483648, %v5162_v11  ;;  %v12779_v31 = vld [vmem:[#allocation98_spill] sm:$0xff] }
 0x423   : > { %9492 = vtanh.f32 %v11574_v44  ;;  %vm5170_vm4 = vmor %vm5168_vm3, %vm5169_vm2  ;;  %v5187_v56 = vand.u32 2147483647, %v5162_v11  ;;  %vm5183_vm7 = vweird.f32 %v5162_v11 }
 0x424   : > { %v5165_v4 = vsub.f32 1.0, %v5164_v61  ;;  %9494 = vtanh.f32 %v11581_v37  ;;  %v5190_v47 = vor.u32 1.1754944e-38, %v5189_v23  ;;  %v12795_v23 = vld [vmem:[#allocation117_spill] sm:$0xff] }
 0x425   : > { %vm5188_vm9 = vcmp.eq.f32.partialorder %v5187_v56, 8.507059e+37  ;;  %v12797_v56 = vld [vmem:[#allocation126_spill] sm:$0xff] }
 0x426   : > { %v5166_v29 = vmul.f32 %v9489_v15, %v5165_v4  ;;  %v12781_v4 = vld [vmem:[#allocation103_spill] sm:$0xff] }
 0x428   : > { %v9491_v1 = vpop.eup %9490  ;;  %v5167_v42 = vadd.f32 %v9489_v15, %v5166_v29  ;;  %v12784_v29 = vld [vmem:[#allocation101_spill] sm:$0xff] }
 0x429   : > { %v5179_v26 = vmul.f32 %v9491_v1, %v5162_v11  ;;  %v9493_v25 = vpop.eup %9492  ;;  %vm5184_vm6 = vweird.f32 %v9491_v1  ;;  %v12782_v11 = vld [vmem:[#allocation107_spill] sm:$0xff] }
 0x42a   : > { %v5171_v22 = vsel %vm5170_vm4, %v9489_v15, %v5167_v42  ;;  %vm5185_vm8 = vmor %vm5183_vm7, %vm5184_vm6  ;;  %v9495_v35 = vpop.eup %9494  ;;  %v12787_v42 = vld [vmem:[#allocation106_spill] sm:$0xff] }
 0x42b   : > { %v5176_v63 = vsel %vm5173_vm5, %v5175_v5, %v5171_v22  ;;  %v5180_v33 = vsub.f32 1.0, %v5179_v26  ;;  %v12788_v5 = vld [vmem:[#allocation108_spill] sm:$0xff]  ;;  %v12790_v22 = vld [vmem:[#allocation118_spill] sm:$0xff] }
 0x42c   : > { %v5201_v43 = vmul.f32 %v9493_v25, %v5176_v63  ;;  %v12789_v26 = vld [vmem:[#allocation116_spill] sm:$0xff]  ;;  %v12791_v25 = vld [vmem:[#allocation110_spill] sm:$0xff] }
 0x42d   : > { %v5181_v10 = vmul.f32 %v9491_v1, %v5180_v33  ;;  %v12792_v63 = vld [vmem:[#allocation112_spill] sm:$0xff]  ;;  %v12793_v33 = vld [vmem:[#allocation121_spill] sm:$0xff] }
 0x42e   : > { %5206 = vst [vmem:[#allocation13] sm:$0xff] %v5201_v43  ;;  %v11587_v50 = vpack.c.bf16 %v5201_v43, %v5201_v43  ;;  %v12794_v43 = vld [vmem:[#allocation124_spill] sm:$0xff] }
 0x42f   : > { %v5182_v21 = vadd.f32 %v9491_v1, %v5181_v10  ;;  %v12796_v10 = vld [vmem:[#allocation119_spill] sm:$0xff] }
 0x430   : > { %5229 = vmatmul.bf16.vlgmr.msra.gmra.mxu0 %v11587_v50  ;;  %5255 = vmatmul.bf16.vlgmr.msra.gmra.mxu2 %v11587_v50 }
 0x431   : > { %v5186_v9 = vsel %vm5185_vm8, %v9491_v1, %v5182_v21  ;;  %5325 = vmatpush.bf16.msra.mxu0 %v12779_v31  ;;  %5351 = vmatpush.bf16.msra.mxu2 %v12780_v57  ;;  %v12786_v1 = vld [vmem:[#allocation111_spill] sm:$0xff]  ;;  %v12798_v21 = vld [vmem:[#allocation128_spill] sm:$0xff] }
 0x432   : > { %v5191_v45 = vsel %vm5188_vm9, %v5190_v47, %v5186_v9  ;;  %v12799_v47 = vld [vmem:[#allocation123_spill] sm:$0xff]  ;;  %v12800_v9 = vld [vmem:[#allocation125_spill] sm:$0xff] }
 0x433   : > { %v5202_v15 = vmul.f32 %v9495_v35, %v5191_v45  ;;  %v12801_v35 = vld [vmem:[#allocation133_spill] sm:$0xff]  ;;  %v12802_v45 = vld [vmem:[#allocation135_spill] sm:$0xff] }
 0x435   : > { %5207 = vst [vmem:[#allocation13 + $0x8] sm:$0xff] %v5202_v15  ;;  %v11593_v61 = vpack.c.bf16 %v5202_v15, %v5202_v15  ;;  %5326 = vmatpush.bf16.msra.mxu0 %v12781_v4  ;;  %5352 = vmatpush.bf16.msra.mxu2 %v12782_v11  ;;  %v12803_v15 = vld [vmem:[#allocation127_spill] sm:$0xff] }
 0x437   : > { %5242 = vmatmul.bf16.vlgmr.msra.gmra.mxu1 %v11593_v61  ;;  %5268 = vmatmul.bf16.vlgmr.msra.gmra.mxu3 %v11593_v61 }
 0x438   : > { %5338 = vmatpush.bf16.msra.mxu1 %v12783_v36  ;;  %5364 = vmatpush.bf16.msra.mxu3 %v12784_v29 }
 0x439   : > { %5327 = vmatpush.bf16.msra.mxu0 %v12785_v62  ;;  %5353 = vmatpush.bf16.msra.mxu2 %v12786_v1 }
 0x43c   : > { %5339 = vmatpush.bf16.msra.mxu1 %v12787_v42  ;;  %5365 = vmatpush.bf16.msra.mxu3 %v12788_v5 }
 0x43d   : > { %5328 = vmatpush.bf16.msra.mxu0 %v12789_v26  ;;  %5354 = vmatpush.bf16.msra.mxu2 %v12790_v22 }
 0x440   : > { %5340 = vmatpush.bf16.msra.mxu1 %v12791_v25  ;;  %5366 = vmatpush.bf16.msra.mxu3 %v12792_v63 }
 0x441   : > { %5281 = vmatmul.bf16.vlgmr.msrb.gmra.mxu0 %v11587_v50  ;;  %5307 = vmatmul.bf16.vlgmr.msrb.gmra.mxu2 %v11587_v50 }
 0x442   : > { %5329 = vmatpush.bf16.msra.mxu0 %v12793_v33  ;;  %5355 = vmatpush.bf16.msra.mxu2 %v12794_v43  ;;  %v12808_v43 = vld [vmem:[#allocation134_spill] sm:$0xff] }
 0x444   : > { %5341 = vmatpush.bf16.msra.mxu1 %v12795_v23  ;;  %5367 = vmatpush.bf16.msra.mxu3 %v12796_v10  ;;  %v12804_v23 = vld [vmem:[#allocation130_spill] sm:$0xff]  ;;  %v12807_v10 = vld [vmem:[#allocation145_spill] sm:$0xff] }
 0x446   : > { %5330 = vmatpush.bf16.msra.mxu0 %v12797_v56  ;;  %5356 = vmatpush.bf16.msra.mxu2 %v12798_v21  ;;  %v12805_v56 = vld [vmem:[#allocation141_spill] sm:$0xff]  ;;  %v12806_v21 = vld [vmem:[#allocation143_spill] sm:$0xff] }
 0x447   : > { %5294 = vmatmul.bf16.vlgmr.msrb.gmra.mxu1 %v11593_v61  ;;  %5320 = vmatmul.bf16.vlgmr.msrb.gmra.mxu3 %v11593_v61 }
 0x448   : > { %5342 = vmatpush.bf16.msra.mxu1 %v12799_v47  ;;  %5368 = vmatpush.bf16.msra.mxu3 %v12800_v9  ;;  %v12809_v47 = vld [vmem:[#allocation136_spill] sm:$0xff]  ;;  %v12828_v9 = vld [vmem:[#allocation171_spill] sm:$0xff] }
 0x44a   : > { %5331 = vmatpush.bf16.msra.mxu0 %v12801_v35  ;;  %5357 = vmatpush.bf16.msra.mxu2 %v12802_v45  ;;  %v12810_v45 = vld [vmem:[#allocation148_spill] sm:$0xff]  ;;  %v12827_v35 = vld [vmem:[#allocation163_spill] sm:$0xff] }
 0x44c   : > { %5343 = vmatpush.bf16.msra.mxu1 %v12803_v15  ;;  %5369 = vmatpush.bf16.msra.mxu3 %v12804_v23  ;;  %v12811_v15 = vld [vmem:[#allocation150_spill] sm:$0xff]  ;;  %v12812_v23 = vld [vmem:[#allocation140_spill] sm:$0xff] }
 0x44e   : > { %5332 = vmatpush.bf16.msra.mxu0 %v11186_v28  ;;  %5358 = vmatpush.bf16.msra.mxu2 %v12805_v56  ;;  %v12813_v28 = vld [vmem:[#allocation142_spill] sm:$0xff]  ;;  %v12814_v56 = vld [vmem:[#allocation144_spill] sm:$0xff] }
 0x450   : > { %5344 = vmatpush.bf16.msra.mxu1 %v12808_v43  ;;  %5370 = vmatpush.bf16.msra.mxu3 %v12809_v47  ;;  %v12817_v43 = vld [vmem:[#allocation157_spill] sm:$0xff] }
 0x451   : > { %5333 = vmatmul.bf16.vlgmr.msra.gmra.mxu0 %v11587_v50  ;;  %5359 = vmatmul.bf16.vlgmr.msra.gmra.mxu2 %v11587_v50  ;;  %v12818_v47 = vld [vmem:[#allocation149_spill] sm:$0xff] }
 0x452   : > { %5377 = vmatpush.bf16.msrb.mxu0 %v12806_v21  ;;  %5403 = vmatpush.bf16.msrb.mxu2 %v12807_v10  ;;  %v12815_v21 = vld [vmem:[#allocation146_spill] sm:$0xff]  ;;  %v12816_v10 = vld [vmem:[#allocation153_spill] sm:$0xff] }
 0x454   : > { %5345 = vmatpush.bf16.msra.mxu1 %v12812_v23  ;;  %5371 = vmatpush.bf16.msra.mxu3 %v12813_v28  ;;  %v12821_v23 = vld [vmem:[#allocation162_spill] sm:$0xff]  ;;  %v12822_v28 = vld [vmem:[#allocation156_spill] sm:$0xff] }
 0x456   : > { %5378 = vmatpush.bf16.msrb.mxu0 %v12810_v45  ;;  %5404 = vmatpush.bf16.msrb.mxu2 %v12811_v15  ;;  %v12819_v45 = vld [vmem:[#allocation151_spill] sm:$0xff] }
 0x457   : > { %5346 = vmatmul.bf16.vlgmr.msra.gmra.mxu1 %v11593_v61  ;;  %5372 = vmatmul.bf16.vlgmr.msra.gmra.mxu3 %v11593_v61  ;;  %v12820_v15 = vld [vmem:[#allocation159_spill] sm:$0xff] }
 0x458   : > { %5390 = vmatpush.bf16.msrb.mxu1 %v12814_v56  ;;  %5416 = vmatpush.bf16.msrb.mxu3 %v12815_v21  ;;  %v12823_v56 = vld [vmem:[#allocation158_spill] sm:$0xff] }
 0x459   : > { %v12824_v21 = vld [vmem:[#allocation166_spill] sm:$0xff] }
 0x45a   : > { %5379 = vmatpush.bf16.msrb.mxu0 %v12816_v10  ;;  %5405 = vmatpush.bf16.msrb.mxu2 %v12817_v43  ;;  %v12825_v10 = vld [vmem:[#allocation168_spill] sm:$0xff]  ;;  %v12826_v43 = vld [vmem:[#allocation161_spill] sm:$0xff] }
 0x45c   : > { %5391 = vmatpush.bf16.msrb.mxu1 %v12818_v47  ;;  %5417 = vmatpush.bf16.msrb.mxu3 %v12819_v45  ;;  %v12829_v45 = vld [vmem:[#allocation167_spill] sm:$0xff] }
 0x45e   : > { %5380 = vmatpush.bf16.msrb.mxu0 %v12820_v15  ;;  %5406 = vmatpush.bf16.msrb.mxu2 %v12821_v23  ;;  %v12830_v15 = vld [vmem:[#allocation169_spill] sm:$0xff] }
 0x460   : > { %5392 = vmatpush.bf16.msrb.mxu1 %v12822_v28  ;;  %5418 = vmatpush.bf16.msrb.mxu3 %v12823_v56  ;;  %v12831_v56 = vld [vmem:[#allocation172_spill] sm:$0xff] }
 0x462   : > { %5381 = vmatpush.bf16.msrb.mxu0 %v12824_v21  ;;  %5407 = vmatpush.bf16.msrb.mxu2 %v12825_v10 }
 0x464   : > { %5393 = vmatpush.bf16.msrb.mxu1 %v12826_v43  ;;  %5419 = vmatpush.bf16.msrb.mxu3 %v12827_v35 }
 0x466   : > { %5382 = vmatpush.bf16.msrb.mxu0 %v12828_v9  ;;  %5408 = vmatpush.bf16.msrb.mxu2 %v11338_v14 }
 0x468   : > { %5394 = vmatpush.bf16.msrb.mxu1 %v12829_v45  ;;  %5420 = vmatpush.bf16.msrb.mxu3 %v12830_v15 }
 0x46a   : > { %5383 = vmatpush.bf16.msrb.mxu0 %v11355_v24  ;;  %5409 = vmatpush.bf16.msrb.mxu2 %v11365_v54 }
 0x46c   : > { %5395 = vmatpush.bf16.msrb.mxu1 %v12831_v56  ;;  %5421 = vmatpush.bf16.msrb.mxu3 %v11344_v18 }
 0x46e   : > { %5384 = vmatpush.bf16.msrb.mxu0 %v11379_v27  ;;  %5410 = vmatpush.bf16.msrb.mxu2 %v11385_v6 }
 0x470   : > { %5396 = vmatpush.bf16.msrb.mxu1 %v11363_v48  ;;  %5422 = vmatpush.bf16.msrb.mxu3 %v11371_v0 }
 0x471   : > { %5385 = vmatmul.bf16.vlgmr.msrb.gmra.mxu0 %v11587_v50  ;;  %5411 = vmatmul.bf16.vlgmr.msrb.gmra.mxu2 %v11587_v50  ;;  %v12832_v50 = vld [vmem:[#allocation46_spill] sm:$0xff] }
 0x472   : > { %5581 = vmatpush.bf16.msra.mxu0 %v10647_v51  ;;  %5607 = vmatpush.bf16.msra.mxu2 %v10651_v53 }
 0x474   : > { %5397 = vmatpush.bf16.msrb.mxu1 %v11383_v59  ;;  %5423 = vmatpush.bf16.msrb.mxu3 %v11388_v60  ;;  %v12878_v59 = vld [vmem:[#allocation114_spill] sm:$0xff] }
 0x476   : > { %5582 = vmatpush.bf16.msra.mxu0 %v10664_v39  ;;  %5608 = vmatpush.bf16.msra.mxu2 %v10670_v3  ;;  %v12888_v3 = vld [vmem:[#allocation185_spill] sm:$0xff] }
 0x477   : > { %5398 = vmatmul.bf16.vlgmr.msrb.gmra.mxu1 %v11593_v61  ;;  %5424 = vmatmul.bf16.vlgmr.msrb.gmra.mxu3 %v11593_v61  ;;  %v12833_v61 = vld [vmem:[#allocation48_spill] sm:$0xff] }
 0x478   : > { %5594 = vmatpush.bf16.msra.mxu1 %v10649_v52  ;;  %5620 = vmatpush.bf16.msra.mxu3 %v10656_v58 }
 0x47a   : > { %5583 = vmatpush.bf16.msra.mxu0 %v10684_v12  ;;  %5609 = vmatpush.bf16.msra.mxu2 %v10690_v13  ;;  %v12877_v13 = vld [vmem:[#allocation91_spill] sm:$0xff] }
 0x47c   : > { %5595 = vmatpush.bf16.msra.mxu1 %v10668_v2  ;;  %5621 = vmatpush.bf16.msra.mxu3 %v10676_v19 }
 0x47e   : > { %5584 = vmatpush.bf16.msra.mxu0 %v10704_v30  ;;  %5610 = vmatpush.bf16.msra.mxu2 %v10710_v32  ;;  %v12875_v30 = vld [vmem:[#allocation74_spill] sm:$0xff] }
 0x480   : > { %5596 = vmatpush.bf16.msra.mxu1 %v10688_v41  ;;  %5622 = vmatpush.bf16.msra.mxu3 %v10696_v17  ;;  %v12874_v41 = vld [vmem:[#allocation81_spill] sm:$0xff] }
 0x482   : > { %5585 = vmatpush.bf16.msra.mxu0 %v10728_v40  ;;  %5611 = vmatpush.bf16.msra.mxu2 %v10734_v20  ;;  %v12834_v20 = vld [vmem:[#allocation53_spill] sm:$0xff]  ;;  %v12873_v40 = vld [vmem:[#allocation79_spill] sm:$0xff] }
 0x484   : > { %5597 = vmatpush.bf16.msra.mxu1 %v10708_v16  ;;  %5623 = vmatpush.bf16.msra.mxu3 %v10717_v34  ;;  %v12835_v16 = vld [vmem:[#allocation55_spill] sm:$0xff]  ;;  %v12836_v34 = vld [vmem:[#allocation57_spill] sm:$0xff] }
 0x486   : > { %5586 = vmatpush.bf16.msra.mxu0 %v10748_v49  ;;  %5612 = vmatpush.bf16.msra.mxu2 %v10754_v55  ;;  %v12837_v49 = vld [vmem:[#allocation59_spill] sm:$0xff]  ;;  %v12838_v55 = vld [vmem:[#allocation50_spill] sm:$0xff] }
 0x488   : > { %5598 = vmatpush.bf16.msra.mxu1 %v10732_v38  ;;  %5624 = vmatpush.bf16.msra.mxu3 %v10740_v8  ;;  %v12839_v38 = vld [vmem:[#allocation52_spill] sm:$0xff]  ;;  %v12840_v8 = vld [vmem:[#allocation61_spill] sm:$0xff] }
 0x48a   : > { %5587 = vmatpush.bf16.msra.mxu0 %v10768_v7  ;;  %5613 = vmatpush.bf16.msra.mxu2 %v10776_v46  ;;  %v12841_v7 = vld [vmem:[#allocation63_spill] sm:$0xff]  ;;  %v12842_v46 = vld [vmem:[#allocation54_spill] sm:$0xff] }
 0x48c   : > { %5599 = vmatpush.bf16.msra.mxu1 %v12832_v50  ;;  %5625 = vmatpush.bf16.msra.mxu3 %v12833_v61  ;;  %v12843_v50 = vld [vmem:[#allocation56_spill] sm:$0xff]  ;;  %v12844_v61 = vld [vmem:[#allocation58_spill] sm:$0xff] }
 0x48e   : > { %5588 = vmatpush.bf16.msra.mxu0 %v12834_v20  ;;  %5614 = vmatpush.bf16.msra.mxu2 %v12835_v16  ;;  %v12845_v20 = vld [vmem:[#allocation60_spill] sm:$0xff]  ;;  %v12846_v16 = vld [vmem:[#allocation66_spill] sm:$0xff] }
 0x490   : > { %5600 = vmatpush.bf16.msra.mxu1 %v12838_v55  ;;  %5626 = vmatpush.bf16.msra.mxu3 %v12839_v38  ;;  %v12849_v55 = vld [vmem:[#allocation64_spill] sm:$0xff]  ;;  %v12850_v38 = vld [vmem:[#allocation71_spill] sm:$0xff] }
 0x492   : > { %5633 = vmatpush.bf16.msrb.mxu0 %v12836_v34  ;;  %5659 = vmatpush.bf16.msrb.mxu2 %v12837_v49  ;;  %v12847_v34 = vld [vmem:[#allocation68_spill] sm:$0xff]  ;;  %v12848_v49 = vld [vmem:[#allocation62_spill] sm:$0xff] }
 0x494   : > { %5601 = vmatpush.bf16.msra.mxu1 %v12842_v46  ;;  %5627 = vmatpush.bf16.msra.mxu3 %v12843_v50  ;;  %v12853_v46 = vld [vmem:[#allocation69_spill] sm:$0xff]  ;;  %v12854_v50 = vld [vmem:[#allocation76_spill] sm:$0xff] }
 0x496   : > { %5634 = vmatpush.bf16.msrb.mxu0 %v12840_v8  ;;  %5660 = vmatpush.bf16.msrb.mxu2 %v12841_v7  ;;  %v12851_v8 = vld [vmem:[#allocation73_spill] sm:$0xff]  ;;  %v12852_v7 = vld [vmem:[#allocation67_spill] sm:$0xff] }
 0x498   : > { %5646 = vmatpush.bf16.msrb.mxu1 %v12844_v61  ;;  %5672 = vmatpush.bf16.msrb.mxu3 %v12845_v20  ;;  %v12855_v61 = vld [vmem:[#allocation78_spill] sm:$0xff]  ;;  %v12856_v20 = vld [vmem:[#allocation72_spill] sm:$0xff] }
 0x49a   : > { %5635 = vmatpush.bf16.msrb.mxu0 %v12846_v16  ;;  %5661 = vmatpush.bf16.msrb.mxu2 %v12847_v34  ;;  %v12857_v16 = vld [vmem:[#allocation75_spill] sm:$0xff] }
 0x49b   : > { %v12858_v34 = vld [vmem:[#allocation83_spill] sm:$0xff] }
 0x49c   : > { %5647 = vmatpush.bf16.msrb.mxu1 %v12848_v49  ;;  %5673 = vmatpush.bf16.msrb.mxu3 %v12849_v55  ;;  %v12859_v49 = vld [vmem:[#allocation85_spill] sm:$0xff] }
 0x49d   : > { %v12860_v55 = vld [vmem:[#allocation77_spill] sm:$0xff] }
 0x49e   : > { %5636 = vmatpush.bf16.msrb.mxu0 %v12850_v38  ;;  %5662 = vmatpush.bf16.msrb.mxu2 %v12851_v8  ;;  %v12861_v38 = vld [vmem:[#allocation80_spill] sm:$0xff]  ;;  %v12862_v8 = vld [vmem:[#allocation87_spill] sm:$0xff] }
 0x4a0   : > { %5648 = vmatpush.bf16.msrb.mxu1 %v12852_v7  ;;  %5674 = vmatpush.bf16.msrb.mxu3 %v12853_v46  ;;  %v12863_v7 = vld [vmem:[#allocation90_spill] sm:$0xff]  ;;  %v12864_v46 = vld [vmem:[#allocation84_spill] sm:$0xff] }
 0x4a2   : > { %5637 = vmatpush.bf16.msrb.mxu0 %v12854_v50  ;;  %5663 = vmatpush.bf16.msrb.mxu2 %v12855_v61  ;;  %v12865_v50 = vld [vmem:[#allocation86_spill] sm:$0xff] }
 0x4a3   : > { %v12866_v61 = vld [vmem:[#allocation94_spill] sm:$0xff] }
 0x4a4   : > { %5649 = vmatpush.bf16.msrb.mxu1 %v12856_v20  ;;  %5675 = vmatpush.bf16.msrb.mxu3 %v12857_v16  ;;  %v12867_v20 = vld [vmem:[#allocation96_spill] sm:$0xff]  ;;  %v12868_v16 = vld [vmem:[#allocation89_spill] sm:$0xff] }
 0x4a6   : > { %5638 = vmatpush.bf16.msrb.mxu0 %v12858_v34  ;;  %5664 = vmatpush.bf16.msrb.mxu2 %v12859_v49  ;;  %v12869_v34 = vld [vmem:[#allocation92_spill] sm:$0xff]  ;;  %v12870_v49 = vld [vmem:[#allocation95_spill] sm:$0xff] }
 0x4a8   : > { %5650 = vmatpush.bf16.msrb.mxu1 %v12860_v55  ;;  %5676 = vmatpush.bf16.msrb.mxu3 %v12861_v38  ;;  %v12871_v55 = vld [vmem:[#allocation97_spill] sm:$0xff] }
 0x4aa   : > { %5639 = vmatpush.bf16.msrb.mxu0 %v12862_v8  ;;  %5665 = vmatpush.bf16.msrb.mxu2 %v12863_v7  ;;  %v12872_v8 = vld [vmem:[#allocation65_spill] sm:$0xff] }
 0x4ab   : > { %v3880_v7 = vadd.f32 %v12873_v40, %v12872_v8 }
 0x4ac   : > { %5651 = vmatpush.bf16.msrb.mxu1 %v12864_v46  ;;  %5677 = vmatpush.bf16.msrb.mxu3 %v12865_v50 }
 0x4ad   : > { %v5230_v38 = vpop.f32.mrf.mxu0  ;;  %v3899_v50 = vadd.f32 %v12874_v41, %v3880_v7  ;;  %v12879_v41 = vld [vmem:[#allocation129_spill] sm:$0xff] }
 0x4ae   : > { %5640 = vmatpush.bf16.msrb.mxu0 %v12866_v61  ;;  %5666 = vmatpush.bf16.msrb.mxu2 %v12867_v20  ;;  %v12876_v20 = vld [vmem:[#allocation88_spill] sm:$0xff] }
 0x4af   : > { %v3918_v19 = vadd.f32 %v12876_v20, %v12875_v30 }
 0x4b0   : > { %5652 = vmatpush.bf16.msrb.mxu1 %v12868_v16  ;;  %5678 = vmatpush.bf16.msrb.mxu3 %v12869_v34 }
 0x4b3   : > { %v5256_v17 = vpop.f32.mrf.mxu2 }
 0x4b4   : > { %5653 = vmatpush.bf16.msrb.mxu1 %v12870_v49  ;;  %5679 = vmatpush.bf16.msrb.mxu3 %v12871_v55  ;;  %v5243_v46 = vpop.f32.mrf.mxu1  ;;  %v3937_v49 = vadd.f32 %v12877_v13, %v3918_v19 }
 0x4b5   : > { %v5244_v32 = vadd.f32 %v5243_v46, %v5230_v38  ;;  %v5232_v61 = vpop.f32.mrf.mxu0  ;;  %v3956_v38 = vadd.f32 %v12879_v41, %v12878_v59 }
 0x4b7   : > { %v5429_v16 = vadd.f32 %v5244_v32, %v3899_v50 }
 0x4b9   : > { %v8778_v2 = vmul.f32 -1.442695, %v5429_v16  ;;  %v12880_v16 = vld [vmem:[#allocation131_spill] sm:$0xff] }
 0x4ba   : > { %v5269_v34 = vpop.f32.mrf.mxu3  ;;  %v3975_v50 = vadd.f32 %v12880_v16, %v3956_v38 }
 0x4bb   : > { %9496 = vpow2.f32 %v8778_v2  ;;  %v5270_v55 = vadd.f32 %v5269_v34, %v5256_v17  ;;  %v5258_v12 = vpop.f32.mrf.mxu2 }
 0x4bc   : > { %v5245_v58 = vpop.f32.mrf.mxu1  ;;  %v12881_v12 = vld [vmem:[#allocation122_spill] sm:$0xff] }
 0x4bd   : > { %v5430_v52 = vadd.f32 %v5270_v55, %v3937_v49  ;;  %v12882_v58 = vld [vmem:[#allocation137_spill] sm:$0xff] }
 0x4be   : > { %v5282_v40 = vpop.f32.mrf.mxu0  ;;  %v3994_v17 = vadd.f32 %v12882_v58, %v12881_v12  ;;  %v12885_v58 = vld [vmem:[#allocation175_spill] sm:$0xff] }
 0x4bf   : > { %v8779_v8 = vmul.f32 -1.442695, %v5430_v52 }
 0x4c1   : > { %v9497_v60 = vpop.eup %9496  ;;  %9498 = vpow2.f32 %v8779_v8 }
 0x4c2   : > { %v5443_v7 = vadd.f32 1.0, %v9497_v60  ;;  %v5271_v46 = vpop.f32.mrf.mxu3  ;;  %v12883_v60 = vld [vmem:[#allocation139_spill] sm:$0xff] }
 0x4c3   : > { %v4013_v61 = vadd.f32 %v12883_v60, %v3994_v17 }
 0x4c4   : > { %v5295_v20 = vpop.f32.mrf.mxu1  ;;  %v5308_v32 = vpop.f32.mrf.mxu2  ;;  %9500 = vrcp.f32 %v5443_v7  ;;  %vm5450_vm11 = vweird.f32 %v5443_v7 }
 0x4c5   : > { %v5296_v19 = vadd.f32 %v5295_v20, %v5282_v40 }
 0x4c6   : > { %v5284_v2 = vpop.f32.mrf.mxu0 }
 0x4c7   : > { %v9499_v13 = vpop.eup %9498  ;;  %v5431_v34 = vadd.f32 %v5296_v19, %v3975_v50 }
 0x4c8   : > { %v11746_v52 = vadd.f32 1.0, %v9499_v13  ;;  %v12884_v13 = vld [vmem:[#allocation160_spill] sm:$0xff] }
 0x4c9   : > { %v8780_v49 = vmul.f32 -1.442695, %v5431_v34  ;;  %v4032_v34 = vadd.f32 %v12885_v58, %v12884_v13  ;;  %v5456_v13 = vand.u32 2147483648, %v5443_v7 }
 0x4ca   : > { %9502 = vrcp.f32 %v11746_v52  ;;  %v5321_v8 = vpop.f32.mrf.mxu3  ;;  %v11749_v55 = vpop.eup %9500  ;;  %vm5465_vm0 = vweird.f32 %v11746_v52 }
 0x4cb   : > { %9504 = vpow2.f32 %v8780_v49  ;;  %v5322_v41 = vadd.f32 %v5321_v8, %v5308_v32  ;;  %v5446_v20 = vmul.f32 %v11749_v55, %v5443_v7  ;;  %v12886_v8 = vld [vmem:[#allocation177_spill] sm:$0xff]  ;;  %vm5451_vm10 = vweird.f32 %v11749_v55 }
 0x4cc   : > { %v5297_v38 = vpop.f32.mrf.mxu1  ;;  %v5310_v40 = vpop.f32.mrf.mxu2  ;;  %v4051_v60 = vadd.f32 %v12886_v8, %v4032_v34  ;;  %vm11770_vm12 = vmor %vm5450_vm11, %vm5451_vm10 }
 0x4cd   : > { %v5432_v46 = vadd.f32 %v5322_v41, %v4013_v61  ;;  %v5447_v12 = vsub.f32 1.0, %v5446_v20 }
 0x4ce   : > { %v5334_v16 = vpop.f32.mrf.mxu0 }
 0x4cf   : > { %v8781_v2 = vmul.f32 -1.442695, %v5432_v46  ;;  %v5448_v41 = vmul.f32 %v11749_v55, %v5447_v12 }
 0x4d0   : > { %v11753_v50 = vpop.eup %9502 }
 0x4d1   : > { %v9505_v19 = vpop.eup %9504  ;;  %9506 = vpow2.f32 %v8781_v2  ;;  %v5461_v32 = vmul.f32 %v11753_v50, %v11746_v52  ;;  %v12887_v2 = vld [vmem:[#allocation170_spill] sm:$0xff]  ;;  %v5449_v0 = vadd.f32 %v11749_v55, %v5448_v41  ;;  %v5457_v41 = vor.u32 1.1754944e-38, %v5456_v13 }
 0x4d2   : > { %v5481_v59 = vadd.f32 1.0, %v9505_v19  ;;  %v5323_v30 = vpop.f32.mrf.mxu3  ;;  %v4070_v58 = vadd.f32 %v12888_v3, %v12887_v2  ;;  %v5454_v19 = vand.u32 2147483647, %v5443_v7  ;;  %vm5466_vm14 = vweird.f32 %v11753_v50  ;;  %v12926_v2 = vld [vmem:[#allocation157_spill] sm:$0xff] }
 0x4d3   : > { %v5462_v46 = vsub.f32 1.0, %v5461_v32  ;;  %v12889_v32 = vld [vmem:[#allocation186_spill] sm:$0xff]  ;;  %v5471_v13 = vand.u32 2147483648, %v11746_v52  ;;  %vm11791_vm2 = vmor %vm5465_vm0, %vm5466_vm14 }
 0x4d4   : > { %9508 = vrcp.f32 %v5481_v59  ;;  %v5360_v17 = vpop.f32.mrf.mxu2  ;;  %v5347_v49 = vpop.f32.mrf.mxu1  ;;  %vm11774_vm13 = vcmp.eq.f32.partialorder %v5454_v19, 8.507059e+37  ;;  %v5469_v19 = vand.u32 2147483647, %v11746_v52  ;;  %vm5488_vm1 = vweird.f32 %v5481_v59 }
 0x4d5   : > { %v5348_v61 = vadd.f32 %v5347_v49, %v5334_v16  ;;  %v5463_v34 = vmul.f32 %v11753_v50, %v5462_v46  ;;  %v4089_v49 = vadd.f32 %v12889_v32, %v4070_v58  ;;  %v5453_v46 = vsel %vm11770_vm12, %v11749_v55, %v5449_v0 }
 0x4d6   : > { %v5336_v38 = vpop.f32.mrf.mxu0  ;;  %v5458_v55 = vsel %vm11774_vm13, %v5457_v41, %v5453_v46  ;;  %vm5470_vm5 = vcmp.eq.f32.partialorder %v5469_v19, 8.507059e+37 }
 0x4d7   : > { %v9507_v40 = vpop.eup %9506  ;;  %v5433_v30 = vadd.f32 %v5348_v61, %v4051_v60 }
 0x4d8   : > { %v11763_v20 = vadd.f32 1.0, %v9507_v40 }
 0x4da   : > { %v9509_v39 = vpop.eup %9508  ;;  %9510 = vrcp.f32 %v11763_v20  ;;  %v5373_v12 = vpop.f32.mrf.mxu3  ;;  %v5509_v38 = vand.u32 2147483648, %v11763_v20  ;;  %vm5503_vm7 = vweird.f32 %v11763_v20 }
 0x4db   : > { %v5484_v16 = vmul.f32 %v9509_v39, %v5481_v59  ;;  %9512 = vtanh.f32 %v5433_v30  ;;  %v5374_v3 = vadd.f32 %v5373_v12, %v5360_v17  ;;  %v5494_v30 = vand.u32 2147483648, %v5481_v59 }
 0x4dc   : > { %v5362_v8 = vpop.f32.mrf.mxu2  ;;  %v5349_v40 = vpop.f32.mrf.mxu1  ;;  %vm5489_vm15 = vweird.f32 %v9509_v39  ;;  %v5492_v17 = vand.u32 2147483647, %v5481_v59 }
 0x4dd   : > { %v5485_v60 = vsub.f32 1.0, %v5484_v16  ;;  %v5434_v58 = vadd.f32 %v5374_v3, %v4089_v49  ;;  %v5464_v16 = vadd.f32 %v11753_v50, %v5463_v34  ;;  %vm5490_vm3 = vmor %vm5488_vm1, %vm5489_vm15  ;;  %v5495_v3 = vor.u32 1.1754944e-38, %v5494_v30  ;;  %v12897_v34 = vld [vmem:[#allocation195_spill] sm:$0xff] }
 0x4de   : > { %vm5493_vm4 = vcmp.eq.f32.partialorder %v5492_v17, 8.507059e+37  ;;  %v5472_v40 = vor.u32 1.1754944e-38, %v5471_v13  ;;  %v5507_v30 = vand.u32 2147483647, %v11763_v20 }
 0x4df   : > { %v5486_v7 = vmul.f32 %v9509_v39, %v5485_v60  ;;  %9514 = vtanh.f32 %v5434_v58  ;;  %v5468_v59 = vsel %vm11791_vm2, %v11753_v50, %v5464_v16  ;;  %v5510_v16 = vor.u32 1.1754944e-38, %v5509_v38 }
 0x4e0   : > { %v9511_v12 = vpop.eup %9510  ;;  %vm5508_vm9 = vcmp.eq.f32.partialorder %v5507_v30, 8.507059e+37  ;;  %v12901_v30 = vld [vmem:[#allocation198_spill] sm:$0xff] }
 0x4e1   : > { %v9513_v32 = vpop.eup %9512  ;;  %v5499_v0 = vmul.f32 %v9511_v12, %v11763_v20  ;;  %v5487_v49 = vadd.f32 %v9509_v39, %v5486_v7  ;;  %vm5504_vm6 = vweird.f32 %v9511_v12  ;;  %v12898_v20 = vld [vmem:[#allocation196_spill] sm:$0xff] }
 0x4e2   : > { %v5555_v8 = vmul.f32 %v9513_v32, %v5458_v55  ;;  %v5375_v61 = vpop.f32.mrf.mxu3  ;;  %v5473_v32 = vsel %vm5470_vm5, %v5472_v40, %v5468_v59  ;;  %vm5505_vm8 = vmor %vm5503_vm7, %vm5504_vm6  ;;  %v12900_v40 = vld [vmem:[#allocation197_spill] sm:$0xff] }
 0x4e3   : > { %v5500_v60 = vsub.f32 1.0, %v5499_v0  ;;  %v5491_v52 = vsel %vm5490_vm3, %v9509_v39, %v5487_v49 }
 0x4e4   : > { %v5496_v41 = vsel %vm5493_vm4, %v5495_v3, %v5491_v52 }
 0x4e5   : > { %v5501_v46 = vmul.f32 %v9511_v12, %v5500_v60  ;;  %v5553_v58 = vmul.f32 %v5496_v41, %v11574_v44  ;;  %v9515_v7 = vpop.eup %9514  ;;  %v12896_v44 = vld [vmem:[#allocation192_spill] sm:$0xff]  ;;  %v12899_v41 = vld [vmem:[#allocation194_spill] sm:$0xff] }
 0x4e6   : > { %v5556_v50 = vmul.f32 %v9515_v7, %v5473_v32  ;;  %v4108_v3 = vadd.f32 %v12897_v34, %v12896_v44  ;;  %v4146_v38 = vadd.f32 %v12900_v40, %v12899_v41  ;;  %v12924_v41 = vld [vmem:[#allocation146_spill] sm:$0xff]  ;;  %v12925_v44 = vld [vmem:[#allocation153_spill] sm:$0xff] }
 0x4e7   : > { %v11802_v39 = vadd.f32 %v5555_v8, %v5553_v58  ;;  %v5502_v17 = vadd.f32 %v9511_v12, %v5501_v46 }
 0x4e8   : > { %v4127_v8 = vadd.f32 %v12898_v20, %v4108_v3 }
 0x4e9   : > { %v5506_v0 = vsel %vm5505_vm8, %v9511_v12, %v5502_v17 }
 0x4ea   : > { %v5511_v19 = vsel %vm5508_vm9, %v5510_v16, %v5506_v0 }
 0x4eb   : > { %v5554_v13 = vmul.f32 %v5511_v19, %v11581_v37  ;;  %v4165_v37 = vadd.f32 %v12901_v30, %v4146_v38 }
 0x4ed   : > { %v11805_v49 = vadd.f32 %v5556_v50, %v5554_v13 }
 0x4ee   : > { %v5386_v55 = vpop.f32.mrf.mxu0 }
 0x4f4   : > { %v5399_v60 = vpop.f32.mrf.mxu1  ;;  %v5412_v52 = vpop.f32.mrf.mxu2 }
 0x4f5   : > { %v5400_v59 = vadd.f32 %v5399_v60, %v5386_v55 }
 0x4f6   : > { %v5388_v61 = vpop.f32.mrf.mxu0 }
 0x4f7   : > { %v5435_v12 = vadd.f32 %v5400_v59, %v4127_v8 }
 0x4f9   : > { %v8782_v46 = vmul.f32 -1.442695, %v5435_v12 }
 0x4fa   : > { %v5425_v58 = vpop.f32.mrf.mxu3 }
 0x4fb   : > { %9516 = vpow2.f32 %v8782_v46  ;;  %v5426_v7 = vadd.f32 %v5425_v58, %v5412_v52 }
 0x4fc   : > { %v5401_v32 = vpop.f32.mrf.mxu1  ;;  %v5414_v17 = vpop.f32.mrf.mxu2 }
 0x4fd   : > { %v5436_v50 = vadd.f32 %v5426_v7, %v4165_v37 }
 0x4ff   : > { %v8783_v16 = vmul.f32 -1.442695, %v5436_v50 }
 0x501   : > { %v9517_v0 = vpop.eup %9516  ;;  %9518 = vpow2.f32 %v8783_v16 }
 0x502   : > { %v5521_v19 = vadd.f32 1.0, %v9517_v0  ;;  %v5427_v13 = vpop.f32.mrf.mxu3 }
 0x504   : > { %9520 = vrcp.f32 %v5521_v19  ;;  %v5534_v8 = vand.u32 2147483648, %v5521_v19  ;;  %v5532_v52 = vand.u32 2147483647, %v5521_v19  ;;  %vm5528_vm11 = vweird.f32 %v5521_v19 }
 0x506   : > { %v5535_v12 = vor.u32 1.1754944e-38, %v5534_v8  ;;  %vm5533_vm13 = vcmp.eq.f32.partialorder %v5532_v52, 8.507059e+37  ;;  %v12903_v8 = vld [vmem:[#allocation117_spill] sm:$0xff]  ;;  %v12905_v52 = vld [vmem:[#allocation126_spill] sm:$0xff] }
 0x507   : > { %v9519_v55 = vpop.eup %9518 }
 0x508   : > { %v5522_v34 = vadd.f32 1.0, %v9519_v55 }
 0x50a   : > { %v9521_v3 = vpop.eup %9520  ;;  %9522 = vrcp.f32 %v5522_v34  ;;  %v5549_v7 = vand.u32 2147483648, %v5522_v34  ;;  %v5547_v50 = vand.u32 2147483647, %v5522_v34  ;;  %vm5543_vm15 = vweird.f32 %v5522_v34 }
 0x50b   : > { %v5524_v60 = vmul.f32 %v9521_v3, %v5521_v19  ;;  %9524 = vtanh.f32 %v11802_v39  ;;  %vm5529_vm10 = vweird.f32 %v9521_v3 }
 0x50c   : > { %vm5530_vm12 = vmor %vm5528_vm11, %vm5529_vm10  ;;  %9526 = vtanh.f32 %v11805_v49  ;;  %v5550_v19 = vor.u32 1.1754944e-38, %v5549_v7  ;;  %vm5548_vm1 = vcmp.eq.f32.partialorder %v5547_v50, 8.507059e+37  ;;  %v12914_v7 = vld [vmem:[#allocation141_spill] sm:$0xff]  ;;  %v12917_v50 = vld [vmem:[#allocation134_spill] sm:$0xff] }
 0x50d   : > { %v5525_v20 = vsub.f32 1.0, %v5524_v60 }
 0x50f   : > { %v5526_v59 = vmul.f32 %v9521_v3, %v5525_v20 }
 0x510   : > { %v9523_v61 = vpop.eup %9522 }
 0x511   : > { %v5527_v40 = vadd.f32 %v9521_v3, %v5526_v59  ;;  %v5539_v38 = vmul.f32 %v9523_v61, %v5522_v34  ;;  %v9525_v30 = vpop.eup %9524  ;;  %vm5544_vm14 = vweird.f32 %v9523_v61  ;;  %v12902_v34 = vld [vmem:[#allocation124_spill] sm:$0xff]  ;;  %v12904_v59 = vld [vmem:[#allocation119_spill] sm:$0xff] }
 0x512   : > { %vm5545_vm0 = vmor %vm5543_vm15, %vm5544_vm14  ;;  %v9527_v55 = vpop.eup %9526 }
 0x513   : > { %v5531_v46 = vsel %vm5530_vm12, %v9521_v3, %v5527_v40  ;;  %v5540_v58 = vsub.f32 1.0, %v5539_v38  ;;  %v12907_v40 = vld [vmem:[#allocation123_spill] sm:$0xff]  ;;  %v12908_v38 = vld [vmem:[#allocation125_spill] sm:$0xff] }
 0x514   : > { %v5536_v37 = vsel %vm5533_vm13, %v5535_v12, %v5531_v46  ;;  %v12909_v12 = vld [vmem:[#allocation133_spill] sm:$0xff]  ;;  %v12910_v46 = vld [vmem:[#allocation135_spill] sm:$0xff] }
 0x515   : > { %v5561_v32 = vmul.f32 %v9525_v30, %v5536_v37  ;;  %v5541_v17 = vmul.f32 %v9523_v61, %v5540_v58  ;;  %v12911_v58 = vld [vmem:[#allocation127_spill] sm:$0xff]  ;;  %v12912_v30 = vld [vmem:[#allocation130_spill] sm:$0xff] }
 0x516   : > { %v12913_v37 = vld [vmem:[#allocation138_spill] sm:$0xff] }
 0x517   : > { %5566 = vst [vmem:[#allocation13 + $0x10] sm:$0xff] %v5561_v32  ;;  %v11815_v16 = vpack.c.bf16 %v5561_v32, %v5561_v32  ;;  %v5542_v0 = vadd.f32 %v9523_v61, %v5541_v17  ;;  %v12915_v32 = vld [vmem:[#allocation143_spill] sm:$0xff]  ;;  %v12916_v17 = vld [vmem:[#allocation145_spill] sm:$0xff] }
 0x519   : > { %v5546_v13 = vsel %vm5545_vm0, %v9523_v61, %v5542_v0  ;;  %5589 = vmatmul.bf16.vlgmr.msra.gmra.mxu0 %v11815_v16  ;;  %5615 = vmatmul.bf16.vlgmr.msra.gmra.mxu2 %v11815_v16  ;;  %v12906_v61 = vld [vmem:[#allocation128_spill] sm:$0xff] }
 0x51a   : > { %v5551_v3 = vsel %vm5548_vm1, %v5550_v19, %v5546_v13  ;;  %5685 = vmatpush.bf16.msra.mxu0 %v12779_v31  ;;  %5711 = vmatpush.bf16.msra.mxu2 %v12780_v57  ;;  %v12918_v0 = vld [vmem:[#allocation136_spill] sm:$0xff]  ;;  %v12920_v13 = vld [vmem:[#allocation150_spill] sm:$0xff] }
 0x51b   : > { %v5562_v60 = vmul.f32 %v9527_v55, %v5551_v3  ;;  %v12919_v19 = vld [vmem:[#allocation148_spill] sm:$0xff]  ;;  %v12922_v3 = vld [vmem:[#allocation142_spill] sm:$0xff] }
 0x51c   : > { %v12921_v55 = vld [vmem:[#allocation140_spill] sm:$0xff] }
 0x51d   : > { %5567 = vst [vmem:[#allocation13 + $0x18] sm:$0xff] %v5562_v60  ;;  %v11821_v20 = vpack.c.bf16 %v5562_v60, %v5562_v60  ;;  %v12923_v60 = vld [vmem:[#allocation144_spill] sm:$0xff] }
 0x51e   : > { %5686 = vmatpush.bf16.msra.mxu0 %v12781_v4  ;;  %5712 = vmatpush.bf16.msra.mxu2 %v12782_v11 }
 0x51f   : > { %5602 = vmatmul.bf16.vlgmr.msra.gmra.mxu1 %v11821_v20  ;;  %5628 = vmatmul.bf16.vlgmr.msra.gmra.mxu3 %v11821_v20 }
 0x520   : > { %5698 = vmatpush.bf16.msra.mxu1 %v12783_v36  ;;  %5724 = vmatpush.bf16.msra.mxu3 %v12784_v29 }
 0x522   : > { %5687 = vmatpush.bf16.msra.mxu0 %v12785_v62  ;;  %5713 = vmatpush.bf16.msra.mxu2 %v12786_v1 }
 0x524   : > { %5699 = vmatpush.bf16.msra.mxu1 %v12787_v42  ;;  %5725 = vmatpush.bf16.msra.mxu3 %v12788_v5 }
 0x526   : > { %5688 = vmatpush.bf16.msra.mxu0 %v12789_v26  ;;  %5714 = vmatpush.bf16.msra.mxu2 %v12790_v22 }
 0x528   : > { %5700 = vmatpush.bf16.msra.mxu1 %v12791_v25  ;;  %5726 = vmatpush.bf16.msra.mxu3 %v12792_v63 }
 0x529   : > { %5641 = vmatmul.bf16.vlgmr.msrb.gmra.mxu0 %v11815_v16  ;;  %5667 = vmatmul.bf16.vlgmr.msrb.gmra.mxu2 %v11815_v16 }
 0x52a   : > { %5689 = vmatpush.bf16.msra.mxu0 %v12793_v33  ;;  %5715 = vmatpush.bf16.msra.mxu2 %v12902_v34 }
 0x52c   : > { %5701 = vmatpush.bf16.msra.mxu1 %v12903_v8  ;;  %5727 = vmatpush.bf16.msra.mxu3 %v12904_v59 }
 0x52e   : > { %5690 = vmatpush.bf16.msra.mxu0 %v12905_v52  ;;  %5716 = vmatpush.bf16.msra.mxu2 %v12906_v61 }
 0x52f   : > { %5654 = vmatmul.bf16.vlgmr.msrb.gmra.mxu1 %v11821_v20  ;;  %5680 = vmatmul.bf16.vlgmr.msrb.gmra.mxu3 %v11821_v20 }
 0x530   : > { %5702 = vmatpush.bf16.msra.mxu1 %v12907_v40  ;;  %5728 = vmatpush.bf16.msra.mxu3 %v12908_v38 }
 0x532   : > { %5691 = vmatpush.bf16.msra.mxu0 %v12909_v12  ;;  %5717 = vmatpush.bf16.msra.mxu2 %v12910_v46 }
 0x534   : > { %5703 = vmatpush.bf16.msra.mxu1 %v12911_v58  ;;  %5729 = vmatpush.bf16.msra.mxu3 %v12912_v30 }
 0x536   : > { %5692 = vmatpush.bf16.msra.mxu0 %v12913_v37  ;;  %5718 = vmatpush.bf16.msra.mxu2 %v12914_v7 }
 0x538   : > { %5704 = vmatpush.bf16.msra.mxu1 %v12917_v50  ;;  %5730 = vmatpush.bf16.msra.mxu3 %v12918_v0 }
 0x539   : > { %5693 = vmatmul.bf16.vlgmr.msra.gmra.mxu0 %v11815_v16  ;;  %5719 = vmatmul.bf16.vlgmr.msra.gmra.mxu2 %v11815_v16 }
 0x53a   : > { %5737 = vmatpush.bf16.msrb.mxu0 %v12915_v32  ;;  %5763 = vmatpush.bf16.msrb.mxu2 %v12916_v17 }
 0x53c   : > { %5705 = vmatpush.bf16.msra.mxu1 %v12921_v55  ;;  %5731 = vmatpush.bf16.msra.mxu3 %v12922_v3 }
 0x53e   : > { %5738 = vmatpush.bf16.msrb.mxu0 %v12919_v19  ;;  %5764 = vmatpush.bf16.msrb.mxu2 %v12920_v13  ;;  %v12927_v19 = vld [vmem:[#allocation151_spill] sm:$0xff] }
 0x53f   : > { %5706 = vmatmul.bf16.vlgmr.msra.gmra.mxu1 %v11821_v20  ;;  %5732 = vmatmul.bf16.vlgmr.msra.gmra.mxu3 %v11821_v20  ;;  %v12928_v13 = vld [vmem:[#allocation159_spill] sm:$0xff] }
 0x540   : > { %5750 = vmatpush.bf16.msrb.mxu1 %v12923_v60  ;;  %5776 = vmatpush.bf16.msrb.mxu3 %v12924_v41  ;;  %v12929_v60 = vld [vmem:[#allocation158_spill] sm:$0xff] }
 0x542   : > { %5739 = vmatpush.bf16.msrb.mxu0 %v12925_v44  ;;  %5765 = vmatpush.bf16.msrb.mxu2 %v12926_v2 }
 0x544   : > { %5751 = vmatpush.bf16.msrb.mxu1 %v12818_v47  ;;  %5777 = vmatpush.bf16.msrb.mxu3 %v12927_v19  ;;  %v13004_v47 = vld [vmem:[#allocation190_spill] sm:$0xff] }
 0x546   : > { %5740 = vmatpush.bf16.msrb.mxu0 %v12928_v13  ;;  %5766 = vmatpush.bf16.msrb.mxu2 %v12821_v23 }
 0x548   : > { %5752 = vmatpush.bf16.msrb.mxu1 %v12822_v28  ;;  %5778 = vmatpush.bf16.msrb.mxu3 %v12929_v60 }
 0x54a   : > { %5741 = vmatpush.bf16.msrb.mxu0 %v12824_v21  ;;  %5767 = vmatpush.bf16.msrb.mxu2 %v12825_v10 }
 0x54c   : > { %5753 = vmatpush.bf16.msrb.mxu1 %v12826_v43  ;;  %5779 = vmatpush.bf16.msrb.mxu3 %v12827_v35 }
 0x54e   : > { %5742 = vmatpush.bf16.msrb.mxu0 %v12828_v9  ;;  %5768 = vmatpush.bf16.msrb.mxu2 %v11338_v14 }
 0x550   : > { %5754 = vmatpush.bf16.msrb.mxu1 %v12829_v45  ;;  %5780 = vmatpush.bf16.msrb.mxu3 %v12830_v15  ;;  %v12930_v45 = vld [vmem:[#allocation180_spill] sm:$0xff] }
 0x552   : > { %5743 = vmatpush.bf16.msrb.mxu0 %v11355_v24  ;;  %5769 = vmatpush.bf16.msrb.mxu2 %v11365_v54  ;;  %v12931_v54 = vld [vmem:[#allocation29_spill] sm:$0xff] }
 0x554   : > { %5755 = vmatpush.bf16.msrb.mxu1 %v12831_v56  ;;  %5781 = vmatpush.bf16.msrb.mxu3 %v11344_v18  ;;  %v12932_v56 = vld [vmem:[#allocation31_spill] sm:$0xff]  ;;  %v12933_v18 = vld [vmem:[#allocation182_spill] sm:$0xff] }
 0x556   : > { %5744 = vmatpush.bf16.msrb.mxu0 %v11379_v27  ;;  %5770 = vmatpush.bf16.msrb.mxu2 %v11385_v6  ;;  %v12934_v27 = vld [vmem:[#allocation184_spill] sm:$0xff]  ;;  %v12935_v6 = vld [vmem:[#allocation27_spill] sm:$0xff] }
 0x558   : > { %5756 = vmatpush.bf16.msrb.mxu1 %v11363_v48  ;;  %5782 = vmatpush.bf16.msrb.mxu3 %v12930_v45  ;;  %v12938_v45 = vld [vmem:[#allocation35_spill] sm:$0xff] }
 0x559   : > { %5745 = vmatmul.bf16.vlgmr.msrb.gmra.mxu0 %v11815_v16  ;;  %5771 = vmatmul.bf16.vlgmr.msrb.gmra.mxu2 %v11815_v16  ;;  %v12939_v16 = vld [vmem:[#allocation30_spill] sm:$0xff]  ;;  %v12946_v48 = vld [vmem:[#allocation43_spill] sm:$0xff] }
 0x55a   : > { %5941 = vmatpush.bf16.msra.mxu0 %v10647_v51  ;;  %5967 = vmatpush.bf16.msra.mxu2 %v10651_v53  ;;  %v12936_v51 = vld [vmem:[#allocation28_spill] sm:$0xff]  ;;  %v12937_v53 = vld [vmem:[#allocation33_spill] sm:$0xff] }
 0x55c   : > { %5757 = vmatpush.bf16.msrb.mxu1 %v12933_v18  ;;  %5783 = vmatpush.bf16.msrb.mxu3 %v12934_v27  ;;  %v12942_v18 = vld [vmem:[#allocation39_spill] sm:$0xff]  ;;  %v12943_v27 = vld [vmem:[#allocation34_spill] sm:$0xff] }
 0x55e   : > { %5942 = vmatpush.bf16.msra.mxu0 %v12931_v54  ;;  %5968 = vmatpush.bf16.msra.mxu2 %v12932_v56  ;;  %v12940_v54 = vld [vmem:[#allocation32_spill] sm:$0xff]  ;;  %v12941_v56 = vld [vmem:[#allocation37_spill] sm:$0xff] }
 0x55f   : > { %5758 = vmatmul.bf16.vlgmr.msrb.gmra.mxu1 %v11821_v20  ;;  %5784 = vmatmul.bf16.vlgmr.msrb.gmra.mxu3 %v11821_v20  ;;  %v12947_v20 = vld [vmem:[#allocation38_spill] sm:$0xff] }
 0x560   : > { %5954 = vmatpush.bf16.msra.mxu1 %v12935_v6  ;;  %5980 = vmatpush.bf16.msra.mxu3 %v12936_v51  ;;  %v12944_v6 = vld [vmem:[#allocation36_spill] sm:$0xff]  ;;  %v12945_v51 = vld [vmem:[#allocation41_spill] sm:$0xff] }
 0x562   : > { %5943 = vmatpush.bf16.msra.mxu0 %v12937_v53  ;;  %5969 = vmatpush.bf16.msra.mxu2 %v12938_v45  ;;  %v12948_v53 = vld [vmem:[#allocation40_spill] sm:$0xff]  ;;  %v12949_v45 = vld [vmem:[#allocation45_spill] sm:$0xff] }
 0x564   : > { %5955 = vmatpush.bf16.msra.mxu1 %v12939_v16  ;;  %5981 = vmatpush.bf16.msra.mxu3 %v12940_v54  ;;  %v12950_v16 = vld [vmem:[#allocation47_spill] sm:$0xff]  ;;  %v12951_v54 = vld [vmem:[#allocation42_spill] sm:$0xff] }
 0x566   : > { %5944 = vmatpush.bf16.msra.mxu0 %v12941_v56  ;;  %5970 = vmatpush.bf16.msra.mxu2 %v12942_v18  ;;  %v12952_v56 = vld [vmem:[#allocation44_spill] sm:$0xff]  ;;  %v12953_v18 = vld [vmem:[#allocation49_spill] sm:$0xff] }
 0x568   : > { %5956 = vmatpush.bf16.msra.mxu1 %v12943_v27  ;;  %5982 = vmatpush.bf16.msra.mxu3 %v12944_v6  ;;  %v12954_v27 = vld [vmem:[#allocation51_spill] sm:$0xff]  ;;  %v12955_v6 = vld [vmem:[#allocation46_spill] sm:$0xff] }
 0x56a   : > { %5945 = vmatpush.bf16.msra.mxu0 %v12945_v51  ;;  %5971 = vmatpush.bf16.msra.mxu2 %v12946_v48  ;;  %v12956_v51 = vld [vmem:[#allocation48_spill] sm:$0xff]  ;;  %v12957_v48 = vld [vmem:[#allocation53_spill] sm:$0xff] }
 0x56c   : > { %5957 = vmatpush.bf16.msra.mxu1 %v12947_v20  ;;  %5983 = vmatpush.bf16.msra.mxu3 %v12948_v53  ;;  %v12958_v20 = vld [vmem:[#allocation55_spill] sm:$0xff]  ;;  %v12959_v53 = vld [vmem:[#allocation57_spill] sm:$0xff] }
 0x56e   : > { %5946 = vmatpush.bf16.msra.mxu0 %v12949_v45  ;;  %5972 = vmatpush.bf16.msra.mxu2 %v12950_v16  ;;  %v12960_v45 = vld [vmem:[#allocation59_spill] sm:$0xff]  ;;  %v12961_v16 = vld [vmem:[#allocation50_spill] sm:$0xff] }
 0x570   : > { %5958 = vmatpush.bf16.msra.mxu1 %v12951_v54  ;;  %5984 = vmatpush.bf16.msra.mxu3 %v12952_v56  ;;  %v12962_v54 = vld [vmem:[#allocation52_spill] sm:$0xff]  ;;  %v12963_v56 = vld [vmem:[#allocation61_spill] sm:$0xff] }
 0x572   : > { %5947 = vmatpush.bf16.msra.mxu0 %v12953_v18  ;;  %5973 = vmatpush.bf16.msra.mxu2 %v12954_v27  ;;  %v12964_v18 = vld [vmem:[#allocation63_spill] sm:$0xff]  ;;  %v12965_v27 = vld [vmem:[#allocation54_spill] sm:$0xff] }
 0x574   : > { %5959 = vmatpush.bf16.msra.mxu1 %v12955_v6  ;;  %5985 = vmatpush.bf16.msra.mxu3 %v12956_v51  ;;  %v12966_v6 = vld [vmem:[#allocation56_spill] sm:$0xff]  ;;  %v12967_v51 = vld [vmem:[#allocation58_spill] sm:$0xff] }
 0x576   : > { %5948 = vmatpush.bf16.msra.mxu0 %v12957_v48  ;;  %5974 = vmatpush.bf16.msra.mxu2 %v12958_v20  ;;  %v12968_v48 = vld [vmem:[#allocation60_spill] sm:$0xff]  ;;  %v12969_v20 = vld [vmem:[#allocation66_spill] sm:$0xff] }
 0x578   : > { %5960 = vmatpush.bf16.msra.mxu1 %v12961_v16  ;;  %5986 = vmatpush.bf16.msra.mxu3 %v12962_v54  ;;  %v12972_v16 = vld [vmem:[#allocation64_spill] sm:$0xff]  ;;  %v12973_v54 = vld [vmem:[#allocation71_spill] sm:$0xff] }
 0x57a   : > { %5993 = vmatpush.bf16.msrb.mxu0 %v12959_v53  ;;  %6019 = vmatpush.bf16.msrb.mxu2 %v12960_v45  ;;  %v12970_v53 = vld [vmem:[#allocation68_spill] sm:$0xff]  ;;  %v12971_v45 = vld [vmem:[#allocation62_spill] sm:$0xff] }
 0x57c   : > { %5961 = vmatpush.bf16.msra.mxu1 %v12965_v27  ;;  %5987 = vmatpush.bf16.msra.mxu3 %v12966_v6  ;;  %v12976_v27 = vld [vmem:[#allocation69_spill] sm:$0xff]  ;;  %v12977_v6 = vld [vmem:[#allocation76_spill] sm:$0xff] }
 0x57e   : > { %5994 = vmatpush.bf16.msrb.mxu0 %v12963_v56  ;;  %6020 = vmatpush.bf16.msrb.mxu2 %v12964_v18  ;;  %v12974_v56 = vld [vmem:[#allocation73_spill] sm:$0xff]  ;;  %v12975_v18 = vld [vmem:[#allocation67_spill] sm:$0xff] }
 0x580   : > { %6006 = vmatpush.bf16.msrb.mxu1 %v12967_v51  ;;  %6032 = vmatpush.bf16.msrb.mxu3 %v12968_v48  ;;  %v12978_v51 = vld [vmem:[#allocation78_spill] sm:$0xff]  ;;  %v12979_v48 = vld [vmem:[#allocation72_spill] sm:$0xff] }
 0x582   : > { %5995 = vmatpush.bf16.msrb.mxu0 %v12969_v20  ;;  %6021 = vmatpush.bf16.msrb.mxu2 %v12970_v53  ;;  %v12980_v20 = vld [vmem:[#allocation75_spill] sm:$0xff] }
 0x583   : > { %v12981_v53 = vld [vmem:[#allocation83_spill] sm:$0xff] }
 0x584   : > { %6007 = vmatpush.bf16.msrb.mxu1 %v12971_v45  ;;  %6033 = vmatpush.bf16.msrb.mxu3 %v12972_v16  ;;  %v12982_v45 = vld [vmem:[#allocation85_spill] sm:$0xff] }
 0x585   : > { %v12983_v16 = vld [vmem:[#allocation77_spill] sm:$0xff] }
 0x586   : > { %5996 = vmatpush.bf16.msrb.mxu0 %v12973_v54  ;;  %6022 = vmatpush.bf16.msrb.mxu2 %v12974_v56  ;;  %v12984_v54 = vld [vmem:[#allocation80_spill] sm:$0xff]  ;;  %v12985_v56 = vld [vmem:[#allocation87_spill] sm:$0xff] }
 0x588   : > { %6008 = vmatpush.bf16.msrb.mxu1 %v12975_v18  ;;  %6034 = vmatpush.bf16.msrb.mxu3 %v12976_v27  ;;  %v12986_v18 = vld [vmem:[#allocation90_spill] sm:$0xff]  ;;  %v12987_v27 = vld [vmem:[#allocation84_spill] sm:$0xff] }
 0x58a   : > { %5997 = vmatpush.bf16.msrb.mxu0 %v12977_v6  ;;  %6023 = vmatpush.bf16.msrb.mxu2 %v12978_v51  ;;  %v12988_v6 = vld [vmem:[#allocation86_spill] sm:$0xff] }
 0x58b   : > { %v12989_v51 = vld [vmem:[#allocation94_spill] sm:$0xff] }
 0x58c   : > { %6009 = vmatpush.bf16.msrb.mxu1 %v12979_v48  ;;  %6035 = vmatpush.bf16.msrb.mxu3 %v12980_v20  ;;  %v12990_v48 = vld [vmem:[#allocation96_spill] sm:$0xff]  ;;  %v12991_v20 = vld [vmem:[#allocation89_spill] sm:$0xff] }
 0x58e   : > { %5998 = vmatpush.bf16.msrb.mxu0 %v12981_v53  ;;  %6024 = vmatpush.bf16.msrb.mxu2 %v12982_v45  ;;  %v12992_v53 = vld [vmem:[#allocation92_spill] sm:$0xff]  ;;  %v12993_v45 = vld [vmem:[#allocation95_spill] sm:$0xff] }
 0x590   : > { %6010 = vmatpush.bf16.msrb.mxu1 %v12983_v16  ;;  %6036 = vmatpush.bf16.msrb.mxu3 %v12984_v54  ;;  %v12994_v16 = vld [vmem:[#allocation97_spill] sm:$0xff] }
 0x592   : > { %5999 = vmatpush.bf16.msrb.mxu0 %v12985_v56  ;;  %6025 = vmatpush.bf16.msrb.mxu2 %v12986_v18 }
 0x594   : > { %6011 = vmatpush.bf16.msrb.mxu1 %v12987_v27  ;;  %6037 = vmatpush.bf16.msrb.mxu3 %v12988_v6  ;;  %v12995_v27 = vld [vmem:[#allocation93_spill] sm:$0xff] }
 0x596   : > { %6000 = vmatpush.bf16.msrb.mxu0 %v12989_v51  ;;  %6026 = vmatpush.bf16.msrb.mxu2 %v12990_v48  ;;  %v5590_v54 = vpop.f32.mrf.mxu0 }
 0x598   : > { %6012 = vmatpush.bf16.msrb.mxu1 %v12991_v20  ;;  %6038 = vmatpush.bf16.msrb.mxu3 %v12992_v53  ;;  %v12996_v20 = vld [vmem:[#allocation105_spill] sm:$0xff] }
 0x59c   : > { %6013 = vmatpush.bf16.msrb.mxu1 %v12993_v45  ;;  %6039 = vmatpush.bf16.msrb.mxu3 %v12994_v16  ;;  %v5603_v56 = vpop.f32.mrf.mxu1  ;;  %v5616_v24 = vpop.f32.mrf.mxu2 }
 0x59d   : > { %v5604_v18 = vadd.f32 %v5603_v56, %v5590_v54 }
 0x59e   : > { %v5592_v15 = vpop.f32.mrf.mxu0 }
 0x59f   : > { %v5789_v14 = vadd.f32 %v5604_v18, %v12995_v27 }
 0x5a1   : > { %v8784_v6 = vmul.f32 -1.442695, %v5789_v14  ;;  %v12997_v14 = vld [vmem:[#allocation147_spill] sm:$0xff] }
 0x5a2   : > { %v5629_v9 = vpop.f32.mrf.mxu3 }
 0x5a3   : > { %9528 = vpow2.f32 %v8784_v6  ;;  %v5630_v51 = vadd.f32 %v5629_v9, %v5616_v24 }
 0x5a4   : > { %v5605_v48 = vpop.f32.mrf.mxu1  ;;  %v5618_v35 = vpop.f32.mrf.mxu2 }
 0x5a5   : > { %v5790_v43 = vadd.f32 %v5630_v51, %v12996_v20 }
 0x5a6   : > { %v5642_v53 = vpop.f32.mrf.mxu0 }
 0x5a7   : > { %v8785_v10 = vmul.f32 -1.442695, %v5790_v43 }
 0x5a9   : > { %v9529_v45 = vpop.eup %9528  ;;  %9530 = vpow2.f32 %v8785_v10 }
 0x5aa   : > { %v5803_v16 = vadd.f32 1.0, %v9529_v45  ;;  %v5631_v21 = vpop.f32.mrf.mxu3 }
 0x5ab   : > { %v12998_v21 = vld [vmem:[#allocation155_spill] sm:$0xff] }
 0x5ac   : > { %v5655_v60 = vpop.f32.mrf.mxu1  ;;  %v5668_v28 = vpop.f32.mrf.mxu2  ;;  %9532 = vrcp.f32 %v5803_v16  ;;  %v5814_v13 = vand.u32 2147483647, %v5803_v16  ;;  %vm5810_vm3 = vweird.f32 %v5803_v16 }
 0x5ad   : > { %v5656_v15 = vadd.f32 %v5655_v60, %v5642_v53 }
 0x5ae   : > { %v5644_v54 = vpop.f32.mrf.mxu0  ;;  %vm11983_vm5 = vcmp.eq.f32.partialorder %v5814_v13, 8.507059e+37 }
 0x5af   : > { %v9531_v56 = vpop.eup %9530  ;;  %v5791_v18 = vadd.f32 %v5656_v15, %v12997_v14 }
 0x5b0   : > { %v11966_v27 = vadd.f32 1.0, %v9531_v56 }
 0x5b1   : > { %v8786_v24 = vmul.f32 -1.442695, %v5791_v18 }
 0x5b2   : > { %9534 = vrcp.f32 %v11966_v27  ;;  %v5681_v9 = vpop.f32.mrf.mxu3  ;;  %v9533_v35 = vpop.eup %9532  ;;  %vm5825_vm8 = vweird.f32 %v11966_v27  ;;  %v5829_v13 = vand.u32 2147483647, %v11966_v27 }
 0x5b3   : > { %9536 = vpow2.f32 %v8786_v24  ;;  %v5682_v43 = vadd.f32 %v5681_v9, %v5668_v28  ;;  %v5806_v48 = vmul.f32 %v9533_v35, %v5803_v16  ;;  %vm5811_vm2 = vweird.f32 %v9533_v35 }
 0x5b4   : > { %v5657_v10 = vpop.f32.mrf.mxu1  ;;  %v5670_v6 = vpop.f32.mrf.mxu2  ;;  %vm11979_vm4 = vmor %vm5810_vm3, %vm5811_vm2  ;;  %vm5830_vm13 = vcmp.eq.f32.partialorder %v5829_v13, 8.507059e+37 }
 0x5b5   : > { %v5792_v51 = vadd.f32 %v5682_v43, %v12998_v21  ;;  %v5807_v15 = vsub.f32 1.0, %v5806_v48 }
 0x5b6   : > { %v5694_v20 = vpop.f32.mrf.mxu0 }
 0x5b7   : > { %v8787_v60 = vmul.f32 -1.442695, %v5792_v51  ;;  %v5808_v9 = vmul.f32 %v9533_v35, %v5807_v15  ;;  %v12999_v51 = vld [vmem:[#allocation187_spill] sm:$0xff] }
 0x5b8   : > { %v11970_v53 = vpop.eup %9534 }
 0x5b9   : > { %v9537_v45 = vpop.eup %9536  ;;  %9538 = vpow2.f32 %v8787_v60  ;;  %v5821_v14 = vmul.f32 %v11970_v53, %v11966_v27  ;;  %v5816_v60 = vand.u32 2147483648, %v5803_v16  ;;  %vm5826_vm6 = vweird.f32 %v11970_v53 }
 0x5ba   : > { %v5841_v54 = vadd.f32 1.0, %v9537_v45  ;;  %v5683_v56 = vpop.f32.mrf.mxu3  ;;  %v5809_v45 = vadd.f32 %v9533_v35, %v5808_v9  ;;  %vm12000_vm10 = vmor %vm5825_vm8, %vm5826_vm6 }
 0x5bb   : > { %v5822_v6 = vsub.f32 1.0, %v5821_v14 }
 0x5bc   : > { %9540 = vrcp.f32 %v5841_v54  ;;  %v5720_v18 = vpop.f32.mrf.mxu2  ;;  %v5707_v28 = vpop.f32.mrf.mxu1  ;;  %v5852_v16 = vand.u32 2147483647, %v5841_v54  ;;  %vm5848_vm9 = vweird.f32 %v5841_v54 }
 0x5bd   : > { %v5708_v24 = vadd.f32 %v5707_v28, %v5694_v20  ;;  %v5823_v20 = vmul.f32 %v11970_v53, %v5822_v6 }
 0x5be   : > { %v5696_v10 = vpop.f32.mrf.mxu0  ;;  %vm5853_vm12 = vcmp.eq.f32.partialorder %v5852_v16, 8.507059e+37 }
 0x5bf   : > { %v9539_v43 = vpop.eup %9538  ;;  %v5793_v23 = vadd.f32 %v5708_v24, %v12999_v51  ;;  %v5854_v51 = vand.u32 2147483648, %v5841_v54 }
 0x5c0   : > { %v11974_v21 = vadd.f32 1.0, %v9539_v43  ;;  %v5817_v43 = vor.u32 1.1754944e-38, %v5816_v60  ;;  %v5831_v60 = vand.u32 2147483648, %v11966_v27 }
 0x5c2   : > { %v9541_v48 = vpop.eup %9540  ;;  %9542 = vrcp.f32 %v11974_v21  ;;  %v5733_v19 = vpop.f32.mrf.mxu3  ;;  %v5869_v24 = vand.u32 2147483648, %v11974_v21  ;;  %vm5863_vm15 = vweird.f32 %v11974_v21 }
 0x5c3   : > { %v5844_v56 = vmul.f32 %v9541_v48, %v5841_v54  ;;  %9544 = vtanh.f32 %v5793_v23  ;;  %v5734_v15 = vadd.f32 %v5733_v19, %v5720_v18  ;;  %v5813_v23 = vsel %vm11979_vm4, %v9533_v35, %v5809_v45 }
 0x5c4   : > { %v5722_v28 = vpop.f32.mrf.mxu2  ;;  %v5709_v9 = vpop.f32.mrf.mxu1  ;;  %vm5849_vm7 = vweird.f32 %v9541_v48  ;;  %v5824_v18 = vadd.f32 %v11970_v53, %v5823_v20 }
 0x5c5   : > { %v5845_v14 = vsub.f32 1.0, %v5844_v56  ;;  %v5794_v6 = vadd.f32 %v5734_v15, %v13004_v47  ;;  %v5818_v47 = vsel %vm11983_vm5, %v5817_v43, %v5813_v23  ;;  %vm5850_vm11 = vmor %vm5848_vm9, %vm5849_vm7  ;;  %v5855_v15 = vor.u32 1.1754944e-38, %v5854_v51 }
 0x5c6   : > { %v5828_v54 = vsel %vm12000_vm10, %v11970_v53, %v5824_v18  ;;  %v5832_v23 = vor.u32 1.1754944e-38, %v5831_v60  ;;  %v5867_v51 = vand.u32 2147483647, %v11974_v21  ;;  %v5870_v18 = vor.u32 1.1754944e-38, %v5869_v24 }
 0x5c7   : > { %v5846_v19 = vmul.f32 %v9541_v48, %v5845_v14  ;;  %9546 = vtanh.f32 %v5794_v6 }
 0x5c8   : > { %v9543_v56 = vpop.eup %9542  ;;  %vm5868_vm1 = vcmp.eq.f32.partialorder %v5867_v51, 8.507059e+37 }
 0x5c9   : > { %v9545_v28 = vpop.eup %9544  ;;  %v5859_v35 = vmul.f32 %v9543_v56, %v11974_v21  ;;  %v5847_v45 = vadd.f32 %v9541_v48, %v5846_v19  ;;  %vm5864_vm14 = vweird.f32 %v9543_v56 }
 0x5ca   : > { %v5915_v14 = vmul.f32 %v9545_v28, %v5818_v47  ;;  %v5735_v9 = vpop.f32.mrf.mxu3  ;;  %vm5865_vm0 = vmor %vm5863_vm15, %vm5864_vm14 }
 0x5cb   : > { %v5860_v10 = vsub.f32 1.0, %v5859_v35  ;;  %v5851_v27 = vsel %vm5850_vm11, %v9541_v48, %v5847_v45  ;;  %v5833_v35 = vsel %vm5830_vm13, %v5832_v23, %v5828_v54  ;;  %v13007_v54 = vld [vmem:[#allocation199_spill] sm:$0xff] }
 0x5cc   : > { %v5856_v43 = vsel %vm5853_vm12, %v5855_v15, %v5851_v27 }
 0x5cd   : > { %v5861_v6 = vmul.f32 %v9543_v56, %v5860_v10  ;;  %v5913_v19 = vmul.f32 %v5856_v43, %v11802_v39  ;;  %v9547_v28 = vpop.eup %9546 }
 0x5ce   : > { %v5916_v53 = vmul.f32 %v9547_v28, %v5833_v35 }
 0x5cf   : > { %v12011_v48 = vadd.f32 %v5915_v14, %v5913_v19  ;;  %v5862_v16 = vadd.f32 %v9543_v56, %v5861_v6 }
 0x5d1   : > { %v5866_v47 = vsel %vm5865_vm0, %v9543_v56, %v5862_v16  ;;  %v13008_v56 = vld [vmem:[#allocation202_spill] sm:$0xff] }
 0x5d2   : > { %v5871_v13 = vsel %vm5868_vm1, %v5870_v18, %v5866_v47 }
 0x5d3   : > { %v5914_v60 = vmul.f32 %v5871_v13, %v11805_v49 }
 0x5d5   : > { %v12014_v20 = vadd.f32 %v5916_v53, %v5914_v60 }
 0x5d6   : > { %v5746_v45 = vpop.f32.mrf.mxu0 }
 0x5dc   : > { %v5759_v39 = vpop.f32.mrf.mxu1  ;;  %v5772_v15 = vpop.f32.mrf.mxu2 }
 0x5dd   : > { %v5760_v10 = vadd.f32 %v5759_v39, %v5746_v45 }
 0x5de   : > { %v5748_v27 = vpop.f32.mrf.mxu0 }
 0x5df   : > { %v5795_v21 = vadd.f32 %v5760_v10, %v13007_v54 }
 0x5e1   : > { %v8788_v14 = vmul.f32 -1.442695, %v5795_v21 }
 0x5e2   : > { %v5785_v9 = vpop.f32.mrf.mxu3 }
 0x5e3   : > { %9548 = vpow2.f32 %v8788_v14  ;;  %v5786_v43 = vadd.f32 %v5785_v9, %v5772_v15 }
 0x5e4   : > { %v5761_v23 = vpop.f32.mrf.mxu1  ;;  %v5774_v24 = vpop.f32.mrf.mxu2 }
 0x5e5   : > { %v5796_v6 = vadd.f32 %v5786_v43, %v13008_v56 }
 0x5e7   : > { %v8789_v19 = vmul.f32 -1.442695, %v5796_v6 }
 0x5e9   : > { %v9549_v51 = vpop.eup %9548  ;;  %9550 = vpow2.f32 %v8789_v19 }
 0x5ea   : > { %v5881_v49 = vadd.f32 1.0, %v9549_v51  ;;  %v5787_v28 = vpop.f32.mrf.mxu3 }
 0x5ec   : > { %9552 = vrcp.f32 %v5881_v49  ;;  %v5894_v13 = vand.u32 2147483648, %v5881_v49  ;;  %v5892_v45 = vand.u32 2147483647, %v5881_v49  ;;  %vm5888_vm3 = vweird.f32 %v5881_v49 }
 0x5ee   : > { %v5895_v27 = vor.u32 1.1754944e-38, %v5894_v13  ;;  %vm5893_vm5 = vcmp.eq.f32.partialorder %v5892_v45, 8.507059e+37 }
 0x5ef   : > { %v9551_v35 = vpop.eup %9550 }
 0x5f0   : > { %v5882_v16 = vadd.f32 1.0, %v9551_v35 }
 0x5f2   : > { %v9553_v53 = vpop.eup %9552  ;;  %9554 = vrcp.f32 %v5882_v16  ;;  %v5909_v43 = vand.u32 2147483648, %v5882_v16  ;;  %v5907_v56 = vand.u32 2147483647, %v5882_v16  ;;  %vm5903_vm7 = vweird.f32 %v5882_v16 }
 0x5f3   : > { %v5884_v18 = vmul.f32 %v9553_v53, %v5881_v49  ;;  %9556 = vtanh.f32 %v12011_v48  ;;  %vm5889_vm2 = vweird.f32 %v9553_v53 }
 0x5f4   : > { %vm5890_vm4 = vmor %vm5888_vm3, %vm5889_vm2  ;;  %9558 = vtanh.f32 %v12014_v20  ;;  %v5910_v51 = vor.u32 1.1754944e-38, %v5909_v43  ;;  %vm5908_vm9 = vcmp.eq.f32.partialorder %v5907_v56, 8.507059e+37  ;;  %v13043_v56 = vld [vmem:[#allocation152_spill] sm:$0xff] }
 0x5f5   : > { %v5885_v47 = vsub.f32 1.0, %v5884_v18 }
 0x5f7   : > { %v5886_v60 = vmul.f32 %v9553_v53, %v5885_v47  ;;  %v13040_v47 = vld [vmem:[#allocation113_spill] sm:$0xff] }
 0x5f8   : > { %v9555_v39 = vpop.eup %9554 }
 0x5f9   : > { %v5887_v15 = vadd.f32 %v9553_v53, %v5886_v60  ;;  %v5899_v10 = vmul.f32 %v9555_v39, %v5882_v16  ;;  %v9557_v14 = vpop.eup %9556  ;;  %vm5904_vm6 = vweird.f32 %v9555_v39  ;;  %v13039_v16 = vld [vmem:[#allocation74_spill] sm:$0xff] }
 0x5fa   : > { %vm5905_vm8 = vmor %vm5903_vm7, %vm5904_vm6  ;;  %v9559_v28 = vpop.eup %9558  ;;  %v3923_v13 = vadd.f32 %v13040_v47, %v13039_v16  ;;  %v13051_v16 = vld [vmem:[#allocation170_spill] sm:$0xff]  ;;  %v13052_v47 = vld [vmem:[#allocation191_spill] sm:$0xff] }
 0x5fb   : > { %v5891_v54 = vsel %vm5890_vm4, %v9553_v53, %v5887_v15  ;;  %v5900_v21 = vsub.f32 1.0, %v5899_v10  ;;  %v13041_v15 = vld [vmem:[#allocation115_spill] sm:$0xff] }
 0x5fc   : > { %v5896_v9 = vsel %vm5893_vm5, %v5895_v27, %v5891_v54  ;;  %v3942_v10 = vadd.f32 %v13041_v15, %v3923_v13  ;;  %v4075_v13 = vadd.f32 %v13052_v47, %v13051_v16  ;;  %v13062_v16 = vld [vmem:[#allocation201_spill] sm:$0xff] }
 0x5fd   : > { %v5921_v23 = vmul.f32 %v9557_v14, %v5896_v9  ;;  %v5901_v24 = vmul.f32 %v9555_v39, %v5900_v21 }
 0x5ff   : > { %5926 = vst [vmem:[#allocation13 + $0x20] sm:$0xff] %v5921_v23  ;;  %v12020_v6 = vpack.c.bf16 %v5921_v23, %v5921_v23  ;;  %v5902_v19 = vadd.f32 %v9555_v39, %v5901_v24  ;;  %v13042_v24 = vld [vmem:[#allocation114_spill] sm:$0xff] }
 0x601   : > { %v5906_v49 = vsel %vm5905_vm8, %v9555_v39, %v5902_v19  ;;  %5949 = vmatmul.bf16.vlgmr.msra.gmra.mxu0 %v12020_v6  ;;  %5975 = vmatmul.bf16.vlgmr.msra.gmra.mxu2 %v12020_v6 }
 0x602   : > { %v5911_v35 = vsel %vm5908_vm9, %v5910_v51, %v5906_v49  ;;  %6045 = vmatpush.bf16.msra.mxu0 %v12779_v31  ;;  %6071 = vmatpush.bf16.msra.mxu2 %v12780_v57  ;;  %v13009_v31 = vld [vmem:[#allocation148_spill] sm:$0xff]  ;;  %v13010_v57 = vld [vmem:[#allocation150_spill] sm:$0xff] }
 0x603   : > { %v5922_v53 = vmul.f32 %v9559_v28, %v5911_v35  ;;  %v13044_v35 = vld [vmem:[#allocation154_spill] sm:$0xff] }
 0x605   : > { %5927 = vst [vmem:[#allocation13 + $0x28] sm:$0xff] %v5922_v53  ;;  %v12026_v18 = vpack.c.bf16 %v5922_v53, %v5922_v53 }
 0x606   : > { %6046 = vmatpush.bf16.msra.mxu0 %v12781_v4  ;;  %6072 = vmatpush.bf16.msra.mxu2 %v12782_v11  ;;  %v13011_v4 = vld [vmem:[#allocation144_spill] sm:$0xff]  ;;  %v13012_v11 = vld [vmem:[#allocation149_spill] sm:$0xff] }
 0x607   : > { %5962 = vmatmul.bf16.vlgmr.msra.gmra.mxu1 %v12026_v18  ;;  %5988 = vmatmul.bf16.vlgmr.msra.gmra.mxu3 %v12026_v18 }
 0x608   : > { %6058 = vmatpush.bf16.msra.mxu1 %v12783_v36  ;;  %6084 = vmatpush.bf16.msra.mxu3 %v12784_v29  ;;  %v13013_v36 = vld [vmem:[#allocation151_spill] sm:$0xff] }
 0x609   : > { %v13014_v29 = vld [vmem:[#allocation159_spill] sm:$0xff] }
 0x60a   : > { %6047 = vmatpush.bf16.msra.mxu0 %v12785_v62  ;;  %6073 = vmatpush.bf16.msra.mxu2 %v12786_v1  ;;  %v13015_v62 = vld [vmem:[#allocation162_spill] sm:$0xff]  ;;  %v13016_v1 = vld [vmem:[#allocation156_spill] sm:$0xff] }
 0x60c   : > { %6059 = vmatpush.bf16.msra.mxu1 %v12787_v42  ;;  %6085 = vmatpush.bf16.msra.mxu3 %v12788_v5  ;;  %v13017_v42 = vld [vmem:[#allocation158_spill] sm:$0xff] }
 0x60d   : > { %v13018_v5 = vld [vmem:[#allocation166_spill] sm:$0xff] }
 0x60e   : > { %6048 = vmatpush.bf16.msra.mxu0 %v12789_v26  ;;  %6074 = vmatpush.bf16.msra.mxu2 %v12790_v22  ;;  %v13019_v26 = vld [vmem:[#allocation168_spill] sm:$0xff]  ;;  %v13020_v22 = vld [vmem:[#allocation161_spill] sm:$0xff] }
 0x610   : > { %6060 = vmatpush.bf16.msra.mxu1 %v12791_v25  ;;  %6086 = vmatpush.bf16.msra.mxu3 %v12792_v63  ;;  %v13021_v25 = vld [vmem:[#allocation163_spill] sm:$0xff] }
 0x611   : > { %6001 = vmatmul.bf16.vlgmr.msrb.gmra.mxu0 %v12020_v6  ;;  %6027 = vmatmul.bf16.vlgmr.msrb.gmra.mxu2 %v12020_v6  ;;  %v13022_v63 = vld [vmem:[#allocation171_spill] sm:$0xff] }
 0x612   : > { %6049 = vmatpush.bf16.msra.mxu0 %v12793_v33  ;;  %6075 = vmatpush.bf16.msra.mxu2 %v12902_v34  ;;  %v13023_v33 = vld [vmem:[#allocation173_spill] sm:$0xff]  ;;  %v13027_v34 = vld [vmem:[#allocation179_spill] sm:$0xff] }
 0x614   : > { %6061 = vmatpush.bf16.msra.mxu1 %v12903_v8  ;;  %6087 = vmatpush.bf16.msra.mxu3 %v12904_v59  ;;  %v13028_v8 = vld [vmem:[#allocation172_spill] sm:$0xff]  ;;  %v13029_v59 = vld [vmem:[#allocation174_spill] sm:$0xff] }
 0x616   : > { %6050 = vmatpush.bf16.msra.mxu0 %v12905_v52  ;;  %6076 = vmatpush.bf16.msra.mxu2 %v12906_v61  ;;  %v13030_v52 = vld [vmem:[#allocation181_spill] sm:$0xff]  ;;  %v13031_v61 = vld [vmem:[#allocation183_spill] sm:$0xff] }
 0x617   : > { %6014 = vmatmul.bf16.vlgmr.msrb.gmra.mxu1 %v12026_v18  ;;  %6040 = vmatmul.bf16.vlgmr.msrb.gmra.mxu3 %v12026_v18 }
 0x618   : > { %6062 = vmatpush.bf16.msra.mxu1 %v12907_v40  ;;  %6088 = vmatpush.bf16.msra.mxu3 %v12908_v38  ;;  %v13032_v40 = vld [vmem:[#allocation178_spill] sm:$0xff]  ;;  %v13033_v38 = vld [vmem:[#allocation180_spill] sm:$0xff] }
 0x61a   : > { %6051 = vmatpush.bf16.msra.mxu0 %v12909_v12  ;;  %6077 = vmatpush.bf16.msra.mxu2 %v12910_v46  ;;  %v13034_v12 = vld [vmem:[#allocation182_spill] sm:$0xff]  ;;  %v13035_v46 = vld [vmem:[#allocation184_spill] sm:$0xff] }
 0x61c   : > { %6063 = vmatpush.bf16.msra.mxu1 %v12911_v58  ;;  %6089 = vmatpush.bf16.msra.mxu3 %v12912_v30  ;;  %v13036_v30 = vld [vmem:[#allocation65_spill] sm:$0xff] }
 0x61e   : > { %6052 = vmatpush.bf16.msra.mxu0 %v12913_v37  ;;  %6078 = vmatpush.bf16.msra.mxu2 %v12914_v7  ;;  %v13037_v37 = vld [vmem:[#allocation102_spill] sm:$0xff] }
 0x61f   : > { %v3885_v7 = vadd.f32 %v13037_v37, %v13036_v30 }
 0x620   : > { %6064 = vmatpush.bf16.msra.mxu1 %v12917_v50  ;;  %6090 = vmatpush.bf16.msra.mxu3 %v12918_v0  ;;  %v13038_v50 = vld [vmem:[#allocation104_spill] sm:$0xff] }
 0x621   : > { %6053 = vmatmul.bf16.vlgmr.msra.gmra.mxu0 %v12020_v6  ;;  %6079 = vmatmul.bf16.vlgmr.msra.gmra.mxu2 %v12020_v6  ;;  %v3904_v0 = vadd.f32 %v13038_v50, %v3885_v7  ;;  %v13050_v7 = vld [vmem:[#allocation189_spill] sm:$0xff] }
 0x622   : > { %6097 = vmatpush.bf16.msrb.mxu0 %v12915_v32  ;;  %6123 = vmatpush.bf16.msrb.mxu2 %v12916_v17 }
 0x624   : > { %6065 = vmatpush.bf16.msra.mxu1 %v12921_v55  ;;  %6091 = vmatpush.bf16.msra.mxu3 %v12922_v3 }
 0x626   : > { %6098 = vmatpush.bf16.msrb.mxu0 %v13009_v31  ;;  %6124 = vmatpush.bf16.msrb.mxu2 %v13010_v57 }
 0x627   : > { %6066 = vmatmul.bf16.vlgmr.msra.gmra.mxu1 %v12026_v18  ;;  %6092 = vmatmul.bf16.vlgmr.msra.gmra.mxu3 %v12026_v18 }
 0x628   : > { %6110 = vmatpush.bf16.msrb.mxu1 %v13011_v4  ;;  %6136 = vmatpush.bf16.msrb.mxu3 %v12924_v41  ;;  %v13026_v41 = vld [vmem:[#allocation176_spill] sm:$0xff]  ;;  %v13045_v4 = vld [vmem:[#allocation122_spill] sm:$0xff] }
 0x62a   : > { %6099 = vmatpush.bf16.msrb.mxu0 %v12925_v44  ;;  %6125 = vmatpush.bf16.msrb.mxu2 %v12926_v2  ;;  %v13024_v2 = vld [vmem:[#allocation167_spill] sm:$0xff]  ;;  %v13025_v44 = vld [vmem:[#allocation169_spill] sm:$0xff] }
 0x62c   : > { %6111 = vmatpush.bf16.msrb.mxu1 %v13012_v11  ;;  %6137 = vmatpush.bf16.msrb.mxu3 %v13013_v36  ;;  %v13046_v11 = vld [vmem:[#allocation164_spill] sm:$0xff] }
 0x62d   : > { %v3999_v36 = vadd.f32 %v13046_v11, %v13045_v4 }
 0x62e   : > { %6100 = vmatpush.bf16.msrb.mxu0 %v13014_v29  ;;  %6126 = vmatpush.bf16.msrb.mxu2 %v13015_v62 }
 0x630   : > { %6112 = vmatpush.bf16.msrb.mxu1 %v13016_v1  ;;  %6138 = vmatpush.bf16.msrb.mxu3 %v13017_v42 }
 0x632   : > { %6101 = vmatpush.bf16.msrb.mxu0 %v13018_v5  ;;  %6127 = vmatpush.bf16.msrb.mxu2 %v13019_v26  ;;  %v13047_v26 = vld [vmem:[#allocation165_spill] sm:$0xff] }
 0x634   : > { %6113 = vmatpush.bf16.msrb.mxu1 %v13020_v22  ;;  %6139 = vmatpush.bf16.msrb.mxu3 %v13021_v25  ;;  %v4018_v22 = vadd.f32 %v13047_v26, %v3999_v36 }
 0x636   : > { %6102 = vmatpush.bf16.msrb.mxu0 %v13022_v63  ;;  %6128 = vmatpush.bf16.msrb.mxu2 %v13023_v33 }
 0x638   : > { %6114 = vmatpush.bf16.msrb.mxu1 %v13024_v2  ;;  %6140 = vmatpush.bf16.msrb.mxu3 %v13025_v44 }
 0x63a   : > { %6103 = vmatpush.bf16.msrb.mxu0 %v13026_v41  ;;  %6129 = vmatpush.bf16.msrb.mxu2 %v13027_v34 }
 0x63c   : > { %6115 = vmatpush.bf16.msrb.mxu1 %v13028_v8  ;;  %6141 = vmatpush.bf16.msrb.mxu3 %v13029_v59 }
 0x63e   : > { %6104 = vmatpush.bf16.msrb.mxu0 %v13030_v52  ;;  %6130 = vmatpush.bf16.msrb.mxu2 %v13031_v61  ;;  %v13048_v52 = vld [vmem:[#allocation160_spill] sm:$0xff] }
 0x63f   : > { %v13049_v61 = vld [vmem:[#allocation188_spill] sm:$0xff] }
 0x640   : > { %6116 = vmatpush.bf16.msrb.mxu1 %v13032_v40  ;;  %6142 = vmatpush.bf16.msrb.mxu3 %v13033_v38  ;;  %v4037_v40 = vadd.f32 %v13049_v61, %v13048_v52 }
 0x641   : > { %6105 = vmatmul.bf16.vlgmr.msrb.gmra.mxu0 %v12020_v6  ;;  %6131 = vmatmul.bf16.vlgmr.msrb.gmra.mxu2 %v12020_v6  ;;  %v3961_v6 = vadd.f32 %v13043_v56, %v13042_v24 }
 0x643   : > { %v3980_v53 = vadd.f32 %v13044_v35, %v3961_v6 }
 0x644   : > { %6117 = vmatpush.bf16.msrb.mxu1 %v13034_v12  ;;  %6143 = vmatpush.bf16.msrb.mxu3 %v13035_v46 }
 0x647   : > { %6118 = vmatmul.bf16.vlgmr.msrb.gmra.mxu1 %v12026_v18  ;;  %6144 = vmatmul.bf16.vlgmr.msrb.gmra.mxu3 %v12026_v18 }
 0x67e   : > { %v5950_v58 = vpop.f32.mrf.mxu0 }
 0x684   : > { %v5963_v32 = vpop.f32.mrf.mxu1  ;;  %v5976_v17 = vpop.f32.mrf.mxu2 }
 0x685   : > { %v5964_v55 = vadd.f32 %v5963_v32, %v5950_v58  ;;  %v4056_v32 = vadd.f32 %v13050_v7, %v4037_v40 }
 0x686   : > { %v5952_v3 = vpop.f32.mrf.mxu0 }
 0x687   : > { %v6149_v60 = vadd.f32 %v5964_v55, %v3904_v0 }
 0x689   : > { %v8790_v45 = vmul.f32 -1.442695, %v6149_v60 }
 0x68a   : > { %v5989_v39 = vpop.f32.mrf.mxu3 }
 0x68b   : > { %9560 = vpow2.f32 %v8790_v45  ;;  %v5990_v27 = vadd.f32 %v5989_v39, %v5976_v17 }
 0x68c   : > { %v5965_v54 = vpop.f32.mrf.mxu1  ;;  %v5978_v21 = vpop.f32.mrf.mxu2 }
 0x68d   : > { %v6150_v14 = vadd.f32 %v5990_v27, %v3942_v10 }
 0x68e   : > { %v6002_v9 = vpop.f32.mrf.mxu0 }
 0x68f   : > { %v8791_v43 = vmul.f32 -1.442695, %v6150_v14 }
 0x691   : > { %v9561_v23 = vpop.eup %9560  ;;  %9562 = vpow2.f32 %v8791_v43 }
 0x692   : > { %v6163_v19 = vadd.f32 1.0, %v9561_v23  ;;  %v5991_v51 = vpop.f32.mrf.mxu3 }
 0x694   : > { %v6015_v49 = vpop.f32.mrf.mxu1  ;;  %v6028_v28 = vpop.f32.mrf.mxu2  ;;  %9564 = vrcp.f32 %v6163_v19  ;;  %v6174_v39 = vand.u32 2147483647, %v6163_v19  ;;  %v6176_v15 = vand.u32 2147483648, %v6163_v19  ;;  %vm6170_vm11 = vweird.f32 %v6163_v19 }
 0x695   : > { %v6016_v18 = vadd.f32 %v6015_v49, %v6002_v9  ;;  %v13053_v9 = vld [vmem:[#allocation193_spill] sm:$0xff] }
 0x696   : > { %v6004_v31 = vpop.f32.mrf.mxu0  ;;  %v4094_v43 = vadd.f32 %v13053_v9, %v4075_v13  ;;  %vm12143_vm13 = vcmp.eq.f32.partialorder %v6174_v39, 8.507059e+37  ;;  %v6177_v49 = vor.u32 1.1754944e-38, %v6176_v15  ;;  %v13064_v39 = vld [vmem:[#allocation203_spill] sm:$0xff] }
 0x697   : > { %v9563_v57 = vpop.eup %9562  ;;  %v6151_v29 = vadd.f32 %v6016_v18, %v3980_v53 }
 0x698   : > { %v12115_v62 = vadd.f32 1.0, %v9563_v57 }
 0x699   : > { %v8792_v1 = vmul.f32 -1.442695, %v6151_v29 }
 0x69a   : > { %9566 = vrcp.f32 %v12115_v62  ;;  %v6041_v42 = vpop.f32.mrf.mxu3  ;;  %v12118_v5 = vpop.eup %9564  ;;  %vm6185_vm0 = vweird.f32 %v12115_v62  ;;  %v6189_v11 = vand.u32 2147483647, %v12115_v62  ;;  %v6191_v36 = vand.u32 2147483648, %v12115_v62 }
 0x69b   : > { %9568 = vpow2.f32 %v8792_v1  ;;  %v6042_v25 = vadd.f32 %v6041_v42, %v6028_v28  ;;  %v6166_v44 = vmul.f32 %v12118_v5, %v6163_v19  ;;  %vm6171_vm10 = vweird.f32 %v12118_v5 }
 0x69c   : > { %v6017_v63 = vpop.f32.mrf.mxu1  ;;  %v6030_v33 = vpop.f32.mrf.mxu2  ;;  %vm12139_vm12 = vmor %vm6170_vm11, %vm6171_vm10  ;;  %vm6190_vm5 = vcmp.eq.f32.partialorder %v6189_v11, 8.507059e+37 }
 0x69d   : > { %v6152_v2 = vadd.f32 %v6042_v25, %v4018_v22  ;;  %v6167_v38 = vsub.f32 1.0, %v6166_v44 }
 0x69e   : > { %v6054_v41 = vpop.f32.mrf.mxu0 }
 0x69f   : > { %v8793_v34 = vmul.f32 -1.442695, %v6152_v2  ;;  %v6168_v50 = vmul.f32 %v12118_v5, %v6167_v38 }
 0x6a0   : > { %v12122_v8 = vpop.eup %9566 }
 0x6a1   : > { %v9569_v59 = vpop.eup %9568  ;;  %9570 = vpow2.f32 %v8793_v34  ;;  %v6181_v58 = vmul.f32 %v12122_v8, %v12115_v62  ;;  %v6169_v27 = vadd.f32 %v12118_v5, %v6168_v50  ;;  %vm6186_vm14 = vweird.f32 %v12122_v8  ;;  %v13061_v50 = vld [vmem:[#allocation200_spill] sm:$0xff] }
 0x6a2   : > { %v6201_v12 = vadd.f32 1.0, %v9569_v59  ;;  %v6043_v46 = vpop.f32.mrf.mxu3  ;;  %vm12160_vm2 = vmor %vm6185_vm0, %vm6186_vm14  ;;  %v6192_v34 = vor.u32 1.1754944e-38, %v6191_v36 }
 0x6a3   : > { %v6182_v3 = vsub.f32 1.0, %v6181_v58  ;;  %v6173_v53 = vsel %vm12139_vm12, %v12118_v5, %v6169_v27 }
 0x6a4   : > { %9572 = vrcp.f32 %v6201_v12  ;;  %v6080_v30 = vpop.f32.mrf.mxu2  ;;  %v6067_v37 = vpop.f32.mrf.mxu1  ;;  %v6214_v35 = vand.u32 2147483648, %v6201_v12  ;;  %v6212_v31 = vand.u32 2147483647, %v6201_v12  ;;  %vm6208_vm1 = vweird.f32 %v6201_v12 }
 0x6a5   : > { %v6068_v17 = vadd.f32 %v6067_v37, %v6054_v41  ;;  %v6183_v14 = vmul.f32 %v12122_v8, %v6182_v3  ;;  %v6178_v42 = vsel %vm12143_vm13, %v6177_v49, %v6173_v53 }
 0x6a6   : > { %v6056_v0 = vpop.f32.mrf.mxu0  ;;  %v6215_v22 = vor.u32 1.1754944e-38, %v6214_v35  ;;  %vm6213_vm4 = vcmp.eq.f32.partialorder %v6212_v31, 8.507059e+37 }
 0x6a7   : > { %v9571_v55 = vpop.eup %9570  ;;  %v6153_v45 = vadd.f32 %v6068_v17, %v4056_v32  ;;  %v6184_v57 = vadd.f32 %v12122_v8, %v6183_v14  ;;  %v13060_v17 = vld [vmem:[#allocation192_spill] sm:$0xff] }
 0x6a8   : > { %v12132_v60 = vadd.f32 1.0, %v9571_v55  ;;  %v4113_v0 = vadd.f32 %v13061_v50, %v13060_v17 }
 0x6a9   : > { %v6188_v33 = vsel %vm12160_vm2, %v12122_v8, %v6184_v57 }
 0x6aa   : > { %v9573_v10 = vpop.eup %9572  ;;  %9574 = vrcp.f32 %v12132_v60  ;;  %v6093_v21 = vpop.f32.mrf.mxu3  ;;  %v6229_v44 = vand.u32 2147483648, %v12132_v60  ;;  %v6227_v61 = vand.u32 2147483647, %v12132_v60  ;;  %v6193_v38 = vsel %vm6190_vm5, %v6192_v34, %v6188_v33 }
 0x6ab   : > { %v6204_v54 = vmul.f32 %v9573_v10, %v6201_v12  ;;  %9576 = vtanh.f32 %v6153_v45  ;;  %v6094_v23 = vadd.f32 %v6093_v21, %v6080_v30  ;;  %vm6209_vm15 = vweird.f32 %v9573_v10  ;;  %v13063_v45 = vld [vmem:[#allocation194_spill] sm:$0xff]  ;;  %v13065_v21 = vld [vmem:[#allocation204_spill] sm:$0xff] }
 0x6ac   : > { %v6082_v24 = vpop.f32.mrf.mxu2  ;;  %v6069_v28 = vpop.f32.mrf.mxu1  ;;  %vm6210_vm3 = vmor %vm6208_vm1, %vm6209_vm15  ;;  %vm6223_vm7 = vweird.f32 %v12132_v60  ;;  %v6230_v58 = vor.u32 1.1754944e-38, %v6229_v44  ;;  %vm6228_vm9 = vcmp.eq.f32.partialorder %v6227_v61, 8.507059e+37  ;;  %v4132_v47 = vadd.f32 %v13062_v16, %v4113_v0 }
 0x6ad   : > { %v6205_v56 = vsub.f32 1.0, %v6204_v54  ;;  %v6154_v18 = vadd.f32 %v6094_v23, %v4094_v43  ;;  %v4151_v15 = vadd.f32 %v13064_v39, %v13063_v45 }
 0x6af   : > { %v6206_v19 = vmul.f32 %v9573_v10, %v6205_v56  ;;  %9578 = vtanh.f32 %v6154_v18 }
 0x6b0   : > { %v9575_v4 = vpop.eup %9574 }
 0x6b1   : > { %v9577_v29 = vpop.eup %9576  ;;  %v6219_v1 = vmul.f32 %v9575_v4, %v12132_v60  ;;  %v6207_v5 = vadd.f32 %v9573_v10, %v6206_v19  ;;  %vm6224_vm6 = vweird.f32 %v9575_v4 }
 0x6b2   : > { %v6275_v25 = vmul.f32 %v9577_v29, %v6178_v42  ;;  %v6095_v2 = vpop.f32.mrf.mxu3  ;;  %vm6225_vm8 = vmor %vm6223_vm7, %vm6224_vm6 }
 0x6b3   : > { %v6220_v63 = vsub.f32 1.0, %v6219_v1  ;;  %v6211_v62 = vsel %vm6210_vm3, %v9573_v10, %v6207_v5 }
 0x6b4   : > { %v6216_v41 = vsel %vm6213_vm4, %v6215_v22, %v6211_v62 }
 0x6b5   : > { %v6221_v59 = vmul.f32 %v9575_v4, %v6220_v63  ;;  %v6273_v52 = vmul.f32 %v6216_v41, %v12011_v48  ;;  %v9579_v40 = vpop.eup %9578 }
 0x6b6   : > { %v6276_v46 = vmul.f32 %v9579_v40, %v6193_v38 }
 0x6b7   : > { %v6277_v12 = vadd.f32 %v6275_v25, %v6273_v52  ;;  %v6222_v8 = vadd.f32 %v9575_v4, %v6221_v59 }
 0x6b9   : > { %6290 = vst [vmem:[%s10226_s30] sm:$0xff] %v6277_v12  ;;  %v6226_v30 = vsel %vm6225_vm8, %v9575_v4, %v6222_v8 }
 0x6ba   : > { %v6231_v37 = vsel %vm6228_vm9, %v6230_v58, %v6226_v30 }
 0x6bb   : > { %v6274_v7 = vmul.f32 %v6231_v37, %v12014_v20  ;;  %v4170_v20 = vadd.f32 %v13065_v21, %v4151_v15 }
 0x6bd   : > { %v6278_v48 = vadd.f32 %v6276_v46, %v6274_v7 }
 0x6be   : > { %v6106_v32 = vpop.f32.mrf.mxu0 }
 0x6bf   : > { %6291 = vst [vmem:[%s10226_s30 + $0x8] sm:$0xff] %v6278_v48 }
 0x6c4   : > { %v6119_v55 = vpop.f32.mrf.mxu1  ;;  %v6132_v3 = vpop.f32.mrf.mxu2 }
 0x6c5   : > { %v6120_v13 = vadd.f32 %v6119_v55, %v6106_v32 }
 0x6c6   : > { %v6108_v60 = vpop.f32.mrf.mxu0 }
 0x6c7   : > { %v6155_v10 = vadd.f32 %v6120_v13, %v4132_v47 }
 0x6c9   : > { %v8794_v27 = vmul.f32 -1.442695, %v6155_v10 }
 0x6ca   : > { %v6145_v54 = vpop.f32.mrf.mxu3 }
 0x6cb   : > { %9580 = vpow2.f32 %v8794_v27  ;;  %v6146_v14 = vadd.f32 %v6145_v54, %v6132_v3 }
 0x6cc   : > { %v6121_v9 = vpop.f32.mrf.mxu1  ;;  %v6134_v43 = vpop.f32.mrf.mxu2 }
 0x6cd   : > { %v6156_v23 = vadd.f32 %v6146_v14, %v4170_v20 }
 0x6cf   : > { %v8795_v24 = vmul.f32 -1.442695, %v6156_v23 }
 0x6d1   : > { %v9581_v56 = vpop.eup %9580  ;;  %9582 = vpow2.f32 %v8795_v24 }
 0x6d2   : > { %v6241_v6 = vadd.f32 1.0, %v9581_v56  ;;  %v6147_v51 = vpop.f32.mrf.mxu3 }
 0x6d4   : > { %9584 = vrcp.f32 %v6241_v6  ;;  %v6254_v19 = vand.u32 2147483648, %v6241_v6  ;;  %v6252_v57 = vand.u32 2147483647, %v6241_v6  ;;  %vm6248_vm11 = vweird.f32 %v6241_v6 }
 0x6d6   : > { %v6255_v29 = vor.u32 1.1754944e-38, %v6254_v19  ;;  %vm6253_vm13 = vcmp.eq.f32.partialorder %v6252_v57, 8.507059e+37 }
 0x6d7   : > { %v9583_v49 = vpop.eup %9582 }
 0x6d8   : > { %v6242_v28 = vadd.f32 1.0, %v9583_v49 }
 0x6da   : > { %v9585_v35 = vpop.eup %9584  ;;  %9586 = vrcp.f32 %v6242_v28  ;;  %v6269_v22 = vand.u32 2147483648, %v6242_v28  ;;  %v6267_v63 = vand.u32 2147483647, %v6242_v28  ;;  %vm6263_vm15 = vweird.f32 %v6242_v28 }
 0x6db   : > { %v6244_v53 = vmul.f32 %v9585_v35, %v6241_v6  ;;  %9588 = vtanh.f32 %v6277_v12  ;;  %vm6249_vm10 = vweird.f32 %v9585_v35 }
 0x6dc   : > { %vm6250_vm12 = vmor %vm6248_vm11, %vm6249_vm10  ;;  %9590 = vtanh.f32 %v6278_v48  ;;  %v6270_v2 = vor.u32 1.1754944e-38, %v6269_v22  ;;  %vm6268_vm1 = vcmp.eq.f32.partialorder %v6267_v63, 8.507059e+37 }
 0x6dd   : > { %v6245_v18 = vsub.f32 1.0, %v6244_v53 }
 0x6df   : > { %v6246_v31 = vmul.f32 %v9585_v35, %v6245_v18 }
 0x6e0   : > { %v9587_v4 = vpop.eup %9586 }
 0x6e1   : > { %v6259_v11 = vmul.f32 %v9587_v4, %v6242_v28  ;;  %v6247_v36 = vadd.f32 %v9585_v35, %v6246_v31  ;;  %v9589_v5 = vpop.eup %9588  ;;  %vm6264_vm14 = vweird.f32 %v9587_v4 }
 0x6e2   : > { %vm6265_vm0 = vmor %vm6263_vm15, %vm6264_vm14  ;;  %v9591_v41 = vpop.eup %9590 }
 0x6e3   : > { %v6260_v1 = vsub.f32 1.0, %v6259_v11  ;;  %v6251_v42 = vsel %vm6250_vm12, %v9585_v35, %v6247_v36 }
 0x6e4   : > { %v6256_v26 = vsel %vm6253_vm13, %v6255_v29, %v6251_v42 }
 0x6e5   : > { %v6261_v25 = vmul.f32 %v9587_v4, %v6260_v1  ;;  %v6281_v62 = vmul.f32 %v9589_v5, %v6256_v26 }
 0x6e7   : > { %v6262_v33 = vadd.f32 %v9587_v4, %v6261_v25  ;;  %6286 = vst [vmem:[#allocation13 + $0x30] sm:$0xff] %v6281_v62 }
 0x6e8   : > { %6288 = vst [vmem:[%s10223_s25] sm:$0xff] %v6281_v62 }
 0x6e9   : > { %v6266_v44 = vsel %vm6265_vm0, %v9587_v4, %v6262_v33 }
 0x6ea   : > { %v6271_v34 = vsel %vm6268_vm1, %v6270_v2, %v6266_v44 }
 0x6eb   : > { %v6282_v59 = vmul.f32 %v9591_v41, %v6271_v34 }
 0x6ed   : > { %6287 = vst [vmem:[#allocation13 + $0x38] sm:$0xff] %v6282_v59 }
 0x6ee   : > { %6289 = vst [vmem:[%s10223_s25 + $0x8] sm:$0xff] %v6282_v59 }
 0x6ef   : > { %9829 = shalt.err (!%p9826_p3)
}
 0x6f0   : > { %9378 = dma.vmem_to_hbm [thread:$0]  (%p10079_p7), %s6326_s15, 256, %s6328_s29, %s12203_s24  }
 0x6f1   : > { %s9945_s19 = smov 256   ;;  %s9946_s28 = smov 16  }
 0x6f2   : > { %p13070_p13 = scmp.eq.s32.totalorder %s10026_s21, 9  ;;  %s9872_s13 = sshra.s32 %s12199_s9, 4  ;;  %s9873_s13 = int_to_ptr.hbm [resolvable:$true] %s9872_s13 }
 0x6f3   : > { %s9874_s0 = scalar_lea.hbm %s9873_s13, 16  ;;  %s9878_s1 = scalar_lea.hbm %s13067_s16, 160 }
 0x6f4   : > { %9377 = dma.vmem_to_hbm [thread:$0]  (%p13070_p13), %s6308_s22, 1024, %s6310_s23, [#allocation5], %s9945_s19, %s9945_s19, %s9946_s28  }
 0x6f5   : > { %p9875_p5 = scmp.ne.s32.totalorder %s9873_s13, %s9874_s0  ;;  %p9879_p9 = scmp.lt.s32.totalorder %s9873_s13, %s13067_s16 }
 0x6f6   : > { %p9880_p4 = scmp.lt.s32.totalorder %s9878_s1, %s9874_s0 }
 0x6f7   : > { %p9876_p1 = pnand %p9875_p5, %p10079_p7 }
 0x6f8   : > { %p9881_p10 = por %p9880_p4, %p9879_p9 }
 0x6f9   : > { %p9877_p2 = pneg %p9876_p1 }
 0x6fb   : > { %p9882_p8 = pnand %p9881_p10, %p9877_p2 }
 0x6fd   : > { %9885 = shalt.err (!%p9882_p8)
}
 0x6fe   : > { %9379 = dma.vmem_to_hbm [thread:$0]  (%p10079_p7), %s12197_s14, 256, %s12199_s9, %s12203_s24  }
 0x6ff   : > { %p13071_p11 = pmov %p13070_p13 }
 0x701   : > { %9915 = dma.done.wait (%p13071_p11), [#allocation5], 1024   ;;  %p13072_p12 = pmov %p13071_p11 }
 0x703   : > { %9917 = vsyncadd (%p13072_p12), [#allocation5], 4294966272 }
 0x704 PF: > { %p9421_p0 = scmp.ge.s32.totalorder %s9936_s20, 2  ;;  %s13074_s29 = sadd.s32 4294967294, %s9936_s20  }
 0x705   : > { %s6359_s22 = sand.u32 1, %s13074_s29  }
 0x706   : > { %p9408_p3 = pnand %p9421_p0, %p10041_p6  ;;  %s6360_s23 = scalar_lea.sflag [#allocation15], %s6359_s22 }
 0x708   : > { %p9409_p13 = pneg %p9408_p3 }
 0x70a   : > { %9919 = dma.done.wait (%p9409_p13), %s6360_s23, 512  }
 0x70b   : > { %9921 = vsyncadd (%p9409_p13), %s6360_s23, 4294966784  ;;  %s13075_s20 = sld [smem:[#allocation24_spill]]  ;;  %s13078_s17 = smov %s9928_s18 }
 0x70c   : > { %s13076_s9 = sld [smem:[#allocation22_spill]] }
 0x70d   : > { %s13077_s19 = sld [smem:[#allocation25_spill]] }
 0x711   : > { %p25_p7 = scmp.ge.s32.totalorder %s13075_s20, 12  }
 0x712   : > { %s13079_s18 = smov %s13076_s9 }
 0x713   :  { %27 = sbr.rel (!%p25_p7) target bundleno = 14 (0xe), region = 188 }
 0x718   :  { %6376 = vsyncpa [#allocation4], 1 }
 0x719   :  { %6378 = vsyncpa [#allocation4 + $0x1], 1 }
 0x71a   :  { %6379 = vsyncpa [#allocation7], 1 }
 0x71b   :  { %6380 = vsyncpa [#allocation5], 1 }
 0x71c   :  { %6382 = vsyncpa [#allocation5 + $0x1], 1 }
 0x71d   :  { %6383 = vsyncpa [#allocation15], 1 }
 0x71e   :  { %6385 = vsyncpa [#allocation15 + $0x1], 1 }

</bundles_post_ra>
